<compile_context>
chip_gen: v6e
topology: v6e:2x2x1
jax: 0.10.0
libtpu: 0.0.40
codegen_flags: <defaults>
</compile_context>

<pallas_src>
import jax
import jax.numpy as jnp
from jax import lax
from jax.experimental import pallas as pl
from jax.experimental.pallas import tpu as pltpu


# ----------------------------------------------------------------------------
# Fused forward kernel: one grid step == one block of B images
# ----------------------------------------------------------------------------
def _mnist_kernel(x_ref, band1_ref, b1_ref, band2_ref, b2_ref,
                  w3_ref, b3_ref, w4_ref, b4_ref, o_ref, c1_ref):
    # x_ref:     (1, H, B, W)            input block, rows=(h,b), lanes=w
    # band1_ref: (3, W, W1*C1)           banded conv1 weights (per kh)
    # b1_ref:    (1, W1*C1)
    # band2_ref: (3, W1*C1, W2*C2)       banded conv2 weights (per kh)
    # b2_ref:    (1, W2*C2)
    # w3_ref:    (Hp, (2*Wp-1)*C2, F)    fc1, zero rows at the pooling-garbage lanes
    # b3_ref:    (1, F)
    # w4_ref:    (F, KP)                 fc2, zero-padded to KP (128) columns
    # b4_ref:    (1, KP)
    # o_ref:     (B, KP)                 logits block
    # c1_ref:    (H1*B, W1*C1)           conv1 output scratch (VMEM)
    _, H, B, W = x_ref.shape
    H1, W1 = H - 2, W - 2
    H2, W2 = H - 4, W - 4
    Hp = H2 // 2
    LC1 = band1_ref.shape[2]           # W1 * C1
    LC2 = band2_ref.shape[2]           # W2 * C2
    C2 = LC2 // W2

    x3 = x_ref[0]                      # (H, B, W)

    # ---- conv1 + ReLU: 3 lane-dense banded matmuls (batch folded into M) ----
    acc1 = b1_ref[...]
    for kh in range(3):
        xh = x3[kh:kh + H1].reshape(H1 * B, W)          # free reshape (B % 8 == 0)
        acc1 = acc1 + jnp.dot(xh, band1_ref[kh],
                              preferred_element_type=jnp.float32)
    c1_ref[...] = jnp.maximum(acc1, 0.0)                # (H1*B, W1*C1)

    # ---- conv2 + ReLU: 3 banded matmuls, taps = 8-aligned row slices ----
    acc2 = b2_ref[...]
    for kh in range(3):
        a = c1_ref[kh * B:(kh + H2) * B, :]             # (H2*B, W1*C1)
        acc2 = acc2 + jnp.dot(a, band2_ref[kh],
                              preferred_element_type=jnp.float32)
    z = jnp.maximum(acc2, 0.0)                          # (H2*B, W2*C2)

    # ---- fused 2x2 max-pool: row-pair max + 64-lane-shifted max ----
    z4 = z.reshape(Hp, 2, B, LC2)                       # split of major rows: free
    zh = jnp.maximum(z4[:, 0], z4[:, 1])                # (Hp, B, W2*C2)  pool over h
    pooled = jnp.maximum(zh[:, :, :LC2 - C2], zh[:, :, C2:])  # (Hp, B, (2Wp-1)*C2)
    # valid pooled values sit at lane groups 2q*C2; odd groups are garbage and are
    # swallowed by zero rows of w3_ref.

    # ---- dropout1 / dropout2: identity at inference ----
    # ---- fc1 + ReLU: batched over the Hp axis, then summed ----
    part = lax.dot_general(pooled, w3_ref[...],
                           dimension_numbers=(((2,), (1,)), ((0,), (0,))),
                           preferred_element_type=jnp.float32)      # (Hp, B, F)
    h1 = jnp.maximum(jnp.sum(part, axis=0) + b3_ref[...], 0.0)      # (B, F)

    # ---- fc2 (128-lane padded -> one unmasked lane-dense store) ----
    o_ref[...] = (jnp.dot(h1, w4_ref[...], preferred_element_type=jnp.float32)
                  + b4_ref[...])


# ----------------------------------------------------------------------------
# Wrapper: host-side weight re-layout (banded matrices) + single pallas_call
# ----------------------------------------------------------------------------
def mnist_net_forward(x_nchw, params, *, batch_tile=8):
    N, Cin, H, W = x_nchw.shape
    if Cin != 1:
        raise NotImplementedError("fused conv1 path assumes a single input channel")

    C1 = params["conv1_w"].shape[0]          # 32
    C2 = params["conv2_w"].shape[0]          # 64
    F = params["fc1_w"].shape[0]             # 128
    K = params["fc2_w"].shape[0]             # num_classes
    H1, W1 = H - 2, W - 2
    H2, W2 = H - 4, W - 4
    assert H2 % 2 == 0 and W2 % 2 == 0
    Hp, Wp = H2 // 2, W2 // 2
    assert params["fc1_w"].shape[1] == Hp * Wp * C2

    B = batch_tile
    assert B % 8 == 0, "batch tile must be a multiple of the 8-row sublane tile"
    KP = ((K + 127) // 128) * 128            # lane-dense fc2 output width
    f32 = jnp.float32

    # ---- input: NCHW -> blocked (G, H, B, W); pad batch to a multiple of B ----
    G = pl.cdiv(N, B)
    Np = G * B
    x = x_nchw[:, 0].astype(f32)                                  # (N, H, W)
    if Np != N:
        x = jnp.pad(x, ((0, Np - N), (0, 0), (0, 0)))
    xb = x.reshape(G, B, H, W).transpose(0, 2, 1, 3)              # (G, H, B, W)

    # ---- banded conv weights: fold the kw taps into block-banded matrices ----
    w1v = params["conv1_w"][:, 0].transpose(1, 2, 0).astype(f32)  # (3, 3, C1)
    band1 = jnp.stack([
        sum(jnp.einsum("ij,c->ijc", jnp.eye(W, W1, k=-kw, dtype=f32), w1v[kh, kw])
            for kw in range(3)).reshape(W, W1 * C1)
        for kh in range(3)])                                      # (3, W, W1*C1)
    b1t = jnp.tile(params["conv1_b"].astype(f32), W1)[None, :]    # (1, W1*C1)

    w2v = params["conv2_w"].transpose(2, 3, 1, 0).astype(f32)     # (3, 3, C1, C2)
    band2 = jnp.stack([
        sum(jnp.einsum("ij,cd->icjd", jnp.eye(W1, W2, k=-kw, dtype=f32), w2v[kh, kw])
            for kw in range(3)).reshape(W1 * C1, W2 * C2)
        for kh in range(3)])                                      # (3, W1*C1, W2*C2)
    b2t = jnp.tile(params["conv2_b"].astype(f32), W2)[None, :]    # (1, W2*C2)

    # fc1: torch flatten order is (c, h, w); valid pooled lanes are groups 2q*C2,
    # garbage groups get zero weight rows (no in-kernel activation relayout).
    w3r = (params["fc1_w"].reshape(F, C2, Hp, Wp)
           .transpose(2, 3, 1, 0).astype(f32))                    # (Hp, Wp, C2, F)
    w3band = jnp.zeros((Hp, 2 * Wp - 1, C2, F), f32)
    for q in range(Wp):
        w3band = w3band.at[:, 2 * q].set(w3r[:, q])
    w3band = w3band.reshape(Hp, (2 * Wp - 1) * C2, F)             # (Hp, 704, F)
    b3 = params["fc1_b"].reshape(1, F).astype(f32)

    w4p = jnp.zeros((F, KP), f32).at[:, :K].set(params["fc2_w"].T.astype(f32))
    b4p = jnp.zeros((1, KP), f32).at[0, :K].set(params["fc2_b"].astype(f32))

    LC1, LC2, LP = W1 * C1, W2 * C2, (2 * Wp - 1) * C2

    out = pl.pallas_call(
        _mnist_kernel,
        out_shape=jax.ShapeDtypeStruct((Np, KP), f32),
        grid=(G,),
        in_specs=[
            pl.BlockSpec((1, H, B, W), lambda g: (g, 0, 0, 0)),
            pl.BlockSpec((3, W, LC1), lambda g: (0, 0, 0)),
            pl.BlockSpec((1, LC1), lambda g: (0, 0)),
            pl.BlockSpec((3, LC1, LC2), lambda g: (0, 0, 0)),
            pl.BlockSpec((1, LC2), lambda g: (0, 0)),
            pl.BlockSpec((Hp, LP, F), lambda g: (0, 0, 0)),
            pl.BlockSpec((1, F), lambda g: (0, 0)),
            pl.BlockSpec((F, KP), lambda g: (0, 0)),
            pl.BlockSpec((1, KP), lambda g: (0, 0)),
        ],
        out_specs=pl.BlockSpec((B, KP), lambda g: (g, 0)),
        scratch_shapes=[pltpu.VMEM((H1 * B, LC1), f32)],          # conv1 output
        compiler_params=pltpu.CompilerParams(
            dimension_semantics=("parallel",),                    # batch blocks
            vmem_limit_bytes=48 * 1024 * 1024),
    )(xb, band1, b1t, band2, b2t, w3band, b3, w4p, b4p)

    return out[:N, :K]


# ----------------------------------------------------------------------------
# Pure-JAX reference for verification
# ----------------------------------------------------------------------------
def ref_forward(x_nchw, p):
    dn = ("NCHW", "OIHW", "NCHW")
    y = lax.conv_general_dilated(x_nchw, p["conv1_w"], (1, 1), "VALID",
                                 dimension_numbers=dn)
    y = jnp.maximum(y + p["conv1_b"][None, :, None, None], 0.0)
    y = lax.conv_general_dilated(y, p["conv2_w"], (1, 1), "VALID",
                                 dimension_numbers=dn)
    y = jnp.maximum(y + p["conv2_b"][None, :, None, None], 0.0)
    y = lax.reduce_window(y, -jnp.inf, lax.max, (1, 1, 2, 2), (1, 1, 2, 2), "VALID")
    y = y.reshape(y.shape[0], -1)
    y = jnp.maximum(y @ p["fc1_w"].T + p["fc1_b"], 0.0)
    return y @ p["fc2_w"].T + p["fc2_b"]


if __name__ == "__main__":
    # MNISTNet(input_shape=(1, 16, 16), num_classes=10, n_layers=2)
    # dim_out = (int(((16 - 4) - 2) / 2) + 1) ** 2 * 64 = 36 * 64 = 2304
    N, Cin, S, num_classes = 12, 1, 16, 10        # N=12 -> 2 grid steps of 8 (padded)
    dim_out = (int(((S - 4) - 2) / 2) + 1) ** 2 * 64

    key = jax.random.PRNGKey(0)
    ks = jax.random.split(key, 9)
    params = {
        "conv1_w": 0.05 * jax.random.normal(ks[0], (32, Cin, 3, 3), jnp.float32),
        "conv1_b": 0.05 * jax.random.normal(ks[1], (32,), jnp.float32),
        "conv2_w": 0.05 * jax.random.normal(ks[2], (64, 32, 3, 3), jnp.float32),
        "conv2_b": 0.05 * jax.random.normal(ks[3], (64,), jnp.float32),
        "fc1_w": 0.02 * jax.random.normal(ks[4], (128, dim_out), jnp.float32),
        "fc1_b": 0.02 * jax.random.normal(ks[5], (128,), jnp.float32),
        "fc2_w": 0.05 * jax.random.normal(ks[6], (num_classes, 128), jnp.float32),
        "fc2_b": 0.05 * jax.random.normal(ks[7], (num_classes,), jnp.float32),
    }
    x = jax.random.normal(ks[8], (N, Cin, S, S), jnp.float32)

    fwd = jax.jit(mnist_net_forward)
    out = jax.block_until_ready(fwd(x, params))
    ref = jax.block_until_ready(ref_forward(x, params))

    assert out.shape == (N, num_classes), out.shape
    assert jnp.allclose(out, ref, rtol=1e-3, atol=1e-4), (
        f"max abs diff {jnp.max(jnp.abs(out - ref))}")
    print("KERNEL_OK")
</pallas_src>

<mosaic_0001>
module attributes {stable_mosaic.version = 11 : i64} {
  func.func @_mnist_kernel(%arg0: i32, %arg1: memref<1x16x8x16xf32, #tpu.memory_space<vmem>>, %arg2: memref<3x16x448xf32, #tpu.memory_space<vmem>>, %arg3: memref<1x448xf32, #tpu.memory_space<vmem>>, %arg4: memref<3x448x768xf32, #tpu.memory_space<vmem>>, %arg5: memref<1x768xf32, #tpu.memory_space<vmem>>, %arg6: memref<6x704x128xf32, #tpu.memory_space<vmem>>, %arg7: memref<1x128xf32, #tpu.memory_space<vmem>>, %arg8: memref<128x128xf32, #tpu.memory_space<vmem>>, %arg9: memref<1x128xf32, #tpu.memory_space<vmem>>, %arg10: memref<8x128xf32, #tpu.memory_space<vmem>>, %arg11: memref<112x448xf32, #tpu.memory_space<vmem>>) attributes {dimension_semantics = [#tpu.dimension_semantics<parallel>], iteration_bounds = array<i64: 2>, scalar_prefetch = 0 : i64, scratch_operands = 1 : i64, tpu.core_type = #tpu.core_type<tc>, window_params = [{transform_indices = @transform_0, window_bounds = array<i64: 1, 16, 8, 16>}, {pipeline_mode = #tpu.pipeline_mode<synchronous>, transform_indices = @transform_1, window_bounds = array<i64: 3, 16, 448>}, {pipeline_mode = #tpu.pipeline_mode<synchronous>, transform_indices = @transform_2, window_bounds = array<i64: 1, 448>}, {pipeline_mode = #tpu.pipeline_mode<synchronous>, transform_indices = @transform_3, window_bounds = array<i64: 3, 448, 768>}, {pipeline_mode = #tpu.pipeline_mode<synchronous>, transform_indices = @transform_4, window_bounds = array<i64: 1, 768>}, {pipeline_mode = #tpu.pipeline_mode<synchronous>, transform_indices = @transform_5, window_bounds = array<i64: 6, 704, 128>}, {pipeline_mode = #tpu.pipeline_mode<synchronous>, transform_indices = @transform_6, window_bounds = array<i64: 1, 128>}, {pipeline_mode = #tpu.pipeline_mode<synchronous>, transform_indices = @transform_7, window_bounds = array<i64: 128, 128>}, {pipeline_mode = #tpu.pipeline_mode<synchronous>, transform_indices = @transform_8, window_bounds = array<i64: 1, 128>}, {transform_indices = @transform_9, window_bounds = array<i64: 8, 128>}]} {
    %c0 = arith.constant 0 : index
    %c0_0 = arith.constant 0 : index
    %c0_1 = arith.constant 0 : index
    %c0_2 = arith.constant 0 : index
    %0 = vector.load %arg1[%c0, %c0_0, %c0_1, %c0_2] : memref<1x16x8x16xf32, #tpu.memory_space<vmem>>, vector<1x16x8x16xf32>
    %1 = vector.shape_cast %0 : vector<1x16x8x16xf32> to vector<16x8x16xf32>
    %c0_3 = arith.constant 0 : index
    %c0_4 = arith.constant 0 : index
    %2 = vector.load %arg3[%c0_3, %c0_4] : memref<1x448xf32, #tpu.memory_space<vmem>>, vector<1x448xf32>
    %3 = vector.extract_strided_slice %1 {offsets = [0, 0, 0], sizes = [14, 8, 16], strides = [1, 1, 1]} : vector<16x8x16xf32> to vector<14x8x16xf32>
    %4 = vector.shape_cast %3 : vector<14x8x16xf32> to vector<112x16xf32>
    %c0_5 = arith.constant 0 : index
    %c0_6 = arith.constant 0 : index
    %c0_7 = arith.constant 0 : index
    %5 = vector.load %arg2[%c0_5, %c0_6, %c0_7] : memref<3x16x448xf32, #tpu.memory_space<vmem>>, vector<1x16x448xf32>
    %6 = vector.shape_cast %5 : vector<1x16x448xf32> to vector<16x448xf32>
    %cst = arith.constant dense<0.000000e+00> : vector<112x448xf32>
    %7 = tpu.matmul %4, %6, %cst {dimension_numbers = #tpu.dot_dimension_numbers<[1], [0], [0], [1], [0, 0, 1, 1], [], []>} : vector<112x16xf32>, vector<16x448xf32>, vector<112x448xf32> -> vector<112x448xf32>
    %8 = vector.broadcast %2 : vector<1x448xf32> to vector<112x448xf32>
    %9 = arith.addf %8, %7 : vector<112x448xf32>
    %10 = vector.extract_strided_slice %1 {offsets = [1, 0, 0], sizes = [14, 8, 16], strides = [1, 1, 1]} : vector<16x8x16xf32> to vector<14x8x16xf32>
    %11 = vector.shape_cast %10 : vector<14x8x16xf32> to vector<112x16xf32>
    %c1 = arith.constant 1 : index
    %c0_8 = arith.constant 0 : index
    %c0_9 = arith.constant 0 : index
    %12 = vector.load %arg2[%c1, %c0_8, %c0_9] : memref<3x16x448xf32, #tpu.memory_space<vmem>>, vector<1x16x448xf32>
    %13 = vector.shape_cast %12 : vector<1x16x448xf32> to vector<16x448xf32>
    %cst_10 = arith.constant dense<0.000000e+00> : vector<112x448xf32>
    %14 = tpu.matmul %11, %13, %cst_10 {dimension_numbers = #tpu.dot_dimension_numbers<[1], [0], [0], [1], [0, 0, 1, 1], [], []>} : vector<112x16xf32>, vector<16x448xf32>, vector<112x448xf32> -> vector<112x448xf32>
    %15 = arith.addf %9, %14 : vector<112x448xf32>
    %16 = vector.extract_strided_slice %1 {offsets = [2, 0, 0], sizes = [14, 8, 16], strides = [1, 1, 1]} : vector<16x8x16xf32> to vector<14x8x16xf32>
    %17 = vector.shape_cast %16 : vector<14x8x16xf32> to vector<112x16xf32>
    %c2 = arith.constant 2 : index
    %c0_11 = arith.constant 0 : index
    %c0_12 = arith.constant 0 : index
    %18 = vector.load %arg2[%c2, %c0_11, %c0_12] : memref<3x16x448xf32, #tpu.memory_space<vmem>>, vector<1x16x448xf32>
    %19 = vector.shape_cast %18 : vector<1x16x448xf32> to vector<16x448xf32>
    %cst_13 = arith.constant dense<0.000000e+00> : vector<112x448xf32>
    %20 = tpu.matmul %17, %19, %cst_13 {dimension_numbers = #tpu.dot_dimension_numbers<[1], [0], [0], [1], [0, 0, 1, 1], [], []>} : vector<112x16xf32>, vector<16x448xf32>, vector<112x448xf32> -> vector<112x448xf32>
    %21 = arith.addf %15, %20 : vector<112x448xf32>
    %cst_14 = arith.constant 0.000000e+00 : f32
    %22 = vector.broadcast %cst_14 : f32 to vector<112x448xf32>
    %23 = arith.maximumf %21, %22 : vector<112x448xf32>
    %c0_15 = arith.constant 0 : index
    %c0_16 = arith.constant 0 : index
    %24 = vector.load %arg11[%c0_15, %c0_16] : memref<112x448xf32, #tpu.memory_space<vmem>>, vector<112x448xf32>
    tpu.vector_store %arg11[%c0_15, %c0_16], %23 {strides = array<i32>} : memref<112x448xf32, #tpu.memory_space<vmem>>, vector<112x448xf32>,
    %c0_17 = arith.constant 0 : index
    %c0_18 = arith.constant 0 : index
    %25 = vector.load %arg5[%c0_17, %c0_18] : memref<1x768xf32, #tpu.memory_space<vmem>>, vector<1x768xf32>
    %c0_19 = arith.constant 0 : index
    %c0_20 = arith.constant 0 : index
    %26 = vector.load %arg11[%c0_19, %c0_20] : memref<112x448xf32, #tpu.memory_space<vmem>>, vector<96x448xf32>
    %c0_21 = arith.constant 0 : index
    %c0_22 = arith.constant 0 : index
    %c0_23 = arith.constant 0 : index
    %27 = vector.load %arg4[%c0_21, %c0_22, %c0_23] : memref<3x448x768xf32, #tpu.memory_space<vmem>>, vector<1x448x768xf32>
    %28 = vector.shape_cast %27 : vector<1x448x768xf32> to vector<448x768xf32>
    %cst_24 = arith.constant dense<0.000000e+00> : vector<96x768xf32>
    %29 = tpu.matmul %26, %28, %cst_24 {dimension_numbers = #tpu.dot_dimension_numbers<[1], [0], [0], [1], [0, 0, 1, 1], [], []>} : vector<96x448xf32>, vector<448x768xf32>, vector<96x768xf32> -> vector<96x768xf32>
    %30 = vector.broadcast %25 : vector<1x768xf32> to vector<96x768xf32>
    %31 = arith.addf %30, %29 : vector<96x768xf32>
    %c8 = arith.constant 8 : index
    %c0_25 = arith.constant 0 : index
    %32 = vector.load %arg11[%c8, %c0_25] : memref<112x448xf32, #tpu.memory_space<vmem>>, vector<96x448xf32>
    %c1_26 = arith.constant 1 : index
    %c0_27 = arith.constant 0 : index
    %c0_28 = arith.constant 0 : index
    %33 = vector.load %arg4[%c1_26, %c0_27, %c0_28] : memref<3x448x768xf32, #tpu.memory_space<vmem>>, vector<1x448x768xf32>
    %34 = vector.shape_cast %33 : vector<1x448x768xf32> to vector<448x768xf32>
    %cst_29 = arith.constant dense<0.000000e+00> : vector<96x768xf32>
    %35 = tpu.matmul %32, %34, %cst_29 {dimension_numbers = #tpu.dot_dimension_numbers<[1], [0], [0], [1], [0, 0, 1, 1], [], []>} : vector<96x448xf32>, vector<448x768xf32>, vector<96x768xf32> -> vector<96x768xf32>
    %36 = arith.addf %31, %35 : vector<96x768xf32>
    %c16 = arith.constant 16 : index
    %c0_30 = arith.constant 0 : index
    %37 = vector.load %arg11[%c16, %c0_30] : memref<112x448xf32, #tpu.memory_space<vmem>>, vector<96x448xf32>
    %c2_31 = arith.constant 2 : index
    %c0_32 = arith.constant 0 : index
    %c0_33 = arith.constant 0 : index
    %38 = vector.load %arg4[%c2_31, %c0_32, %c0_33] : memref<3x448x768xf32, #tpu.memory_space<vmem>>, vector<1x448x768xf32>
    %39 = vector.shape_cast %38 : vector<1x448x768xf32> to vector<448x768xf32>
    %cst_34 = arith.constant dense<0.000000e+00> : vector<96x768xf32>
    %40 = tpu.matmul %37, %39, %cst_34 {dimension_numbers = #tpu.dot_dimension_numbers<[1], [0], [0], [1], [0, 0, 1, 1], [], []>} : vector<96x448xf32>, vector<448x768xf32>, vector<96x768xf32> -> vector<96x768xf32>
    %41 = arith.addf %36, %40 : vector<96x768xf32>
    %cst_35 = arith.constant 0.000000e+00 : f32
    %42 = vector.broadcast %cst_35 : f32 to vector<96x768xf32>
    %43 = arith.maximumf %41, %42 : vector<96x768xf32>
    %44 = vector.shape_cast %43 : vector<96x768xf32> to vector<6x2x8x768xf32>
    %45 = vector.extract_strided_slice %44 {offsets = [0, 0, 0, 0], sizes = [6, 1, 8, 768], strides = [1, 1, 1, 1]} : vector<6x2x8x768xf32> to vector<6x1x8x768xf32>
    %46 = vector.shape_cast %45 : vector<6x1x8x768xf32> to vector<6x8x768xf32>
    %47 = vector.extract_strided_slice %44 {offsets = [0, 1, 0, 0], sizes = [6, 1, 8, 768], strides = [1, 1, 1, 1]} : vector<6x2x8x768xf32> to vector<6x1x8x768xf32>
    %48 = vector.shape_cast %47 : vector<6x1x8x768xf32> to vector<6x8x768xf32>
    %49 = arith.maximumf %46, %48 : vector<6x8x768xf32>
    %50 = vector.extract_strided_slice %49 {offsets = [0, 0, 0], sizes = [6, 8, 704], strides = [1, 1, 1]} : vector<6x8x768xf32> to vector<6x8x704xf32>
    %51 = vector.extract_strided_slice %49 {offsets = [0, 0, 64], sizes = [6, 8, 704], strides = [1, 1, 1]} : vector<6x8x768xf32> to vector<6x8x704xf32>
    %52 = arith.maximumf %50, %51 : vector<6x8x704xf32>
    %c0_36 = arith.constant 0 : index
    %c0_37 = arith.constant 0 : index
    %c0_38 = arith.constant 0 : index
    %53 = vector.load %arg6[%c0_36, %c0_37, %c0_38] : memref<6x704x128xf32, #tpu.memory_space<vmem>>, vector<6x704x128xf32>
    %cst_39 = arith.constant dense<0.000000e+00> : vector<6x8x128xf32>
    %54 = tpu.matmul %52, %53, %cst_39 {dimension_numbers = #tpu.dot_dimension_numbers<[2], [1], [1], [2], [0, 0, 0, 1, 1, 2], [0], [0]>} : vector<6x8x704xf32>, vector<6x704x128xf32>, vector<6x8x128xf32> -> vector<6x8x128xf32>
    %cst_40 = arith.constant dense<0.000000e+00> : vector<8x128xf32>
    %55 = vector.multi_reduction <add>, %54, %cst_40 [0] : vector<6x8x128xf32> to vector<8x128xf32>
    %c0_41 = arith.constant 0 : index
    %c0_42 = arith.constant 0 : index
    %56 = vector.load %arg7[%c0_41, %c0_42] : memref<1x128xf32, #tpu.memory_space<vmem>>, vector<1x128xf32>
    %57 = vector.broadcast %56 : vector<1x128xf32> to vector<8x128xf32>
    %58 = arith.addf %55, %57 : vector<8x128xf32>
    %cst_43 = arith.constant 0.000000e+00 : f32
    %59 = vector.broadcast %cst_43 : f32 to vector<8x128xf32>
    %60 = arith.maximumf %58, %59 : vector<8x128xf32>
    %c0_44 = arith.constant 0 : index
    %c0_45 = arith.constant 0 : index
    %61 = vector.load %arg8[%c0_44, %c0_45] : memref<128x128xf32, #tpu.memory_space<vmem>>, vector<128x128xf32>
    %cst_46 = arith.constant dense<0.000000e+00> : vector<8x128xf32>
    %62 = tpu.matmul %60, %61, %cst_46 {dimension_numbers = #tpu.dot_dimension_numbers<[1], [0], [0], [1], [0, 0, 1, 1], [], []>} : vector<8x128xf32>, vector<128x128xf32>, vector<8x128xf32> -> vector<8x128xf32>
    %c0_47 = arith.constant 0 : index
    %c0_48 = arith.constant 0 : index
    %63 = vector.load %arg9[%c0_47, %c0_48] : memref<1x128xf32, #tpu.memory_space<vmem>>, vector<1x128xf32>
    %64 = vector.broadcast %63 : vector<1x128xf32> to vector<8x128xf32>
    %65 = arith.addf %62, %64 : vector<8x128xf32>
    %c0_49 = arith.constant 0 : index
    %c0_50 = arith.constant 0 : index
    %66 = vector.load %arg10[%c0_49, %c0_50] : memref<8x128xf32, #tpu.memory_space<vmem>>, vector<8x128xf32>
    tpu.vector_store %arg10[%c0_49, %c0_50], %65 {strides = array<i32>} : memref<8x128xf32, #tpu.memory_space<vmem>>, vector<8x128xf32>,
    return
  }
  func.func @transform_0(%arg0: i32) -> (i32, i32, i32, i32) {
    %c0_i32 = arith.constant 0 : i32
    %c0_i32_0 = arith.constant 0 : i32
    %c0_i32_1 = arith.constant 0 : i32
    %c0_i32_2 = arith.constant 0 : i32
    return %arg0, %c0_i32, %c0_i32_0, %c0_i32_1 : i32, i32, i32, i32
  }
  func.func @transform_1(%arg0: i32) -> (i32, i32, i32) {
    %c0_i32 = arith.constant 0 : i32
    %c0_i32_0 = arith.constant 0 : i32
    %c0_i32_1 = arith.constant 0 : i32
    %c0_i32_2 = arith.constant 0 : i32
    return %c0_i32, %c0_i32_0, %c0_i32_1 : i32, i32, i32
  }
  func.func @transform_2(%arg0: i32) -> (i32, i32) {
    %c0_i32 = arith.constant 0 : i32
    %c0_i32_0 = arith.constant 0 : i32
    %c0_i32_1 = arith.constant 0 : i32
    return %c0_i32, %c0_i32_0 : i32, i32
  }
  func.func @transform_3(%arg0: i32) -> (i32, i32, i32) {
    %c0_i32 = arith.constant 0 : i32
    %c0_i32_0 = arith.constant 0 : i32
    %c0_i32_1 = arith.constant 0 : i32
    %c0_i32_2 = arith.constant 0 : i32
    return %c0_i32, %c0_i32_0, %c0_i32_1 : i32, i32, i32
  }
  func.func @transform_4(%arg0: i32) -> (i32, i32) {
    %c0_i32 = arith.constant 0 : i32
    %c0_i32_0 = arith.constant 0 : i32
    %c0_i32_1 = arith.constant 0 : i32
    return %c0_i32, %c0_i32_0 : i32, i32
  }
  func.func @transform_5(%arg0: i32) -> (i32, i32, i32) {
    %c0_i32 = arith.constant 0 : i32
    %c0_i32_0 = arith.constant 0 : i32
    %c0_i32_1 = arith.constant 0 : i32
    %c0_i32_2 = arith.constant 0 : i32
    return %c0_i32, %c0_i32_0, %c0_i32_1 : i32, i32, i32
  }
  func.func @transform_6(%arg0: i32) -> (i32, i32) {
    %c0_i32 = arith.constant 0 : i32
    %c0_i32_0 = arith.constant 0 : i32
    %c0_i32_1 = arith.constant 0 : i32
    return %c0_i32, %c0_i32_0 : i32, i32
  }
  func.func @transform_7(%arg0: i32) -> (i32, i32) {
    %c0_i32 = arith.constant 0 : i32
    %c0_i32_0 = arith.constant 0 : i32
    %c0_i32_1 = arith.constant 0 : i32
    return %c0_i32, %c0_i32_0 : i32, i32
  }
  func.func @transform_8(%arg0: i32) -> (i32, i32) {
    %c0_i32 = arith.constant 0 : i32
    %c0_i32_0 = arith.constant 0 : i32
    %c0_i32_1 = arith.constant 0 : i32
    return %c0_i32, %c0_i32_0 : i32, i32
  }
  func.func @transform_9(%arg0: i32) -> (i32, i32) {
    %c0_i32 = arith.constant 0 : i32
    %c0_i32_0 = arith.constant 0 : i32
    return %arg0, %c0_i32 : i32, i32
  }
}

</mosaic_0001>

<bundles_post_ra>
// kernel: tile.18
= control target key start
LH: loop header
LB: loop body
LE: loop exit
PB: predicated region body
PF: predicated region fallthrough
CT: control target
= control target key end

     0   :  { %s28_s0 = inlined_call_operand.vmem [shape: f32[64], index: 0, kind: input, shape index: {}]   ;;  %s29_s1 = inlined_call_operand.vmem [shape: f32[12,64], index: 1, kind: output, shape index: {}]  }
   0x1   :  { %v4_v0 = vld [vmem:[%s28_s0] ss:$0 sm:$0xff] }
   0x2   :  { %5 = vst [vmem:[%s29_s1] sm:$0xff] %v4_v0  ;;  %8 = vst [vmem:[%s29_s1 + $0x8] sm:$0xff] %v4_v0 }

// kernel: tile.19
= control target key start
LH: loop header
LB: loop body
LE: loop exit
PB: predicated region body
PF: predicated region fallthrough
CT: control target
= control target key end

     0   :  { %vm3_vm0 = vcmask 523264   ;;  %s66_s8 = smov 64   ;;  %vm10_vm1 = vcmask 1048064   ;;  %s101_s0 = inlined_call_operand.vmem [shape: f32[12,64], index: 0, kind: input, shape index: {}]   ;;  %s102_s1 = inlined_call_operand.vmem [shape: f32[1,768], index: 1, kind: output, shape index: {}]  }
   0x1   :  { %v59_v0 = vld [vmem:[%s101_s0 + $0x1] ss:$2 sm:$0x3f]   ;;  %v2_v1 = vld [vmem:[%s101_s0] ss:$2 sm:$0x3f]  }
   0x2   :  { %8 = vrot.lane.b32.xlu0 %v59_v0, %s66_s8  ;;  %4 = vst.msk [vmem:[#allocation0] ss:$8 sm:$0xf] %vm3_vm0, %v2_v1   ;;  %5 = vst.msk [vmem:[#allocation0] ss:$8 sm:$0x30] %vm3_vm0, %v2_v1  }
  0x74   :  { %v9_v2 = vpop.permute.xlu0 %8  }
  0x75   :  { %11 = vst.msk [vmem:[#allocation0] ss:$8 sm:$0xf] %vm10_vm1, %v9_v2   ;;  %12 = vst.msk [vmem:[#allocation0] ss:$8 sm:$0x30] %vm10_vm1, %v9_v2  }
  0x7c   :  { %v17_v3 = vld [vmem:[#allocation0] sm:$0x1]  ;;  %v22_v4 = vld [vmem:[#allocation0 + $0x8] sm:$0x1]  ;;  %v28_v5 = vld [vmem:[#allocation0 + $0x10] sm:$0x1] }
  0x7d   :  { %20 = vst [vmem:[%s102_s1] sm:$0x1] %v17_v3  ;;  %60 = vst [vmem:[%s102_s1 + $0x1] sm:$0x1] %v22_v4  ;;  %v35_v6 = vld [vmem:[#allocation0 + $0x18] sm:$0x1] }
  0x7e   :  { %61 = vst [vmem:[%s102_s1 + $0x2] sm:$0x1] %v28_v5  ;;  %v42_v7 = vld [vmem:[#allocation0 + $0x20] sm:$0x1]  ;;  %v49_v8 = vld [vmem:[#allocation0 + $0x28] sm:$0x1] }
  0x7f   :  { %62 = vst [vmem:[%s102_s1 + $0x3] sm:$0x1] %v35_v6  ;;  %63 = vst [vmem:[%s102_s1 + $0x4] sm:$0x1] %v42_v7 }
  0x80   :  { %64 = vst [vmem:[%s102_s1 + $0x5] sm:$0x1] %v49_v8 }

// kernel: tile.13
= control target key start
LH: loop header
LB: loop body
LE: loop exit
PB: predicated region body
PF: predicated region fallthrough
CT: control target
= control target key end

     0   :  { %s28_s0 = inlined_call_operand.vmem [shape: f32[32], index: 0, kind: input, shape index: {}]   ;;  %s29_s1 = inlined_call_operand.vmem [shape: f32[14,32], index: 1, kind: output, shape index: {}]  }
   0x1   :  { %v4_v0 = vld [vmem:[%s28_s0] ss:$0 sm:$0xff] }
   0x2   :  { %5 = vst [vmem:[%s29_s1] sm:$0xff] %v4_v0  ;;  %8 = vst [vmem:[%s29_s1 + $0x8] sm:$0xff] %v4_v0 }

// kernel: tile.14
= control target key start
LH: loop header
LB: loop body
LE: loop exit
PB: predicated region body
PF: predicated region fallthrough
CT: control target
= control target key end

     0   :  { %s62_s8 = smov 96   ;;  %vm3_vm0 = vcmask 261120   ;;  %s64_s15 = smov 64   ;;  %vm9_vm1 = vcmask 1048320   ;;  %vm15_vm2 = vcmask 785920   ;;  %vm21_vm3 = vcmask 523520   ;;  %s99_s0 = inlined_call_operand.vmem [shape: f32[14,32], index: 0, kind: input, shape index: {}]   ;;  %s100_s1 = inlined_call_operand.vmem [shape: f32[1,448], index: 1, kind: output, shape index: {}]  }
   0x1   :  { %v53_v0 = vld [vmem:[%s99_s0 + $0x3] ss:$4 sm:$0x7]   ;;  %v54_v1 = vld [vmem:[%s99_s0 + $0x2] ss:$4 sm:$0x7]  }
   0x2   :  { %7 = vrot.lane.b32.xlu0 %v53_v0, %s62_s8  ;;  %v55_v2 = vld [vmem:[%s99_s0 + $0x1] ss:$4 sm:$0xf]   ;;  %v2_v3 = vld [vmem:[%s99_s0] ss:$4 sm:$0xf]  }
   0x3   :  { %s63_s0 = smov 32   ;;  %4 = vst.msk [vmem:[#allocation0] ss:$8 sm:$0xf] %vm3_vm0, %v2_v3  }
   0x4   :  { %19 = vrot.lane.b32.xlu1 %v55_v2, %s63_s0 }
   0x6   :  { %13 = vrot.lane.b32.xlu0 %v54_v1, %s64_s15 }
  0x74   :  { %v8_v4 = vpop.permute.xlu0 %7  }
  0x75   :  { %10 = vst.msk [vmem:[#allocation0] ss:$8 sm:$0x7] %vm9_vm1, %v8_v4  }
  0x76   :  { %v20_v5 = vpop.permute.xlu1 %19  }
  0x78   :  { %v14_v6 = vpop.permute.xlu0 %13  }
  0x79   :  { %16 = vst.msk [vmem:[#allocation0] ss:$8 sm:$0x7] %vm15_vm2, %v14_v6  }
  0x7a   :  { %22 = vst.msk [vmem:[#allocation0] ss:$8 sm:$0xf] %vm21_vm3, %v20_v5  }
  0x81   :  { %v27_v7 = vld [vmem:[#allocation0] sm:$0x1]  ;;  %v32_v8 = vld [vmem:[#allocation0 + $0x8] sm:$0x1]  ;;  %v38_v9 = vld [vmem:[#allocation0 + $0x10] sm:$0x1] }
  0x82   :  { %30 = vst [vmem:[%s100_s1] sm:$0x1] %v27_v7  ;;  %56 = vst [vmem:[%s100_s1 + $0x1] sm:$0x1] %v32_v8  ;;  %v45_v10 = vld [vmem:[#allocation0 + $0x18] sm:$0x1] }
  0x83   :  { %57 = vst [vmem:[%s100_s1 + $0x2] sm:$0x1] %v38_v9  ;;  %58 = vst [vmem:[%s100_s1 + $0x3] sm:$0x1] %v45_v10 }

// kernel: mnist_net_forward.1
= control target key start
LH: loop header
LB: loop body
LE: loop exit
PB: predicated region body
PF: predicated region fallthrough
CT: control target
= control target key end

     0   :  { %14 = vsyncpa [#allocation4], 0  ;;  %s17659_s0 = inlined_call_operand.vmem [shape: f32[2,16,8,16], index: 0, kind: input, shape index: {}]   ;;  %s17660_s1 = inlined_call_operand.vmem [shape: f32[3,16,448], index: 1, kind: input, shape index: {}]   ;;  %s17661_s2 = inlined_call_operand.vmem [shape: f32[1,448], index: 2, kind: input, shape index: {}]   ;;  %s17662_s3 = inlined_call_operand.vmem [shape: f32[3,448,768], index: 3, kind: input, shape index: {}]   ;;  %s17663_s4 = inlined_call_operand.vmem [shape: f32[1,768], index: 4, kind: input, shape index: {}]   ;;  %s17664_s5 = inlined_call_operand.vmem [shape: f32[6,704,128], index: 5, kind: input, shape index: {}]   ;;  %s17665_s6 = inlined_call_operand.vmem [shape: f32[1,128], index: 6, kind: input, shape index: {}]   ;;  %s17666_s7 = inlined_call_operand.vmem [shape: f32[128,128], index: 7, kind: input, shape index: {}]   ;;  %s17667_s8 = inlined_call_operand.vmem [shape: f32[1,128], index: 8, kind: input, shape index: {}]   ;;  %s17668_s9 = inlined_call_operand.hbm [shape: f32[16,128], index: 9, kind: output, shape index: {}]  }
   0x1   :  { %16 = vsyncpa [#allocation4 + $0x1], 0  ;;  %s9638_s30 = smov 0   ;;  %s9640_s10 = smov 0  }
   0x2   :  { %s9642_s11 = smov 0   ;;  %s9644_s12 = smov 0  }
   0x3 LB: > { %s9659_s13 = sadd.s32 4294967295, %s9582_s12   ;;  %s7900_s14 = sadd.s32 4294967294, %s9582_s12   ;;  %s9582_s12 = sphi %s9644_s12, %s18249_s12   ;;  %s9578_s11 = sphi %s9642_s11, %s18248_s11   ;;  %s9574_s10 = sphi %s9640_s10, %s18247_s10   ;;  %s9570_s30 = sphi %s9638_s30, %s18246_s30  }
   0x4   : > { %s9663_s15 = sadd.s32 1, %s9582_s12   ;;  %s223_s16 = sadd.s32 1, %s9578_s11 }
   0x5   : > { %s220_s17 = ssub.s32 %s9582_s12, %s9663_s15  ;;  %p233_p0 = scmp.ne.s32.totalorder %s9578_s11, %s9574_s10 }
   0x6   : > { %p221_p1 = scmp.eq.s32.totalorder %s220_s17, 0  ;;  %p234_p2 = scmp.eq.s32.totalorder %s9659_s13, 1 }
   0x7   : > { %p239_p3 = scmp.ne.s32.totalorder %s9574_s10, %s9570_s30  ;;  %p240_p4 = scmp.eq.s32.totalorder %s7900_s14, 1 }
   0x8   : > { %s9674_s18 = scalar_select %p221_p1, %s9578_s11, %s223_s16  }
   0x9   : > { %p9676_p5 = por %p234_p2, %p233_p0  ;;  %p9680_p6 = por %p240_p4, %p239_p3 }
   0xa   : > { %p7903_p7 = scmp.ge.s32.totalorder %s9582_s12, 1  ;;  %p290_p8 = scmp.lt.s32.totalorder %s9582_s12, 3 }
   0xc   : > { %p291_p9 = pnand %p7903_p7, %p290_p8 }
   0xe   : > { %294 = sbr.rel (%p291_p9) target bundleno = 2029 (0x7ed), region = 56 }
  0x13   : > { %v353_v0 = vld [vmem:[%s17660_s1 + $0x28] sm:$0xff]  ;;  %v352_v1 = vld [vmem:[%s17660_s1 + $0x20] sm:$0xff]  ;;  %p326_p10 = scmp.lt.s32.totalorder %s9659_s13, 1  ;;  %v355_v4 = vld [vmem:[%s17660_s1 + $0x38] sm:$0xff]  ;;  %vm356_vm0 = vcmask 130048   ;;  %v17669_v6 = vmov 0.0  }
  0x14   : > { %v349_v2 = vld [vmem:[%s17660_s1 + $0x8] sm:$0xff]  ;;  %427 = vmatprep.subr.mxu0 %v353_v0  ;;  %9272 = vmatprep.subr.mxu1 %v353_v0  ;;  %v348_v3 = vld [vmem:[%s17660_s1] sm:$0xff]  ;;  %v354_v7 = vld [vmem:[%s17660_s1 + $0x30] sm:$0xff]  ;;  %vm1565_vm1 = vcmask 523264   ;;  %vm9586_vm2 = vmmov 0   ;;  %s323_s23 = sand.u32 1, %s9574_s10  }
  0x15   : > { %428 = vmatpush1.msra.mxu0 %v352_v1  ;;  %9274 = vmatpush1.msra.mxu1 %v352_v1  ;;  %s327_s29 = scalar_select %p326_p10, %s9659_s13, 1  ;;  %v7940_v5 = vld [vmem:[%s17660_s1 + $0x68] sm:$0xff]  ;;  %v351_v10 = vld [vmem:[%s17660_s1 + $0x18] sm:$0xff]  ;;  %v350_v11 = vld [vmem:[%s17660_s1 + $0x10] sm:$0xff] }
  0x16   : > { %429 = vmatprep.subr.mxu0 %v349_v2  ;;  %9273 = vmatprep.subr.mxu1 %v349_v2  ;;  %v7939_v12 = vld [vmem:[%s17660_s1 + $0x60] sm:$0xff]  ;;  %v7942_v14 = vld [vmem:[%s17660_s1 + $0x78] sm:$0xff]  ;;  %v7941_v15 = vld [vmem:[%s17660_s1 + $0x70] sm:$0xff]  ;;  %s8796_s27 = sshll.u32 %s9659_s13, 7  ;;  %s9587_s24 = smov [#allocation3]  }
  0x17   : > { %430 = vmatpush1.msra.mxu0 %v348_v3  ;;  %9275 = vmatpush1.msra.mxu1 %v348_v3  ;;  %s8799_s22 = sshll.u32 %s327_s29, 7  ;;  %v7938_v16 = vld [vmem:[%s17660_s1 + $0x58] sm:$0xff]  ;;  %v7936_v17 = vld [vmem:[%s17660_s1 + $0x48] sm:$0xff]  ;;  %v7937_v19 = vld [vmem:[%s17660_s1 + $0x50] sm:$0xff]  ;;  %s9585_s29 = smov 64  }
  0x18   : > { %463 = vmatprep.mubr.f32.mxu0 %v17669_v6  ;;  %541 = vmatprep.mubr.f32.mxu1 %v17669_v6  ;;  %s9711_s25 = scalar_lea.vmem %s17659_s0, %s8799_s22  ;;  %v7935_v20 = vld [vmem:[%s17660_s1 + $0x40] sm:$0xff]  ;;  %v7976_v21 = vld [vmem:[%s17660_s1 + $0xa8] sm:$0xff]  ;;  %v7978_v22 = vld [vmem:[%s17660_s1 + $0xb8] sm:$0xff]  ;;  %s17624_s21 = scalar_lea.hbm %s17668_s9, %s8796_s27 }
  0x19   : > { %v331_v8 = vld [vmem:[%s9711_s25] sm:$0xff]  ;;  %v9718_v9 = vld [vmem:[%s9711_s25 + $0x68] sm:$0xff]  ;;  %576 = vmatprep.subr.mxu1 %v355_v4  ;;  %814 = vmatprep.subr.mxu0 %v7940_v5  ;;  %v9754_v18 = vld [vmem:[%s9711_s25 + $0x10] sm:$0xff]  ;;  %s7828_s22 = scalar_lea.sflag [#allocation4], %s323_s23  ;;  %s9526_s13 = sshll.u32 %s9587_s24, 4  ;;  %s9527_s13 = int_to_ptr.vmem [resolvable:$false] %s9526_s13 }
  0x1a   : > { %7907 = vmatmul.mubr.msk.f32.vlgmr.msra.gmra.mxu0 %vm356_vm0, %v331_v8  ;;  %7920 = vmatmul.mubr.msk.f32.vlgmr.msra.gmra.mxu1 %vm356_vm0, %v9718_v9  ;;  %v9734_v13 = vld [vmem:[%s9711_s25 + $0x8] sm:$0xff]  ;;  %v9776_v23 = vld [vmem:[%s9711_s25 + $0x18] sm:$0xff]  ;;  %v9785_v24 = vld [vmem:[%s9711_s25 + $0x20] sm:$0xff] }
  0x1b   : > { %577 = vmatpush1.msra.mxu1 %v354_v7  ;;  %469 = vmatprep.mubr.f32.mxu0 %v17669_v6  ;;  %v9794_v25 = vld [vmem:[%s9711_s25 + $0x28] sm:$0xff]  ;;  %v9803_v26 = vld [vmem:[%s9711_s25 + $0x30] sm:$0xff]  ;;  %v9812_v27 = vld [vmem:[%s9711_s25 + $0x38] sm:$0xff] }
  0x1c   : > { %578 = vmatprep.subr.mxu1 %v351_v10  ;;  %612 = vmatprep.mubr.f32.mxu1 %v17669_v6  ;;  %v9821_v28 = vld [vmem:[%s9711_s25 + $0x40] sm:$0xff]  ;;  %v9830_v29 = vld [vmem:[%s9711_s25 + $0x48] sm:$0xff]  ;;  %v9839_v30 = vld [vmem:[%s9711_s25 + $0x50] sm:$0xff] }
  0x1d   : > { %579 = vmatpush1.msra.mxu1 %v350_v11  ;;  %815 = vmatpush1.msra.mxu0 %v7939_v12  ;;  %v9848_v31 = vld [vmem:[%s9711_s25 + $0x58] sm:$0xff]  ;;  %v9857_v32 = vld [vmem:[%s9711_s25 + $0x60] sm:$0xff]  ;;  %v7972_v34 = vld [vmem:[%s17660_s1 + $0x88] sm:$0xff] }
  0x1e   : > { %7908 = vmatmul.mubr.msk.f32.gmra.mxu0 %vm356_vm0, %v9734_v13  ;;  %7921 = vmatmul.mubr.msk.f32.vlgmr.msra.gmra.mxu1 %vm356_vm0, %v331_v8  ;;  %v7975_v33 = vld [vmem:[%s17660_s1 + $0xa0] sm:$0xff]  ;;  %v7977_v36 = vld [vmem:[%s17660_s1 + $0xb0] sm:$0xff]  ;;  %v7974_v37 = vld [vmem:[%s17660_s1 + $0x98] sm:$0xff] }
  0x1f   : > { %963 = vmatprep.subr.mxu1 %v7942_v14  ;;  %475 = vmatprep.mubr.f32.mxu0 %v17669_v6  ;;  %v7971_v35 = vld [vmem:[%s17660_s1 + $0x80] sm:$0xff]  ;;  %v7973_v38 = vld [vmem:[%s17660_s1 + $0x90] sm:$0xff]  ;;  %v1759_v40 = vld [vmem:[%s17662_s3 + $0x2d8] sm:$0xff] }
  0x20   : > { %964 = vmatpush1.msra.mxu1 %v7941_v15  ;;  %618 = vmatprep.mubr.f32.mxu1 %v17669_v6  ;;  %v9962_v39 = vld [vmem:[%s9711_s25 + $0x70] sm:$0xff]  ;;  %v1753_v42 = vld [vmem:[%s17662_s3 + $0x2a8] sm:$0xff]  ;;  %v1752_v43 = vld [vmem:[%s17662_s3 + $0x2a0] sm:$0xff] }
  0x21   : > { %965 = vmatprep.subr.mxu1 %v7938_v16  ;;  %816 = vmatprep.subr.mxu0 %v7936_v17  ;;  %v1758_v41 = vld [vmem:[%s17662_s3 + $0x2d0] sm:$0xff]  ;;  %v1747_v44 = vld [vmem:[%s17662_s3 + $0x278] sm:$0xff]  ;;  %v1741_v46 = vld [vmem:[%s17662_s3 + $0x248] sm:$0xff] }
  0x22   : > { %7909 = vmatmul.mubr.msk.f32.gmra.mxu0 %vm356_vm0, %v9754_v18  ;;  %7922 = vmatmul.mubr.msk.f32.gmra.mxu1 %vm356_vm0, %v9734_v13  ;;  %v1746_v45 = vld [vmem:[%s17662_s3 + $0x270] sm:$0xff]  ;;  %v1740_v47 = vld [vmem:[%s17662_s3 + $0x240] sm:$0xff]  ;;  %v1735_v48 = vld [vmem:[%s17662_s3 + $0x218] sm:$0xff] }
  0x23   : > { %481 = vmatprep.mubr.f32.mxu0 %v17669_v6  ;;  %624 = vmatprep.mubr.f32.mxu1 %v17669_v6  ;;  %v1734_v49 = vld [vmem:[%s17662_s3 + $0x210] sm:$0xff]  ;;  %v1729_v50 = vld [vmem:[%s17662_s3 + $0x1e8] sm:$0xff]  ;;  %v1728_v51 = vld [vmem:[%s17662_s3 + $0x1e0] sm:$0xff] }
  0x24   : > { %966 = vmatpush1.msra.mxu1 %v7937_v19  ;;  %817 = vmatpush1.msra.mxu0 %v7935_v20  ;;  %v1723_v52 = vld [vmem:[%s17662_s3 + $0x1b8] sm:$0xff]  ;;  %v1722_v53 = vld [vmem:[%s17662_s3 + $0x1b0] sm:$0xff]  ;;  %v1717_v54 = vld [vmem:[%s17662_s3 + $0x188] sm:$0xff] }
  0x25   : > { %1180 = vmatprep.subr.mxu0 %v7976_v21  ;;  %1329 = vmatprep.subr.mxu1 %v7978_v22  ;;  %v1951_v55 = vld [vmem:[%s17662_s3 + $0x8d8] sm:$0xff]  ;;  %v1950_v56 = vld [vmem:[%s17662_s3 + $0x8d0] sm:$0xff]  ;;  %v1716_v57 = vld [vmem:[%s17662_s3 + $0x180] sm:$0xff] }
  0x26   : > { %7910 = vmatmul.mubr.msk.f32.gmra.mxu0 %vm356_vm0, %v9776_v23  ;;  %7923 = vmatmul.mubr.msk.f32.gmra.mxu1 %vm356_vm0, %v9754_v18  ;;  %v1945_v58 = vld [vmem:[%s17662_s3 + $0x8a8] sm:$0xff]  ;;  %v1711_v59 = vld [vmem:[%s17662_s3 + $0x158] sm:$0xff]  ;;  %v1944_v60 = vld [vmem:[%s17662_s3 + $0x8a0] sm:$0xff] }
  0x27   : > { %487 = vmatprep.mubr.f32.mxu0 %v17669_v6  ;;  %630 = vmatprep.mubr.f32.mxu1 %v17669_v6  ;;  %v1710_v61 = vld [vmem:[%s17662_s3 + $0x150] sm:$0xff]  ;;  %v1939_v62 = vld [vmem:[%s17662_s3 + $0x878] sm:$0xff]  ;;  %v1705_v63 = vld [vmem:[%s17662_s3 + $0x128] sm:$0xff] }
  0x28   : > { %v1938_v0 = vld [vmem:[%s17662_s3 + $0x870] sm:$0xff]  ;;  %v1704_v1 = vld [vmem:[%s17662_s3 + $0x120] sm:$0xff]  ;;  %v1933_v2 = vld [vmem:[%s17662_s3 + $0x848] sm:$0xff] }
  0x29   : > { %v1699_v3 = vld [vmem:[%s17662_s3 + $0xf8] sm:$0xff]  ;;  %v1932_v4 = vld [vmem:[%s17662_s3 + $0x840] sm:$0xff]  ;;  %v1698_v5 = vld [vmem:[%s17662_s3 + $0xf0] sm:$0xff] }
  0x2a   : > { %7911 = vmatmul.mubr.msk.f32.gmra.mxu0 %vm356_vm0, %v9785_v24  ;;  %7924 = vmatmul.mubr.msk.f32.gmra.mxu1 %vm356_vm0, %v9776_v23  ;;  %v1927_v7 = vld [vmem:[%s17662_s3 + $0x818] sm:$0xff]  ;;  %v1693_v8 = vld [vmem:[%s17662_s3 + $0xc8] sm:$0xff]  ;;  %v1926_v10 = vld [vmem:[%s17662_s3 + $0x810] sm:$0xff] }
  0x2b   : > { %493 = vmatprep.mubr.f32.mxu0 %v17669_v6  ;;  %636 = vmatprep.mubr.f32.mxu1 %v17669_v6  ;;  %v346_v11 = vld [vmem:[%s9711_s25 + $0x78] sm:$0xff]  ;;  %v1692_v12 = vld [vmem:[%s17662_s3 + $0xc0] sm:$0xff]  ;;  %v1921_v14 = vld [vmem:[%s17662_s3 + $0x7e8] sm:$0xff] }
  0x2c   : > { %v1686_v15 = vld [vmem:[%s17662_s3 + $0x90] sm:$0xff]  ;;  %v1920_v16 = vld [vmem:[%s17662_s3 + $0x7e0] sm:$0xff]  ;;  %v1681_v17 = vld [vmem:[%s17662_s3 + $0x68] sm:$0xff] }
  0x2d   : > { %v1915_v19 = vld [vmem:[%s17662_s3 + $0x7b8] sm:$0xff]  ;;  %v1674_v20 = vld [vmem:[%s17662_s3 + $0x30] sm:$0xff]  ;;  %v1669_v22 = vld [vmem:[%s17662_s3 + $0x8] sm:$0xff] }
  0x2e   : > { %7912 = vmatmul.mubr.msk.f32.gmra.mxu0 %vm356_vm0, %v9794_v25  ;;  %7925 = vmatmul.mubr.msk.f32.gmra.mxu1 %vm356_vm0, %v9785_v24  ;;  %v1914_v21 = vld [vmem:[%s17662_s3 + $0x7b0] sm:$0xff] }
  0x2f   : > { %499 = vmatprep.mubr.f32.mxu0 %v17669_v6  ;;  %642 = vmatprep.mubr.f32.mxu1 %v17669_v6 }
  0x32   : > { %7913 = vmatmul.mubr.msk.f32.gmra.mxu0 %vm356_vm0, %v9803_v26  ;;  %7926 = vmatmul.mubr.msk.f32.gmra.mxu1 %vm356_vm0, %v9794_v25 }
  0x33   : > { %505 = vmatprep.mubr.f32.mxu0 %v17669_v6  ;;  %648 = vmatprep.mubr.f32.mxu1 %v17669_v6 }
  0x36   : > { %7914 = vmatmul.mubr.msk.f32.gmra.mxu0 %vm356_vm0, %v9812_v27  ;;  %7927 = vmatmul.mubr.msk.f32.gmra.mxu1 %vm356_vm0, %v9803_v26 }
  0x37   : > { %511 = vmatprep.mubr.f32.mxu0 %v17669_v6  ;;  %654 = vmatprep.mubr.f32.mxu1 %v17669_v6 }
  0x3a   : > { %7915 = vmatmul.mubr.msk.f32.gmra.mxu0 %vm356_vm0, %v9821_v28  ;;  %7928 = vmatmul.mubr.msk.f32.gmra.mxu1 %vm356_vm0, %v9812_v27 }
  0x3b   : > { %517 = vmatprep.mubr.f32.mxu0 %v17669_v6  ;;  %660 = vmatprep.mubr.f32.mxu1 %v17669_v6 }
  0x3e   : > { %7916 = vmatmul.mubr.msk.f32.gmra.mxu0 %vm356_vm0, %v9830_v29  ;;  %7929 = vmatmul.mubr.msk.f32.gmra.mxu1 %vm356_vm0, %v9821_v28 }
  0x3f   : > { %523 = vmatprep.mubr.f32.mxu0 %v17669_v6  ;;  %666 = vmatprep.mubr.f32.mxu1 %v17669_v6 }
  0x42   : > { %7917 = vmatmul.mubr.msk.f32.gmra.mxu0 %vm356_vm0, %v9839_v30  ;;  %7930 = vmatmul.mubr.msk.f32.gmra.mxu1 %vm356_vm0, %v9830_v29 }
  0x43   : > { %529 = vmatprep.mubr.f32.mxu0 %v17669_v6  ;;  %672 = vmatprep.mubr.f32.mxu1 %v17669_v6 }
  0x46   : > { %7918 = vmatmul.mubr.msk.f32.gmra.mxu0 %vm356_vm0, %v9848_v31  ;;  %7931 = vmatmul.mubr.msk.f32.gmra.mxu1 %vm356_vm0, %v9839_v30 }
  0x47   : > { %535 = vmatprep.mubr.f32.mxu0 %v17669_v6  ;;  %678 = vmatprep.mubr.f32.mxu1 %v17669_v6 }
  0x4a   : > { %7919 = vmatmul.mubr.msk.f32.gmra.mxu0 %vm356_vm0, %v9857_v32  ;;  %7932 = vmatmul.mubr.msk.f32.gmra.mxu1 %vm356_vm0, %v9848_v31 }
  0x4b   : > { %684 = vmatprep.mubr.f32.mxu1 %v17669_v6  ;;  %850 = vmatprep.mubr.f32.mxu0 %v17669_v6 }
  0x4e   : > { %7933 = vmatmul.mubr.msk.f32.gmra.mxu1 %vm356_vm0, %v9857_v32  ;;  %7943 = vmatmul.mubr.msk.f32.vlgmr.msra.gmra.mxu0 %vm356_vm0, %v9734_v13 }
  0x4f   : > { %690 = vmatprep.mubr.f32.mxu1 %v17669_v6  ;;  %856 = vmatprep.mubr.f32.mxu0 %v17669_v6 }
  0x50   : > { %1181 = vmatpush1.msra.mxu0 %v7975_v33  ;;  %v1843_v33 = vld [vmem:[%s17662_s3 + $0x578] sm:$0xff] }
  0x51   : > { %1182 = vmatprep.subr.mxu0 %v7972_v34  ;;  %v1896_v34 = vld [vmem:[%s17662_s3 + $0x720] sm:$0xff] }
  0x52   : > { %7934 = vmatmul.mubr.msk.f32.gmra.mxu1 %vm356_vm0, %v9718_v9  ;;  %7944 = vmatmul.mubr.msk.f32.gmra.mxu0 %vm356_vm0, %v9754_v18 }
  0x53   : > { %862 = vmatprep.mubr.f32.mxu0 %v17669_v6  ;;  %999 = vmatprep.mubr.f32.mxu1 %v17669_v6 }
  0x54   : > { %1183 = vmatpush1.msra.mxu0 %v7971_v35  ;;  %v1842_v35 = vld [vmem:[%s17662_s3 + $0x570] sm:$0xff] }
  0x55   : > { %2040 = vmatprep.subr.mxu0 %v1759_v40  ;;  %v1885_v40 = vld [vmem:[%s17662_s3 + $0x6c8] sm:$0xff] }
  0x56   : > { %7945 = vmatmul.mubr.msk.f32.gmra.mxu0 %vm356_vm0, %v9776_v23  ;;  %7957 = vmatmul.mubr.msk.f32.vlgmr.msra.gmra.mxu1 %vm356_vm0, %v9734_v13  ;;  %v1687_v13 = vld [vmem:[%s17662_s3 + $0x98] sm:$0xff] }
  0x57   : > { %1330 = vmatpush1.msra.mxu1 %v7977_v36  ;;  %868 = vmatprep.mubr.f32.mxu0 %v17669_v6  ;;  %v1891_v36 = vld [vmem:[%s17662_s3 + $0x6f8] sm:$0xff] }
  0x58   : > { %1005 = vmatprep.mubr.f32.mxu1 %v17669_v6  ;;  %1331 = vmatprep.subr.mxu1 %v7974_v37  ;;  %v1837_v37 = vld [vmem:[%s17662_s3 + $0x548] sm:$0xff] }
  0x59   : > { %1332 = vmatpush1.msra.mxu1 %v7973_v38  ;;  %v1890_v38 = vld [vmem:[%s17662_s3 + $0x6f0] sm:$0xff] }
  0x5a   : > { %7946 = vmatmul.mubr.msk.f32.gmra.mxu0 %vm356_vm0, %v9785_v24  ;;  %7958 = vmatmul.mubr.msk.f32.gmra.mxu1 %vm356_vm0, %v9754_v18 }
  0x5b   : > { %874 = vmatprep.mubr.f32.mxu0 %v17669_v6  ;;  %1011 = vmatprep.mubr.f32.mxu1 %v17669_v6 }
  0x5c   : > { %2177 = vmatprep.subr.mxu1 %v1951_v55  ;;  %v1812_v55 = vld [vmem:[%s17662_s3 + $0x480] sm:$0xff] }
  0x5e   : > { %7947 = vmatmul.mubr.msk.f32.gmra.mxu0 %vm356_vm0, %v9794_v25  ;;  %7959 = vmatmul.mubr.msk.f32.gmra.mxu1 %vm356_vm0, %v9776_v23 }
  0x5f   : > { %880 = vmatprep.mubr.f32.mxu0 %v17669_v6  ;;  %1017 = vmatprep.mubr.f32.mxu1 %v17669_v6 }
  0x62   : > { %7948 = vmatmul.mubr.msk.f32.gmra.mxu0 %vm356_vm0, %v9803_v26  ;;  %7960 = vmatmul.mubr.msk.f32.gmra.mxu1 %vm356_vm0, %v9785_v24 }
  0x63   : > { %886 = vmatprep.mubr.f32.mxu0 %v17669_v6  ;;  %1023 = vmatprep.mubr.f32.mxu1 %v17669_v6 }
  0x66   : > { %7949 = vmatmul.mubr.msk.f32.gmra.mxu0 %vm356_vm0, %v9812_v27  ;;  %7961 = vmatmul.mubr.msk.f32.gmra.mxu1 %vm356_vm0, %v9794_v25 }
  0x67   : > { %892 = vmatprep.mubr.f32.mxu0 %v17669_v6  ;;  %1029 = vmatprep.mubr.f32.mxu1 %v17669_v6 }
  0x6a   : > { %7950 = vmatmul.mubr.msk.f32.gmra.mxu0 %vm356_vm0, %v9821_v28  ;;  %7962 = vmatmul.mubr.msk.f32.gmra.mxu1 %vm356_vm0, %v9803_v26 }
  0x6b   : > { %898 = vmatprep.mubr.f32.mxu0 %v17669_v6  ;;  %1035 = vmatprep.mubr.f32.mxu1 %v17669_v6 }
  0x6e   : > { %7951 = vmatmul.mubr.msk.f32.gmra.mxu0 %vm356_vm0, %v9830_v29  ;;  %7963 = vmatmul.mubr.msk.f32.gmra.mxu1 %vm356_vm0, %v9812_v27 }
  0x6f   : > { %904 = vmatprep.mubr.f32.mxu0 %v17669_v6  ;;  %1041 = vmatprep.mubr.f32.mxu1 %v17669_v6 }
  0x72   : > { %7952 = vmatmul.mubr.msk.f32.gmra.mxu0 %vm356_vm0, %v9839_v30  ;;  %7964 = vmatmul.mubr.msk.f32.gmra.mxu1 %vm356_vm0, %v9821_v28 }
  0x73   : > { %910 = vmatprep.mubr.f32.mxu0 %v17669_v6  ;;  %1047 = vmatprep.mubr.f32.mxu1 %v17669_v6 }
  0x76   : > { %7953 = vmatmul.mubr.msk.f32.gmra.mxu0 %vm356_vm0, %v9848_v31  ;;  %7965 = vmatmul.mubr.msk.f32.gmra.mxu1 %vm356_vm0, %v9830_v29 }
  0x77   : > { %916 = vmatprep.mubr.f32.mxu0 %v17669_v6  ;;  %1053 = vmatprep.mubr.f32.mxu1 %v17669_v6 }
  0x7a   : > { %7954 = vmatmul.mubr.msk.f32.gmra.mxu0 %vm356_vm0, %v9857_v32  ;;  %7966 = vmatmul.mubr.msk.f32.gmra.mxu1 %vm356_vm0, %v9839_v30 }
  0x7b   : > { %922 = vmatprep.mubr.f32.mxu0 %v17669_v6  ;;  %1059 = vmatprep.mubr.f32.mxu1 %v17669_v6 }
  0x7e   : > { %7955 = vmatmul.mubr.msk.f32.gmra.mxu0 %vm356_vm0, %v9718_v9  ;;  %7967 = vmatmul.mubr.msk.f32.gmra.mxu1 %vm356_vm0, %v9848_v31 }
  0x7f   : > { %928 = vmatprep.mubr.f32.mxu0 %v17669_v6  ;;  %1065 = vmatprep.mubr.f32.mxu1 %v17669_v6 }
  0x82   : > { %7956 = vmatmul.mubr.msk.f32.gmra.mxu0 %vm356_vm0, %v9962_v39  ;;  %7968 = vmatmul.mubr.msk.f32.gmra.mxu1 %vm356_vm0, %v9857_v32 }
  0x83   : > { %1071 = vmatprep.mubr.f32.mxu1 %v17669_v6  ;;  %1216 = vmatprep.mubr.f32.mxu0 %v17669_v6 }
  0x86   : > { %7969 = vmatmul.mubr.msk.f32.gmra.mxu1 %vm356_vm0, %v9718_v9  ;;  %7979 = vmatmul.mubr.msk.f32.vlgmr.msra.gmra.mxu0 %vm356_vm0, %v9754_v18 }
  0x87   : > { %1077 = vmatprep.mubr.f32.mxu1 %v17669_v6  ;;  %1222 = vmatprep.mubr.f32.mxu0 %v17669_v6 }
  0x88   : > { %2041 = vmatpush1.msra.mxu0 %v1758_v41  ;;  %v1831_v41 = vld [vmem:[%s17662_s3 + $0x518] sm:$0xff] }
  0x89   : > { %2042 = vmatprep.subr.mxu0 %v1753_v42  ;;  %v1884_v42 = vld [vmem:[%s17662_s3 + $0x6c0] sm:$0xff] }
  0x8a   : > { %7970 = vmatmul.mubr.msk.f32.gmra.mxu1 %vm356_vm0, %v9962_v39  ;;  %7980 = vmatmul.mubr.msk.f32.gmra.mxu0 %vm356_vm0, %v9776_v23 }
  0x8b   : > { %1228 = vmatprep.mubr.f32.mxu0 %v17669_v6  ;;  %1365 = vmatprep.mubr.f32.mxu1 %v17669_v6 }
  0x8c   : > { %2043 = vmatpush1.msra.mxu0 %v1752_v43  ;;  %v1830_v43 = vld [vmem:[%s17662_s3 + $0x510] sm:$0xff] }
  0x8d   : > { %2044 = vmatprep.subr.mxu0 %v1747_v44  ;;  %v1879_v44 = vld [vmem:[%s17662_s3 + $0x698] sm:$0xff] }
  0x8e   : > { %7981 = vmatmul.mubr.msk.f32.gmra.mxu0 %vm356_vm0, %v9785_v24  ;;  %7993 = vmatmul.mubr.msk.f32.vlgmr.msra.gmra.mxu1 %vm356_vm0, %v9754_v18  ;;  %v1675_v18 = vld [vmem:[%s17662_s3 + $0x38] sm:$0xff] }
  0x8f   : > { %1234 = vmatprep.mubr.f32.mxu0 %v17669_v6  ;;  %1371 = vmatprep.mubr.f32.mxu1 %v17669_v6 }
  0x90   : > { %2045 = vmatpush1.msra.mxu0 %v1746_v45  ;;  %2178 = vmatpush1.msra.mxu1 %v1950_v56  ;;  %v1825_v45 = vld [vmem:[%s17662_s3 + $0x4e8] sm:$0xff] }
  0x91   : > { %2046 = vmatprep.subr.mxu0 %v1741_v46  ;;  %2179 = vmatprep.subr.mxu1 %v1945_v58  ;;  %v1878_v46 = vld [vmem:[%s17662_s3 + $0x690] sm:$0xff]  ;;  %v1861_v56 = vld [vmem:[%s17662_s3 + $0x608] sm:$0xff]  ;;  %v1860_v58 = vld [vmem:[%s17662_s3 + $0x600] sm:$0xff] }
  0x92   : > { %7982 = vmatmul.mubr.msk.f32.gmra.mxu0 %vm356_vm0, %v9794_v25  ;;  %7994 = vmatmul.mubr.msk.f32.gmra.mxu1 %vm356_vm0, %v9776_v23  ;;  %v1668_v23 = vld [vmem:[%s17662_s3] sm:$0xff] }
  0x93   : > { %1240 = vmatprep.mubr.f32.mxu0 %v17669_v6  ;;  %1377 = vmatprep.mubr.f32.mxu1 %v17669_v6 }
  0x94   : > { %2047 = vmatpush1.msra.mxu0 %v1740_v47  ;;  %2180 = vmatpush1.msra.mxu1 %v1944_v60  ;;  %v1824_v47 = vld [vmem:[%s17662_s3 + $0x4e0] sm:$0xff]  ;;  %v1999_v60 = vld [vmem:[%s17662_s3 + $0xa58] sm:$0xff] }
  0x95   : > { %2048 = vmatprep.subr.mxu0 %v1735_v48  ;;  %2181 = vmatprep.subr.mxu1 %v1939_v62  ;;  %v1873_v48 = vld [vmem:[%s17662_s3 + $0x668] sm:$0xff]  ;;  %v1998_v62 = vld [vmem:[%s17662_s3 + $0xa50] sm:$0xff] }
  0x96   : > { %7983 = vmatmul.mubr.msk.f32.gmra.mxu0 %vm356_vm0, %v9803_v26  ;;  %7995 = vmatmul.mubr.msk.f32.gmra.mxu1 %vm356_vm0, %v9785_v24  ;;  %v1909_v24 = vld [vmem:[%s17662_s3 + $0x788] sm:$0xff] }
  0x97   : > { %1246 = vmatprep.mubr.f32.mxu0 %v17669_v6  ;;  %1383 = vmatprep.mubr.f32.mxu1 %v17669_v6 }
  0x98   : > { %2049 = vmatpush1.msra.mxu0 %v1734_v49  ;;  %2182 = vmatpush1.msra.mxu1 %v1938_v0  ;;  %v1819_v49 = vld [vmem:[%s17662_s3 + $0x4b8] sm:$0xff]  ;;  %v1993_v0 = vld [vmem:[%s17662_s3 + $0xa28] sm:$0xff] }
  0x99   : > { %2050 = vmatprep.subr.mxu0 %v1729_v50  ;;  %2183 = vmatprep.subr.mxu1 %v1933_v2  ;;  %v1872_v50 = vld [vmem:[%s17662_s3 + $0x660] sm:$0xff] }
  0x9a   : > { %7984 = vmatmul.mubr.msk.f32.gmra.mxu0 %vm356_vm0, %v9812_v27  ;;  %7996 = vmatmul.mubr.msk.f32.gmra.mxu1 %vm356_vm0, %v9794_v25  ;;  %v1855_v25 = vld [vmem:[%s17662_s3 + $0x5d8] sm:$0xff]  ;;  %v1992_v2 = vld [vmem:[%s17662_s3 + $0xa20] sm:$0xff] }
  0x9b   : > { %1252 = vmatprep.mubr.f32.mxu0 %v17669_v6  ;;  %1389 = vmatprep.mubr.f32.mxu1 %v17669_v6 }
  0x9c   : > { %2051 = vmatpush1.msra.mxu0 %v1728_v51  ;;  %2184 = vmatpush1.msra.mxu1 %v1932_v4  ;;  %v1818_v51 = vld [vmem:[%s17662_s3 + $0x4b0] sm:$0xff]  ;;  %v1987_v4 = vld [vmem:[%s17662_s3 + $0x9f8] sm:$0xff] }
  0x9d   : > { %2052 = vmatprep.subr.mxu0 %v1723_v52  ;;  %2185 = vmatprep.subr.mxu1 %v1927_v7  ;;  %v1867_v52 = vld [vmem:[%s17662_s3 + $0x638] sm:$0xff]  ;;  %v1986_v7 = vld [vmem:[%s17662_s3 + $0x9f0] sm:$0xff] }
  0x9e   : > { %7985 = vmatmul.mubr.msk.f32.gmra.mxu0 %vm356_vm0, %v9821_v28  ;;  %7997 = vmatmul.mubr.msk.f32.gmra.mxu1 %vm356_vm0, %v9803_v26  ;;  %v1908_v26 = vld [vmem:[%s17662_s3 + $0x780] sm:$0xff] }
  0x9f   : > { %1258 = vmatprep.mubr.f32.mxu0 %v17669_v6  ;;  %1395 = vmatprep.mubr.f32.mxu1 %v17669_v6 }
  0xa0   : > { %2053 = vmatpush1.msra.mxu0 %v1722_v53  ;;  %2186 = vmatpush1.msra.mxu1 %v1926_v10  ;;  %v1813_v53 = vld [vmem:[%s17662_s3 + $0x488] sm:$0xff] }
  0xa1   : > { %2054 = vmatprep.subr.mxu0 %v1717_v54  ;;  %2187 = vmatprep.subr.mxu1 %v1921_v14  ;;  %v1866_v54 = vld [vmem:[%s17662_s3 + $0x630] sm:$0xff]  ;;  %v1981_v10 = vld [vmem:[%s17662_s3 + $0x9c8] sm:$0xff] }
  0xa2   : > { %7986 = vmatmul.mubr.msk.f32.gmra.mxu0 %vm356_vm0, %v9830_v29  ;;  %7998 = vmatmul.mubr.msk.f32.gmra.mxu1 %vm356_vm0, %v9812_v27  ;;  %v1854_v27 = vld [vmem:[%s17662_s3 + $0x5d0] sm:$0xff] }
  0xa3   : > { %1264 = vmatprep.mubr.f32.mxu0 %v17669_v6  ;;  %1401 = vmatprep.mubr.f32.mxu1 %v17669_v6 }
  0xa4   : > { %2055 = vmatpush1.msra.mxu0 %v1716_v57  ;;  %2188 = vmatpush1.msra.mxu1 %v1920_v16  ;;  %v1807_v57 = vld [vmem:[%s17662_s3 + $0x458] sm:$0xff] }
  0xa5   : > { %2056 = vmatprep.subr.mxu0 %v1711_v59  ;;  %2189 = vmatprep.subr.mxu1 %v1915_v19  ;;  %v1806_v59 = vld [vmem:[%s17662_s3 + $0x450] sm:$0xff]  ;;  %v1975_v16 = vld [vmem:[%s17662_s3 + $0x998] sm:$0xff] }
  0xa6   : > { %7987 = vmatmul.mubr.msk.f32.gmra.mxu0 %vm356_vm0, %v9839_v30  ;;  %7999 = vmatmul.mubr.msk.f32.gmra.mxu1 %vm356_vm0, %v9821_v28  ;;  %v1903_v28 = vld [vmem:[%s17662_s3 + $0x758] sm:$0xff] }
  0xa7   : > { %1270 = vmatprep.mubr.f32.mxu0 %v17669_v6  ;;  %1407 = vmatprep.mubr.f32.mxu1 %v17669_v6 }
  0xa8   : > { %2057 = vmatpush1.msra.mxu0 %v1710_v61  ;;  %2190 = vmatpush1.msra.mxu1 %v1914_v21  ;;  %v1801_v61 = vld [vmem:[%s17662_s3 + $0x428] sm:$0xff] }
  0xa9   : > { %2058 = vmatprep.subr.mxu0 %v1705_v63  ;;  %2191 = vmatprep.subr.mxu1 %v1909_v24  ;;  %v1800_v63 = vld [vmem:[%s17662_s3 + $0x420] sm:$0xff]  ;;  %v1969_v21 = vld [vmem:[%s17662_s3 + $0x968] sm:$0xff] }
  0xaa   : > { %7988 = vmatmul.mubr.msk.f32.gmra.mxu0 %vm356_vm0, %v9848_v31  ;;  %8000 = vmatmul.mubr.msk.f32.gmra.mxu1 %vm356_vm0, %v9830_v29  ;;  %v1849_v29 = vld [vmem:[%s17662_s3 + $0x5a8] sm:$0xff] }
  0xab   : > { %1276 = vmatprep.mubr.f32.mxu0 %v17669_v6  ;;  %1413 = vmatprep.mubr.f32.mxu1 %v17669_v6 }
  0xac   : > { %2059 = vmatpush1.msra.mxu0 %v1704_v1  ;;  %2192 = vmatpush1.msra.mxu1 %v1908_v26  ;;  %v1795_v1 = vld [vmem:[%s17662_s3 + $0x3f8] sm:$0xff]  ;;  %v1770_v26 = vld [vmem:[%s17662_s3 + $0x330] sm:$0xff] }
  0xad   : > { %2060 = vmatprep.subr.mxu0 %v1699_v3  ;;  %2193 = vmatprep.subr.mxu1 %v1903_v28  ;;  %v1794_v3 = vld [vmem:[%s17662_s3 + $0x3f0] sm:$0xff]  ;;  %v1765_v28 = vld [vmem:[%s17662_s3 + $0x308] sm:$0xff] }
  0xae   : > { %7989 = vmatmul.mubr.msk.f32.gmra.mxu0 %vm356_vm0, %v9857_v32  ;;  %8001 = vmatmul.mubr.msk.f32.gmra.mxu1 %vm356_vm0, %v9839_v30  ;;  %v1902_v30 = vld [vmem:[%s17662_s3 + $0x750] sm:$0xff] }
  0xaf   : > { %1282 = vmatprep.mubr.f32.mxu0 %v17669_v6  ;;  %1419 = vmatprep.mubr.f32.mxu1 %v17669_v6 }
  0xb0   : > { %2061 = vmatpush1.msra.mxu0 %v1698_v5  ;;  %2194 = vmatpush1.msra.mxu1 %v1902_v30  ;;  %v1789_v5 = vld [vmem:[%s17662_s3 + $0x3c8] sm:$0xff] }
  0xb1   : > { %2062 = vmatprep.subr.mxu0 %v1693_v8  ;;  %v1788_v8 = vld [vmem:[%s17662_s3 + $0x3c0] sm:$0xff] }
  0xb2   : > { %7990 = vmatmul.mubr.msk.f32.gmra.mxu0 %vm356_vm0, %v9718_v9  ;;  %8002 = vmatmul.mubr.msk.f32.gmra.mxu1 %vm356_vm0, %v9848_v31  ;;  %v1848_v31 = vld [vmem:[%s17662_s3 + $0x5a0] sm:$0xff] }
  0xb3   : > { %1288 = vmatprep.mubr.f32.mxu0 %v17669_v6  ;;  %1425 = vmatprep.mubr.f32.mxu1 %v17669_v6 }
  0xb4   : > { %2063 = vmatpush1.msra.mxu0 %v1692_v12  ;;  %v1980_v12 = vld [vmem:[%s17662_s3 + $0x9c0] sm:$0xff] }
  0xb5   : > { %2064 = vmatprep.subr.mxu0 %v1687_v13 }
  0xb6   : > { %7991 = vmatmul.mubr.msk.f32.gmra.mxu0 %vm356_vm0, %v9962_v39  ;;  %8003 = vmatmul.mubr.msk.f32.gmra.mxu1 %vm356_vm0, %v9857_v32  ;;  %v1897_v32 = vld [vmem:[%s17662_s3 + $0x728] sm:$0xff] }
  0xb7   : > { %1294 = vmatprep.mubr.f32.mxu0 %v17669_v6  ;;  %1431 = vmatprep.mubr.f32.mxu1 %v17669_v6 }
  0xb8   : > { %2065 = vmatpush1.msra.mxu0 %v1686_v15  ;;  %2195 = vmatprep.subr.mxu1 %v1897_v32  ;;  %v1782_v15 = vld [vmem:[%s17662_s3 + $0x390] sm:$0xff]  ;;  %v1764_v32 = vld [vmem:[%s17662_s3 + $0x300] sm:$0xff] }
  0xb9   : > { %2066 = vmatprep.subr.mxu0 %v1681_v17  ;;  %2196 = vmatpush1.msra.mxu1 %v1896_v34  ;;  %v1777_v17 = vld [vmem:[%s17662_s3 + $0x368] sm:$0xff] }
  0xba   : > { %7992 = vmatmul.mubr.msk.f32.gmra.mxu0 %vm356_vm0, %v346_v11  ;;  %8004 = vmatmul.mubr.msk.f32.gmra.mxu1 %vm356_vm0, %v9718_v9  ;;  %v1680_v9 = vld [vmem:[%s17662_s3 + $0x60] sm:$0xff]  ;;  %v1953_v34 = vld [vmem:[%s17662_s3 + $0x8e8] sm:$0xff] }
  0xbb   : > { %1437 = vmatprep.mubr.f32.mxu1 %v17669_v6  ;;  %2067 = vmatpush1.msra.mxu0 %v1680_v9  ;;  %v1974_v9 = vld [vmem:[%s17662_s3 + $0x990] sm:$0xff] }
  0xbc   : > { %2068 = vmatprep.subr.mxu0 %v1675_v18  ;;  %2197 = vmatprep.subr.mxu1 %v1891_v36 }
  0xbd   : > { %2069 = vmatpush1.msra.mxu0 %v1674_v20  ;;  %2198 = vmatpush1.msra.mxu1 %v1890_v38  ;;  %v1776_v20 = vld [vmem:[%s17662_s3 + $0x360] sm:$0xff]  ;;  %v1761_v38 = vld [vmem:[%s17662_s3 + $0x2e8] sm:$0xff] }
  0xbe   : > { %8005 = vmatmul.mubr.msk.f32.gmra.mxu1 %vm356_vm0, %v9962_v39  ;;  %2070 = vmatprep.subr.mxu0 %v1669_v22  ;;  %v1836_v39 = vld [vmem:[%s17662_s3 + $0x540] sm:$0xff]  ;;  %v1771_v22 = vld [vmem:[%s17662_s3 + $0x338] sm:$0xff] }
  0xbf   : > { %1443 = vmatprep.mubr.f32.mxu1 %v17669_v6  ;;  %2071 = vmatpush1.msra.mxu0 %v1668_v23  ;;  %v1968_v23 = vld [vmem:[%s17662_s3 + $0x960] sm:$0xff] }
  0xc0   : > { %2072 = vmatprep.subr.mxu0 %v1855_v25  ;;  %2199 = vmatprep.subr.mxu1 %v1885_v40 }
  0xc1   : > { %2073 = vmatpush2.msra.mxu0 %v1854_v27  ;;  %2200 = vmatpush1.msra.mxu1 %v1884_v42  ;;  %v1963_v27 = vld [vmem:[%s17662_s3 + $0x938] sm:$0xff] }
  0xc2   : > { %8006 = vmatmul.mubr.msk.f32.gmra.mxu1 %vm356_vm0, %v346_v11  ;;  %2074 = vmatprep.subr.mxu0 %v1849_v29  ;;  %v1783_v11 = vld [vmem:[%s17662_s3 + $0x398] sm:$0xff]  ;;  %v1962_v29 = vld [vmem:[%s17662_s3 + $0x930] sm:$0xff] }
  0xc3   : > { %2075 = vmatpush2.msra.mxu0 %v1848_v31  ;;  %2201 = vmatprep.subr.mxu1 %v1879_v44 }
  0xc4   : > { %2076 = vmatprep.subr.mxu0 %v1843_v33  ;;  %2202 = vmatpush1.msra.mxu1 %v1878_v46  ;;  %v1957_v33 = vld [vmem:[%s17662_s3 + $0x908] sm:$0xff] }
  0xc5   : > { %2077 = vmatpush2.msra.mxu0 %v1842_v35  ;;  %2203 = vmatprep.subr.mxu1 %v1873_v48  ;;  %v1956_v35 = vld [vmem:[%s17662_s3 + $0x900] sm:$0xff] }
  0xc6   : > { %2078 = vmatprep.subr.mxu0 %v1837_v37  ;;  %2204 = vmatpush1.msra.mxu1 %v1872_v50 }
  0xc7   : > { %2079 = vmatpush2.msra.mxu0 %v1836_v39  ;;  %2205 = vmatprep.subr.mxu1 %v1867_v52 }
  0xc8   : > { %2080 = vmatprep.subr.mxu0 %v1831_v41  ;;  %2206 = vmatpush1.msra.mxu1 %v1866_v54 }
  0xc9   : > { %2081 = vmatpush2.msra.mxu0 %v1830_v43  ;;  %2207 = vmatprep.subr.mxu1 %v1861_v56 }
  0xca   : > { %2082 = vmatprep.subr.mxu0 %v1825_v45  ;;  %2208 = vmatpush1.msra.mxu1 %v1860_v58 }
  0xcb   : > { %2083 = vmatpush2.msra.mxu0 %v1824_v47  ;;  %2225 = vmatprep.subr.mxu1 %v1999_v60 }
  0xcc   : > { %2084 = vmatprep.subr.mxu0 %v1819_v49  ;;  %2226 = vmatpush2.msra.mxu1 %v1998_v62 }
  0xcd   : > { %2085 = vmatpush2.msra.mxu0 %v1818_v51  ;;  %2227 = vmatprep.subr.mxu1 %v1993_v0 }
  0xce   : > { %2086 = vmatprep.subr.mxu0 %v1813_v53  ;;  %2228 = vmatpush2.msra.mxu1 %v1992_v2 }
  0xcf   : > { %2087 = vmatpush2.msra.mxu0 %v1812_v55  ;;  %2229 = vmatprep.subr.mxu1 %v1987_v4 }
  0xd0   : > { %2088 = vmatprep.subr.mxu0 %v1807_v57  ;;  %2230 = vmatpush2.msra.mxu1 %v1986_v7 }
  0xd1   : > { %2089 = vmatpush2.msra.mxu0 %v1806_v59  ;;  %2231 = vmatprep.subr.mxu1 %v1981_v10 }
  0xd2   : > { %2090 = vmatprep.subr.mxu0 %v1801_v61  ;;  %2232 = vmatpush2.msra.mxu1 %v1980_v12 }
  0xd3   : > { %2091 = vmatpush2.msra.mxu0 %v1800_v63  ;;  %2233 = vmatprep.subr.mxu1 %v1975_v16 }
  0xd4   : > { %2092 = vmatprep.subr.mxu0 %v1795_v1  ;;  %2234 = vmatpush2.msra.mxu1 %v1974_v9 }
  0xd5   : > { %2093 = vmatpush2.msra.mxu0 %v1794_v3  ;;  %2235 = vmatprep.subr.mxu1 %v1969_v21 }
  0xd6   : > { %2094 = vmatprep.subr.mxu0 %v1789_v5  ;;  %2236 = vmatpush2.msra.mxu1 %v1968_v23 }
  0xd7   : > { %2095 = vmatpush2.msra.mxu0 %v1788_v8  ;;  %2237 = vmatprep.subr.mxu1 %v1963_v27 }
  0xd8   : > { %2096 = vmatprep.subr.mxu0 %v1783_v11  ;;  %2238 = vmatpush2.msra.mxu1 %v1962_v29 }
  0xd9   : > { %2097 = vmatpush2.msra.mxu0 %v1782_v15  ;;  %2239 = vmatprep.subr.mxu1 %v1957_v33 }
  0xda   : > { %v10348_v13 = vpop.f32.mrf.mxu0  ;;  %v10350_v14 = vpop.f32.mrf.mxu1  ;;  %2098 = vmatprep.subr.mxu0 %v1777_v17  ;;  %2240 = vmatpush2.msra.mxu1 %v1956_v35 }
  0xdb   : > { %2099 = vmatpush2.msra.mxu0 %v1776_v20  ;;  %2314 = vmatprep.subr.mxu1 %v1761_v38 }
  0xdc   : > { %v10364_v18 = vpop.f32.mrf.mxu0  ;;  %v10366_v19 = vpop.f32.mrf.mxu1  ;;  %2100 = vmatprep.subr.mxu0 %v1771_v22 }
  0xdd   : > { %2101 = vmatpush2.msra.mxu0 %v1770_v26 }
  0xde   : > { %v10380_v24 = vpop.f32.mrf.mxu0  ;;  %v10382_v25 = vpop.f32.mrf.mxu1  ;;  %2102 = vmatprep.subr.mxu0 %v1765_v28 }
  0xdf   : > { %2103 = vmatpush2.msra.mxu0 %v1764_v32 }
  0xe0   : > { %v10396_v30 = vpop.f32.mrf.mxu0  ;;  %v10398_v31 = vpop.f32.mrf.mxu1  ;;  %2451 = vmatprep.subr.mxu0 %v1953_v34 }
  0xe2   : > { %v10412_v36 = vpop.f32.mrf.mxu0  ;;  %v10414_v37 = vpop.f32.mrf.mxu1 }
  0xe4   : > { %v10419_v39 = vpop.f32.mrf.mxu0  ;;  %v10421_v40 = vpop.f32.mrf.mxu1 }
  0xe6   : > { %v10423_v41 = vpop.f32.mrf.mxu0  ;;  %v10425_v42 = vpop.f32.mrf.mxu1 }
  0xe8   : > { %v10427_v43 = vpop.f32.mrf.mxu0  ;;  %v10429_v44 = vpop.f32.mrf.mxu1 }
  0xea   : > { %v10431_v45 = vpop.f32.mrf.mxu0  ;;  %v10433_v46 = vpop.f32.mrf.mxu1 }
  0xec   : > { %v10435_v47 = vpop.f32.mrf.mxu0  ;;  %v10437_v48 = vpop.f32.mrf.mxu1 }
  0xee   : > { %v10439_v49 = vpop.f32.mrf.mxu0  ;;  %v10441_v50 = vpop.f32.mrf.mxu1 }
  0xf0   : > { %v10443_v51 = vpop.f32.mrf.mxu0  ;;  %v10445_v52 = vpop.f32.mrf.mxu1 }
  0xf2   : > { %v10447_v53 = vpop.f32.mrf.mxu0  ;;  %v10449_v54 = vpop.f32.mrf.mxu1 }
  0xf4   : > { %v10451_v55 = vpop.f32.mrf.mxu0  ;;  %v10453_v56 = vpop.f32.mrf.mxu1 }
  0xf6   : > { %v10455_v57 = vpop.f32.mrf.mxu0  ;;  %v10457_v58 = vpop.f32.mrf.mxu1 }
  0xf8   : > { %v10459_v59 = vpop.f32.mrf.mxu0  ;;  %v10461_v60 = vpop.f32.mrf.mxu1 }
  0xfa   : > { %v10463_v61 = vpop.f32.mrf.mxu0  ;;  %v10465_v62 = vpop.f32.mrf.mxu1 }
  0xfc   : > { %v10467_v63 = vpop.f32.mrf.mxu0  ;;  %v10469_v0 = vpop.f32.mrf.mxu1 }
  0xfd   : > { %17703 = vst [vmem:[#allocation6_spill] sm:$0xff] %v10467_v63  ;;  %17704 = vst [vmem:[#allocation7_spill] sm:$0xff] %v10469_v0 }
  0xfe   : > { %v10471_v1 = vpop.f32.mrf.mxu0  ;;  %v10473_v2 = vpop.f32.mrf.mxu1 }
  0xff   : > { %17705 = vst [vmem:[#allocation8_spill] sm:$0xff] %v10471_v1  ;;  %17706 = vst [vmem:[#allocation9_spill] sm:$0xff] %v10473_v2 }
 0x100   : > { %v10475_v3 = vpop.f32.mrf.mxu0  ;;  %v10477_v4 = vpop.f32.mrf.mxu1 }
 0x101   : > { %17707 = vst [vmem:[#allocation10_spill] sm:$0xff] %v10475_v3  ;;  %17708 = vst [vmem:[#allocation11_spill] sm:$0xff] %v10477_v4 }
 0x102   : > { %v10479_v5 = vpop.f32.mrf.mxu0  ;;  %v10481_v7 = vpop.f32.mrf.mxu1 }
 0x103   : > { %17709 = vst [vmem:[#allocation12_spill] sm:$0xff] %v10479_v5  ;;  %17710 = vst [vmem:[#allocation13_spill] sm:$0xff] %v10481_v7 }
 0x104   : > { %v10483_v8 = vpop.f32.mrf.mxu0  ;;  %v10485_v10 = vpop.f32.mrf.mxu1 }
 0x105   : > { %17711 = vst [vmem:[#allocation14_spill] sm:$0xff] %v10483_v8  ;;  %17712 = vst [vmem:[#allocation15_spill] sm:$0xff] %v10485_v10 }
 0x106   : > { %v10487_v11 = vpop.f32.mrf.mxu0  ;;  %v10489_v12 = vpop.f32.mrf.mxu1 }
 0x107   : > { %17713 = vst [vmem:[#allocation16_spill] sm:$0xff] %v10487_v11  ;;  %17714 = vst [vmem:[#allocation17_spill] sm:$0xff] %v10489_v12 }
 0x108   : > { %v10491_v15 = vpop.f32.mrf.mxu0  ;;  %v10493_v16 = vpop.f32.mrf.mxu1 }
 0x109   : > { %17715 = vst [vmem:[#allocation18_spill] sm:$0xff] %v10491_v15  ;;  %17716 = vst [vmem:[#allocation19_spill] sm:$0xff] %v10493_v16 }
 0x10a   : > { %v10495_v17 = vpop.f32.mrf.mxu0  ;;  %v10497_v9 = vpop.f32.mrf.mxu1 }
 0x10b   : > { %17717 = vst [vmem:[#allocation20_spill] sm:$0xff] %v10495_v17  ;;  %17718 = vst [vmem:[#allocation21_spill] sm:$0xff] %v10497_v9 }
 0x10c   : > { %v10499_v20 = vpop.f32.mrf.mxu0  ;;  %v10501_v21 = vpop.f32.mrf.mxu1 }
 0x10d   : > { %17719 = vst [vmem:[#allocation22_spill] sm:$0xff] %v10499_v20  ;;  %17720 = vst [vmem:[#allocation23_spill] sm:$0xff] %v10501_v21 }
 0x10e   : > { %v10503_v22 = vpop.f32.mrf.mxu1  ;;  %v10505_v23 = vpop.f32.mrf.mxu0 }
 0x10f   : > { %17721 = vst [vmem:[#allocation24_spill] sm:$0xff] %v10503_v22 }
 0x110   : > { %v10507_v26 = vpop.f32.mrf.mxu1  ;;  %v10509_v27 = vpop.f32.mrf.mxu0 }
 0x111   : > { %17722 = vst [vmem:[#allocation25_spill] sm:$0xff] %v10507_v26 }
 0x112   : > { %v10511_v28 = vpop.f32.mrf.mxu1  ;;  %v10513_v29 = vpop.f32.mrf.mxu0 }
 0x113   : > { %17723 = vst [vmem:[#allocation26_spill] sm:$0xff] %v10511_v28 }
 0x114   : > { %v10515_v32 = vpop.f32.mrf.mxu1  ;;  %v10517_v33 = vpop.f32.mrf.mxu0 }
 0x115   : > { %17724 = vst [vmem:[#allocation27_spill] sm:$0xff] %v10515_v32 }
 0x116   : > { %v10519_v34 = vpop.f32.mrf.mxu0  ;;  %v10521_v35 = vpop.f32.mrf.mxu1 }
 0x118   : > { %v10523_v38 = vpop.f32.mrf.mxu0  ;;  %v10525_v6 = vpop.f32.mrf.mxu1 }
 0x11a   : > { %v10527_v22 = vpop.f32.mrf.mxu0  ;;  %v10529_v26 = vpop.f32.mrf.mxu1 }
 0x11c   : > { %v10531_v21 = vpop.f32.mrf.mxu0  ;;  %v10533_v28 = vpop.f32.mrf.mxu1 }
 0x11e   : > { %v10535_v9 = vpop.f32.mrf.mxu0  ;;  %v10537_v32 = vpop.f32.mrf.mxu1 }
 0x120   : > { %v10539_v20 = vpop.f32.mrf.mxu0  ;;  %v10541_v17 = vpop.f32.mrf.mxu1 }
 0x122   : > { %v10543_v16 = vpop.f32.mrf.mxu0  ;;  %v10545_v15 = vpop.f32.mrf.mxu1 }
 0x123   : > { %17725 = vst [vmem:[#allocation28_spill] sm:$0xff] %v10543_v16  ;;  %17726 = vst [vmem:[#allocation29_spill] sm:$0xff] %v10545_v15 }
 0x124   : > { %v10547_v12 = vpop.f32.mrf.mxu0  ;;  %v10549_v11 = vpop.f32.mrf.mxu1 }
 0x125   : > { %17727 = vst [vmem:[#allocation30_spill] sm:$0xff] %v10547_v12  ;;  %17728 = vst [vmem:[#allocation31_spill] sm:$0xff] %v10549_v11 }
 0x126   : > { %v10551_v10 = vpop.f32.mrf.mxu0  ;;  %v10553_v8 = vpop.f32.mrf.mxu1 }
 0x127   : > { %17729 = vst [vmem:[#allocation32_spill] sm:$0xff] %v10551_v10  ;;  %17730 = vst [vmem:[#allocation33_spill] sm:$0xff] %v10553_v8 }
 0x128   : > { %v10555_v7 = vpop.f32.mrf.mxu0  ;;  %v10557_v5 = vpop.f32.mrf.mxu1 }
 0x129   : > { %17731 = vst [vmem:[#allocation34_spill] sm:$0xff] %v10555_v7  ;;  %17732 = vst [vmem:[#allocation35_spill] sm:$0xff] %v10557_v5 }
 0x12a   : > { %v10559_v4 = vpop.f32.mrf.mxu0  ;;  %v10561_v3 = vpop.f32.mrf.mxu1 }
 0x12b   : > { %17733 = vst [vmem:[#allocation36_spill] sm:$0xff] %v10559_v4  ;;  %17734 = vst [vmem:[#allocation37_spill] sm:$0xff] %v10561_v3  ;;  %v698_v3 = vlaneseq }
 0x12c   : > { %v10563_v2 = vpop.f32.mrf.mxu0  ;;  %v10565_v1 = vpop.f32.mrf.mxu1 }
 0x12d   : > { %17735 = vst [vmem:[#allocation38_spill] sm:$0xff] %v10563_v2  ;;  %17736 = vst [vmem:[#allocation39_spill] sm:$0xff] %v10565_v1 }
 0x12e   : > { %v10567_v0 = vpop.f32.mrf.mxu0  ;;  %v10569_v12 = vpop.f32.mrf.mxu1 }
 0x12f   : > { %17737 = vst [vmem:[#allocation40_spill] sm:$0xff] %v10567_v0  ;;  %17738 = vst [vmem:[#allocation41_spill] sm:$0xff] %v10569_v12 }
 0x130   : > { %v10571_v11 = vpop.f32.mrf.mxu0  ;;  %v10573_v10 = vpop.f32.mrf.mxu1 }
 0x131   : > { %17739 = vst [vmem:[#allocation42_spill] sm:$0xff] %v10571_v11  ;;  %17740 = vst [vmem:[#allocation43_spill] sm:$0xff] %v10573_v10  ;;  %v10591_v11 = vshrl.u32 %v698_v3, 7 }
 0x132   : > { %v10575_v8 = vpop.f32.mrf.mxu0  ;;  %v10577_v7 = vpop.f32.mrf.mxu1 }
 0x133   : > { %17741 = vst [vmem:[#allocation44_spill] sm:$0xff] %v10575_v8  ;;  %17742 = vst [vmem:[#allocation45_spill] sm:$0xff] %v10577_v7  ;;  %v17674_v3 = vsub.s32 3, %v10591_v11 }
 0x134   : > { %v10579_v5 = vpop.f32.mrf.mxu0  ;;  %v10581_v4 = vpop.f32.mrf.mxu1  ;;  %17749 = vst [vmem:[#allocation52_spill] sm:$0xff] %v10591_v11 }
 0x135   : > { %17743 = vst [vmem:[#allocation46_spill] sm:$0xff] %v10579_v5  ;;  %17744 = vst [vmem:[#allocation47_spill] sm:$0xff] %v10581_v4  ;;  %v17671_v4 = vsub.s32 0, %v10591_v11 }
 0x136   : > { %v10583_v2 = vpop.f32.mrf.mxu0  ;;  %v10585_v1 = vpop.f32.mrf.mxu1 }
 0x137   : > { %17745 = vst [vmem:[#allocation48_spill] sm:$0xff] %v10583_v2  ;;  %17746 = vst [vmem:[#allocation49_spill] sm:$0xff] %v10585_v1  ;;  %v17672_v2 = vsub.s32 1, %v10591_v11 }
 0x138   : > { %v10587_v0 = vpop.f32.mrf.mxu0  ;;  %v10589_v12 = vpop.f32.mrf.mxu1 }
 0x139   : > { %17747 = vst [vmem:[#allocation50_spill] sm:$0xff] %v10587_v0  ;;  %17748 = vst [vmem:[#allocation51_spill] sm:$0xff] %v10589_v12  ;;  %v347_v0 = vld [vmem:[%s17661_s2] sm:$0xf]  ;;  %v17673_v12 = vsub.s32 2, %v10591_v11 }
 0x13a   : > { %v10593_v10 = vpop.f32.mrf.mxu0  ;;  %v10595_v8 = vpop.f32.mrf.mxu1  ;;  %v10622_v15 = vrot.slane %v347_v0, %v17672_v2 }
 0x13b   : > { %17750 = vst [vmem:[#allocation53_spill] sm:$0xff] %v10593_v10  ;;  %17751 = vst [vmem:[#allocation54_spill] sm:$0xff] %v10595_v8  ;;  %v10626_v16 = vrot.slane %v347_v0, %v17673_v12 }
 0x13c   : > { %v10597_v7 = vpop.f32.mrf.mxu0  ;;  %v10599_v5 = vpop.f32.mrf.mxu1  ;;  %v719_v12 = vadd.f32 %v10622_v15, %v10364_v18 }
 0x13d   : > { %17752 = vst [vmem:[#allocation55_spill] sm:$0xff] %v10597_v7  ;;  %17753 = vst [vmem:[#allocation56_spill] sm:$0xff] %v10599_v5  ;;  %v10618_v5 = vrot.slane %v347_v0, %v17671_v4  ;;  %v720_v11 = vadd.f32 %v10626_v16, %v10382_v25  ;;  %v727_v25 = vadd.f32 %v10622_v15, %v10419_v39 }
 0x13e   : > { %v10608_v1 = vpop.f32.mrf.mxu0  ;;  %v10610_v10 = vpop.f32.mrf.mxu1 }
 0x13f   : > { %17754 = vst [vmem:[#allocation57_spill] sm:$0xff] %v10608_v1  ;;  %17755 = vst [vmem:[#allocation58_spill] sm:$0xff] %v10610_v10  ;;  %v10630_v1 = vrot.slane %v347_v0, %v17674_v3  ;;  %v718_v4 = vadd.f32 %v10618_v5, %v10348_v13  ;;  %v10644_v2 = vadd.f32 %v10618_v5, %v10350_v14 }
 0x140   : > { %v10612_v8 = vpop.f32.mrf.mxu0  ;;  %v10614_v7 = vpop.f32.mrf.mxu1  ;;  %v10650_v0 = vadd.f32 %v10622_v15, %v10366_v19  ;;  %v722_v13 = vadd.f32 %v10618_v5, %v10380_v24  ;;  %v726_v19 = vadd.f32 %v10618_v5, %v10412_v36  ;;  %v1085_v24 = vadd.f32 %v10509_v27, %v719_v12 }
 0x141   : > { %17756 = vst [vmem:[#allocation59_spill] sm:$0xff] %v10612_v8  ;;  %17757 = vst [vmem:[#allocation60_spill] sm:$0xff] %v10614_v7  ;;  %v1084_v3 = vadd.f32 %v10505_v23, %v718_v4  ;;  %v721_v14 = vadd.f32 %v10630_v1, %v10398_v31  ;;  %v724_v4 = vadd.f32 %v10626_v16, %v10414_v37 }
 0x142   : > { %v10632_v10 = vpop.f32.mrf.mxu0  ;;  %v10634_v8 = vpop.f32.mrf.mxu1  ;;  %v730_v31 = vadd.f32 %v10618_v5, %v10423_v41  ;;  %v731_v12 = vadd.f32 %v10622_v15, %v10427_v43  ;;  %v1088_v27 = vadd.f32 %v10513_v29, %v722_v13  ;;  %v10691_v41 = vadd.f32 %v10618_v5, %v10431_v45 }
 0x143   : > { %v10705_v13 = vadd.f32 %v10630_v1, %v10437_v48  ;;  %v10722_v48 = vadd.f32 %v10630_v1, %v10445_v52  ;;  %v10736_v52 = vadd.f32 %v10618_v5, %v10447_v53  ;;  %v1087_v53 = vadd.f32 %v10525_v6, %v721_v14 }
 0x144   : > { %v10638_v7 = vpop.f32.mrf.mxu0  ;;  %v10640_v63 = vpop.f32.mrf.mxu1  ;;  %v1090_v6 = vadd.f32 %v10529_v26, %v724_v4  ;;  %v1097_v26 = vadd.f32 %v10531_v21, %v731_v12  ;;  %v1929_v21 = vld [vmem:[%s17662_s3 + $0x828] sm:$0xff]  ;;  %v1100_v12 = vadd.f32 %v10535_v9, %v10691_v41  ;;  %v10809_v9 = vadd.f32 %v10618_v5, %v10463_v61 }
 0x145   : > { %17758 = vst [vmem:[#allocation61_spill] sm:$0xff] %v10638_v7  ;;  %17759 = vst [vmem:[#allocation62_spill] sm:$0xff] %v10640_v63  ;;  %v723_v63 = vadd.f32 %v10622_v15, %v10396_v30  ;;  %v10672_v30 = vadd.f32 %v10630_v1, %v10421_v40  ;;  %v10687_v40 = vadd.f32 %v10630_v1, %v10429_v44 }
 0x146   : > { %v10661_v7 = vpop.f32.mrf.mxu1  ;;  %v1218_v18 = vpop.f32.mrf.mxu0 }
 0x147   : > { %17760 = vst [vmem:[#allocation63_spill] sm:$0xff] %v10661_v7  ;;  %v1450_v23 = vadd.f32 %v1218_v18, %v1084_v3  ;;  %v10678_v7 = vadd.f32 %v10626_v16, %v10425_v42  ;;  %v10695_v42 = vadd.f32 %v10626_v16, %v10433_v46  ;;  %v10699_v18 = vadd.f32 %v10622_v15, %v10435_v47 }
 0x148   : > { %v10680_v36 = vpop.f32.mrf.mxu1  ;;  %v1220_v37 = vpop.f32.mrf.mxu0  ;;  %v1089_v44 = vadd.f32 %v10517_v33, %v723_v63  ;;  %v10710_v46 = vadd.f32 %v10618_v5, %v10439_v49  ;;  %v10714_v47 = vadd.f32 %v10626_v16, %v10441_v50  ;;  %v1952_v49 = vld [vmem:[%s17662_s3 + $0x8e0] sm:$0xff]  ;;  %v1086_v50 = vadd.f32 %v10521_v35, %v720_v11 }
 0x149   : > { %v1506_v39 = vmax.f32 %v1450_v23, 0.0  ;;  %v1451_v3 = vadd.f32 %v1220_v37, %v1085_v24  ;;  %v10718_v23 = vadd.f32 %v10622_v15, %v10443_v51  ;;  %v1092_v37 = vadd.f32 %v10519_v34, %v726_v19  ;;  %v1947_v51 = vld [vmem:[%s17662_s3 + $0x8b8] sm:$0xff] }
 0x14a   : > { %v10701_v43 = vpop.f32.mrf.mxu1  ;;  %v1224_v29 = vpop.f32.mrf.mxu0  ;;  %v10744_v34 = vadd.f32 %v10622_v15, %v10451_v55  ;;  %v1093_v11 = vadd.f32 %v10523_v38, %v727_v25  ;;  %v1941_v55 = vld [vmem:[%s17662_s3 + $0x888] sm:$0xff]  ;;  %v10756_v38 = vadd.f32 %v10630_v1, %v10453_v56  ;;  %v10760_v25 = vadd.f32 %v10618_v5, %v10455_v57  ;;  %v1935_v57 = vld [vmem:[%s17662_s3 + $0x858] sm:$0xff] }
 0x14b   : > { %1562 = vst [vmem:[#allocation2] sm:$0xff] %v1506_v39  ;;  %v1507_v45 = vmax.f32 %v1451_v3, 0.0  ;;  %v1454_v24 = vadd.f32 %v1224_v29, %v1088_v27  ;;  %v10740_v29 = vadd.f32 %v10626_v16, %v10449_v54  ;;  %v1091_v4 = vadd.f32 %v10533_v28, %v10672_v30 }
 0x14c   : > { %v10724_v63 = vpop.f32.mrf.mxu1  ;;  %v1226_v33 = vpop.f32.mrf.mxu0  ;;  %v10788_v28 = vadd.f32 %v10622_v15, %v10459_v59  ;;  %v10792_v30 = vadd.f32 %v10630_v1, %v10461_v60  ;;  %v1095_v41 = vadd.f32 %v10541_v17, %v10687_v40  ;;  %v1917_v17 = vld [vmem:[%s17662_s3 + $0x7c8] sm:$0xff]  ;;  %v17761_v40 = vld [vmem:[#allocation6_spill] sm:$0xff] }
 0x14d   : > { %1563 = vst [vmem:[#allocation2 + $0x8] sm:$0xff] %v1507_v45  ;;  %v1510_v27 = vmax.f32 %v1454_v24, 0.0  ;;  %v1455_v3 = vadd.f32 %v1226_v33, %v1089_v44  ;;  %2104 = vmatprep.mubr.f32.mxu0 %v1507_v45  ;;  %v1946_v44 = vld [vmem:[%s17662_s3 + $0x8b0] sm:$0xff] }
 0x14e   : > { %v1230_v35 = vpop.f32.mrf.mxu0  ;;  %v1367_v19 = vpop.f32.mrf.mxu1  ;;  %2105 = vmatmul.mubr.f32.vlgmr.msra.gmra.mxu0 %v1506_v39  ;;  %v1096_v39 = vadd.f32 %v10527_v22, %v730_v31  ;;  %v10774_v22 = vadd.f32 %v10626_v16, %v10457_v58 }
 0x14f   : > { %1567 = vst [vmem:[#allocation2 + $0x20] sm:$0xff] %v1510_v27  ;;  %v1511_v45 = vmax.f32 %v1455_v3, 0.0  ;;  %v1458_v24 = vadd.f32 %v1230_v35, %v1092_v37  ;;  %v1452_v54 = vadd.f32 %v1367_v19, %v1086_v50  ;;  %2452 = vmatpush1.msra.mxu0 %v1952_v49  ;;  %v1940_v49 = vld [vmem:[%s17662_s3 + $0x880] sm:$0xff] }
 0x150   : > { %v1232_v14 = vpop.f32.mrf.mxu0  ;;  %v1369_v33 = vpop.f32.mrf.mxu1  ;;  %2453 = vmatprep.subr.mxu0 %v1947_v51 }
 0x151   : > { %1568 = vst [vmem:[#allocation2 + $0x28] sm:$0xff] %v1511_v45  ;;  %v1514_v37 = vmax.f32 %v1458_v24, 0.0  ;;  %v10767_v50 = vmax.f32 %v1452_v54, 0.0  ;;  %v1459_v56 = vadd.f32 %v1232_v14, %v1093_v11  ;;  %v1453_v3 = vadd.f32 %v1369_v33, %v1087_v53  ;;  %2454 = vmatpush1.msra.mxu0 %v1946_v44  ;;  %2110 = vmatprep.mubr.f32.mxu0 %v1511_v45  ;;  %v1934_v11 = vld [vmem:[%s17662_s3 + $0x850] sm:$0xff]  ;;  %v1928_v24 = vld [vmem:[%s17662_s3 + $0x820] sm:$0xff] }
 0x152   : > { %v1236_v31 = vpop.f32.mrf.mxu0  ;;  %v1373_v51 = vpop.f32.mrf.mxu1  ;;  %2455 = vmatprep.subr.mxu0 %v1941_v55  ;;  %2111 = vmatmul.mubr.f32.gmra.mxu0 %v1510_v27  ;;  %v1094_v27 = vadd.f32 %v10537_v32, %v10678_v7  ;;  %v1923_v7 = vld [vmem:[%s17662_s3 + $0x7f8] sm:$0xff]  ;;  %v1101_v32 = vadd.f32 %v10539_v20, %v10699_v18  ;;  %v1922_v14 = vld [vmem:[%s17662_s3 + $0x7f0] sm:$0xff]  ;;  %v10826_v20 = vadd.f32 %v10626_v16, %v10465_v62 }
 0x153   : > { %1571 = vst [vmem:[#allocation2 + $0x40] sm:$0xff] %v1514_v37  ;;  %1564 = vst [vmem:[#allocation2 + $0x10] sm:$0xff] %v10767_v50  ;;  %v1515_v35 = vmax.f32 %v1459_v56, 0.0  ;;  %v1509_v58 = vmax.f32 %v1453_v3, 0.0  ;;  %v1462_v19 = vadd.f32 %v1236_v31, %v1096_v39  ;;  %v1456_v44 = vadd.f32 %v1373_v51, %v1090_v6  ;;  %2456 = vmatpush1.msra.mxu0 %v1940_v49  ;;  %v1916_v51 = vld [vmem:[%s17662_s3 + $0x7c0] sm:$0xff] }
 0x154   : > { %v1238_v53 = vpop.f32.mrf.mxu0  ;;  %v1375_v45 = vpop.f32.mrf.mxu1  ;;  %2457 = vmatprep.subr.mxu0 %v1935_v57  ;;  %v10830_v18 = vadd.f32 %v10622_v15, %v17761_v40  ;;  %v17763_v57 = vld [vmem:[#allocation29_spill] sm:$0xff]  ;;  %v1760_v40 = vld [vmem:[%s17662_s3 + $0x2e0] sm:$0xff] }
 0x155   : > { %1572 = vst [vmem:[#allocation2 + $0x48] sm:$0xff] %v1515_v35  ;;  %1566 = vst.msk [vmem:[#allocation2 + $0x18] sm:$0xff] %vm1565_vm1, %v1509_v58  ;;  %v1518_v59 = vmax.f32 %v1462_v19, 0.0  ;;  %v10802_v54 = vmax.f32 %v1456_v44, 0.0  ;;  %v1463_v60 = vadd.f32 %v1238_v53, %v1097_v26  ;;  %v1457_v55 = vadd.f32 %v1375_v45, %v1091_v4  ;;  %2458 = vmatpush1.msra.mxu0 %v1934_v11  ;;  %v17765_v44 = vld [vmem:[#allocation30_spill] sm:$0xff] }
 0x156   : > { %2116 = vmatprep.mubr.f32.mxu0 %v1515_v35  ;;  %v1242_v39 = vpop.f32.mrf.mxu0  ;;  %v1379_v6 = vpop.f32.mrf.mxu1  ;;  %2459 = vmatprep.subr.mxu0 %v1929_v21  ;;  %v1098_v26 = vadd.f32 %v17763_v57, %v10695_v42  ;;  %v1911_v42 = vld [vmem:[%s17662_s3 + $0x798] sm:$0xff]  ;;  %v1105_v21 = vadd.f32 %v17765_v44, %v10718_v23 }
 0x157   : > { %2117 = vmatmul.mubr.f32.gmra.mxu0 %v1514_v37  ;;  %1575 = vst [vmem:[#allocation2 + $0x60] sm:$0xff] %v1518_v59  ;;  %1569 = vst [vmem:[#allocation2 + $0x30] sm:$0xff] %v10802_v54  ;;  %v1519_v33 = vmax.f32 %v1463_v60, 0.0  ;;  %v1513_v61 = vmax.f32 %v1457_v55, 0.0  ;;  %v10819_v49 = vadd.f32 %v1242_v39, %v1100_v12  ;;  %v1460_v56 = vadd.f32 %v1379_v6, %v1094_v27  ;;  %v17762_v37 = vld [vmem:[#allocation28_spill] sm:$0xff]  ;;  %v17766_v12 = vld [vmem:[#allocation31_spill] sm:$0xff] }
 0x158   : > { %2460 = vmatpush1.msra.mxu0 %v1928_v24  ;;  %v1104_v3 = vadd.f32 %v17762_v37, %v10710_v46  ;;  %v1244_v4 = vpop.f32.mrf.mxu0  ;;  %v1381_v31 = vpop.f32.mrf.mxu1  ;;  %v17764_v46 = vld [vmem:[#allocation7_spill] sm:$0xff]  ;;  %v1099_v27 = vadd.f32 %v17766_v12, %v10705_v13  ;;  %v1910_v24 = vld [vmem:[%s17662_s3 + $0x790] sm:$0xff]  ;;  %v17767_v13 = vld [vmem:[#allocation8_spill] sm:$0xff] }
 0x159   : > { %2461 = vmatprep.subr.mxu0 %v1923_v7  ;;  %1576 = vst [vmem:[#allocation2 + $0x68] sm:$0xff] %v1519_v33  ;;  %1570 = vst.msk [vmem:[#allocation2 + $0x38] sm:$0xff] %vm1565_vm1, %v1513_v61  ;;  %v1522_v62 = vmax.f32 %v10819_v49, 0.0  ;;  %v10841_v11 = vmax.f32 %v1460_v56, 0.0  ;;  %v1467_v35 = vadd.f32 %v1244_v4, %v1101_v32  ;;  %v1461_v58 = vadd.f32 %v1381_v31, %v1095_v41  ;;  %v17769_v39 = vld [vmem:[#allocation32_spill] sm:$0xff]  ;;  %v1905_v37 = vld [vmem:[%s17662_s3 + $0x768] sm:$0xff] }
 0x15a   : > { %2462 = vmatpush1.msra.mxu0 %v1922_v14  ;;  %2122 = vmatprep.mubr.f32.mxu0 %v1519_v33  ;;  %v10848_v19 = vadd.f32 %v10630_v1, %v17764_v46  ;;  %v1248_v53 = vpop.f32.mrf.mxu0  ;;  %v1385_v45 = vpop.f32.mrf.mxu1  ;;  %v10864_v32 = vadd.f32 %v10618_v5, %v17767_v13  ;;  %v1108_v6 = vadd.f32 %v17769_v39, %v10736_v52  ;;  %v17770_v14 = vld [vmem:[#allocation33_spill] sm:$0xff]  ;;  %v17771_v4 = vld [vmem:[#allocation10_spill] sm:$0xff]  ;;  %v1743_v49 = vld [vmem:[%s17662_s3 + $0x258] sm:$0xff] }
 0x15b   : > { %2463 = vmatprep.subr.mxu0 %v1917_v17  ;;  %2123 = vmatmul.mubr.f32.gmra.mxu0 %v1518_v59  ;;  %1579 = vst [vmem:[#allocation2 + $0x80] sm:$0xff] %v1522_v62  ;;  %1573 = vst [vmem:[#allocation2 + $0x50] sm:$0xff] %v10841_v11  ;;  %v1523_v60 = vmax.f32 %v1467_v35, 0.0  ;;  %v1517_v55 = vmax.f32 %v1461_v58, 0.0  ;;  %v10860_v7 = vadd.f32 %v1248_v53, %v1104_v3  ;;  %v17768_v59 = vld [vmem:[#allocation9_spill] sm:$0xff]  ;;  %v17773_v58 = vld [vmem:[#allocation35_spill] sm:$0xff] }
 0x15c   : > { %v1464_v23 = vadd.f32 %v1385_v45, %v1098_v26  ;;  %2464 = vmatpush1.msra.mxu0 %v1916_v51  ;;  %v10868_v41 = vadd.f32 %v10626_v16, %v17768_v59  ;;  %v1102_v33 = vadd.f32 %v17770_v14, %v10714_v47  ;;  %v1250_v61 = vpop.f32.mrf.mxu0  ;;  %v1387_v56 = vpop.f32.mrf.mxu1  ;;  %v10874_v17 = vld [vmem:[#allocation2 + $0x18] sm:$0xff]  ;;  %v10895_v31 = vadd.f32 %v10622_v15, %v17771_v4  ;;  %v17772_v51 = vld [vmem:[#allocation34_spill] sm:$0xff]  ;;  %v1749_v53 = vld [vmem:[%s17662_s3 + $0x288] sm:$0xff] }
 0x15d   : > { %2465 = vmatprep.subr.mxu0 %v1911_v42  ;;  %1580 = vst [vmem:[#allocation2 + $0x88] sm:$0xff] %v1523_v60  ;;  %1574 = vst.msk [vmem:[#allocation2 + $0x58] sm:$0xff] %vm1565_vm1, %v1517_v55  ;;  %v1526_v52 = vmax.f32 %v10860_v7, 0.0  ;;  %v10886_v47 = vadd.f32 %v1250_v61, %v1105_v21  ;;  %v1465_v57 = vadd.f32 %v1387_v56, %v1099_v27  ;;  %8007 = vmatprep.mubr.msk.f32.mxu1 %vm1565_vm1, %v10874_v17  ;;  %v1755_v26 = vld [vmem:[%s17662_s3 + $0x2b8] sm:$0xff]  ;;  %v1754_v21 = vld [vmem:[%s17662_s3 + $0x2b0] sm:$0xff] }
 0x15e   : > { %v10884_v3 = vmax.f32 %v1464_v23, 0.0  ;;  %2466 = vmatpush1.msra.mxu0 %v1910_v24  ;;  %v1109_v35 = vadd.f32 %v17772_v51, %v10744_v34  ;;  %v1103_v42 = vadd.f32 %v17773_v58, %v10722_v48  ;;  %v1254_v46 = vpop.f32.mrf.mxu0  ;;  %v1391_v44 = vpop.f32.mrf.mxu1  ;;  %2242 = vmatmul.mubr.f32.vlgmr.msra.gmra.mxu1 %v10767_v50  ;;  %v17774_v45 = vld [vmem:[#allocation11_spill] sm:$0xff]  ;;  %v17776_v23 = vld [vmem:[#allocation37_spill] sm:$0xff]  ;;  %v1748_v14 = vld [vmem:[%s17662_s3 + $0x280] sm:$0xff] }
 0x15f   : > { %2128 = vmatprep.mubr.f32.mxu0 %v1523_v60  ;;  %1583 = vst [vmem:[#allocation2 + $0xa0] sm:$0xff] %v1526_v52  ;;  %v1527_v12 = vmax.f32 %v10886_v47, 0.0  ;;  %v1521_v34 = vmax.f32 %v1465_v57, 0.0  ;;  %v10909_v27 = vadd.f32 %v1254_v46, %v1108_v6  ;;  %v1468_v48 = vadd.f32 %v1391_v44, %v1102_v33  ;;  %2315 = vmatpush1.msra.mxu1 %v1760_v40  ;;  %v17775_v60 = vld [vmem:[#allocation36_spill] sm:$0xff]  ;;  %v17778_v57 = vld [vmem:[#allocation38_spill] sm:$0xff]  ;;  %v17779_v4 = vld [vmem:[#allocation39_spill] sm:$0xff] }
 0x160   : > { %1577 = vst [vmem:[#allocation2 + $0x70] sm:$0xff] %v10884_v3  ;;  %2467 = vmatprep.subr.mxu0 %v1905_v37  ;;  %v10916_v24 = vadd.f32 %v10630_v1, %v17774_v45  ;;  %v1112_v55 = vadd.f32 %v17775_v60, %v10760_v25  ;;  %v1106_v13 = vadd.f32 %v17776_v23, %v10740_v29  ;;  %v1256_v59 = vpop.f32.mrf.mxu0  ;;  %v1393_v39 = vpop.f32.mrf.mxu1  ;;  %v10922_v6 = vld [vmem:[#allocation2 + $0x38] sm:$0xff]  ;;  %v1904_v33 = vld [vmem:[%s17662_s3 + $0x760] sm:$0xff]  ;;  %v17782_v60 = vld [vmem:[#allocation41_spill] sm:$0xff] }
 0x161   : > { %2316 = vmatprep.subr.mxu1 %v1755_v26  ;;  %2129 = vmatmul.mubr.f32.gmra.mxu0 %v1522_v62  ;;  %1584 = vst [vmem:[#allocation2 + $0xa8] sm:$0xff] %v1527_v12  ;;  %1578 = vst.msk [vmem:[#allocation2 + $0x78] sm:$0xff] %vm1565_vm1, %v1521_v34  ;;  %v1530_v29 = vmax.f32 %v10909_v27, 0.0  ;;  %v10936_v25 = vmax.f32 %v1468_v48, 0.0  ;;  %v10938_v61 = vadd.f32 %v1256_v59, %v1109_v35  ;;  %v1899_v62 = vld [vmem:[%s17662_s3 + $0x738] sm:$0xff]  ;;  %v17777_v40 = vld [vmem:[#allocation12_spill] sm:$0xff] }
 0x162   : > { %v1469_v56 = vadd.f32 %v1393_v39, %v1103_v42  ;;  %2317 = vmatpush1.msra.mxu1 %v1754_v21  ;;  %8008 = vmatprep.mubr.msk.f32.mxu1 %vm1565_vm1, %v10922_v6  ;;  %v10950_v37 = vadd.f32 %v10618_v5, %v17777_v40  ;;  %v1113_v26 = vadd.f32 %v17778_v57, %v10788_v28  ;;  %v1260_v35 = vpop.f32.mrf.mxu0  ;;  %v1397_v58 = vpop.f32.mrf.mxu1  ;;  %v1742_v42 = vld [vmem:[%s17662_s3 + $0x250] sm:$0xff]  ;;  %v1737_v21 = vld [vmem:[%s17662_s3 + $0x228] sm:$0xff]  ;;  %v1736_v39 = vld [vmem:[%s17662_s3 + $0x220] sm:$0xff] }
 0x163   : > { %v1107_v51 = vadd.f32 %v17779_v4, %v10756_v38  ;;  %2318 = vmatprep.subr.mxu1 %v1749_v53  ;;  %2248 = vmatmul.mubr.f32.gmra.mxu1 %v10802_v54  ;;  %1587 = vst [vmem:[#allocation2 + $0xc0] sm:$0xff] %v1530_v29  ;;  %1581 = vst [vmem:[#allocation2 + $0x90] sm:$0xff] %v10936_v25  ;;  %v1531_v46 = vmax.f32 %v10938_v61, 0.0  ;;  %v10964_v44 = vadd.f32 %v1260_v35, %v1112_v55  ;;  %v17780_v34 = vld [vmem:[#allocation13_spill] sm:$0xff]  ;;  %v17781_v53 = vld [vmem:[#allocation40_spill] sm:$0xff] }
 0x164   : > { %v1525_v28 = vmax.f32 %v1469_v56, 0.0  ;;  %v1472_v38 = vadd.f32 %v1397_v58, %v1106_v13  ;;  %2319 = vmatpush1.msra.mxu1 %v1748_v14  ;;  %2468 = vmatpush1.msra.mxu0 %v1904_v33  ;;  %v10971_v48 = vadd.f32 %v10626_v16, %v17780_v34  ;;  %v1116_v45 = vadd.f32 %v17781_v53, %v10809_v9  ;;  %v1262_v55 = vpop.f32.mrf.mxu0  ;;  %v1399_v59 = vpop.f32.mrf.mxu1  ;;  %v10977_v13 = vld [vmem:[#allocation2 + $0x58] sm:$0xff]  ;;  %v1898_v14 = vld [vmem:[%s17662_s3 + $0x730] sm:$0xff]  ;;  %v1893_v34 = vld [vmem:[%s17662_s3 + $0x708] sm:$0xff] }
 0x165   : > { %v1110_v23 = vadd.f32 %v17782_v60, %v10774_v22  ;;  %2320 = vmatprep.subr.mxu1 %v1743_v49  ;;  %2469 = vmatprep.subr.mxu0 %v1899_v62  ;;  %1588 = vst [vmem:[#allocation2 + $0xc8] sm:$0xff] %v1531_v46  ;;  %v1534_v22 = vmax.f32 %v10964_v44, 0.0  ;;  %v10991_v33 = vadd.f32 %v1262_v55, %v1113_v26  ;;  %v1731_v49 = vld [vmem:[%s17662_s3 + $0x1f8] sm:$0xff]  ;;  %v17783_v62 = vld [vmem:[#allocation14_spill] sm:$0xff]  ;;  %v17787_v55 = vld [vmem:[#allocation44_spill] sm:$0xff] }
 0x166   : > { %1582 = vst.msk [vmem:[#allocation2 + $0x98] sm:$0xff] %vm1565_vm1, %v1525_v28  ;;  %v10989_v9 = vmax.f32 %v1472_v38, 0.0  ;;  %v1473_v56 = vadd.f32 %v1399_v59, %v1107_v51  ;;  %2321 = vmatpush1.msra.mxu1 %v1742_v42  ;;  %8009 = vmatprep.mubr.msk.f32.mxu1 %vm1565_vm1, %v10977_v13  ;;  %v11000_v40 = vadd.f32 %v10622_v15, %v17783_v62  ;;  %v17784_v57 = vld [vmem:[#allocation42_spill] sm:$0xff]  ;;  %v17785_v35 = vld [vmem:[#allocation43_spill] sm:$0xff]  ;;  %v1266_v51 = vpop.f32.mrf.mxu0  ;;  %v1403_v58 = vpop.f32.mrf.mxu1  ;;  %v1724_v47 = vld [vmem:[%s17662_s3 + $0x1c0] sm:$0xff] }
 0x167   : > { %v1117_v4 = vadd.f32 %v17784_v57, %v10830_v18  ;;  %v1111_v26 = vadd.f32 %v17785_v35, %v10792_v30  ;;  %2322 = vmatprep.subr.mxu1 %v1737_v21  ;;  %2254 = vmatmul.mubr.f32.gmra.mxu1 %v10841_v11  ;;  %v1730_v42 = vld [vmem:[%s17662_s3 + $0x1f0] sm:$0xff]  ;;  %1591 = vst [vmem:[#allocation2 + $0xe0] sm:$0xff] %v1534_v22  ;;  %v1535_v28 = vmax.f32 %v10991_v33, 0.0  ;;  %v1725_v21 = vld [vmem:[%s17662_s3 + $0x1c8] sm:$0xff]  ;;  %v17786_v53 = vld [vmem:[#allocation15_spill] sm:$0xff] }
 0x168   : > { %1585 = vst [vmem:[#allocation2 + $0xb0] sm:$0xff] %v10989_v9  ;;  %v1529_v18 = vmax.f32 %v1473_v56, 0.0  ;;  %v11014_v38 = vadd.f32 %v1266_v51, %v1116_v45  ;;  %v1476_v30 = vadd.f32 %v1403_v58, %v1110_v23  ;;  %2323 = vmatpush1.msra.mxu1 %v1736_v39  ;;  %2470 = vmatpush1.msra.mxu0 %v1898_v14  ;;  %v17788_v45 = vld [vmem:[#allocation45_spill] sm:$0xff]  ;;  %v1268_v39 = vpop.f32.mrf.mxu0  ;;  %v1405_v14 = vpop.f32.mrf.mxu1  ;;  %v11032_v56 = vld [vmem:[#allocation2 + $0x78] sm:$0xff]  ;;  %v17790_v51 = vld [vmem:[#allocation46_spill] sm:$0xff] }
 0x169   : > { %v11024_v60 = vadd.f32 %v10630_v1, %v17786_v53  ;;  %v1120_v59 = vadd.f32 %v17787_v55, %v10864_v32  ;;  %v1114_v23 = vadd.f32 %v17788_v45, %v10826_v20  ;;  %2324 = vmatprep.subr.mxu1 %v1731_v49  ;;  %2134 = vmatprep.mubr.f32.mxu0 %v1527_v12  ;;  %v1892_v12 = vld [vmem:[%s17662_s3 + $0x700] sm:$0xff]  ;;  %v1887_v53 = vld [vmem:[%s17662_s3 + $0x6d8] sm:$0xff]  ;;  %v1718_v55 = vld [vmem:[%s17662_s3 + $0x190] sm:$0xff] }
 0x16a   : > { %1592 = vst [vmem:[#allocation2 + $0xe8] sm:$0xff] %v1535_v28  ;;  %1586 = vst.msk [vmem:[#allocation2 + $0xb8] sm:$0xff] %vm1565_vm1, %v1529_v18  ;;  %v1538_v62 = vmax.f32 %v11014_v38, 0.0  ;;  %v11038_v57 = vmax.f32 %v1476_v30, 0.0  ;;  %v11040_v32 = vadd.f32 %v1268_v39, %v1117_v4  ;;  %v1477_v20 = vadd.f32 %v1405_v14, %v1111_v26  ;;  %2325 = vmatpush1.msra.mxu1 %v1730_v42  ;;  %v17789_v49 = vld [vmem:[#allocation16_spill] sm:$0xff]  ;;  %v17791_v26 = vld [vmem:[#allocation47_spill] sm:$0xff]  ;;  %v1272_v42 = vpop.f32.mrf.mxu0  ;;  %v1409_v18 = vpop.f32.mrf.mxu1 }
 0x16b   : > { %8010 = vmatprep.mubr.msk.f32.mxu1 %vm1565_vm1, %v11032_v56  ;;  %v762_v35 = vadd.f32 %v10618_v5, %v17789_v49  ;;  %v1121_v4 = vadd.f32 %v17790_v51, %v10895_v31  ;;  %v1115_v58 = vadd.f32 %v17791_v26, %v10848_v19  ;;  %2326 = vmatprep.subr.mxu1 %v1725_v21  ;;  %v1719_v30 = vld [vmem:[%s17662_s3 + $0x198] sm:$0xff]  ;;  %v1886_v45 = vld [vmem:[%s17662_s3 + $0x6d0] sm:$0xff]  ;;  %v17792_v39 = vld [vmem:[#allocation17_spill] sm:$0xff] }
 0x16c   : > { %2471 = vmatprep.subr.mxu0 %v1893_v34  ;;  %1595 = vst [vmem:[#allocation2 + $0x100] sm:$0xff] %v1538_v62  ;;  %1589 = vst [vmem:[#allocation2 + $0xd0] sm:$0xff] %v11038_v57  ;;  %v1539_v31 = vmax.f32 %v11040_v32, 0.0  ;;  %v1533_v19 = vmax.f32 %v1477_v20, 0.0  ;;  %v11066_v21 = vadd.f32 %v1272_v42, %v1120_v59  ;;  %v1480_v34 = vadd.f32 %v1409_v18, %v1114_v23  ;;  %v17793_v59 = vld [vmem:[#allocation48_spill] sm:$0xff]  ;;  %v17794_v7 = vld [vmem:[#allocation49_spill] sm:$0xff]  ;;  %v1274_v20 = vpop.f32.mrf.mxu0  ;;  %v1411_v49 = vpop.f32.mrf.mxu1 }
 0x16d   : > { %2135 = vmatmul.mubr.f32.gmra.mxu0 %v1526_v52  ;;  %2260 = vmatmul.mubr.f32.gmra.mxu1 %v10884_v3  ;;  %v11079_v14 = vadd.f32 %v10626_v16, %v17792_v39  ;;  %v1124_v23 = vadd.f32 %v17793_v59, %v10950_v37  ;;  %v1118_v52 = vadd.f32 %v17794_v7, %v10868_v41  ;;  %v11085_v51 = vld [vmem:[#allocation2 + $0x98] sm:$0xff]  ;;  %v1713_v41 = vld [vmem:[%s17662_s3 + $0x168] sm:$0xff]  ;;  %v17800_v61 = vld [vmem:[#allocation54_spill] sm:$0xff] }
 0x16e   : > { %2327 = vmatpush1.msra.mxu1 %v1724_v47  ;;  %2472 = vmatpush1.msra.mxu0 %v1892_v12  ;;  %1596 = vst [vmem:[#allocation2 + $0x108] sm:$0xff] %v1539_v31  ;;  %1590 = vst.msk [vmem:[#allocation2 + $0xd8] sm:$0xff] %vm1565_vm1, %v1533_v19  ;;  %v1542_v26 = vmax.f32 %v11066_v21, 0.0  ;;  %v11091_v42 = vmax.f32 %v1480_v34, 0.0  ;;  %v1487_v37 = vadd.f32 %v1274_v20, %v1121_v4  ;;  %v1881_v47 = vld [vmem:[%s17662_s3 + $0x6a8] sm:$0xff]  ;;  %v17795_v12 = vld [vmem:[#allocation18_spill] sm:$0xff]  ;;  %v1278_v4 = vpop.f32.mrf.mxu0 }
 0x16f   : > { %2328 = vmatprep.subr.mxu1 %v1719_v30  ;;  %2473 = vmatprep.subr.mxu0 %v1887_v53  ;;  %v1481_v18 = vadd.f32 %v1411_v49, %v1115_v58  ;;  %v763_v39 = vadd.f32 %v10622_v15, %v17795_v12  ;;  %v17796_v19 = vld [vmem:[#allocation50_spill] sm:$0xff]  ;;  %v17797_v34 = vld [vmem:[#allocation51_spill] sm:$0xff]  ;;  %v1415_v58 = vpop.f32.mrf.mxu1  ;;  %v17803_v27 = vld [vmem:[#allocation56_spill] sm:$0xff]  ;;  %v1136_v44 = vadd.f32 %v10632_v10, %v10644_v2 }
 0x170   : > { %v1125_v59 = vadd.f32 %v17796_v19, %v11000_v40  ;;  %v1119_v30 = vadd.f32 %v17797_v34, %v10916_v24  ;;  %2329 = vmatpush1.msra.mxu1 %v1718_v55  ;;  %2474 = vmatpush1.msra.mxu0 %v1886_v45  ;;  %1599 = vst [vmem:[#allocation2 + $0x120] sm:$0xff] %v1542_v26  ;;  %1593 = vst [vmem:[#allocation2 + $0xf0] sm:$0xff] %v11091_v42  ;;  %v11108_v53 = vmax.f32 %v1487_v37, 0.0  ;;  %v1712_v55 = vld [vmem:[%s17662_s3 + $0x160] sm:$0xff]  ;;  %v17798_v20 = vld [vmem:[#allocation19_spill] sm:$0xff]  ;;  %v1280_v12 = vpop.f32.mrf.mxu0 }
 0x171   : > { %v1537_v7 = vmax.f32 %v1481_v18, 0.0  ;;  %2140 = vmatprep.mubr.f32.mxu0 %v1531_v46  ;;  %8011 = vmatprep.mubr.msk.f32.mxu1 %vm1565_vm1, %v11085_v51  ;;  %v1490_v40 = vadd.f32 %v1278_v4, %v1124_v23  ;;  %v1484_v24 = vadd.f32 %v1415_v58, %v1118_v52  ;;  %v1880_v45 = vld [vmem:[%s17662_s3 + $0x6a0] sm:$0xff]  ;;  %v761_v49 = vadd.f32 %v10630_v1, %v17798_v20  ;;  %v17799_v37 = vld [vmem:[#allocation53_spill] sm:$0xff]  ;;  %v1707_v23 = vld [vmem:[%s17662_s3 + $0x138] sm:$0xff]  ;;  %v1417_v19 = vpop.f32.mrf.mxu1 }
 0x172   : > { %v1128_v18 = vadd.f32 %v17799_v37, %v762_v35  ;;  %v1122_v46 = vadd.f32 %v17800_v61, %v10971_v48  ;;  %2330 = vmatprep.subr.mxu1 %v1713_v41  ;;  %2475 = vmatprep.subr.mxu0 %v1881_v47  ;;  %v1875_v52 = vld [vmem:[%s17662_s3 + $0x678] sm:$0xff]  ;;  %1600 = vst [vmem:[#allocation2 + $0x128] sm:$0xff] %v11108_v53  ;;  %v1706_v47 = vld [vmem:[%s17662_s3 + $0x130] sm:$0xff]  ;;  %v17801_v58 = vld [vmem:[#allocation20_spill] sm:$0xff] }
 0x173   : > { %1594 = vst.msk [vmem:[#allocation2 + $0xf8] sm:$0xff] %vm1565_vm1, %v1537_v7  ;;  %v11133_v35 = vmax.f32 %v1490_v40, 0.0  ;;  %v11135_v34 = vmax.f32 %v1484_v24, 0.0  ;;  %2141 = vmatmul.mubr.f32.gmra.mxu0 %v1530_v29  ;;  %2266 = vmatmul.mubr.f32.gmra.mxu1 %v10936_v25  ;;  %v1491_v48 = vadd.f32 %v1280_v12, %v1125_v59  ;;  %v1485_v41 = vadd.f32 %v1417_v19, %v1119_v30  ;;  %v1874_v4 = vld [vmem:[%s17662_s3 + $0x670] sm:$0xff]  ;;  %v17802_v40 = vld [vmem:[#allocation55_spill] sm:$0xff]  ;;  %v1284_v30 = vpop.f32.mrf.mxu0  ;;  %v1421_v20 = vpop.f32.mrf.mxu1  ;;  %v17805_v19 = vld [vmem:[#allocation57_spill] sm:$0xff] }
 0x174   : > { %v766_v7 = vadd.f32 %v10618_v5, %v17801_v58  ;;  %v1129_v24 = vadd.f32 %v17802_v40, %v763_v39  ;;  %v1123_v29 = vadd.f32 %v17803_v27, %v11024_v60  ;;  %2331 = vmatpush1.msra.mxu1 %v1712_v55  ;;  %2476 = vmatpush1.msra.mxu0 %v1880_v45  ;;  %v11151_v59 = vld [vmem:[#allocation2 + $0xb8] sm:$0xff]  ;;  %v1701_v39 = vld [vmem:[%s17662_s3 + $0x108] sm:$0xff]  ;;  %v17804_v61 = vld [vmem:[#allocation22_spill] sm:$0xff] }
 0x175   : > { %1603 = vst [vmem:[#allocation2 + $0x140] sm:$0xff] %v11133_v35  ;;  %1597 = vst [vmem:[#allocation2 + $0x110] sm:$0xff] %v11135_v34  ;;  %2332 = vmatprep.subr.mxu1 %v1707_v23  ;;  %2477 = vmatprep.subr.mxu0 %v1875_v52  ;;  %v11155_v37 = vmax.f32 %v1491_v48, 0.0  ;;  %v1541_v5 = vmax.f32 %v1485_v41, 0.0  ;;  %v1869_v60 = vld [vmem:[%s17662_s3 + $0x648] sm:$0xff]  ;;  %v1494_v55 = vadd.f32 %v1284_v30, %v1128_v18  ;;  %v17806_v23 = vld [vmem:[#allocation58_spill] sm:$0xff]  ;;  %v1286_v48 = vpop.f32.mrf.mxu0  ;;  %v1423_v41 = vpop.f32.mrf.mxu1 }
 0x176   : > { %v1488_v45 = vadd.f32 %v1421_v20, %v1122_v46  ;;  %v767_v12 = vadd.f32 %v10622_v15, %v17804_v61  ;;  %v1132_v58 = vadd.f32 %v17805_v19, %v766_v7  ;;  %v1126_v52 = vadd.f32 %v17806_v23, %v11079_v14  ;;  %2333 = vmatpush1.msra.mxu1 %v1706_v47  ;;  %v1700_v14 = vld [vmem:[%s17662_s3 + $0x100] sm:$0xff]  ;;  %v17807_v7 = vld [vmem:[#allocation21_spill] sm:$0xff]  ;;  %v1695_v20 = vld [vmem:[%s17662_s3 + $0xd8] sm:$0xff] }
 0x177   : > { %2478 = vmatpush1.msra.mxu0 %v1874_v4  ;;  %1604 = vst [vmem:[#allocation2 + $0x148] sm:$0xff] %v11155_v37  ;;  %1598 = vst.msk [vmem:[#allocation2 + $0x118] sm:$0xff] %vm1565_vm1, %v1541_v5  ;;  %2146 = vmatprep.mubr.f32.mxu0 %v1535_v28  ;;  %v11174_v15 = vmax.f32 %v1494_v55, 0.0  ;;  %v1868_v46 = vld [vmem:[%s17662_s3 + $0x640] sm:$0xff]  ;;  %v1495_v47 = vadd.f32 %v1286_v48, %v1129_v24  ;;  %v1489_v4 = vadd.f32 %v1423_v41, %v1123_v29  ;;  %v17808_v28 = vld [vmem:[#allocation59_spill] sm:$0xff]  ;;  %v1290_v55 = vpop.f32.mrf.mxu0  ;;  %v1427_v24 = vpop.f32.mrf.mxu1 }
 0x178   : > { %8012 = vmatprep.mubr.msk.f32.mxu1 %vm1565_vm1, %v11151_v59  ;;  %v11176_v18 = vmax.f32 %v1488_v45, 0.0  ;;  %v764_v33 = vadd.f32 %v10626_v16, %v17807_v7  ;;  %v1133_v40 = vadd.f32 %v17808_v28, %v767_v12  ;;  %v17809_v27 = vld [vmem:[#allocation60_spill] sm:$0xff]  ;;  %2334 = vmatprep.subr.mxu1 %v1701_v39  ;;  %v1863_v5 = vld [vmem:[%s17662_s3 + $0x618] sm:$0xff]  ;;  %v1694_v39 = vld [vmem:[%s17662_s3 + $0xd0] sm:$0xff]  ;;  %v1498_v45 = vadd.f32 %v1290_v55, %v1132_v58 }
 0x179   : > { %v1127_v30 = vadd.f32 %v17809_v27, %v761_v49  ;;  %2479 = vmatprep.subr.mxu0 %v1869_v60  ;;  %1607 = vst [vmem:[#allocation2 + $0x160] sm:$0xff] %v11174_v15  ;;  %2147 = vmatmul.mubr.f32.gmra.mxu0 %v1534_v22  ;;  %v11199_v49 = vmax.f32 %v1495_v47, 0.0  ;;  %v1545_v29 = vmax.f32 %v1489_v4, 0.0  ;;  %v1862_v60 = vld [vmem:[%s17662_s3 + $0x610] sm:$0xff]  ;;  %v1492_v61 = vadd.f32 %v1427_v24, %v1126_v52  ;;  %v17810_v12 = vld [vmem:[#allocation23_spill] sm:$0xff]  ;;  %v1292_v48 = vpop.f32.mrf.mxu0  ;;  %v1429_v41 = vpop.f32.mrf.mxu1  ;;  %v1689_v58 = vld [vmem:[%s17662_s3 + $0xa8] sm:$0xff] }
 0x17a   : > { %1601 = vst [vmem:[#allocation2 + $0x130] sm:$0xff] %v11176_v18  ;;  %2272 = vmatmul.mubr.f32.gmra.mxu1 %v10989_v9  ;;  %v765_v19 = vadd.f32 %v10630_v1, %v17810_v12  ;;  %v1130_v22 = vadd.f32 %v10634_v8, %v764_v33  ;;  %2480 = vmatpush1.msra.mxu0 %v1868_v46  ;;  %v11212_v23 = vld [vmem:[#allocation2 + $0xd8] sm:$0xff]  ;;  %v2001_v2 = vld [vmem:[%s17662_s3 + $0xa68] sm:$0xff]  ;;  %v1554_v8 = vmax.f32 %v1498_v45, 0.0  ;;  %v17811_v46 = vld [vmem:[#allocation24_spill] sm:$0xff] }
 0x17b   : > { %2335 = vmatpush1.msra.mxu1 %v1700_v14  ;;  %2481 = vmatprep.subr.mxu0 %v1863_v5  ;;  %1608 = vst [vmem:[#allocation2 + $0x168] sm:$0xff] %v11199_v49  ;;  %1602 = vst.msk [vmem:[#allocation2 + $0x138] sm:$0xff] %vm1565_vm1, %v1545_v29  ;;  %v11222_v10 = vmax.f32 %v1492_v61, 0.0  ;;  %v1499_v52 = vadd.f32 %v1292_v48, %v1133_v40  ;;  %v1493_v14 = vadd.f32 %v1429_v41, %v1127_v30  ;;  %v17812_v4 = vld [vmem:[#allocation61_spill] sm:$0xff]  ;;  %v17813_v33 = vld [vmem:[#allocation62_spill] sm:$0xff]  ;;  %v1296_v27 = vpop.f32.mrf.mxu0 }
 0x17c   : > { %2336 = vmatprep.subr.mxu1 %v1695_v20  ;;  %v768_v47 = vadd.f32 %v10626_v16, %v17811_v46  ;;  %v1137_v7 = vadd.f32 %v17812_v4, %v10650_v0  ;;  %v1131_v28 = vadd.f32 %v17813_v33, %v765_v19  ;;  %2482 = vmatpush1.msra.mxu0 %v1862_v60  ;;  %v1433_v20 = vpop.f32.mrf.mxu1  ;;  %v1688_v40 = vld [vmem:[%s17662_s3 + $0xa0] sm:$0xff]  ;;  %v17814_v32 = vld [vmem:[#allocation25_spill] sm:$0xff]  ;;  %v17815_v29 = vld [vmem:[#allocation63_spill] sm:$0xff] }
 0x17d   : > { %2337 = vmatpush1.msra.mxu1 %v1694_v39  ;;  %2152 = vmatprep.mubr.f32.mxu0 %v1539_v31  ;;  %1611 = vst [vmem:[#allocation2 + $0x180] sm:$0xff] %v1554_v8  ;;  %1605 = vst [vmem:[#allocation2 + $0x150] sm:$0xff] %v11222_v10  ;;  %v2000_v0 = vld [vmem:[%s17662_s3 + $0xa60] sm:$0xff]  ;;  %v1555_v30 = vmax.f32 %v1499_v52, 0.0  ;;  %v1549_v5 = vmax.f32 %v1493_v14, 0.0  ;;  %v1502_v55 = vadd.f32 %v1296_v27, %v1136_v44  ;;  %v1683_v60 = vld [vmem:[%s17662_s3 + $0x78] sm:$0xff]  ;;  %v1298_v61 = vpop.f32.mrf.mxu0 }
 0x17e   : > { %8013 = vmatprep.mubr.msk.f32.mxu1 %vm1565_vm1, %v11212_v23  ;;  %v1496_v24 = vadd.f32 %v1433_v20, %v1130_v22  ;;  %v769_v31 = vadd.f32 %v10630_v1, %v17814_v32  ;;  %v1134_v39 = vadd.f32 %v17815_v29, %v768_v47  ;;  %2338 = vmatprep.subr.mxu1 %v1689_v58  ;;  %v1995_v45 = vld [vmem:[%s17662_s3 + $0xa38] sm:$0xff]  ;;  %v1435_v12 = vpop.f32.mrf.mxu1  ;;  %v1682_v19 = vld [vmem:[%s17662_s3 + $0x70] sm:$0xff]  ;;  %v1677_v14 = vld [vmem:[%s17662_s3 + $0x48] sm:$0xff] }
 0x17f   : > { %2499 = vmatprep.subr.mxu0 %v2001_v2  ;;  %2153 = vmatmul.mubr.f32.gmra.mxu0 %v1538_v62  ;;  %1612 = vst [vmem:[#allocation2 + $0x188] sm:$0xff] %v1555_v30  ;;  %1606 = vst.msk [vmem:[#allocation2 + $0x158] sm:$0xff] %vm1565_vm1, %v1549_v5  ;;  %v1994_v44 = vld [vmem:[%s17662_s3 + $0xa30] sm:$0xff]  ;;  %v1558_v22 = vmax.f32 %v1502_v55, 0.0  ;;  %v1503_v41 = vadd.f32 %v1298_v61, %v1137_v7  ;;  %v1497_v58 = vadd.f32 %v1435_v12, %v1131_v28  ;;  %v11263_v2 = vld [vmem:[#allocation2 + $0xf8] sm:$0xff] }
 0x180   : > { %2278 = vmatmul.mubr.f32.gmra.mxu1 %v11038_v57  ;;  %v11259_v48 = vmax.f32 %v1496_v24, 0.0  ;;  %v17816_v38 = vld [vmem:[#allocation26_spill] sm:$0xff]  ;;  %2500 = vmatpush2.msra.mxu0 %v2000_v0  ;;  %v1439_v8 = vpop.f32.mrf.mxu1  ;;  %v1135_v52 = vadd.f32 %v10680_v36, %v769_v31  ;;  %v1989_v46 = vld [vmem:[%s17662_s3 + $0xa08] sm:$0xff]  ;;  %v17817_v36 = vld [vmem:[#allocation27_spill] sm:$0xff] }
 0x181   : > { %v772_v62 = vadd.f32 %v10626_v16, %v17816_v38  ;;  %2339 = vmatpush1.msra.mxu1 %v1688_v40  ;;  %2501 = vmatprep.subr.mxu0 %v1995_v45  ;;  %1615 = vst [vmem:[#allocation2 + $0x1a0] sm:$0xff] %v1558_v22  ;;  %v1559_v16 = vmax.f32 %v1503_v41, 0.0  ;;  %v1553_v47 = vmax.f32 %v1497_v58, 0.0  ;;  %v1500_v4 = vadd.f32 %v1439_v8, %v1134_v39  ;;  %v1676_v27 = vld [vmem:[%s17662_s3 + $0x40] sm:$0xff]  ;;  %v1983_v0 = vld [vmem:[%s17662_s3 + $0x9d8] sm:$0xff]  ;;  %v1670_v55 = vld [vmem:[%s17662_s3 + $0x10] sm:$0xff] }
 0x182   : > { %2340 = vmatprep.subr.mxu1 %v1683_v60  ;;  %1609 = vst [vmem:[#allocation2 + $0x170] sm:$0xff] %v11259_v48  ;;  %2502 = vmatpush2.msra.mxu0 %v1994_v44  ;;  %v1441_v7 = vpop.f32.mrf.mxu1  ;;  %v773_v33 = vadd.f32 %v10630_v1, %v17817_v36  ;;  %v1988_v20 = vld [vmem:[%s17662_s3 + $0xa00] sm:$0xff]  ;;  %v1982_v24 = vld [vmem:[%s17662_s3 + $0x9d0] sm:$0xff]  ;;  %v11302_v29 = vld [vmem:[#allocation2 + $0x118] sm:$0xff] }
 0x183   : > { %2341 = vmatpush1.msra.mxu1 %v1682_v19  ;;  %v1138_v28 = vadd.f32 %v10701_v43, %v772_v62  ;;  %2158 = vmatprep.mubr.f32.mxu0 %v11108_v53  ;;  %1616 = vst [vmem:[#allocation2 + $0x1a8] sm:$0xff] %v1559_v16  ;;  %1610 = vst.msk [vmem:[#allocation2 + $0x178] sm:$0xff] %vm1565_vm1, %v1553_v47  ;;  %v1556_v40 = vmax.f32 %v1500_v4, 0.0  ;;  %v1501_v1 = vadd.f32 %v1441_v7, %v1135_v52  ;;  %v1671_v43 = vld [vmem:[%s17662_s3 + $0x18] sm:$0xff]  ;;  %v1857_v21 = vld [vmem:[%s17662_s3 + $0x5e8] sm:$0xff] }
 0x184   : > { %8014 = vmatprep.mubr.msk.f32.mxu1 %vm1565_vm1, %v11263_v2  ;;  %2342 = vmatprep.subr.mxu1 %v1677_v14  ;;  %v1445_v30 = vpop.f32.mrf.mxu1  ;;  %v1139_v5 = vadd.f32 %v10724_v63, %v773_v33  ;;  %v1856_v45 = vld [vmem:[%s17662_s3 + $0x5e0] sm:$0xff]  ;;  %v1851_v19 = vld [vmem:[%s17662_s3 + $0x5b8] sm:$0xff]  ;;  %v1850_v22 = vld [vmem:[%s17662_s3 + $0x5b0] sm:$0xff] }
 0x185   : > { %2503 = vmatprep.subr.mxu0 %v1989_v46  ;;  %2159 = vmatmul.mubr.f32.gmra.mxu0 %v1542_v26  ;;  %1613 = vst [vmem:[#allocation2 + $0x190] sm:$0xff] %v1556_v40  ;;  %v1557_v32 = vmax.f32 %v1501_v1, 0.0  ;;  %v1504_v31 = vadd.f32 %v1445_v30, %v1138_v28  ;;  %v1977_v26 = vld [vmem:[%s17662_s3 + $0x9a8] sm:$0xff]  ;;  %v1976_v61 = vld [vmem:[%s17662_s3 + $0x9a0] sm:$0xff]  ;;  %v1971_v44 = vld [vmem:[%s17662_s3 + $0x978] sm:$0xff] }
 0x186   : > { %2284 = vmatmul.mubr.f32.gmra.mxu1 %v11091_v42  ;;  %2504 = vmatpush2.msra.mxu0 %v1988_v20  ;;  %v1447_v63 = vpop.f32.mrf.mxu1  ;;  %v1970_v41 = vld [vmem:[%s17662_s3 + $0x970] sm:$0xff]  ;;  %v11335_v58 = vld [vmem:[#allocation2 + $0x138] sm:$0xff]  ;;  %v1845_v38 = vld [vmem:[%s17662_s3 + $0x588] sm:$0xff] }
 0x187   : > { %2343 = vmatpush1.msra.mxu1 %v1676_v27  ;;  %2505 = vmatprep.subr.mxu0 %v1983_v0  ;;  %1614 = vst.msk [vmem:[#allocation2 + $0x198] sm:$0xff] %vm1565_vm1, %v1557_v32  ;;  %v1560_v39 = vmax.f32 %v1504_v31, 0.0  ;;  %v1505_v60 = vadd.f32 %v1447_v63, %v1139_v5  ;;  %v1965_v62 = vld [vmem:[%s17662_s3 + $0x948] sm:$0xff]  ;;  %v1844_v8 = vld [vmem:[%s17662_s3 + $0x580] sm:$0xff]  ;;  %v1839_v14 = vld [vmem:[%s17662_s3 + $0x558] sm:$0xff] }
 0x188   : > { %2344 = vmatprep.subr.mxu1 %v1671_v43  ;;  %2506 = vmatpush2.msra.mxu0 %v1982_v24  ;;  %v1964_v52 = vld [vmem:[%s17662_s3 + $0x940] sm:$0xff]  ;;  %v1959_v46 = vld [vmem:[%s17662_s3 + $0x918] sm:$0xff]  ;;  %v1838_v16 = vld [vmem:[%s17662_s3 + $0x550] sm:$0xff] }
 0x189   : > { %2345 = vmatpush1.msra.mxu1 %v1670_v55  ;;  %2164 = vmatprep.mubr.f32.mxu0 %v11155_v37  ;;  %1617 = vst [vmem:[#allocation2 + $0x1b0] sm:$0xff] %v1560_v39  ;;  %v1561_v12 = vmax.f32 %v1505_v60, 0.0  ;;  %v1958_v47 = vld [vmem:[%s17662_s3 + $0x910] sm:$0xff]  ;;  %v11366_v4 = vld [vmem:[#allocation2 + $0x158] sm:$0xff]  ;;  %v1833_v7 = vld [vmem:[%s17662_s3 + $0x528] sm:$0xff] }
 0x18a   : > { %8015 = vmatprep.mubr.msk.f32.mxu1 %vm1565_vm1, %v11302_v29  ;;  %2346 = vmatprep.subr.mxu1 %v1857_v21  ;;  %v1763_v36 = vld [vmem:[%s17662_s3 + $0x2f8] sm:$0xff]  ;;  %v1832_v33 = vld [vmem:[%s17662_s3 + $0x520] sm:$0xff]  ;;  %v1762_v28 = vld [vmem:[%s17662_s3 + $0x2f0] sm:$0xff] }
 0x18b   : > { %2507 = vmatprep.subr.mxu0 %v1977_v26  ;;  %2165 = vmatmul.mubr.f32.gmra.mxu0 %v11133_v35  ;;  %1618 = vst.msk [vmem:[#allocation2 + $0x1b8] sm:$0xff] %vm1565_vm1, %v1561_v12  ;;  %v1827_v27 = vld [vmem:[%s17662_s3 + $0x4f8] sm:$0xff]  ;;  %v1826_v20 = vld [vmem:[%s17662_s3 + $0x4f0] sm:$0xff]  ;;  %v1756_v40 = vld [vmem:[%s17662_s3 + $0x2c0] sm:$0xff] }
 0x18c   : > { %2290 = vmatmul.mubr.f32.gmra.mxu1 %v11135_v34  ;;  %2508 = vmatpush2.msra.mxu0 %v1976_v61  ;;  %v11398_v1 = vld [vmem:[#allocation2 + $0x178] sm:$0xff]  ;;  %v1820_v0 = vld [vmem:[%s17662_s3 + $0x4c0] sm:$0xff]  ;;  %v1745_v5 = vld [vmem:[%s17662_s3 + $0x268] sm:$0xff] }
 0x18d   : > { %2347 = vmatpush2.msra.mxu1 %v1856_v45  ;;  %2509 = vmatprep.subr.mxu0 %v1971_v44  ;;  %v1751_v43 = vld [vmem:[%s17662_s3 + $0x298] sm:$0xff]  ;;  %v1814_v55 = vld [vmem:[%s17662_s3 + $0x490] sm:$0xff]  ;;  %v1744_v24 = vld [vmem:[%s17662_s3 + $0x260] sm:$0xff] }
 0x18e   : > { %2348 = vmatprep.subr.mxu1 %v1851_v19  ;;  %2510 = vmatpush2.msra.mxu0 %v1970_v41  ;;  %v1815_v30 = vld [vmem:[%s17662_s3 + $0x498] sm:$0xff]  ;;  %v11430_v32 = vld [vmem:[#allocation2 + $0x8] sm:$0xff]  ;;  %v1808_v63 = vld [vmem:[%s17662_s3 + $0x460] sm:$0xff] }
 0x18f   : > { %2349 = vmatpush2.msra.mxu1 %v1850_v22  ;;  %2170 = vmatprep.mubr.f32.mxu0 %v11199_v49  ;;  %v1739_v31 = vld [vmem:[%s17662_s3 + $0x238] sm:$0xff]  ;;  %v1738_v21 = vld [vmem:[%s17662_s3 + $0x230] sm:$0xff]  ;;  %v1732_v60 = vld [vmem:[%s17662_s3 + $0x200] sm:$0xff] }
 0x190   : > { %8016 = vmatprep.mubr.msk.f32.mxu1 %vm1565_vm1, %v11335_v58  ;;  %2350 = vmatprep.subr.mxu1 %v1845_v38  ;;  %v1803_v26 = vld [vmem:[%s17662_s3 + $0x438] sm:$0xff]  ;;  %v1802_v39 = vld [vmem:[%s17662_s3 + $0x430] sm:$0xff]  ;;  %v1797_v45 = vld [vmem:[%s17662_s3 + $0x408] sm:$0xff] }
 0x191   : > { %2511 = vmatprep.subr.mxu0 %v1965_v62  ;;  %2171 = vmatmul.mubr.f32.gmra.mxu0 %v11174_v15  ;;  %v1727_v61 = vld [vmem:[%s17662_s3 + $0x1d8] sm:$0xff]  ;;  %v1726_v12 = vld [vmem:[%s17662_s3 + $0x1d0] sm:$0xff]  ;;  %v1720_v22 = vld [vmem:[%s17662_s3 + $0x1a0] sm:$0xff] }
 0x192   : > { %2296 = vmatmul.mubr.f32.gmra.mxu1 %v11176_v18  ;;  %2512 = vmatpush2.msra.mxu0 %v1964_v52  ;;  %v1791_v19 = vld [vmem:[%s17662_s3 + $0x3d8] sm:$0xff]  ;;  %v1790_v44 = vld [vmem:[%s17662_s3 + $0x3d0] sm:$0xff]  ;;  %v1785_v41 = vld [vmem:[%s17662_s3 + $0x3a8] sm:$0xff] }
 0x193   : > { %2351 = vmatpush2.msra.mxu1 %v1844_v8  ;;  %2513 = vmatprep.subr.mxu0 %v1959_v46  ;;  %v1715_v38 = vld [vmem:[%s17662_s3 + $0x178] sm:$0xff]  ;;  %v1714_v62 = vld [vmem:[%s17662_s3 + $0x170] sm:$0xff]  ;;  %v1773_v46 = vld [vmem:[%s17662_s3 + $0x348] sm:$0xff] }
 0x194   : > { %2352 = vmatprep.subr.mxu1 %v1839_v14  ;;  %8019 = vmatprep.mubr.msk.f32.mxu0 %vm1565_vm1, %v10874_v17  ;;  %v1757_v17 = vld [vmem:[%s17662_s3 + $0x2c8] sm:$0xff]  ;;  %v1779_v8 = vld [vmem:[%s17662_s3 + $0x378] sm:$0xff]  ;;  %v1778_v52 = vld [vmem:[%s17662_s3 + $0x370] sm:$0xff] }
 0x195   : > { %2353 = vmatpush2.msra.mxu1 %v1838_v16  ;;  %2514 = vmatpush2.msra.mxu0 %v1958_v47  ;;  %v1708_v14 = vld [vmem:[%s17662_s3 + $0x140] sm:$0xff]  ;;  %v1703_v16 = vld [vmem:[%s17662_s3 + $0x118] sm:$0xff]  ;;  %v1702_v47 = vld [vmem:[%s17662_s3 + $0x110] sm:$0xff] }
 0x196   : > { %8017 = vmatprep.mubr.msk.f32.mxu1 %vm1565_vm1, %v11366_v4  ;;  %2354 = vmatprep.subr.mxu1 %v1833_v7  ;;  %v1767_v7 = vld [vmem:[%s17662_s3 + $0x318] sm:$0xff] }
 0x197   : > { %2588 = vmatprep.subr.mxu0 %v1763_v36  ;;  %2302 = vmatmul.mubr.f32.gmra.mxu1 %v11222_v10  ;;  %v1766_v36 = vld [vmem:[%s17662_s3 + $0x310] sm:$0xff] }
 0x198   : > { %2516 = vmatmul.mubr.f32.vlgmr.msra.gmra.mxu0 %v10767_v50  ;;  %2355 = vmatpush2.msra.mxu1 %v1832_v33  ;;  %v1821_v50 = vld [vmem:[%s17662_s3 + $0x4c8] sm:$0xff]  ;;  %v1696_v33 = vld [vmem:[%s17662_s3 + $0xe0] sm:$0xff] }
 0x199   : > { %2589 = vmatpush1.msra.mxu0 %v1762_v28  ;;  %2356 = vmatprep.subr.mxu1 %v1827_v27  ;;  %v1691_v28 = vld [vmem:[%s17662_s3 + $0xb8] sm:$0xff]  ;;  %v1954_v27 = vld [vmem:[%s17662_s3 + $0x8f0] sm:$0xff] }
 0x19a   : > { %8020 = vmatprep.mubr.msk.f32.mxu0 %vm1565_vm1, %v10922_v6  ;;  %2590 = vmatprep.subr.mxu0 %v1757_v17  ;;  %v1750_v6 = vld [vmem:[%s17662_s3 + $0x290] sm:$0xff]  ;;  %v11552_v17 = vld [vmem:[#allocation2] sm:$0xff] }
 0x19b   : > { %2357 = vmatpush2.msra.mxu1 %v1826_v20  ;;  %2591 = vmatpush1.msra.mxu0 %v1756_v40  ;;  %v11558_v20 = vld [vmem:[#allocation2 + $0x28] sm:$0xff] }
 0x19c   : > { %8018 = vmatprep.mubr.msk.f32.mxu1 %vm1565_vm1, %v11398_v1  ;;  %2358 = vmatprep.subr.mxu1 %v1821_v50  ;;  %v1685_v40 = vld [vmem:[%s17662_s3 + $0x88] sm:$0xff] }
 0x19d   : > { %2592 = vmatprep.subr.mxu0 %v1751_v43  ;;  %2308 = vmatmul.mubr.f32.gmra.mxu1 %v11259_v48  ;;  %v1949_v50 = vld [vmem:[%s17662_s3 + $0x8c8] sm:$0xff]  ;;  %v1684_v43 = vld [vmem:[%s17662_s3 + $0x80] sm:$0xff] }
 0x19e   : > { %2522 = vmatmul.mubr.f32.gmra.mxu0 %v10802_v54  ;;  %2359 = vmatpush2.msra.mxu1 %v1820_v0  ;;  %v1809_v54 = vld [vmem:[%s17662_s3 + $0x468] sm:$0xff]  ;;  %v1948_v0 = vld [vmem:[%s17662_s3 + $0x8c0] sm:$0xff] }
 0x19f   : > { %2593 = vmatpush1.msra.mxu0 %v1750_v6  ;;  %2360 = vmatprep.subr.mxu1 %v1815_v30  ;;  %v1679_v6 = vld [vmem:[%s17662_s3 + $0x58] sm:$0xff]  ;;  %v1942_v30 = vld [vmem:[%s17662_s3 + $0x890] sm:$0xff] }
 0x1a0   : > { %2378 = vmatprep.mubr.f32.mxu1 %v11430_v32  ;;  %8021 = vmatprep.mubr.msk.f32.mxu0 %vm1565_vm1, %v10977_v13  ;;  %v1733_v13 = vld [vmem:[%s17662_s3 + $0x208] sm:$0xff] }
 0x1a1   : > { %2594 = vmatprep.subr.mxu0 %v1745_v5  ;;  %2361 = vmatpush2.msra.mxu1 %v1814_v55  ;;  %v11585_v5 = vld [vmem:[#allocation2 + $0x20] sm:$0xff]  ;;  %v11591_v55 = vld [vmem:[#allocation2 + $0x48] sm:$0xff] }
 0x1a2   : > { %2595 = vmatpush1.msra.mxu0 %v1744_v24  ;;  %2362 = vmatprep.subr.mxu1 %v1809_v54  ;;  %v1673_v24 = vld [vmem:[%s17662_s3 + $0x28] sm:$0xff] }
 0x1a3   : > { %2596 = vmatprep.subr.mxu0 %v1739_v31  ;;  %2363 = vmatpush2.msra.mxu1 %v1808_v63  ;;  %v1937_v54 = vld [vmem:[%s17662_s3 + $0x868] sm:$0xff]  ;;  %v1672_v31 = vld [vmem:[%s17662_s3 + $0x20] sm:$0xff] }
 0x1a4   : > { %2528 = vmatmul.mubr.f32.gmra.mxu0 %v10841_v11  ;;  %2364 = vmatprep.subr.mxu1 %v1803_v26  ;;  %v1796_v11 = vld [vmem:[%s17662_s3 + $0x400] sm:$0xff]  ;;  %v1930_v26 = vld [vmem:[%s17662_s3 + $0x830] sm:$0xff] }
 0x1a5   : > { %2597 = vmatpush1.msra.mxu0 %v1738_v21  ;;  %8022 = vmatprep.mubr.msk.f32.mxu0 %vm1565_vm1, %v11032_v56  ;;  %v1721_v56 = vld [vmem:[%s17662_s3 + $0x1a8] sm:$0xff]  ;;  %v1936_v63 = vld [vmem:[%s17662_s3 + $0x860] sm:$0xff]  ;;  %v1859_v21 = vld [vmem:[%s17662_s3 + $0x5f8] sm:$0xff] }
 0x1a6   : > { %2598 = vmatprep.subr.mxu0 %v1733_v13  ;;  %2365 = vmatpush2.msra.mxu1 %v1802_v39  ;;  %v11618_v13 = vld [vmem:[#allocation2 + $0x40] sm:$0xff]  ;;  %v11624_v39 = vld [vmem:[#allocation2 + $0x68] sm:$0xff] }
 0x1a7   : > { %2599 = vmatpush1.msra.mxu0 %v1732_v60  ;;  %2366 = vmatprep.subr.mxu1 %v1797_v45  ;;  %v1853_v60 = vld [vmem:[%s17662_s3 + $0x5c8] sm:$0xff] }
 0x1a8   : > { %2600 = vmatprep.subr.mxu0 %v1727_v61  ;;  %2367 = vmatpush2.msra.mxu1 %v1796_v11  ;;  %v1925_v45 = vld [vmem:[%s17662_s3 + $0x808] sm:$0xff]  ;;  %v1852_v61 = vld [vmem:[%s17662_s3 + $0x5c0] sm:$0xff] }
 0x1a9   : > { %2534 = vmatmul.mubr.f32.gmra.mxu0 %v10884_v3  ;;  %2368 = vmatprep.subr.mxu1 %v1791_v19  ;;  %v1784_v3 = vld [vmem:[%s17662_s3 + $0x3a0] sm:$0xff]  ;;  %v1918_v19 = vld [vmem:[%s17662_s3 + $0x7d0] sm:$0xff] }
 0x1aa   : > { %2601 = vmatpush1.msra.mxu0 %v1726_v12  ;;  %8023 = vmatprep.mubr.msk.f32.mxu0 %vm1565_vm1, %v11085_v51  ;;  %v1709_v51 = vld [vmem:[%s17662_s3 + $0x148] sm:$0xff]  ;;  %v1924_v11 = vld [vmem:[%s17662_s3 + $0x800] sm:$0xff]  ;;  %v1847_v12 = vld [vmem:[%s17662_s3 + $0x598] sm:$0xff] }
 0x1ab   : > { %2602 = vmatprep.subr.mxu0 %v1721_v56  ;;  %2369 = vmatpush2.msra.mxu1 %v1790_v44  ;;  %v11651_v56 = vld [vmem:[#allocation2 + $0x60] sm:$0xff]  ;;  %v11657_v44 = vld [vmem:[#allocation2 + $0x88] sm:$0xff] }
 0x1ac   : > { %2603 = vmatpush1.msra.mxu0 %v1720_v22  ;;  %2370 = vmatprep.subr.mxu1 %v1785_v41  ;;  %v1841_v22 = vld [vmem:[%s17662_s3 + $0x568] sm:$0xff] }
 0x1ad   : > { %2604 = vmatprep.subr.mxu0 %v1715_v38  ;;  %2371 = vmatpush2.msra.mxu1 %v1784_v3  ;;  %v1913_v41 = vld [vmem:[%s17662_s3 + $0x7a8] sm:$0xff]  ;;  %v1840_v38 = vld [vmem:[%s17662_s3 + $0x560] sm:$0xff] }
 0x1ae   : > { %2540 = vmatmul.mubr.f32.gmra.mxu0 %v10936_v25  ;;  %2372 = vmatprep.subr.mxu1 %v1779_v8  ;;  %v1772_v25 = vld [vmem:[%s17662_s3 + $0x340] sm:$0xff]  ;;  %v1906_v8 = vld [vmem:[%s17662_s3 + $0x770] sm:$0xff] }
 0x1af   : > { %2605 = vmatpush1.msra.mxu0 %v1714_v62  ;;  %8024 = vmatprep.mubr.msk.f32.mxu0 %vm1565_vm1, %v11151_v59  ;;  %v1697_v59 = vld [vmem:[%s17662_s3 + $0xe8] sm:$0xff]  ;;  %v1912_v3 = vld [vmem:[%s17662_s3 + $0x7a0] sm:$0xff]  ;;  %v1835_v62 = vld [vmem:[%s17662_s3 + $0x538] sm:$0xff] }
 0x1b0   : > { %2606 = vmatprep.subr.mxu0 %v1709_v51  ;;  %2373 = vmatpush2.msra.mxu1 %v1778_v52  ;;  %v11684_v51 = vld [vmem:[#allocation2 + $0x80] sm:$0xff]  ;;  %v11690_v52 = vld [vmem:[#allocation2 + $0xa8] sm:$0xff] }
 0x1b1   : > { %2607 = vmatpush1.msra.mxu0 %v1708_v14  ;;  %2374 = vmatprep.subr.mxu1 %v1773_v46  ;;  %v1829_v14 = vld [vmem:[%s17662_s3 + $0x508] sm:$0xff] }
 0x1b2   : > { %2608 = vmatprep.subr.mxu0 %v1703_v16  ;;  %2375 = vmatpush2.msra.mxu1 %v1772_v25  ;;  %v1901_v46 = vld [vmem:[%s17662_s3 + $0x748] sm:$0xff]  ;;  %v1828_v16 = vld [vmem:[%s17662_s3 + $0x500] sm:$0xff] }
 0x1b3   : > { %2546 = vmatmul.mubr.f32.gmra.mxu0 %v10989_v9  ;;  %2376 = vmatprep.subr.mxu1 %v1767_v7  ;;  %v1955_v9 = vld [vmem:[%s17662_s3 + $0x8f8] sm:$0xff]  ;;  %v1900_v25 = vld [vmem:[%s17662_s3 + $0x740] sm:$0xff]  ;;  %v1894_v7 = vld [vmem:[%s17662_s3 + $0x710] sm:$0xff] }
 0x1b4   : > { %2609 = vmatpush1.msra.mxu0 %v1702_v47  ;;  %8025 = vmatprep.mubr.msk.f32.mxu0 %vm1565_vm1, %v11212_v23  ;;  %v1690_v23 = vld [vmem:[%s17662_s3 + $0xb0] sm:$0xff]  ;;  %v1823_v47 = vld [vmem:[%s17662_s3 + $0x4d8] sm:$0xff] }
 0x1b5   : > { %2610 = vmatprep.subr.mxu0 %v1697_v59  ;;  %2377 = vmatpush2.msra.mxu1 %v1766_v36  ;;  %v11717_v59 = vld [vmem:[#allocation2 + $0xa0] sm:$0xff]  ;;  %v11723_v36 = vld [vmem:[#allocation2 + $0xc8] sm:$0xff] }
 0x1b6   : > { %2611 = vmatpush1.msra.mxu0 %v1696_v33  ;;  %2379 = vmatmul.mubr.f32.vlgmr.msra.gmra.mxu1 %v11552_v17  ;;  %v1817_v33 = vld [vmem:[%s17662_s3 + $0x4a8] sm:$0xff] }
 0x1b7   : > { %2612 = vmatprep.subr.mxu0 %v1691_v28  ;;  %2725 = vmatprep.subr.mxu1 %v1955_v9  ;;  %v1889_v28 = vld [vmem:[%s17662_s3 + $0x6e8] sm:$0xff]  ;;  %v1816_v9 = vld [vmem:[%s17662_s3 + $0x4a0] sm:$0xff] }
 0x1b8   : > { %2384 = vmatprep.mubr.f32.mxu1 %v11558_v20  ;;  %2552 = vmatmul.mubr.f32.gmra.mxu0 %v11038_v57  ;;  %v1943_v57 = vld [vmem:[%s17662_s3 + $0x898] sm:$0xff] }
 0x1b9   : > { %2726 = vmatpush1.msra.mxu1 %v1954_v27  ;;  %2613 = vmatpush1.msra.mxu0 %v1690_v23  ;;  %v1888_v27 = vld [vmem:[%s17662_s3 + $0x6e0] sm:$0xff]  ;;  %v1811_v23 = vld [vmem:[%s17662_s3 + $0x478] sm:$0xff] }
 0x1ba   : > { %8026 = vmatprep.mubr.msk.f32.mxu0 %vm1565_vm1, %v11263_v2  ;;  %2614 = vmatprep.subr.mxu0 %v1685_v40  ;;  %v1678_v2 = vld [vmem:[%s17662_s3 + $0x50] sm:$0xff] }
 0x1bb   : > { %2727 = vmatprep.subr.mxu1 %v1949_v50  ;;  %2615 = vmatpush1.msra.mxu0 %v1684_v43  ;;  %v1810_v40 = vld [vmem:[%s17662_s3 + $0x470] sm:$0xff]  ;;  %v11752_v50 = vld [vmem:[#allocation2 + $0xc0] sm:$0xff]  ;;  %v1805_v43 = vld [vmem:[%s17662_s3 + $0x448] sm:$0xff] }
 0x1bc   : > { %2728 = vmatpush1.msra.mxu1 %v1948_v0  ;;  %2616 = vmatprep.subr.mxu0 %v1679_v6  ;;  %v1877_v0 = vld [vmem:[%s17662_s3 + $0x688] sm:$0xff] }
 0x1bd   : > { %2385 = vmatmul.mubr.f32.gmra.mxu1 %v11585_v5  ;;  %2729 = vmatprep.subr.mxu1 %v1943_v57  ;;  %v11761_v6 = vld [vmem:[#allocation2 + $0xe8] sm:$0xff]  ;;  %v1804_v57 = vld [vmem:[%s17662_s3 + $0x440] sm:$0xff] }
 0x1be   : > { %2390 = vmatprep.mubr.f32.mxu1 %v11591_v55  ;;  %2558 = vmatmul.mubr.f32.gmra.mxu0 %v11091_v42  ;;  %v1931_v42 = vld [vmem:[%s17662_s3 + $0x838] sm:$0xff] }
 0x1bf   : > { %2730 = vmatpush1.msra.mxu1 %v1942_v30  ;;  %2617 = vmatpush1.msra.mxu0 %v1678_v2  ;;  %v1876_v30 = vld [vmem:[%s17662_s3 + $0x680] sm:$0xff]  ;;  %v1799_v2 = vld [vmem:[%s17662_s3 + $0x418] sm:$0xff] }
 0x1c0   : > { %8027 = vmatprep.mubr.msk.f32.mxu0 %vm1565_vm1, %v11302_v29  ;;  %2618 = vmatprep.subr.mxu0 %v1673_v24  ;;  %v1858_v29 = vld [vmem:[%s17662_s3 + $0x5f0] sm:$0xff]  ;;  %v1871_v24 = vld [vmem:[%s17662_s3 + $0x658] sm:$0xff] }
 0x1c1   : > { %2731 = vmatprep.subr.mxu1 %v1937_v54  ;;  %2619 = vmatpush1.msra.mxu0 %v1672_v31  ;;  %v1798_v54 = vld [vmem:[%s17662_s3 + $0x410] sm:$0xff] }
 0x1c2   : > { %2732 = vmatpush1.msra.mxu1 %v1936_v63  ;;  %2620 = vmatprep.subr.mxu0 %v1859_v21  ;;  %v1870_v31 = vld [vmem:[%s17662_s3 + $0x650] sm:$0xff]  ;;  %v11782_v63 = vld [vmem:[#allocation2 + $0xe0] sm:$0xff]  ;;  %v1793_v21 = vld [vmem:[%s17662_s3 + $0x3e8] sm:$0xff] }
 0x1c3   : > { %2391 = vmatmul.mubr.f32.gmra.mxu1 %v11618_v13  ;;  %2733 = vmatprep.subr.mxu1 %v1931_v42  ;;  %v1865_v42 = vld [vmem:[%s17662_s3 + $0x628] sm:$0xff] }
 0x1c4   : > { %2396 = vmatprep.mubr.f32.mxu1 %v11624_v39  ;;  %2564 = vmatmul.mubr.f32.gmra.mxu0 %v11135_v34  ;;  %v1919_v34 = vld [vmem:[%s17662_s3 + $0x7d8] sm:$0xff] }
 0x1c5   : > { %2734 = vmatpush1.msra.mxu1 %v1930_v26  ;;  %2621 = vmatpush2.msra.mxu0 %v1858_v29  ;;  %v11791_v26 = vld [vmem:[#allocation2 + $0x108] sm:$0xff]  ;;  %v1792_v29 = vld [vmem:[%s17662_s3 + $0x3e0] sm:$0xff] }
 0x1c6   : > { %8028 = vmatprep.mubr.msk.f32.mxu0 %vm1565_vm1, %v11335_v58  ;;  %2622 = vmatprep.subr.mxu0 %v1853_v60  ;;  %v1846_v58 = vld [vmem:[%s17662_s3 + $0x590] sm:$0xff]  ;;  %v1864_v60 = vld [vmem:[%s17662_s3 + $0x620] sm:$0xff] }
 0x1c7   : > { %2735 = vmatprep.subr.mxu1 %v1925_v45  ;;  %2623 = vmatpush2.msra.mxu0 %v1852_v61  ;;  %v1787_v45 = vld [vmem:[%s17662_s3 + $0x3b8] sm:$0xff] }
 0x1c8   : > { %2736 = vmatpush1.msra.mxu1 %v1924_v11  ;;  %2624 = vmatprep.subr.mxu0 %v1847_v12  ;;  %v2003_v61 = vld [vmem:[%s17662_s3 + $0xa78] sm:$0xff]  ;;  %v1786_v11 = vld [vmem:[%s17662_s3 + $0x3b0] sm:$0xff] }
 0x1c9   : > { %2397 = vmatmul.mubr.f32.gmra.mxu1 %v11651_v56  ;;  %2737 = vmatprep.subr.mxu1 %v1919_v34  ;;  %v2002_v12 = vld [vmem:[%s17662_s3 + $0xa70] sm:$0xff]  ;;  %v11812_v34 = vld [vmem:[#allocation2 + $0x100] sm:$0xff] }
 0x1ca   : > { %2402 = vmatprep.mubr.f32.mxu1 %v11657_v44  ;;  %2570 = vmatmul.mubr.f32.gmra.mxu0 %v11176_v18  ;;  %v1907_v18 = vld [vmem:[%s17662_s3 + $0x778] sm:$0xff] }
 0x1cb   : > { %2738 = vmatpush1.msra.mxu1 %v1918_v19  ;;  %2625 = vmatpush2.msra.mxu0 %v1846_v58  ;;  %v1781_v19 = vld [vmem:[%s17662_s3 + $0x388] sm:$0xff] }
 0x1cc   : > { %8029 = vmatprep.mubr.msk.f32.mxu0 %vm1565_vm1, %v11366_v4  ;;  %2626 = vmatprep.subr.mxu0 %v1841_v22  ;;  %v1834_v4 = vld [vmem:[%s17662_s3 + $0x530] sm:$0xff]  ;;  %v1997_v58 = vld [vmem:[%s17662_s3 + $0xa48] sm:$0xff]  ;;  %v1780_v22 = vld [vmem:[%s17662_s3 + $0x380] sm:$0xff] }
 0x1cd   : > { %2739 = vmatprep.subr.mxu1 %v1913_v41  ;;  %2627 = vmatpush2.msra.mxu0 %v1840_v38  ;;  %v1996_v41 = vld [vmem:[%s17662_s3 + $0xa40] sm:$0xff]  ;;  %v1775_v38 = vld [vmem:[%s17662_s3 + $0x358] sm:$0xff] }
 0x1ce   : > { %2740 = vmatpush1.msra.mxu1 %v1912_v3  ;;  %2628 = vmatprep.subr.mxu0 %v1835_v62  ;;  %v1774_v3 = vld [vmem:[%s17662_s3 + $0x350] sm:$0xff] }
 0x1cf   : > { %2403 = vmatmul.mubr.f32.gmra.mxu1 %v11684_v51  ;;  %2741 = vmatprep.subr.mxu1 %v1907_v18  ;;  %v1990_v62 = vld [vmem:[%s17662_s3 + $0xa10] sm:$0xff]  ;;  %v11840_v18 = vld [vmem:[#allocation2 + $0x120] sm:$0xff] }
 0x1d0   : > { %2408 = vmatprep.mubr.f32.mxu1 %v11690_v52  ;;  %2576 = vmatmul.mubr.f32.gmra.mxu0 %v11222_v10  ;;  %v1895_v10 = vld [vmem:[%s17662_s3 + $0x718] sm:$0xff] }
 0x1d1   : > { %2742 = vmatpush1.msra.mxu1 %v1906_v8  ;;  %2629 = vmatpush2.msra.mxu0 %v1834_v4  ;;  %v1769_v8 = vld [vmem:[%s17662_s3 + $0x328] sm:$0xff] }
 0x1d2   : > { %8030 = vmatprep.mubr.msk.f32.mxu0 %vm1565_vm1, %v11398_v1  ;;  %2630 = vmatprep.subr.mxu0 %v1829_v14  ;;  %v1822_v1 = vld [vmem:[%s17662_s3 + $0x4d0] sm:$0xff]  ;;  %v1985_v4 = vld [vmem:[%s17662_s3 + $0x9e8] sm:$0xff]  ;;  %v1768_v14 = vld [vmem:[%s17662_s3 + $0x320] sm:$0xff] }
 0x1d3   : > { %2743 = vmatprep.subr.mxu1 %v1901_v46  ;;  %2631 = vmatpush2.msra.mxu0 %v1828_v16  ;;  %v1984_v46 = vld [vmem:[%s17662_s3 + $0x9e0] sm:$0xff]  ;;  %v1979_v16 = vld [vmem:[%s17662_s3 + $0x9b8] sm:$0xff] }
 0x1d4   : > { %2744 = vmatpush1.msra.mxu1 %v1900_v25  ;;  %2632 = vmatprep.subr.mxu0 %v1823_v47  ;;  %v1978_v25 = vld [vmem:[%s17662_s3 + $0x9b0] sm:$0xff] }
 0x1d5   : > { %2409 = vmatmul.mubr.f32.gmra.mxu1 %v11717_v59  ;;  %2745 = vmatprep.subr.mxu1 %v1895_v10  ;;  %v8325_v47 = vld [vmem:[%s17662_s3 + $0x1350] sm:$0xff]  ;;  %v1973_v10 = vld [vmem:[%s17662_s3 + $0x988] sm:$0xff] }
 0x1d6   : > { %2414 = vmatprep.mubr.f32.mxu1 %v11723_v36  ;;  %2582 = vmatmul.mubr.f32.gmra.mxu0 %v11259_v48  ;;  %v1883_v48 = vld [vmem:[%s17662_s3 + $0x6b8] sm:$0xff] }
 0x1d7   : > { %2746 = vmatpush1.msra.mxu1 %v1894_v7  ;;  %2633 = vmatpush2.msra.mxu0 %v1822_v1  ;;  %v8319_v7 = vld [vmem:[%s17662_s3 + $0x1320] sm:$0xff]  ;;  %v1967_v1 = vld [vmem:[%s17662_s3 + $0x958] sm:$0xff] }
 0x1d8   : > { %2652 = vmatprep.mubr.f32.mxu0 %v11430_v32  ;;  %2634 = vmatprep.subr.mxu0 %v1817_v33  ;;  %v1882_v32 = vld [vmem:[%s17662_s3 + $0x6b0] sm:$0xff] }
 0x1d9   : > { %2747 = vmatprep.subr.mxu1 %v1889_v28  ;;  %2635 = vmatpush2.msra.mxu0 %v1816_v9  ;;  %v8313_v33 = vld [vmem:[%s17662_s3 + $0x12f0] sm:$0xff]  ;;  %v1961_v28 = vld [vmem:[%s17662_s3 + $0x928] sm:$0xff] }
 0x1da   : > { %2748 = vmatpush1.msra.mxu1 %v1888_v27  ;;  %2636 = vmatprep.subr.mxu0 %v1811_v23  ;;  %v8308_v9 = vld [vmem:[%s17662_s3 + $0x12c8] sm:$0xff]  ;;  %v9397_v27 = vld [vmem:[#allocation2 + $0x18] sm:$0xff] }
 0x1db   : > { %2415 = vmatmul.mubr.f32.gmra.mxu1 %v11752_v50  ;;  %2749 = vmatprep.subr.mxu1 %v1883_v48  ;;  %v8134_v23 = vld [vmem:[%s17662_s3 + $0xd58] sm:$0xff]  ;;  %v9398_v48 = vld [vmem:[#allocation2 + $0x10] sm:$0xff] }
 0x1dc   : > { %2420 = vmatprep.mubr.f32.mxu1 %v11761_v6  ;;  %2637 = vmatpush2.msra.mxu0 %v1810_v40  ;;  %v8133_v40 = vld [vmem:[%s17662_s3 + $0xd50] sm:$0xff] }
 0x1dd   : > { %2750 = vmatpush1.msra.mxu1 %v1882_v32  ;;  %2638 = vmatprep.subr.mxu0 %v1805_v43  ;;  %v8301_v32 = vld [vmem:[%s17662_s3 + $0x1290] sm:$0xff]  ;;  %v8128_v43 = vld [vmem:[%s17662_s3 + $0xd28] sm:$0xff] }
 0x1de   : > { %2751 = vmatprep.subr.mxu1 %v1877_v0  ;;  %2639 = vmatpush2.msra.mxu0 %v1804_v57  ;;  %v9399_v0 = vld [vmem:[#allocation2 + $0x38] sm:$0xff]  ;;  %v8127_v57 = vld [vmem:[%s17662_s3 + $0xd20] sm:$0xff] }
 0x1df   : > { %2752 = vmatpush1.msra.mxu1 %v1876_v30  ;;  %2640 = vmatprep.subr.mxu0 %v1799_v2  ;;  %v8295_v30 = vld [vmem:[%s17662_s3 + $0x1260] sm:$0xff]  ;;  %v8122_v2 = vld [vmem:[%s17662_s3 + $0xcf8] sm:$0xff] }
 0x1e0   : > { %2421 = vmatmul.mubr.f32.gmra.mxu1 %v11782_v63  ;;  %2753 = vmatprep.subr.mxu1 %v1871_v24  ;;  %v9400_v24 = vld [vmem:[#allocation2 + $0x30] sm:$0xff] }
 0x1e1   : > { %2426 = vmatprep.mubr.f32.mxu1 %v11791_v26  ;;  %2641 = vmatpush2.msra.mxu0 %v1798_v54  ;;  %v8121_v54 = vld [vmem:[%s17662_s3 + $0xcf0] sm:$0xff] }
 0x1e2   : > { %2754 = vmatpush1.msra.mxu1 %v1870_v31  ;;  %2642 = vmatprep.subr.mxu0 %v1793_v21  ;;  %v8289_v31 = vld [vmem:[%s17662_s3 + $0x1230] sm:$0xff]  ;;  %v8116_v21 = vld [vmem:[%s17662_s3 + $0xcc8] sm:$0xff] }
 0x1e3   : > { %2755 = vmatprep.subr.mxu1 %v1865_v42  ;;  %2643 = vmatpush2.msra.mxu0 %v1792_v29  ;;  %v9401_v42 = vld [vmem:[#allocation2 + $0x58] sm:$0xff]  ;;  %v8115_v29 = vld [vmem:[%s17662_s3 + $0xcc0] sm:$0xff] }
 0x1e4   : > { %2756 = vmatpush1.msra.mxu1 %v1864_v60  ;;  %2644 = vmatprep.subr.mxu0 %v1787_v45  ;;  %v8283_v60 = vld [vmem:[%s17662_s3 + $0x1200] sm:$0xff]  ;;  %v8110_v45 = vld [vmem:[%s17662_s3 + $0xc98] sm:$0xff] }
 0x1e5   : > { %2427 = vmatmul.mubr.f32.gmra.mxu1 %v11812_v34  ;;  %2773 = vmatprep.subr.mxu1 %v2003_v61  ;;  %v9402_v61 = vld [vmem:[#allocation2 + $0x50] sm:$0xff] }
 0x1e6   : > { %2432 = vmatprep.mubr.f32.mxu1 %v11108_v53  ;;  %2645 = vmatpush2.msra.mxu0 %v1786_v11  ;;  %v1991_v53 = vld [vmem:[%s17662_s3 + $0xa18] sm:$0xff]  ;;  %v8109_v11 = vld [vmem:[%s17662_s3 + $0xc90] sm:$0xff] }
 0x1e7   : > { %2774 = vmatpush2.msra.mxu1 %v2002_v12  ;;  %2646 = vmatprep.subr.mxu0 %v1781_v19  ;;  %v8277_v12 = vld [vmem:[%s17662_s3 + $0x11d0] sm:$0xff]  ;;  %v8104_v19 = vld [vmem:[%s17662_s3 + $0xc68] sm:$0xff] }
 0x1e8   : > { %2775 = vmatprep.subr.mxu1 %v1997_v58  ;;  %2647 = vmatpush2.msra.mxu0 %v1780_v22  ;;  %v9403_v58 = vld [vmem:[#allocation2 + $0x78] sm:$0xff]  ;;  %v8103_v22 = vld [vmem:[%s17662_s3 + $0xc60] sm:$0xff] }
 0x1e9   : > { %2776 = vmatpush2.msra.mxu1 %v1996_v41  ;;  %2648 = vmatprep.subr.mxu0 %v1775_v38  ;;  %v8271_v41 = vld [vmem:[%s17662_s3 + $0x11a0] sm:$0xff]  ;;  %v8098_v38 = vld [vmem:[%s17662_s3 + $0xc38] sm:$0xff] }
 0x1ea   : > { %2433 = vmatmul.mubr.f32.gmra.mxu1 %v11840_v18  ;;  %2777 = vmatprep.subr.mxu1 %v1991_v53  ;;  %v9404_v53 = vld [vmem:[#allocation2 + $0x70] sm:$0xff] }
 0x1eb   : > { %2438 = vmatprep.mubr.f32.mxu1 %v11155_v37  ;;  %2649 = vmatpush2.msra.mxu0 %v1774_v3  ;;  %v8326_v37 = vld [vmem:[%s17662_s3 + $0x1358] sm:$0xff]  ;;  %v8097_v3 = vld [vmem:[%s17662_s3 + $0xc30] sm:$0xff] }
 0x1ec   : > { %2778 = vmatpush2.msra.mxu1 %v1990_v62  ;;  %2650 = vmatprep.subr.mxu0 %v1769_v8  ;;  %v8265_v62 = vld [vmem:[%s17662_s3 + $0x1170] sm:$0xff]  ;;  %v8092_v8 = vld [vmem:[%s17662_s3 + $0xc08] sm:$0xff] }
 0x1ed   : > { %2779 = vmatprep.subr.mxu1 %v1985_v4  ;;  %2651 = vmatpush2.msra.mxu0 %v1768_v14  ;;  %v9405_v4 = vld [vmem:[#allocation2 + $0x98] sm:$0xff]  ;;  %v8091_v14 = vld [vmem:[%s17662_s3 + $0xc00] sm:$0xff] }
 0x1ee   : > { %2780 = vmatpush2.msra.mxu1 %v1984_v46  ;;  %2653 = vmatmul.mubr.f32.vlgmr.msra.gmra.mxu0 %v11552_v17  ;;  %v1972_v17 = vld [vmem:[%s17662_s3 + $0x980] sm:$0xff] }
 0x1ef   : > { %2439 = vmatmul.mubr.f32.gmra.mxu1 %v11133_v35  ;;  %2781 = vmatprep.subr.mxu1 %v1979_v16  ;;  %v8320_v35 = vld [vmem:[%s17662_s3 + $0x1328] sm:$0xff]  ;;  %v8259_v46 = vld [vmem:[%s17662_s3 + $0x1140] sm:$0xff]  ;;  %v8086_v16 = vld [vmem:[%s17662_s3 + $0xbd8] sm:$0xff] }
 0x1f0   : > { %3523 = vmatprep.subr.mxu0 %v8326_v37  ;;  %2444 = vmatprep.mubr.f32.mxu1 %v11199_v49  ;;  %v8314_v49 = vld [vmem:[%s17662_s3 + $0x12f8] sm:$0xff] }
 0x1f1   : > { %2658 = vmatprep.mubr.f32.mxu0 %v11558_v20  ;;  %2782 = vmatpush2.msra.mxu1 %v1978_v25  ;;  %v1966_v20 = vld [vmem:[%s17662_s3 + $0x950] sm:$0xff] }
 0x1f2   : > { %3524 = vmatpush1.msra.mxu0 %v8325_v47  ;;  %2783 = vmatprep.subr.mxu1 %v1973_v10  ;;  %v9406_v25 = vld [vmem:[#allocation2 + $0x90] sm:$0xff] }
 0x1f3   : > { %3525 = vmatprep.subr.mxu0 %v8320_v35  ;;  %2784 = vmatpush2.msra.mxu1 %v1972_v17  ;;  %v8085_v47 = vld [vmem:[%s17662_s3 + $0xbd0] sm:$0xff]  ;;  %v8080_v17 = vld [vmem:[%s17662_s3 + $0xba8] sm:$0xff] }
 0x1f4   : > { %3526 = vmatpush1.msra.mxu0 %v8319_v7  ;;  %2445 = vmatmul.mubr.f32.gmra.mxu1 %v11174_v15  ;;  %v1960_v15 = vld [vmem:[%s17662_s3 + $0x920] sm:$0xff]  ;;  %v8253_v10 = vld [vmem:[%s17662_s3 + $0x1110] sm:$0xff]  ;;  %v9407_v7 = vld [vmem:[#allocation2 + $0xb8] sm:$0xff] }
 0x1f5   : > { %2659 = vmatmul.mubr.f32.gmra.mxu0 %v11585_v5  ;;  %2785 = vmatprep.subr.mxu1 %v1967_v1  ;;  %v8307_v5 = vld [vmem:[%s17662_s3 + $0x12c0] sm:$0xff] }
 0x1f6   : > { %3527 = vmatprep.subr.mxu0 %v8314_v49  ;;  %2664 = vmatprep.mubr.f32.mxu0 %v11591_v55  ;;  %v8302_v55 = vld [vmem:[%s17662_s3 + $0x1298] sm:$0xff]  ;;  %v8079_v1 = vld [vmem:[%s17662_s3 + $0xba0] sm:$0xff] }
 0x1f7   : > { %2786 = vmatpush2.msra.mxu1 %v1966_v20  ;;  %8031 = vmatprep.mubr.msk.f32.mxu1 %vm1565_vm1, %v9397_v27  ;;  %v8247_v49 = vld [vmem:[%s17662_s3 + $0x10e0] sm:$0xff] }
 0x1f8   : > { %3528 = vmatpush1.msra.mxu0 %v8313_v33  ;;  %2787 = vmatprep.subr.mxu1 %v1961_v28  ;;  %v8242_v33 = vld [vmem:[%s17662_s3 + $0x10b8] sm:$0xff] }
 0x1f9   : > { %3529 = vmatprep.subr.mxu0 %v8308_v9  ;;  %2788 = vmatpush2.msra.mxu1 %v1960_v15  ;;  %v9408_v9 = vld [vmem:[#allocation2 + $0xb0] sm:$0xff] }
 0x1fa   : > { %3530 = vmatpush1.msra.mxu0 %v8307_v5  ;;  %2790 = vmatmul.mubr.f32.vlgmr.msra.gmra.mxu1 %v9398_v48  ;;  %v8073_v15 = vld [vmem:[%s17662_s3 + $0xb70] sm:$0xff]  ;;  %v8067_v48 = vld [vmem:[%s17662_s3 + $0xb40] sm:$0xff] }
 0x1fb   : > { %2665 = vmatmul.mubr.f32.gmra.mxu0 %v11618_v13  ;;  %3386 = vmatprep.subr.mxu1 %v8134_v23  ;;  %v8296_v13 = vld [vmem:[%s17662_s3 + $0x1268] sm:$0xff]  ;;  %v8241_v5 = vld [vmem:[%s17662_s3 + $0x10b0] sm:$0xff] }
 0x1fc   : > { %3531 = vmatprep.subr.mxu0 %v8302_v55  ;;  %2670 = vmatprep.mubr.f32.mxu0 %v11624_v39  ;;  %v8290_v39 = vld [vmem:[%s17662_s3 + $0x1238] sm:$0xff]  ;;  %v8068_v23 = vld [vmem:[%s17662_s3 + $0xb48] sm:$0xff] }
 0x1fd   : > { %8032 = vmatprep.mubr.msk.f32.mxu1 %vm1565_vm1, %v9399_v0  ;;  %3387 = vmatpush1.msra.mxu1 %v8133_v40  ;;  %v9409_v55 = vld [vmem:[#allocation2 + $0xd8] sm:$0xff]  ;;  %v8235_v40 = vld [vmem:[%s17662_s3 + $0x1080] sm:$0xff]  ;;  %v9410_v0 = vld [vmem:[#allocation2 + $0xd0] sm:$0xff] }
 0x1fe   : > { %3532 = vmatpush1.msra.mxu0 %v8301_v32  ;;  %3388 = vmatprep.subr.mxu1 %v8128_v43  ;;  %v8374_v43 = vld [vmem:[%s17662_s3 + $0x14d8] sm:$0xff] }
 0x1ff   : > { %3533 = vmatprep.subr.mxu0 %v8296_v13  ;;  %3389 = vmatpush1.msra.mxu1 %v8127_v57  ;;  %v8061_v57 = vld [vmem:[%s17662_s3 + $0xb10] sm:$0xff] }
 0x200   : > { %3534 = vmatpush1.msra.mxu0 %v8295_v30  ;;  %2796 = vmatmul.mubr.f32.gmra.mxu1 %v9400_v24  ;;  %v8373_v30 = vld [vmem:[%s17662_s3 + $0x14d0] sm:$0xff]  ;;  %v9412_v24 = vld [vmem:[#allocation2 + $0xf8] sm:$0xff] }
 0x201   : > { %2671 = vmatmul.mubr.f32.gmra.mxu0 %v11651_v56  ;;  %3390 = vmatprep.subr.mxu1 %v8122_v2  ;;  %v8284_v56 = vld [vmem:[%s17662_s3 + $0x1208] sm:$0xff] }
 0x202   : > { %3535 = vmatprep.subr.mxu0 %v8290_v39  ;;  %2676 = vmatprep.mubr.f32.mxu0 %v11657_v44  ;;  %v8278_v44 = vld [vmem:[%s17662_s3 + $0x11d8] sm:$0xff]  ;;  %v8056_v2 = vld [vmem:[%s17662_s3 + $0xae8] sm:$0xff] }
 0x203   : > { %8033 = vmatprep.mubr.msk.f32.mxu1 %vm1565_vm1, %v9401_v42  ;;  %3391 = vmatpush1.msra.mxu1 %v8121_v54  ;;  %v9411_v39 = vld [vmem:[#allocation2 + $0x128] sm:$0xff]  ;;  %v8055_v54 = vld [vmem:[%s17662_s3 + $0xae0] sm:$0xff] }
 0x204   : > { %3536 = vmatpush1.msra.mxu0 %v8289_v31  ;;  %3392 = vmatprep.subr.mxu1 %v8116_v21  ;;  %v8367_v31 = vld [vmem:[%s17662_s3 + $0x14a0] sm:$0xff] }
 0x205   : > { %3537 = vmatprep.subr.mxu0 %v8284_v56  ;;  %3393 = vmatpush1.msra.mxu1 %v8115_v29  ;;  %v8050_v29 = vld [vmem:[%s17662_s3 + $0xab8] sm:$0xff] }
 0x206   : > { %3538 = vmatpush1.msra.mxu0 %v8283_v60  ;;  %2802 = vmatmul.mubr.f32.gmra.mxu1 %v9402_v61  ;;  %v8362_v60 = vld [vmem:[%s17662_s3 + $0x1478] sm:$0xff]  ;;  %v8049_v61 = vld [vmem:[%s17662_s3 + $0xab0] sm:$0xff] }
 0x207   : > { %2677 = vmatmul.mubr.f32.gmra.mxu0 %v11684_v51  ;;  %3394 = vmatprep.subr.mxu1 %v8110_v45  ;;  %v8272_v51 = vld [vmem:[%s17662_s3 + $0x11a8] sm:$0xff] }
 0x208   : > { %3539 = vmatprep.subr.mxu0 %v8278_v44  ;;  %2682 = vmatprep.mubr.f32.mxu0 %v11690_v52  ;;  %v8266_v52 = vld [vmem:[%s17662_s3 + $0x1178] sm:$0xff]  ;;  %v9413_v44 = vld [vmem:[#allocation2 + $0xf0] sm:$0xff] }
 0x209   : > { %8034 = vmatprep.mubr.msk.f32.mxu1 %vm1565_vm1, %v9403_v58  ;;  %3395 = vmatpush1.msra.mxu1 %v8109_v11  ;;  %v8361_v11 = vld [vmem:[%s17662_s3 + $0x1470] sm:$0xff] }
 0x20a   : > { %3540 = vmatpush1.msra.mxu0 %v8277_v12  ;;  %3396 = vmatprep.subr.mxu1 %v8104_v19  ;;  %v8044_v19 = vld [vmem:[%s17662_s3 + $0xa88] sm:$0xff] }
 0x20b   : > { %3541 = vmatprep.subr.mxu0 %v8272_v51  ;;  %3397 = vmatpush1.msra.mxu1 %v8103_v22  ;;  %v9414_v22 = vld [vmem:[#allocation2 + $0x148] sm:$0xff] }
 0x20c   : > { %3542 = vmatpush1.msra.mxu0 %v8271_v41  ;;  %2808 = vmatmul.mubr.f32.gmra.mxu1 %v9404_v53  ;;  %v9415_v41 = vld [vmem:[#allocation2 + $0x118] sm:$0xff]  ;;  %v12155_v53 = vld [vmem:[%s17663_s4] sm:$0x3f] }
 0x20d   : > { %2683 = vmatmul.mubr.f32.gmra.mxu0 %v11717_v59  ;;  %3398 = vmatprep.subr.mxu1 %v8098_v38  ;;  %v8260_v59 = vld [vmem:[%s17662_s3 + $0x1148] sm:$0xff]  ;;  %v8043_v38 = vld [vmem:[%s17662_s3 + $0xa80] sm:$0xff] }
 0x20e   : > { %3543 = vmatprep.subr.mxu0 %v8266_v52  ;;  %2688 = vmatprep.mubr.f32.mxu0 %v11723_v36  ;;  %v8254_v36 = vld [vmem:[%s17662_s3 + $0x1118] sm:$0xff]  ;;  %v12026_v37 = vpop.f32.mrf.mxu0  ;;  %v8355_v52 = vld [vmem:[%s17662_s3 + $0x1440] sm:$0xff] }
 0x20f   : > { %8035 = vmatprep.mubr.msk.f32.mxu1 %vm1565_vm1, %v9405_v4  ;;  %3399 = vmatpush1.msra.mxu1 %v8097_v3  ;;  %v17825_v4 = vld [vmem:[#allocation52_spill] sm:$0xff] }
 0x210   : > { %3544 = vmatpush1.msra.mxu0 %v8265_v62  ;;  %3400 = vmatprep.subr.mxu1 %v8092_v8  ;;  %v12035_v35 = vpop.f32.mrf.mxu0  ;;  %v8230_v62 = vld [vmem:[%s17662_s3 + $0x1058] sm:$0xff] }
 0x211   : > { %3545 = vmatprep.subr.mxu0 %v8260_v59  ;;  %3401 = vmatpush1.msra.mxu1 %v8091_v14  ;;  %17818 = vst [vmem:[#allocation6_spill] sm:$0xff] %v12035_v35  ;;  %v8350_v8 = vld [vmem:[%s17662_s3 + $0x1418] sm:$0xff]  ;;  %v17826_v14 = vsub.s32 0, %v17825_v4 }
 0x212   : > { %3546 = vmatpush1.msra.mxu0 %v8259_v46  ;;  %2814 = vmatmul.mubr.f32.gmra.mxu1 %v9406_v25  ;;  %v12051_v20 = vpop.f32.mrf.mxu0  ;;  %v9417_v25 = vld [vmem:[#allocation2 + $0x110] sm:$0xff] }
 0x213   : > { %2689 = vmatmul.mubr.f32.gmra.mxu0 %v11752_v50  ;;  %3402 = vmatprep.subr.mxu1 %v8086_v16  ;;  %v8248_v50 = vld [vmem:[%s17662_s3 + $0x10e8] sm:$0xff]  ;;  %v12168_v46 = vrot.slane %v12155_v53, %v17826_v14 }
 0x214   : > { %3547 = vmatprep.subr.mxu0 %v8254_v36  ;;  %2694 = vmatprep.mubr.f32.mxu0 %v11761_v6  ;;  %v8074_v6 = vld [vmem:[%s17662_s3 + $0xb78] sm:$0xff]  ;;  %v12059_v28 = vpop.f32.mrf.mxu0 }
 0x215   : > { %8036 = vmatprep.mubr.msk.f32.mxu1 %vm1565_vm1, %v9407_v7  ;;  %3403 = vmatpush1.msra.mxu1 %v8085_v47  ;;  %17819 = vst [vmem:[#allocation28_spill] sm:$0xff] %v12059_v28  ;;  %v8229_v47 = vld [vmem:[%s17662_s3 + $0x1050] sm:$0xff]  ;;  %v8344_v7 = vld [vmem:[%s17662_s3 + $0x13e8] sm:$0xff] }
 0x216   : > { %3548 = vmatpush1.msra.mxu0 %v8253_v10  ;;  %3404 = vmatprep.subr.mxu1 %v8080_v17  ;;  %v8349_v10 = vld [vmem:[%s17662_s3 + $0x1410] sm:$0xff]  ;;  %v8232_v28 = vld [vmem:[%s17662_s3 + $0x1068] sm:$0xff] }
 0x217   : > { %3549 = vmatprep.subr.mxu0 %v8248_v50  ;;  %3405 = vmatpush1.msra.mxu1 %v8079_v1  ;;  %v12068_v27 = vpop.f32.mrf.mxu0  ;;  %v8224_v50 = vld [vmem:[%s17662_s3 + $0x1028] sm:$0xff] }
 0x218   : > { %3550 = vmatpush1.msra.mxu0 %v8247_v49  ;;  %2820 = vmatmul.mubr.f32.gmra.mxu1 %v9408_v9  ;;  %v9418_v49 = vld [vmem:[#allocation2 + $0x168] sm:$0xff] }
 0x219   : > { %2695 = vmatmul.mubr.f32.gmra.mxu0 %v11782_v63  ;;  %3406 = vmatprep.subr.mxu1 %v8074_v6  ;;  %v8236_v63 = vld [vmem:[%s17662_s3 + $0x1088] sm:$0xff]  ;;  %v12084_v32 = vpop.f32.mrf.mxu0  ;;  %v8223_v6 = vld [vmem:[%s17662_s3 + $0x1020] sm:$0xff] }
 0x21a   : > { %3551 = vmatprep.subr.mxu0 %v8242_v33  ;;  %2700 = vmatprep.mubr.f32.mxu0 %v11791_v26  ;;  %17820 = vst [vmem:[#allocation29_spill] sm:$0xff] %v12084_v32  ;;  %v8062_v26 = vld [vmem:[%s17662_s3 + $0xb18] sm:$0xff]  ;;  %v8343_v33 = vld [vmem:[%s17662_s3 + $0x13e0] sm:$0xff] }
 0x21b   : > { %8037 = vmatprep.mubr.msk.f32.mxu1 %vm1565_vm1, %v9409_v55  ;;  %3407 = vmatpush1.msra.mxu1 %v8073_v15  ;;  %v12092_v13 = vpop.f32.mrf.mxu0 }
 0x21c   : > { %3552 = vmatpush1.msra.mxu0 %v8241_v5  ;;  %3408 = vmatprep.subr.mxu1 %v8068_v23  ;;  %v8218_v5 = vld [vmem:[%s17662_s3 + $0xff8] sm:$0xff] }
 0x21d   : > { %3553 = vmatprep.subr.mxu0 %v8236_v63  ;;  %3409 = vmatpush1.msra.mxu1 %v8067_v48  ;;  %v12117_v42 = vpop.f32.mrf.mxu0  ;;  %v8217_v63 = vld [vmem:[%s17662_s3 + $0xff0] sm:$0xff] }
 0x21e   : > { %3554 = vmatpush1.msra.mxu0 %v8235_v40  ;;  %2826 = vmatmul.mubr.f32.gmra.mxu1 %v9410_v0  ;;  %v2243_v21 = vpop.f32.mrf.mxu1  ;;  %17821 = vst [vmem:[#allocation7_spill] sm:$0xff] %v12117_v42  ;;  %v9420_v40 = vld [vmem:[#allocation2 + $0x160] sm:$0xff]  ;;  %v8212_v0 = vld [vmem:[%s17662_s3 + $0xfc8] sm:$0xff] }
 0x21f   : > { %2701 = vmatmul.mubr.f32.gmra.mxu0 %v11812_v34  ;;  %3410 = vmatprep.subr.mxu1 %v8062_v26  ;;  %v8368_v34 = vld [vmem:[%s17662_s3 + $0x14a8] sm:$0xff]  ;;  %v12115_v56 = vadd.f32 %v2243_v21, %v12026_v37  ;;  %v9416_v37 = vld [vmem:[#allocation2 + $0x140] sm:$0xff]  ;;  %v9421_v26 = vld [vmem:[#allocation2 + $0x130] sm:$0xff] }
 0x220   : > { %3571 = vmatprep.subr.mxu0 %v8374_v43  ;;  %2706 = vmatprep.mubr.f32.mxu0 %v9411_v39  ;;  %v12125_v45 = vpop.f32.mrf.mxu1  ;;  %v8337_v43 = vld [vmem:[%s17662_s3 + $0x13b0] sm:$0xff]  ;;  %v8331_v39 = vld [vmem:[%s17662_s3 + $0x1380] sm:$0xff]  ;;  %v8136_v21 = vld [vmem:[%s17662_s3 + $0xd68] sm:$0xff] }
 0x221   : > { %8038 = vmatprep.mubr.msk.f32.mxu1 %vm1565_vm1, %v9412_v24  ;;  %3411 = vmatpush1.msra.mxu1 %v8061_v57  ;;  %17822 = vst [vmem:[#allocation30_spill] sm:$0xff] %v12125_v45  ;;  %v12143_v58 = vpop.f32.mrf.mxu0  ;;  %v8332_v57 = vld [vmem:[%s17662_s3 + $0x1388] sm:$0xff]  ;;  %v8206_v24 = vld [vmem:[%s17662_s3 + $0xf98] sm:$0xff] }
 0x222   : > { %3572 = vmatpush2.msra.mxu0 %v8373_v30  ;;  %3412 = vmatprep.subr.mxu1 %v8056_v2  ;;  %v9422_v30 = vld [vmem:[#allocation2 + $0x158] sm:$0xff]  ;;  %v8316_v42 = vld [vmem:[%s17662_s3 + $0x1308] sm:$0xff] }
 0x223   : > { %3573 = vmatprep.subr.mxu0 %v8368_v34  ;;  %3413 = vmatpush1.msra.mxu1 %v8055_v54  ;;  %v2249_v12 = vpop.f32.mrf.mxu1  ;;  %v12171_v36 = vpop.f32.mrf.mxu0  ;;  %v12226_v2 = vld [vmem:[#allocation2 + $0x38] sm:$0xff]  ;;  %v8211_v34 = vld [vmem:[%s17662_s3 + $0xfc0] sm:$0xff] }
 0x224   : > { %3574 = vmatpush2.msra.mxu0 %v8367_v31  ;;  %2832 = vmatmul.mubr.f32.gmra.mxu1 %v9413_v44  ;;  %v12141_v51 = vadd.f32 %v2249_v12, %v12051_v20  ;;  %17827 = vst [vmem:[#allocation9_spill] sm:$0xff] %v12171_v36  ;;  %v9419_v20 = vld [vmem:[#allocation2 + $0x138] sm:$0xff]  ;;  %v12252_v12 = vld [vmem:[#allocation2 + $0x30] sm:$0xff] }
 0x225   : > { %2707 = vmatmul.mubr.f32.gmra.mxu0 %v11840_v18  ;;  %3414 = vmatprep.subr.mxu1 %v8050_v29  ;;  %v8356_v18 = vld [vmem:[%s17662_s3 + $0x1448] sm:$0xff]  ;;  %v12157_v3 = vpop.f32.mrf.mxu1  ;;  %v12707_v36 = vld [vmem:[#allocation2 + $0x190] sm:$0xff] }
 0x226   : > { %3575 = vmatprep.subr.mxu0 %v8362_v60  ;;  %17823 = vst [vmem:[#allocation31_spill] sm:$0xff] %v12141_v51  ;;  %2712 = vmatprep.mubr.f32.mxu0 %v9414_v22  ;;  %17824 = vst [vmem:[#allocation8_spill] sm:$0xff] %v12157_v3  ;;  %v8205_v60 = vld [vmem:[%s17662_s3 + $0xf90] sm:$0xff]  ;;  %v8130_v22 = vld [vmem:[%s17662_s3 + $0xd38] sm:$0xff] }
 0x227   : > { %8039 = vmatprep.mubr.msk.f32.mxu1 %vm1565_vm1, %v9415_v41  ;;  %3415 = vmatpush1.msra.mxu1 %v8049_v61  ;;  %v2255_v59 = vpop.f32.mrf.mxu1  ;;  %v9424_v41 = vld [vmem:[#allocation2 + $0x178] sm:$0xff] }
 0x228   : > { %3576 = vmatpush2.msra.mxu0 %v8361_v11  ;;  %3416 = vmatprep.subr.mxu1 %v8044_v19  ;;  %v2256_v16 = vadd.f32 %v2255_v59, %v12068_v27  ;;  %v8338_v27 = vld [vmem:[%s17662_s3 + $0x13b8] sm:$0xff]  ;;  %v9423_v11 = vld [vmem:[#allocation2 + $0x150] sm:$0xff]  ;;  %v8135_v19 = vld [vmem:[%s17662_s3 + $0xd60] sm:$0xff] }
 0x229   : > { %3577 = vmatprep.subr.mxu0 %v8356_v18  ;;  %3417 = vmatpush1.msra.mxu1 %v8043_v38  ;;  %v12179_v17 = vpop.f32.mrf.mxu1  ;;  %v12268_v38 = vld [vmem:[#allocation2 + $0x58] sm:$0xff] }
 0x22a   : > { %3578 = vmatpush2.msra.mxu0 %v8355_v52  ;;  %2838 = vmatmul.mubr.f32.gmra.mxu1 %v9417_v25  ;;  %17828 = vst [vmem:[#allocation32_spill] sm:$0xff] %v12179_v17  ;;  %v12188_v1 = vadd.f32 %v12168_v46, %v2256_v16  ;;  %v8199_v52 = vld [vmem:[%s17662_s3 + $0xf60] sm:$0xff]  ;;  %v8124_v16 = vld [vmem:[%s17662_s3 + $0xd08] sm:$0xff]  ;;  %v8193_v25 = vld [vmem:[%s17662_s3 + $0xf30] sm:$0xff] }
 0x22b   : > { %2713 = vmatmul.mubr.f32.gmra.mxu0 %v9416_v37  ;;  %3418 = vmatprep.subr.mxu1 %v8230_v62  ;;  %v8129_v62 = vld [vmem:[%s17662_s3 + $0xd30] sm:$0xff] }
 0x22c   : > { %3579 = vmatprep.subr.mxu0 %v8350_v8  ;;  %17829 = vst [vmem:[#allocation33_spill] sm:$0xff] %v12188_v1  ;;  %2718 = vmatprep.mubr.f32.mxu0 %v9418_v49  ;;  %v8194_v8 = vld [vmem:[%s17662_s3 + $0xf38] sm:$0xff]  ;;  %v8123_v49 = vld [vmem:[%s17662_s3 + $0xd00] sm:$0xff] }
 0x22d   : > { %8040 = vmatprep.mubr.msk.f32.mxu1 %vm1565_vm1, %v9419_v20  ;;  %3419 = vmatpush2.msra.mxu1 %v8229_v47  ;;  %v12197_v9 = vpop.f32.mrf.mxu0  ;;  %v2261_v15 = vpop.f32.mrf.mxu1 }
 0x22e   : > { %3580 = vmatpush2.msra.mxu0 %v8349_v10  ;;  %3420 = vmatprep.subr.mxu1 %v8224_v50  ;;  %v2262_v23 = vadd.f32 %v2261_v15, %v12092_v13  ;;  %v9425_v50 = vld [vmem:[#allocation2 + $0x170] sm:$0xff]  ;;  %v12312_v15 = vld [vmem:[#allocation2 + $0x78] sm:$0xff] }
 0x22f   : > { %3581 = vmatprep.subr.mxu0 %v8344_v7  ;;  %3421 = vmatpush2.msra.mxu1 %v8223_v6  ;;  %v12209_v55 = vpop.f32.mrf.mxu0  ;;  %v12211_v48 = vpop.f32.mrf.mxu1  ;;  %v12294_v7 = vld [vmem:[#allocation2 + $0x50] sm:$0xff]  ;;  %v12303_v6 = vld [vmem:[#allocation2 + $0x28] sm:$0xff] }
 0x230   : > { %3582 = vmatpush2.msra.mxu0 %v8343_v33  ;;  %17830 = vst [vmem:[#allocation10_spill] sm:$0xff] %v12209_v55  ;;  %17831 = vst [vmem:[#allocation34_spill] sm:$0xff] %v12211_v48  ;;  %2844 = vmatmul.mubr.f32.gmra.mxu1 %v9421_v26  ;;  %v12217_v13 = vadd.f32 %v12168_v46, %v2262_v23  ;;  %v8188_v33 = vld [vmem:[%s17662_s3 + $0xf08] sm:$0xff]  ;;  %v8182_v23 = vld [vmem:[%s17662_s3 + $0xed8] sm:$0xff] }
 0x231   : > { %2719 = vmatmul.mubr.f32.gmra.mxu0 %v9420_v40  ;;  %3422 = vmatprep.subr.mxu1 %v8218_v5  ;;  %v8187_v5 = vld [vmem:[%s17662_s3 + $0xf00] sm:$0xff]  ;;  %v8112_v26 = vld [vmem:[%s17662_s3 + $0xca8] sm:$0xff] }
 0x232   : > { %17832 = vst [vmem:[#allocation35_spill] sm:$0xff] %v12217_v13  ;;  %3583 = vmatprep.subr.mxu0 %v8338_v27  ;;  %8041 = vmatprep.mubr.msk.f32.mxu1 %vm1565_vm1, %v9422_v30  ;;  %v8117_v27 = vld [vmem:[%s17662_s3 + $0xcd0] sm:$0xff]  ;;  %v8111_v30 = vld [vmem:[%s17662_s3 + $0xca0] sm:$0xff]  ;;  %v8052_v48 = vld [vmem:[%s17662_s3 + $0xac8] sm:$0xff] }
 0x233   : > { %3423 = vmatpush2.msra.mxu1 %v8217_v63  ;;  %3584 = vmatpush2.msra.mxu0 %v8337_v43  ;;  %v12239_v54 = vpop.f32.mrf.mxu0  ;;  %v2267_v31 = vpop.f32.mrf.mxu1  ;;  %v8181_v43 = vld [vmem:[%s17662_s3 + $0xed0] sm:$0xff]  ;;  %v8268_v55 = vld [vmem:[%s17662_s3 + $0x1188] sm:$0xff] }
 0x234   : > { %8379 = vmatprep.mubr.msk.f32.mxu0 %vm1565_vm1, %v12226_v2  ;;  %3424 = vmatprep.subr.mxu1 %v8212_v0  ;;  %v2268_v29 = vadd.f32 %v2267_v31, %v12143_v58  ;;  %v8200_v58 = vld [vmem:[%s17662_s3 + $0xf68] sm:$0xff]  ;;  %v8357_v13 = vld [vmem:[%s17662_s3 + $0x1450] sm:$0xff] }
 0x235   : > { %3585 = vmatprep.subr.mxu0 %v8332_v57  ;;  %3425 = vmatpush2.msra.mxu1 %v8211_v34  ;;  %v12248_v44 = vpop.f32.mrf.mxu0  ;;  %v12250_v61 = vpop.f32.mrf.mxu1  ;;  %v12334_v57 = vld [vmem:[#allocation2 + $0x70] sm:$0xff] }
 0x236   : > { %3586 = vmatpush2.msra.mxu0 %v8331_v39  ;;  %17833 = vst [vmem:[#allocation11_spill] sm:$0xff] %v12248_v44  ;;  %17834 = vst [vmem:[#allocation36_spill] sm:$0xff] %v12250_v61  ;;  %2850 = vmatmul.mubr.f32.gmra.mxu1 %v9423_v11  ;;  %v12258_v18 = vadd.f32 %v12168_v46, %v2268_v29  ;;  %v8175_v29 = vld [vmem:[%s17662_s3 + $0xea0] sm:$0xff]  ;;  %v8170_v11 = vld [vmem:[%s17662_s3 + $0xe78] sm:$0xff] }
 0x237   : > { %3426 = vmatprep.subr.mxu1 %v8206_v24  ;;  %3588 = vmatmul.mubr.f32.vlgmr.msra.gmra.mxu0 %v12252_v12  ;;  %v8176_v24 = vld [vmem:[%s17662_s3 + $0xea8] sm:$0xff]  ;;  %v12668_v44 = vld [vmem:[#allocation2 + $0x170] sm:$0xff]  ;;  %v12705_v61 = vld [vmem:[#allocation2 + $0xc0] sm:$0xff] }
 0x238   : > { %17835 = vst [vmem:[#allocation37_spill] sm:$0xff] %v12258_v18  ;;  %3660 = vmatprep.subr.mxu0 %v8136_v21  ;;  %8042 = vmatprep.mubr.msk.f32.mxu1 %vm1565_vm1, %v9424_v41  ;;  %v12353_v21 = vld [vmem:[#allocation2 + $0x98] sm:$0xff] }
 0x239   : > { %3427 = vmatpush2.msra.mxu1 %v8205_v60  ;;  %8380 = vmatprep.mubr.msk.f32.mxu0 %vm1565_vm1, %v12268_v38  ;;  %v12281_v59 = vpop.f32.mrf.mxu0  ;;  %v8105_v60 = vld [vmem:[%s17662_s3 + $0xc70] sm:$0xff] }
 0x23a   : > { %3661 = vmatpush1.msra.mxu0 %v8135_v19  ;;  %v2273_v14 = vpop.f32.mrf.mxu1  ;;  %3428 = vmatprep.subr.mxu1 %v8200_v58  ;;  %v8100_v19 = vld [vmem:[%s17662_s3 + $0xc48] sm:$0xff]  ;;  %v8169_v58 = vld [vmem:[%s17662_s3 + $0xe70] sm:$0xff] }
 0x23b   : > { %3662 = vmatprep.subr.mxu0 %v8130_v22  ;;  %v2274_v37 = vadd.f32 %v2273_v14, %v12197_v9  ;;  %3429 = vmatpush2.msra.mxu1 %v8199_v52  ;;  %v12290_v47 = vpop.f32.mrf.mxu0  ;;  %v8118_v9 = vld [vmem:[%s17662_s3 + $0xcd8] sm:$0xff]  ;;  %v12374_v52 = vld [vmem:[#allocation2 + $0x90] sm:$0xff]  ;;  %v8164_v14 = vld [vmem:[%s17662_s3 + $0xe48] sm:$0xff] }
 0x23c   : > { %3663 = vmatpush1.msra.mxu0 %v8129_v62  ;;  %17836 = vst [vmem:[#allocation12_spill] sm:$0xff] %v12290_v47  ;;  %v12292_v10 = vpop.f32.mrf.mxu1  ;;  %2856 = vmatmul.mubr.f32.gmra.mxu1 %v9425_v50  ;;  %v8099_v62 = vld [vmem:[%s17662_s3 + $0xc40] sm:$0xff]  ;;  %v12391_v50 = vld [vmem:[#allocation2 + $0xb8] sm:$0xff] }
 0x23d   : > { %17837 = vst [vmem:[#allocation38_spill] sm:$0xff] %v12292_v10  ;;  %3430 = vmatprep.subr.mxu1 %v8194_v8  ;;  %v12300_v20 = vadd.f32 %v12168_v46, %v2274_v37  ;;  %3594 = vmatmul.mubr.f32.gmra.mxu0 %v12294_v7  ;;  %v8196_v10 = vld [vmem:[%s17662_s3 + $0xf48] sm:$0xff] }
 0x23e   : > { %3664 = vmatprep.subr.mxu0 %v8124_v16  ;;  %3431 = vmatpush2.msra.mxu1 %v8193_v25  ;;  %v8094_v16 = vld [vmem:[%s17662_s3 + $0xc18] sm:$0xff] }
 0x23f   : > { %17838 = vst [vmem:[#allocation39_spill] sm:$0xff] %v12300_v20  ;;  %3450 = vmatprep.mubr.f32.mxu1 %v12303_v6  ;;  %8381 = vmatprep.mubr.msk.f32.mxu0 %vm1565_vm1, %v12312_v15  ;;  %v12325_v63 = vpop.f32.mrf.mxu0 }
 0x240   : > { %3665 = vmatpush1.msra.mxu0 %v8123_v49  ;;  %v2279_v40 = vpop.f32.mrf.mxu1  ;;  %3432 = vmatprep.subr.mxu1 %v8188_v33  ;;  %v8093_v49 = vld [vmem:[%s17662_s3 + $0xc10] sm:$0xff] }
 0x241   : > { %3666 = vmatprep.subr.mxu0 %v8118_v9  ;;  %v2280_v0 = vadd.f32 %v2279_v40, %v12239_v54  ;;  %3433 = vmatpush2.msra.mxu1 %v8187_v5  ;;  %v12339_v34 = vpop.f32.mrf.mxu0  ;;  %v8106_v54 = vld [vmem:[%s17662_s3 + $0xc78] sm:$0xff]  ;;  %v8088_v5 = vld [vmem:[%s17662_s3 + $0xbe8] sm:$0xff]  ;;  %v8087_v40 = vld [vmem:[%s17662_s3 + $0xbe0] sm:$0xff] }
 0x242   : > { %3667 = vmatpush1.msra.mxu0 %v8117_v27  ;;  %17839 = vst [vmem:[#allocation13_spill] sm:$0xff] %v12339_v34  ;;  %v12341_v39 = vpop.f32.mrf.mxu1  ;;  %3434 = vmatprep.subr.mxu1 %v8182_v23  ;;  %v8158_v9 = vld [vmem:[%s17662_s3 + $0xe18] sm:$0xff]  ;;  %v8157_v27 = vld [vmem:[%s17662_s3 + $0xe10] sm:$0xff]  ;;  %v8208_v34 = vld [vmem:[%s17662_s3 + $0xfa8] sm:$0xff] }
 0x243   : > { %17840 = vst [vmem:[#allocation40_spill] sm:$0xff] %v12341_v39  ;;  %3600 = vmatmul.mubr.f32.gmra.mxu0 %v12334_v57  ;;  %v12351_v31 = vadd.f32 %v12168_v46, %v2280_v0  ;;  %3668 = vmatprep.subr.mxu0 %v8112_v26  ;;  %v12413_v23 = vld [vmem:[#allocation2 + $0xb0] sm:$0xff]  ;;  %v8152_v0 = vld [vmem:[%s17662_s3 + $0xde8] sm:$0xff]  ;;  %v12666_v39 = vld [vmem:[#allocation2 + $0xa0] sm:$0xff] }
 0x244   : > { %3435 = vmatpush2.msra.mxu1 %v8181_v43  ;;  %8382 = vmatprep.mubr.msk.f32.mxu0 %vm1565_vm1, %v12353_v21 }
 0x245   : > { %17841 = vst [vmem:[#allocation41_spill] sm:$0xff] %v12351_v31  ;;  %3669 = vmatpush1.msra.mxu0 %v8111_v30  ;;  %3436 = vmatprep.subr.mxu1 %v8176_v24  ;;  %v12372_v22 = vpop.f32.mrf.mxu0  ;;  %v8082_v30 = vld [vmem:[%s17662_s3 + $0xbb8] sm:$0xff]  ;;  %v12819_v31 = vld [vmem:[#allocation2 + $0x120] sm:$0xff] }
 0x246   : > { %3670 = vmatprep.subr.mxu0 %v8106_v54  ;;  %v2285_v41 = vpop.f32.mrf.mxu1  ;;  %3437 = vmatpush2.msra.mxu1 %v8175_v29  ;;  %v12428_v54 = vld [vmem:[#allocation2 + $0xd8] sm:$0xff]  ;;  %v8151_v29 = vld [vmem:[%s17662_s3 + $0xde0] sm:$0xff] }
 0x247   : > { %3671 = vmatpush1.msra.mxu0 %v8105_v60  ;;  %v2286_v8 = vadd.f32 %v2285_v41, %v12281_v59  ;;  %3438 = vmatprep.subr.mxu1 %v8170_v11  ;;  %v12387_v37 = vpop.f32.mrf.mxu0  ;;  %v8163_v59 = vld [vmem:[%s17662_s3 + $0xe40] sm:$0xff]  ;;  %v8081_v60 = vld [vmem:[%s17662_s3 + $0xbb0] sm:$0xff]  ;;  %v8076_v41 = vld [vmem:[%s17662_s3 + $0xb88] sm:$0xff] }
 0x248   : > { %3606 = vmatmul.mubr.f32.gmra.mxu0 %v12374_v52  ;;  %17842 = vst [vmem:[#allocation14_spill] sm:$0xff] %v12387_v37  ;;  %v12389_v25 = vpop.f32.mrf.mxu1  ;;  %3672 = vmatprep.subr.mxu0 %v8100_v19  ;;  %v12625_v37 = vld [vmem:[#allocation2 + $0x80] sm:$0xff] }
 0x249   : > { %17843 = vst [vmem:[#allocation42_spill] sm:$0xff] %v12389_v25  ;;  %3439 = vmatpush2.msra.mxu1 %v8169_v58  ;;  %v12400_v33 = vadd.f32 %v12168_v46, %v2286_v8  ;;  %8383 = vmatprep.mubr.msk.f32.mxu0 %vm1565_vm1, %v12391_v50  ;;  %v12454_v8 = vld [vmem:[#allocation2 + $0xd0] sm:$0xff]  ;;  %v8280_v25 = vld [vmem:[%s17662_s3 + $0x11e8] sm:$0xff] }
 0x24a   : > { %3673 = vmatpush1.msra.mxu0 %v8099_v62  ;;  %3440 = vmatprep.subr.mxu1 %v8164_v14  ;;  %v8145_v62 = vld [vmem:[%s17662_s3 + $0xdb0] sm:$0xff]  ;;  %v8075_v14 = vld [vmem:[%s17662_s3 + $0xb80] sm:$0xff] }
 0x24b   : > { %17844 = vst [vmem:[#allocation43_spill] sm:$0xff] %v12400_v33  ;;  %3674 = vmatprep.subr.mxu0 %v8094_v16  ;;  %3441 = vmatpush2.msra.mxu1 %v8163_v59  ;;  %v12418_v26 = vpop.f32.mrf.mxu0  ;;  %v8140_v16 = vld [vmem:[%s17662_s3 + $0xd88] sm:$0xff]  ;;  %v8070_v59 = vld [vmem:[%s17662_s3 + $0xb58] sm:$0xff] }
 0x24c   : > { %3675 = vmatpush1.msra.mxu0 %v8093_v49  ;;  %v2291_v43 = vpop.f32.mrf.mxu1  ;;  %3442 = vmatprep.subr.mxu1 %v8158_v9 }
 0x24d   : > { %3612 = vmatmul.mubr.f32.gmra.mxu0 %v12413_v23  ;;  %v2292_v24 = vadd.f32 %v2291_v43, %v12325_v63  ;;  %3676 = vmatprep.subr.mxu0 %v8088_v5  ;;  %v12436_v11 = vpop.f32.mrf.mxu0  ;;  %v8146_v63 = vld [vmem:[%s17662_s3 + $0xdb8] sm:$0xff] }
 0x24e   : > { %3443 = vmatpush2.msra.mxu1 %v8157_v27  ;;  %17845 = vst [vmem:[#allocation15_spill] sm:$0xff] %v12436_v11  ;;  %v12438_v19 = vpop.f32.mrf.mxu1  ;;  %8384 = vmatprep.mubr.msk.f32.mxu0 %vm1565_vm1, %v12428_v54  ;;  %v12468_v5 = vld [vmem:[#allocation2 + $0xf8] sm:$0xff]  ;;  %v8139_v27 = vld [vmem:[%s17662_s3 + $0xd80] sm:$0xff]  ;;  %v8220_v11 = vld [vmem:[%s17662_s3 + $0x1008] sm:$0xff] }
 0x24f   : > { %17846 = vst [vmem:[#allocation44_spill] sm:$0xff] %v12438_v19  ;;  %3677 = vmatpush1.msra.mxu0 %v8087_v40  ;;  %v12446_v58 = vadd.f32 %v12168_v46, %v2292_v24  ;;  %3444 = vmatprep.subr.mxu1 %v8152_v0  ;;  %v8069_v40 = vld [vmem:[%s17662_s3 + $0xb50] sm:$0xff]  ;;  %v8064_v24 = vld [vmem:[%s17662_s3 + $0xb28] sm:$0xff] }
 0x250   : > { %3678 = vmatprep.subr.mxu0 %v8082_v30  ;;  %3445 = vmatpush2.msra.mxu1 %v8151_v29  ;;  %v8328_v29 = vld [vmem:[%s17662_s3 + $0x1368] sm:$0xff]  ;;  %v12627_v19 = vld [vmem:[#allocation2 + $0x150] sm:$0xff] }
 0x251   : > { %17847 = vst [vmem:[#allocation45_spill] sm:$0xff] %v12446_v58  ;;  %3679 = vmatpush1.msra.mxu0 %v8081_v60  ;;  %3446 = vmatprep.subr.mxu1 %v8146_v63  ;;  %v12466_v49 = vpop.f32.mrf.mxu0  ;;  %v12492_v60 = vld [vmem:[#allocation2 + $0x20] sm:$0xff]  ;;  %v12494_v63 = vld [vmem:[#allocation2 + $0xf0] sm:$0xff] }
 0x252   : > { %3618 = vmatmul.mubr.f32.gmra.mxu0 %v12454_v8  ;;  %v2297_v9 = vpop.f32.mrf.mxu1  ;;  %3680 = vmatprep.subr.mxu0 %v8076_v41  ;;  %v12498_v41 = vld [vmem:[#allocation2 + $0x48] sm:$0xff] }
 0x253   : > { %3447 = vmatpush2.msra.mxu1 %v8145_v62  ;;  %v2298_v43 = vadd.f32 %v2297_v9, %v12372_v22  ;;  %8385 = vmatprep.mubr.msk.f32.mxu0 %vm1565_vm1, %v12468_v5  ;;  %v12479_v0 = vpop.f32.mrf.mxu0  ;;  %v8063_v62 = vld [vmem:[%s17662_s3 + $0xb20] sm:$0xff]  ;;  %v8322_v9 = vld [vmem:[%s17662_s3 + $0x1338] sm:$0xff] }
 0x254   : > { %3681 = vmatpush1.msra.mxu0 %v8075_v14  ;;  %17848 = vst [vmem:[#allocation16_spill] sm:$0xff] %v12479_v0  ;;  %v12481_v30 = vpop.f32.mrf.mxu1  ;;  %3448 = vmatprep.subr.mxu1 %v8140_v16  ;;  %v8327_v14 = vld [vmem:[%s17662_s3 + $0x1360] sm:$0xff]  ;;  %v12506_v16 = vld [vmem:[#allocation2 + $0x118] sm:$0xff]  ;;  %v8304_v0 = vld [vmem:[%s17662_s3 + $0x12a8] sm:$0xff] }
 0x255   : > { %17849 = vst [vmem:[#allocation46_spill] sm:$0xff] %v12481_v30  ;;  %3682 = vmatprep.subr.mxu0 %v8070_v59  ;;  %v12490_v22 = vadd.f32 %v12168_v46, %v2298_v43  ;;  %3449 = vmatpush2.msra.mxu1 %v8139_v27  ;;  %v8058_v59 = vld [vmem:[%s17662_s3 + $0xaf8] sm:$0xff]  ;;  %v8057_v43 = vld [vmem:[%s17662_s3 + $0xaf0] sm:$0xff]  ;;  %v8292_v30 = vld [vmem:[%s17662_s3 + $0x1248] sm:$0xff] }
 0x256   : > { %3683 = vmatpush1.msra.mxu0 %v8069_v40  ;;  %3451 = vmatmul.mubr.f32.vlgmr.msra.gmra.mxu1 %v12492_v60 }
 0x257   : > { %17850 = vst [vmem:[#allocation47_spill] sm:$0xff] %v12490_v22  ;;  %3624 = vmatmul.mubr.f32.gmra.mxu0 %v12494_v63  ;;  %3684 = vmatprep.subr.mxu0 %v8064_v24  ;;  %v2303_v27 = vpop.f32.mrf.mxu1  ;;  %v8321_v24 = vld [vmem:[%s17662_s3 + $0x1330] sm:$0xff] }
 0x258   : > { %3797 = vmatprep.subr.mxu1 %v8328_v29  ;;  %v12514_v40 = vpop.f32.mrf.mxu0  ;;  %3456 = vmatprep.mubr.f32.mxu1 %v12498_v41  ;;  %v2304_v29 = vadd.f32 %v2303_v27, %v12418_v26  ;;  %v12539_v26 = vld [vmem:[#allocation2 + $0x40] sm:$0xff]  ;;  %v12553_v27 = vld [vmem:[#allocation2 + $0x138] sm:$0xff] }
 0x259   : > { %8386 = vmatprep.mubr.msk.f32.mxu0 %vm1565_vm1, %v12506_v16  ;;  %3685 = vmatpush1.msra.mxu0 %v8063_v62  ;;  %v12526_v17 = vpop.f32.mrf.mxu1  ;;  %v12541_v62 = vld [vmem:[#allocation2 + $0x110] sm:$0xff] }
 0x25a   : > { %3798 = vmatpush1.msra.mxu1 %v8327_v14  ;;  %17851 = vst [vmem:[#allocation17_spill] sm:$0xff] %v12526_v17  ;;  %v12528_v32 = vpop.f32.mrf.mxu0  ;;  %3686 = vmatprep.subr.mxu0 %v8058_v59  ;;  %v12537_v45 = vadd.f32 %v12168_v46, %v2304_v29  ;;  %v12545_v14 = vld [vmem:[#allocation2 + $0x68] sm:$0xff]  ;;  %v8051_v59 = vld [vmem:[%s17662_s3 + $0xac0] sm:$0xff] }
 0x25b   : > { %17852 = vst [vmem:[#allocation48_spill] sm:$0xff] %v12528_v32  ;;  %3799 = vmatprep.subr.mxu1 %v8322_v9  ;;  %3687 = vmatpush1.msra.mxu0 %v8057_v43  ;;  %v8315_v9 = vld [vmem:[%s17662_s3 + $0x1300] sm:$0xff]  ;;  %v8046_v43 = vld [vmem:[%s17662_s3 + $0xa98] sm:$0xff] }
 0x25c   : > { %17853 = vst [vmem:[#allocation49_spill] sm:$0xff] %v12537_v45  ;;  %3800 = vmatpush1.msra.mxu1 %v8321_v24  ;;  %3630 = vmatmul.mubr.f32.gmra.mxu0 %v12541_v62  ;;  %v8310_v24 = vld [vmem:[%s17662_s3 + $0x12d8] sm:$0xff] }
 0x25d   : > { %3457 = vmatmul.mubr.f32.gmra.mxu1 %v12539_v26  ;;  %3688 = vmatprep.subr.mxu0 %v8052_v48  ;;  %v2309_v29 = vpop.f32.mrf.mxu1  ;;  %v8309_v48 = vld [vmem:[%s17662_s3 + $0x12d0] sm:$0xff] }
 0x25e   : > { %3801 = vmatprep.subr.mxu1 %v8316_v42  ;;  %v12561_v32 = vpop.f32.mrf.mxu0  ;;  %3462 = vmatprep.mubr.f32.mxu1 %v12545_v14  ;;  %v8045_v42 = vld [vmem:[%s17662_s3 + $0xa90] sm:$0xff]  ;;  %v2310_v35 = vadd.f32 %v2309_v29, %v12466_v49  ;;  %v12584_v49 = vld [vmem:[#allocation2 + $0x60] sm:$0xff]  ;;  %v8226_v29 = vld [vmem:[%s17662_s3 + $0x1038] sm:$0xff] }
 0x25f   : > { %8387 = vmatprep.mubr.msk.f32.mxu0 %vm1565_vm1, %v12553_v27  ;;  %3689 = vmatpush1.msra.mxu0 %v8051_v59  ;;  %v12586_v59 = vld [vmem:[#allocation2 + $0x130] sm:$0xff] }
 0x260   : > { %3802 = vmatpush1.msra.mxu1 %v8315_v9  ;;  %v12573_v3 = vpop.f32.mrf.mxu0  ;;  %3690 = vmatprep.subr.mxu0 %v8046_v43  ;;  %v12582_v17 = vadd.f32 %v12168_v46, %v2310_v35  ;;  %v12590_v9 = vld [vmem:[#allocation2 + $0x88] sm:$0xff]  ;;  %v8231_v43 = vld [vmem:[%s17662_s3 + $0x1060] sm:$0xff] }
 0x261   : > { %17854 = vst [vmem:[#allocation18_spill] sm:$0xff] %v12573_v3  ;;  %3803 = vmatprep.subr.mxu1 %v8310_v24  ;;  %3691 = vmatpush1.msra.mxu0 %v8045_v42  ;;  %v8303_v35 = vld [vmem:[%s17662_s3 + $0x12a0] sm:$0xff]  ;;  %v12598_v24 = vld [vmem:[#allocation2 + $0x158] sm:$0xff] }
 0x262   : > { %17855 = vst [vmem:[#allocation50_spill] sm:$0xff] %v12582_v17  ;;  %3804 = vmatpush1.msra.mxu1 %v8309_v48  ;;  %3636 = vmatmul.mubr.f32.gmra.mxu0 %v12586_v59  ;;  %v8298_v42 = vld [vmem:[%s17662_s3 + $0x1278] sm:$0xff] }
 0x263   : > { %3463 = vmatmul.mubr.f32.gmra.mxu1 %v12584_v49  ;;  %3692 = vmatprep.subr.mxu0 %v8232_v28  ;;  %v8225_v28 = vld [vmem:[%s17662_s3 + $0x1030] sm:$0xff]  ;;  %v8262_v17 = vld [vmem:[%s17662_s3 + $0x1158] sm:$0xff] }
 0x264   : > { %3805 = vmatprep.subr.mxu1 %v8304_v0  ;;  %v12606_v48 = vpop.f32.mrf.mxu0  ;;  %3468 = vmatprep.mubr.f32.mxu1 %v12590_v9  ;;  %v8297_v0 = vld [vmem:[%s17662_s3 + $0x1270] sm:$0xff] }
 0x265   : > { %8388 = vmatprep.mubr.msk.f32.mxu0 %vm1565_vm1, %v12598_v24  ;;  %3693 = vmatpush2.msra.mxu0 %v8231_v43  ;;  %v12631_v43 = vld [vmem:[#allocation2 + $0xa8] sm:$0xff] }
 0x266   : > { %3806 = vmatpush1.msra.mxu1 %v8303_v35  ;;  %v12617_v3 = vpop.f32.mrf.mxu0  ;;  %3694 = vmatprep.subr.mxu0 %v8226_v29  ;;  %v8219_v35 = vld [vmem:[%s17662_s3 + $0x1000] sm:$0xff] }
 0x267   : > { %17856 = vst [vmem:[#allocation51_spill] sm:$0xff] %v12617_v3  ;;  %3807 = vmatprep.subr.mxu1 %v8298_v42  ;;  %3695 = vmatpush2.msra.mxu0 %v8225_v28  ;;  %v8291_v29 = vld [vmem:[%s17662_s3 + $0x1240] sm:$0xff]  ;;  %v12641_v28 = vld [vmem:[#allocation2 + $0x178] sm:$0xff] }
 0x268   : > { %3808 = vmatpush1.msra.mxu1 %v8297_v0  ;;  %3642 = vmatmul.mubr.f32.gmra.mxu0 %v12627_v19  ;;  %v8214_v0 = vld [vmem:[%s17662_s3 + $0xfd8] sm:$0xff] }
 0x269   : > { %3469 = vmatmul.mubr.f32.gmra.mxu1 %v12625_v37  ;;  %v12639_v42 = vpop.f32.mrf.mxu0  ;;  %3696 = vmatprep.subr.mxu0 %v8220_v11  ;;  %v8286_v3 = vld [vmem:[%s17662_s3 + $0x1218] sm:$0xff]  ;;  %v8213_v11 = vld [vmem:[%s17662_s3 + $0xfd0] sm:$0xff] }
 0x26a   : > { %3809 = vmatprep.subr.mxu1 %v8292_v30  ;;  %3474 = vmatprep.mubr.f32.mxu1 %v12631_v43  ;;  %v8285_v30 = vld [vmem:[%s17662_s3 + $0x1210] sm:$0xff] }
 0x26b   : > { %8389 = vmatprep.mubr.msk.f32.mxu0 %vm1565_vm1, %v12641_v28  ;;  %3697 = vmatpush2.msra.mxu0 %v8219_v35  ;;  %v12664_v47 = vpop.f32.mrf.mxu0  ;;  %v8207_v35 = vld [vmem:[%s17662_s3 + $0xfa0] sm:$0xff] }
 0x26c   : > { %3810 = vmatpush1.msra.mxu1 %v8291_v29  ;;  %3698 = vmatprep.subr.mxu0 %v8214_v0  ;;  %17857 = vst [vmem:[#allocation19_spill] sm:$0xff] %v12664_v47  ;;  %v8279_v29 = vld [vmem:[%s17662_s3 + $0x11e0] sm:$0xff]  ;;  %v12680_v0 = vld [vmem:[#allocation2 + $0x198] sm:$0xff] }
 0x26d   : > { %3811 = vmatprep.subr.mxu1 %v8286_v3  ;;  %3699 = vmatpush2.msra.mxu0 %v8213_v11  ;;  %v12672_v3 = vld [vmem:[#allocation2 + $0xc8] sm:$0xff]  ;;  %v8202_v11 = vld [vmem:[%s17662_s3 + $0xf78] sm:$0xff] }
 0x26e   : > { %3812 = vmatpush1.msra.mxu1 %v8285_v30  ;;  %3648 = vmatmul.mubr.f32.gmra.mxu0 %v12668_v44  ;;  %v8274_v30 = vld [vmem:[%s17662_s3 + $0x11b8] sm:$0xff]  ;;  %v12697_v47 = vpop.f32.mrf.mxu0 }
 0x26f   : > { %3475 = vmatmul.mubr.f32.gmra.mxu1 %v12666_v39  ;;  %3700 = vmatprep.subr.mxu0 %v8208_v34  ;;  %v8201_v34 = vld [vmem:[%s17662_s3 + $0xf70] sm:$0xff] }
 0x270   : > { %3813 = vmatprep.subr.mxu1 %v8280_v25  ;;  %3480 = vmatprep.mubr.f32.mxu1 %v12672_v3  ;;  %v8273_v25 = vld [vmem:[%s17662_s3 + $0x11b0] sm:$0xff] }
 0x271   : > { %8390 = vmatprep.mubr.msk.f32.mxu0 %vm1565_vm1, %v12680_v0  ;;  %3701 = vmatpush2.msra.mxu0 %v8207_v35  ;;  %v8195_v35 = vld [vmem:[%s17662_s3 + $0xf40] sm:$0xff] }
 0x272   : > { %3814 = vmatpush1.msra.mxu1 %v8279_v29  ;;  %3702 = vmatprep.subr.mxu0 %v8202_v11  ;;  %v8267_v29 = vld [vmem:[%s17662_s3 + $0x1180] sm:$0xff]  ;;  %v12717_v11 = vpop.f32.mrf.mxu1 }
 0x273   : > { %3815 = vmatprep.subr.mxu1 %v8274_v30  ;;  %3703 = vmatpush2.msra.mxu0 %v8201_v34  ;;  %17858 = vst [vmem:[#allocation53_spill] sm:$0xff] %v12717_v11  ;;  %v12719_v30 = vpop.f32.mrf.mxu0  ;;  %v12721_v34 = vld [vmem:[#allocation2 + $0xe8] sm:$0xff]  ;;  %v8189_v11 = vld [vmem:[%s17662_s3 + $0xf10] sm:$0xff] }
 0x274   : > { %3816 = vmatpush1.msra.mxu1 %v8273_v25  ;;  %3654 = vmatmul.mubr.f32.gmra.mxu0 %v12707_v36  ;;  %17859 = vst [vmem:[#allocation54_spill] sm:$0xff] %v12719_v30  ;;  %v8190_v25 = vld [vmem:[%s17662_s3 + $0xf18] sm:$0xff]  ;;  %v8184_v30 = vld [vmem:[%s17662_s3 + $0xee8] sm:$0xff] }
 0x275   : > { %3481 = vmatmul.mubr.f32.gmra.mxu1 %v12705_v61  ;;  %3704 = vmatprep.subr.mxu0 %v8196_v10  ;;  %v12746_v22 = vpop.f32.mrf.mxu0 }
 0x276   : > { %3817 = vmatprep.subr.mxu1 %v8268_v55  ;;  %3486 = vmatprep.mubr.f32.mxu1 %v12721_v34  ;;  %v8261_v55 = vld [vmem:[%s17662_s3 + $0x1150] sm:$0xff]  ;;  %v2380_v10 = vpop.f32.mrf.mxu1 }
 0x277   : > { %3705 = vmatpush2.msra.mxu0 %v8195_v35  ;;  %3724 = vmatprep.mubr.f32.mxu0 %v12303_v6  ;;  %v12741_v45 = vadd.f32 %v12514_v40, %v2380_v10  ;;  %v8256_v35 = vld [vmem:[%s17662_s3 + $0x1128] sm:$0xff]  ;;  %v12750_v6 = vld [vmem:[#allocation2 + $0xe0] sm:$0xff] }
 0x278   : > { %3818 = vmatpush1.msra.mxu1 %v8267_v29  ;;  %3706 = vmatprep.subr.mxu0 %v8190_v25  ;;  %v12748_v58 = vpop.f32.mrf.mxu1  ;;  %v8183_v29 = vld [vmem:[%s17662_s3 + $0xee0] sm:$0xff]  ;;  %v12759_v40 = vld [vmem:[#allocation2 + $0x108] sm:$0xff]  ;;  %v8250_v25 = vld [vmem:[%s17662_s3 + $0x10f8] sm:$0xff] }
 0x279   : > { %17860 = vst [vmem:[#allocation20_spill] sm:$0xff] %v12741_v45  ;;  %3819 = vmatprep.subr.mxu1 %v8262_v17  ;;  %17861 = vst [vmem:[#allocation55_spill] sm:$0xff] %v12748_v58  ;;  %3707 = vmatpush2.msra.mxu0 %v8189_v11  ;;  %v8255_v17 = vld [vmem:[%s17662_s3 + $0x1120] sm:$0xff]  ;;  %v8178_v11 = vld [vmem:[%s17662_s3 + $0xeb8] sm:$0xff]  ;;  %v12777_v58 = vpop.f32.mrf.mxu0 }
 0x27a   : > { %3820 = vmatpush1.msra.mxu1 %v8261_v55  ;;  %3708 = vmatprep.subr.mxu0 %v8184_v30  ;;  %v8177_v55 = vld [vmem:[%s17662_s3 + $0xeb0] sm:$0xff]  ;;  %v8172_v10 = vld [vmem:[%s17662_s3 + $0xe88] sm:$0xff]  ;;  %17862 = vst [vmem:[#allocation56_spill] sm:$0xff] %v12777_v58 }
 0x27b   : > { %3487 = vmatmul.mubr.f32.gmra.mxu1 %v12750_v6  ;;  %3821 = vmatprep.subr.mxu1 %v8256_v35  ;;  %v8249_v30 = vld [vmem:[%s17662_s3 + $0x10f0] sm:$0xff]  ;;  %v8244_v35 = vld [vmem:[%s17662_s3 + $0x10c8] sm:$0xff] }
 0x27c   : > { %3492 = vmatprep.mubr.f32.mxu1 %v12759_v40  ;;  %3709 = vmatpush2.msra.mxu0 %v8183_v29  ;;  %v12785_v29 = vld [vmem:[#allocation2 + $0x100] sm:$0xff]  ;;  %v12796_v58 = vld [vmem:[#allocation2 + $0x128] sm:$0xff] }
 0x27d   : > { %3822 = vmatpush1.msra.mxu1 %v8255_v17  ;;  %v2386_v45 = vpop.f32.mrf.mxu1  ;;  %3710 = vmatprep.subr.mxu0 %v8178_v11  ;;  %v8171_v17 = vld [vmem:[%s17662_s3 + $0xe80] sm:$0xff] }
 0x27e   : > { %3823 = vmatprep.subr.mxu1 %v8250_v25  ;;  %v12783_v33 = vadd.f32 %v12561_v32, %v2386_v45  ;;  %3711 = vmatpush2.msra.mxu0 %v8177_v55  ;;  %v8243_v11 = vld [vmem:[%s17662_s3 + $0x10c0] sm:$0xff]  ;;  %v8166_v32 = vld [vmem:[%s17662_s3 + $0xe58] sm:$0xff]  ;;  %v8165_v55 = vld [vmem:[%s17662_s3 + $0xe50] sm:$0xff] }
 0x27f   : > { %3824 = vmatpush1.msra.mxu1 %v8249_v30  ;;  %v12793_v25 = vpop.f32.mrf.mxu1  ;;  %3712 = vmatprep.subr.mxu0 %v8172_v10  ;;  %v8238_v45 = vld [vmem:[%s17662_s3 + $0x1098] sm:$0xff]  ;;  %v8237_v30 = vld [vmem:[%s17662_s3 + $0x1090] sm:$0xff]  ;;  %v12811_v10 = vpop.f32.mrf.mxu0 }
 0x280   : > { %17863 = vst [vmem:[#allocation22_spill] sm:$0xff] %v12783_v33  ;;  %17864 = vst [vmem:[#allocation57_spill] sm:$0xff] %v12793_v25  ;;  %3493 = vmatmul.mubr.f32.gmra.mxu1 %v12785_v29  ;;  %3825 = vmatprep.subr.mxu1 %v8244_v35  ;;  %v8160_v25 = vld [vmem:[%s17662_s3 + $0xe28] sm:$0xff] }
 0x281   : > { %3498 = vmatprep.mubr.f32.mxu1 %v12796_v58  ;;  %3713 = vmatpush2.msra.mxu0 %v8171_v17  ;;  %v8376_v35 = vld [vmem:[%s17662_s3 + $0x14e8] sm:$0xff]  ;;  %v8159_v17 = vld [vmem:[%s17662_s3 + $0xe20] sm:$0xff]  ;;  %v12839_v20 = vpop.f32.mrf.mxu0 }
 0x282   : > { %3826 = vmatpush1.msra.mxu1 %v8243_v11  ;;  %3714 = vmatprep.subr.mxu0 %v8166_v32  ;;  %v8375_v11 = vld [vmem:[%s17662_s3 + $0x14e0] sm:$0xff]  ;;  %17866 = vst [vmem:[#allocation21_spill] sm:$0xff] %v12839_v20 }
 0x283   : > { %3827 = vmatprep.subr.mxu1 %v8238_v45  ;;  %v2392_v33 = vpop.f32.mrf.mxu1  ;;  %3715 = vmatpush2.msra.mxu0 %v8165_v55  ;;  %v12831_v45 = vld [vmem:[#allocation2 + $0x148] sm:$0xff]  ;;  %v8154_v55 = vld [vmem:[%s17662_s3 + $0xdf8] sm:$0xff]  ;;  %v12856_v20 = vld [vmem:[#allocation2 + $0x140] sm:$0xff] }
 0x284   : > { %3828 = vmatpush1.msra.mxu1 %v8237_v30  ;;  %v12828_v32 = vadd.f32 %v12606_v48, %v2392_v33  ;;  %3716 = vmatprep.subr.mxu0 %v8160_v25  ;;  %v8370_v30 = vld [vmem:[%s17662_s3 + $0x14b8] sm:$0xff]  ;;  %v8153_v33 = vld [vmem:[%s17662_s3 + $0xdf0] sm:$0xff]  ;;  %v8148_v25 = vld [vmem:[%s17662_s3 + $0xdc8] sm:$0xff] }
 0x285   : > { %3499 = vmatmul.mubr.f32.gmra.mxu1 %v12819_v31  ;;  %v12841_v18 = vpop.f32.mrf.mxu1  ;;  %3845 = vmatprep.subr.mxu1 %v8376_v35  ;;  %v8369_v48 = vld [vmem:[%s17662_s3 + $0x14b0] sm:$0xff]  ;;  %v8364_v35 = vld [vmem:[%s17662_s3 + $0x1488] sm:$0xff] }
 0x286   : > { %17865 = vst [vmem:[#allocation58_spill] sm:$0xff] %v12828_v32  ;;  %17867 = vst [vmem:[#allocation59_spill] sm:$0xff] %v12841_v18  ;;  %3504 = vmatprep.mubr.f32.mxu1 %v12831_v45  ;;  %3717 = vmatpush2.msra.mxu0 %v8159_v17  ;;  %v8147_v18 = vld [vmem:[%s17662_s3 + $0xdc0] sm:$0xff] }
 0x287   : > { %3846 = vmatpush2.msra.mxu1 %v8375_v11  ;;  %3718 = vmatprep.subr.mxu0 %v8154_v55  ;;  %v8363_v17 = vld [vmem:[%s17662_s3 + $0x1480] sm:$0xff]  ;;  %v12864_v11 = vpop.f32.mrf.mxu0 }
 0x288   : > { %3847 = vmatprep.subr.mxu1 %v8370_v30  ;;  %3719 = vmatpush2.msra.mxu0 %v8153_v33  ;;  %v12867_v30 = vld [vmem:[#allocation2 + $0x168] sm:$0xff]  ;;  %v8142_v33 = vld [vmem:[%s17662_s3 + $0xd98] sm:$0xff] }
 0x289   : > { %3848 = vmatpush2.msra.mxu1 %v8369_v48  ;;  %v2398_v55 = vpop.f32.mrf.mxu1  ;;  %3720 = vmatprep.subr.mxu0 %v8148_v25  ;;  %v8358_v48 = vld [vmem:[%s17662_s3 + $0x1458] sm:$0xff]  ;;  %v8141_v25 = vld [vmem:[%s17662_s3 + $0xd90] sm:$0xff] }
 0x28a   : > { %3505 = vmatmul.mubr.f32.gmra.mxu1 %v12856_v20  ;;  %v12876_v32 = vadd.f32 %v12639_v42, %v2398_v55  ;;  %3849 = vmatprep.subr.mxu1 %v8364_v35  ;;  %v8352_v42 = vld [vmem:[%s17662_s3 + $0x1428] sm:$0xff]  ;;  %v8330_v35 = vld [vmem:[%s17662_s3 + $0x1378] sm:$0xff]  ;;  %v12893_v55 = vpop.f32.mrf.mxu0 }
 0x28b   : > { %3510 = vmatprep.mubr.f32.mxu1 %v12867_v30  ;;  %v12885_v1 = vpop.f32.mrf.mxu1  ;;  %3721 = vmatpush2.msra.mxu0 %v8147_v18  ;;  %17870 = vst [vmem:[#allocation24_spill] sm:$0xff] %v12893_v55  ;;  %v8351_v18 = vld [vmem:[%s17662_s3 + $0x1420] sm:$0xff] }
 0x28c   : > { %17868 = vst [vmem:[#allocation60_spill] sm:$0xff] %v12876_v32  ;;  %17869 = vst [vmem:[#allocation23_spill] sm:$0xff] %v12885_v1  ;;  %3850 = vmatpush2.msra.mxu1 %v8363_v17  ;;  %3722 = vmatprep.subr.mxu0 %v8142_v33  ;;  %v12895_v32 = vld [vmem:[#allocation2 + $0x160] sm:$0xff]  ;;  %v8329_v17 = vld [vmem:[%s17662_s3 + $0x1370] sm:$0xff]  ;;  %v12927_v51 = vpop.f32.mrf.mxu0 }
 0x28d   : > { %3851 = vmatprep.subr.mxu1 %v8358_v48  ;;  %3723 = vmatpush2.msra.mxu0 %v8141_v25  ;;  %v12905_v48 = vld [vmem:[#allocation2 + $0x188] sm:$0xff]  ;;  %v17871_v25 = vsub.s32 2, %v17825_v4 }
 0x28e   : > { %3852 = vmatpush2.msra.mxu1 %v8357_v13  ;;  %3725 = vmatmul.mubr.f32.vlgmr.msra.gmra.mxu0 %v12492_v60  ;;  %v8346_v13 = vld [vmem:[%s17662_s3 + $0x13f8] sm:$0xff]  ;;  %v8324_v60 = vld [vmem:[%s17662_s3 + $0x1348] sm:$0xff] }
 0x28f   : > { %3511 = vmatmul.mubr.f32.gmra.mxu1 %v12895_v32  ;;  %v2404_v33 = vpop.f32.mrf.mxu1  ;;  %3853 = vmatprep.subr.mxu1 %v8352_v42  ;;  %v12916_v55 = vrot.slane %v12155_v53, %v17871_v25  ;;  %v8345_v42 = vld [vmem:[%s17662_s3 + $0x13f0] sm:$0xff]  ;;  %v8312_v25 = vld [vmem:[%s17662_s3 + $0x12e8] sm:$0xff] }
 0x290   : > { %4071 = vmatprep.subr.mxu0 %v8330_v35  ;;  %v2542_v1 = vadd.f32 %v12697_v47, %v2404_v33  ;;  %3516 = vmatprep.mubr.f32.mxu1 %v12905_v48  ;;  %v8323_v35 = vld [vmem:[%s17662_s3 + $0x1340] sm:$0xff]  ;;  %v8340_v47 = vld [vmem:[%s17662_s3 + $0x13c8] sm:$0xff] }
 0x291   : > { %3730 = vmatprep.mubr.f32.mxu0 %v12498_v41  ;;  %v12929_v4 = vpop.f32.mrf.mxu1  ;;  %3854 = vmatpush2.msra.mxu1 %v8351_v18  ;;  %v8318_v41 = vld [vmem:[%s17662_s3 + $0x1318] sm:$0xff]  ;;  %v12940_v33 = vld [vmem:[#allocation2 + $0x180] sm:$0xff] }
 0x292   : > { %17872 = vst [vmem:[#allocation61_spill] sm:$0xff] %v12929_v4  ;;  %4072 = vmatpush1.msra.mxu0 %v8329_v17  ;;  %v12932_v53 = vadd.f32 %v12916_v55, %v2542_v1  ;;  %3855 = vmatprep.subr.mxu1 %v8346_v13  ;;  %v8339_v18 = vld [vmem:[%s17662_s3 + $0x13c0] sm:$0xff]  ;;  %v8317_v1 = vld [vmem:[%s17662_s3 + $0x1310] sm:$0xff]  ;;  %v12950_v17 = vpop.f32.mrf.mxu0 }
 0x293   : > { %4073 = vmatprep.subr.mxu0 %v8324_v60  ;;  %3856 = vmatpush2.msra.mxu1 %v8345_v42  ;;  %17873 = vst [vmem:[#allocation62_spill] sm:$0xff] %v12950_v17  ;;  %v8334_v60 = vld [vmem:[%s17662_s3 + $0x1398] sm:$0xff] }
 0x294   : > { %4074 = vmatpush1.msra.mxu0 %v8323_v35  ;;  %3517 = vmatmul.mubr.f32.gmra.mxu1 %v12940_v33  ;;  %v8311_v35 = vld [vmem:[%s17662_s3 + $0x12e0] sm:$0xff] }
 0x295   : > { %3731 = vmatmul.mubr.f32.gmra.mxu0 %v12539_v26  ;;  %v2410_v13 = vpop.f32.mrf.mxu1  ;;  %3857 = vmatprep.subr.mxu1 %v8340_v47  ;;  %v8333_v26 = vld [vmem:[%s17662_s3 + $0x1390] sm:$0xff] }
 0x296   : > { %4075 = vmatprep.subr.mxu0 %v8318_v41  ;;  %v2548_v42 = vadd.f32 %v12746_v22, %v2410_v13  ;;  %3736 = vmatprep.mubr.f32.mxu0 %v12545_v14  ;;  %v8138_v22 = vld [vmem:[%s17662_s3 + $0xd78] sm:$0xff] }
 0x297   : > { %3858 = vmatpush2.msra.mxu1 %v8339_v18  ;;  %v12966_v47 = vpop.f32.mrf.mxu1  ;;  %8391 = vmatprep.mubr.msk.f32.mxu1 %vm1565_vm1, %v12226_v2  ;;  %v8306_v14 = vld [vmem:[%s17662_s3 + $0x12b8] sm:$0xff]  ;;  %v12979_v18 = vpop.f32.mrf.mxu0  ;;  %v8137_v2 = vld [vmem:[%s17662_s3 + $0xd70] sm:$0xff] }
 0x298   : > { %17874 = vst [vmem:[#allocation25_spill] sm:$0xff] %v12966_v47  ;;  %4076 = vmatpush1.msra.mxu0 %v8317_v1  ;;  %v12971_v41 = vadd.f32 %v12916_v55, %v2548_v42  ;;  %3859 = vmatprep.subr.mxu1 %v8334_v60  ;;  %v8305_v1 = vld [vmem:[%s17662_s3 + $0x12b0] sm:$0xff]  ;;  %v8132_v60 = vld [vmem:[%s17662_s3 + $0xd48] sm:$0xff]  ;;  %v8299_v42 = vld [vmem:[%s17662_s3 + $0x1280] sm:$0xff] }
 0x299   : > { %4077 = vmatprep.subr.mxu0 %v8312_v25  ;;  %3860 = vmatpush2.msra.mxu1 %v8333_v26  ;;  %v8131_v25 = vld [vmem:[%s17662_s3 + $0xd40] sm:$0xff]  ;;  %v13005_v26 = vpop.f32.mrf.mxu0  ;;  %v8670_v47 = vld [vmem:[%s17662_s3 + $0x1cf8] sm:$0xff] }
 0x29a   : > { %4078 = vmatpush1.msra.mxu0 %v8311_v35  ;;  %3862 = vmatmul.mubr.f32.vlgmr.msra.gmra.mxu1 %v12252_v12  ;;  %17875 = vst [vmem:[#allocation63_spill] sm:$0xff] %v13005_v26  ;;  %v13896_v26 = vld [vmem:[#allocation2 + $0x60] sm:$0xff] }
 0x29b   : > { %3737 = vmatmul.mubr.f32.gmra.mxu0 %v12584_v49  ;;  %v2416_v13 = vpop.f32.mrf.mxu1  ;;  %3934 = vmatprep.subr.mxu1 %v8138_v22  ;;  %v8300_v49 = vld [vmem:[%s17662_s3 + $0x1288] sm:$0xff] }
 0x29c   : > { %4079 = vmatprep.subr.mxu0 %v8306_v14  ;;  %v2554_v12 = vadd.f32 %v12811_v10, %v2416_v13  ;;  %3742 = vmatprep.mubr.f32.mxu0 %v12590_v9  ;;  %v8294_v9 = vld [vmem:[%s17662_s3 + $0x1258] sm:$0xff]  ;;  %v8125_v14 = vld [vmem:[%s17662_s3 + $0xd10] sm:$0xff] }
 0x29d   : > { %8392 = vmatprep.mubr.msk.f32.mxu1 %vm1565_vm1, %v12268_v38  ;;  %v13007_v35 = vpop.f32.mrf.mxu1  ;;  %3935 = vmatpush1.msra.mxu1 %v8137_v2  ;;  %v8126_v38 = vld [vmem:[%s17662_s3 + $0xd18] sm:$0xff]  ;;  %v8293_v2 = vld [vmem:[%s17662_s3 + $0x1250] sm:$0xff] }
 0x29e   : > { %17876 = vst [vmem:[#allocation26_spill] sm:$0xff] %v13007_v35  ;;  %4080 = vmatpush1.msra.mxu0 %v8305_v1  ;;  %v13010_v10 = vadd.f32 %v12916_v55, %v2554_v12  ;;  %3936 = vmatprep.subr.mxu1 %v8132_v60  ;;  %v13026_v1 = vpop.f32.mrf.mxu0  ;;  %v13940_v35 = vld [vmem:[#allocation2 + $0x80] sm:$0xff] }
 0x29f   : > { %4081 = vmatprep.subr.mxu0 %v8300_v49  ;;  %3937 = vmatpush1.msra.mxu1 %v8131_v25  ;;  %v8287_v49 = vld [vmem:[%s17662_s3 + $0x1220] sm:$0xff] }
 0x2a0   : > { %4082 = vmatpush1.msra.mxu0 %v8299_v42  ;;  %v2422_v22 = vpop.f32.mrf.mxu1  ;;  %3868 = vmatmul.mubr.f32.gmra.mxu1 %v12294_v7  ;;  %v8288_v7 = vld [vmem:[%s17662_s3 + $0x1228] sm:$0xff]  ;;  %v13055_v25 = vpop.f32.mrf.mxu0 }
 0x2a1   : > { %3743 = vmatmul.mubr.f32.gmra.mxu0 %v12625_v37  ;;  %v2560_v13 = vadd.f32 %v12864_v11, %v2422_v22  ;;  %3938 = vmatprep.subr.mxu1 %v8126_v38  ;;  %v8120_v37 = vld [vmem:[%s17662_s3 + $0xce8] sm:$0xff]  ;;  %v8119_v11 = vld [vmem:[%s17662_s3 + $0xce0] sm:$0xff]  ;;  %17878 = vst [vmem:[#allocation64_spill] sm:$0xff] %v13055_v25  ;;  %v8281_v22 = vld [vmem:[%s17662_s3 + $0x11f0] sm:$0xff] }
 0x2a2   : > { %4083 = vmatprep.subr.mxu0 %v8294_v9  ;;  %v13035_v60 = vpop.f32.mrf.mxu1  ;;  %3748 = vmatprep.mubr.f32.mxu0 %v12631_v43  ;;  %v8114_v43 = vld [vmem:[%s17662_s3 + $0xcb8] sm:$0xff]  ;;  %v8113_v9 = vld [vmem:[%s17662_s3 + $0xcb0] sm:$0xff] }
 0x2a3   : > { %17877 = vst [vmem:[#allocation27_spill] sm:$0xff] %v13035_v60  ;;  %8393 = vmatprep.mubr.msk.f32.mxu1 %vm1565_vm1, %v12312_v15  ;;  %v13047_v12 = vadd.f32 %v12916_v55, %v2560_v13  ;;  %3939 = vmatpush1.msra.mxu1 %v8125_v14  ;;  %v8282_v15 = vld [vmem:[%s17662_s3 + $0x11f8] sm:$0xff]  ;;  %v8275_v13 = vld [vmem:[%s17662_s3 + $0x11c0] sm:$0xff] }
 0x2a4   : > { %4084 = vmatpush1.msra.mxu0 %v8293_v2  ;;  %3940 = vmatprep.subr.mxu1 %v8120_v37  ;;  %v8107_v2 = vld [vmem:[%s17662_s3 + $0xc80] sm:$0xff]  ;;  %v2583_v37 = vpop.f32.mrf.mxu0 }
 0x2a5   : > { %4085 = vmatprep.subr.mxu0 %v8288_v7  ;;  %v2428_v42 = vpop.f32.mrf.mxu1  ;;  %3941 = vmatpush1.msra.mxu1 %v8119_v11 }
 0x2a6   : > { %4086 = vmatpush1.msra.mxu0 %v8287_v49  ;;  %v2566_v38 = vadd.f32 %v12927_v51, %v2428_v42  ;;  %3874 = vmatmul.mubr.f32.gmra.mxu1 %v12334_v57  ;;  %v8108_v51 = vld [vmem:[%s17662_s3 + $0xc88] sm:$0xff]  ;;  %v13103_v42 = vpop.f32.mrf.mxu0 }
 0x2a7   : > { %3749 = vmatmul.mubr.f32.gmra.mxu0 %v12666_v39  ;;  %v13066_v14 = vpop.f32.mrf.mxu1  ;;  %3942 = vmatprep.subr.mxu1 %v8114_v43  ;;  %v8276_v57 = vld [vmem:[%s17662_s3 + $0x11c8] sm:$0xff]  ;;  %v8101_v43 = vld [vmem:[%s17662_s3 + $0xc50] sm:$0xff]  ;;  %17881 = vst [vmem:[#allocation67_spill] sm:$0xff] %v13103_v42 }
 0x2a8   : > { %17879 = vst [vmem:[#allocation65_spill] sm:$0xff] %v13066_v14  ;;  %4087 = vmatprep.subr.mxu0 %v8282_v15  ;;  %v13075_v39 = vadd.f32 %v12916_v55, %v2566_v38  ;;  %3754 = vmatprep.mubr.f32.mxu0 %v12672_v3  ;;  %v8102_v3 = vld [vmem:[%s17662_s3 + $0xc58] sm:$0xff]  ;;  %v8269_v15 = vld [vmem:[%s17662_s3 + $0x1190] sm:$0xff]  ;;  %v8095_v38 = vld [vmem:[%s17662_s3 + $0xc20] sm:$0xff] }
 0x2a9   : > { %8394 = vmatprep.mubr.msk.f32.mxu1 %vm1565_vm1, %v12353_v21  ;;  %3943 = vmatpush1.msra.mxu1 %v8113_v9  ;;  %v8270_v21 = vld [vmem:[%s17662_s3 + $0x1198] sm:$0xff]  ;;  %v8263_v9 = vld [vmem:[%s17662_s3 + $0x1160] sm:$0xff]  ;;  %v8676_v14 = vld [vmem:[%s17662_s3 + $0x1d28] sm:$0xff] }
 0x2aa   : > { %4088 = vmatpush1.msra.mxu0 %v8281_v22  ;;  %v2434_v7 = vpop.f32.mrf.mxu1  ;;  %3944 = vmatprep.subr.mxu1 %v8108_v51 }
 0x2ab   : > { %4089 = vmatprep.subr.mxu0 %v8276_v57  ;;  %v2572_v11 = vadd.f32 %v12979_v18, %v2434_v7  ;;  %3945 = vmatpush1.msra.mxu1 %v8107_v2 }
 0x2ac   : > { %4090 = vmatpush1.msra.mxu0 %v8275_v13  ;;  %v13093_v49 = vpop.f32.mrf.mxu1  ;;  %3880 = vmatmul.mubr.f32.gmra.mxu1 %v12374_v52  ;;  %v8264_v52 = vld [vmem:[%s17662_s3 + $0x1168] sm:$0xff] }
 0x2ad   : > { %17880 = vst [vmem:[#allocation66_spill] sm:$0xff] %v13093_v49  ;;  %3755 = vmatmul.mubr.f32.gmra.mxu0 %v12705_v61  ;;  %v13106_v18 = vadd.f32 %v12916_v55, %v2572_v11  ;;  %3946 = vmatprep.subr.mxu1 %v8102_v3  ;;  %v8096_v61 = vld [vmem:[%s17662_s3 + $0xc28] sm:$0xff]  ;;  %v8257_v3 = vld [vmem:[%s17662_s3 + $0x1130] sm:$0xff]  ;;  %v8251_v11 = vld [vmem:[%s17662_s3 + $0x1100] sm:$0xff] }
 0x2ae   : > { %4091 = vmatprep.subr.mxu0 %v8270_v21  ;;  %3760 = vmatprep.mubr.f32.mxu0 %v12721_v34  ;;  %v2654_v51 = vpop.f32.mrf.mxu0  ;;  %v8258_v34 = vld [vmem:[%s17662_s3 + $0x1138] sm:$0xff]  ;;  %v8084_v21 = vld [vmem:[%s17662_s3 + $0xbc8] sm:$0xff] }
 0x2af   : > { %8395 = vmatprep.mubr.msk.f32.mxu1 %vm1565_vm1, %v12391_v50  ;;  %v2440_v22 = vpop.f32.mrf.mxu1  ;;  %3947 = vmatpush1.msra.mxu1 %v8101_v43  ;;  %v8090_v50 = vld [vmem:[%s17662_s3 + $0xbf8] sm:$0xff] }
 0x2b0   : > { %4092 = vmatpush1.msra.mxu0 %v8269_v15  ;;  %v2578_v57 = vadd.f32 %v13026_v1, %v2440_v22  ;;  %3948 = vmatprep.subr.mxu1 %v8096_v61  ;;  %v13132_v13 = vpop.f32.mrf.mxu0  ;;  %v8089_v1 = vld [vmem:[%s17662_s3 + $0xbf0] sm:$0xff]  ;;  %v13917_v49 = vld [vmem:[#allocation2 + $0x58] sm:$0xff] }
 0x2b1   : > { %4093 = vmatprep.subr.mxu0 %v8264_v52  ;;  %v13130_v2 = vpop.f32.mrf.mxu1  ;;  %17883 = vst [vmem:[#allocation69_spill] sm:$0xff] %v13132_v13  ;;  %3949 = vmatpush1.msra.mxu1 %v8095_v38  ;;  %v8245_v22 = vld [vmem:[%s17662_s3 + $0x10d0] sm:$0xff]  ;;  %v17934_v13 = vld [vmem:[#allocation35_spill] sm:$0xff] }
 0x2b2   : > { %17882 = vst [vmem:[#allocation68_spill] sm:$0xff] %v13130_v2  ;;  %4094 = vmatpush1.msra.mxu0 %v8263_v9  ;;  %v13135_v7 = vadd.f32 %v12916_v55, %v2578_v57  ;;  %3886 = vmatmul.mubr.f32.gmra.mxu1 %v12413_v23  ;;  %v8083_v23 = vld [vmem:[%s17662_s3 + $0xbc0] sm:$0xff]  ;;  %v8072_v57 = vld [vmem:[%s17662_s3 + $0xb68] sm:$0xff] }
 0x2b3   : > { %3761 = vmatmul.mubr.f32.gmra.mxu0 %v12750_v6  ;;  %3950 = vmatprep.subr.mxu1 %v8090_v50  ;;  %v8252_v6 = vld [vmem:[%s17662_s3 + $0x1108] sm:$0xff]  ;;  %v8239_v50 = vld [vmem:[%s17662_s3 + $0x10a0] sm:$0xff] }
 0x2b4   : > { %4095 = vmatprep.subr.mxu0 %v8258_v34  ;;  %3766 = vmatprep.mubr.f32.mxu0 %v12759_v40  ;;  %v2446_v43 = vpop.f32.mrf.mxu1  ;;  %v8078_v40 = vld [vmem:[%s17662_s3 + $0xb98] sm:$0xff]  ;;  %v17938_v2 = vld [vmem:[#allocation37_spill] sm:$0xff] }
 0x2b5   : > { %8396 = vmatprep.mubr.msk.f32.mxu1 %vm1565_vm1, %v12428_v54  ;;  %v2660_v15 = vpop.f32.mrf.mxu0  ;;  %3951 = vmatpush1.msra.mxu1 %v8089_v1  ;;  %v2584_v61 = vadd.f32 %v2583_v37, %v2446_v43  ;;  %v8246_v54 = vld [vmem:[%s17662_s3 + $0x10d8] sm:$0xff]  ;;  %v8077_v37 = vld [vmem:[%s17662_s3 + $0xb90] sm:$0xff]  ;;  %v8371_v43 = vld [vmem:[%s17662_s3 + $0x14c0] sm:$0xff] }
 0x2b6   : > { %4096 = vmatpush1.msra.mxu0 %v8257_v3  ;;  %3952 = vmatprep.subr.mxu1 %v8084_v21  ;;  %v13166_v52 = vpop.f32.mrf.mxu1 }
 0x2b7   : > { %4097 = vmatprep.subr.mxu0 %v8252_v6  ;;  %17884 = vst [vmem:[#allocation70_spill] sm:$0xff] %v13166_v52  ;;  %v13168_v38 = vpop.f32.mrf.mxu0  ;;  %3953 = vmatpush1.msra.mxu1 %v8083_v23  ;;  %v13171_v9 = vadd.f32 %v12916_v55, %v2584_v61  ;;  %v8377_v23 = vld [vmem:[%s17662_s3 + $0x14f0] sm:$0xff] }
 0x2b8   : > { %17885 = vst [vmem:[#allocation71_spill] sm:$0xff] %v13168_v38  ;;  %4098 = vmatpush1.msra.mxu0 %v8251_v11  ;;  %3892 = vmatmul.mubr.f32.gmra.mxu1 %v12454_v8  ;;  %v8071_v8 = vld [vmem:[%s17662_s3 + $0xb60] sm:$0xff]  ;;  %v8060_v11 = vld [vmem:[%s17662_s3 + $0xb08] sm:$0xff]  ;;  %v8518_v38 = vld [vmem:[%s17662_s3 + $0x1838] sm:$0xff] }
 0x2b9   : > { %3767 = vmatmul.mubr.f32.gmra.mxu0 %v12785_v29  ;;  %3954 = vmatprep.subr.mxu1 %v8078_v40  ;;  %v8240_v29 = vld [vmem:[%s17662_s3 + $0x10a8] sm:$0xff] }
 0x2ba   : > { %4099 = vmatprep.subr.mxu0 %v8246_v54  ;;  %3772 = vmatprep.mubr.f32.mxu0 %v12796_v58  ;;  %v2791_v1 = vpop.f32.mrf.mxu1  ;;  %v8066_v58 = vld [vmem:[%s17662_s3 + $0xb38] sm:$0xff] }
 0x2bb   : > { %8397 = vmatprep.mubr.msk.f32.mxu1 %vm1565_vm1, %v12468_v5  ;;  %v2666_v34 = vpop.f32.mrf.mxu0  ;;  %3955 = vmatpush1.msra.mxu1 %v8077_v37  ;;  %v13196_v3 = vadd.f32 %v2791_v1, %v2654_v51  ;;  %v8378_v5 = vld [vmem:[%s17662_s3 + $0x14f8] sm:$0xff]  ;;  %v8065_v51 = vld [vmem:[%s17662_s3 + $0xb30] sm:$0xff] }
 0x2bc   : > { %4100 = vmatpush1.msra.mxu0 %v8245_v22  ;;  %3956 = vmatprep.subr.mxu1 %v8072_v57  ;;  %v13206_v6 = vpop.f32.mrf.mxu1  ;;  %v8365_v57 = vld [vmem:[%s17662_s3 + $0x1490] sm:$0xff] }
 0x2bd   : > { %4101 = vmatprep.subr.mxu0 %v8240_v29  ;;  %v13204_v21 = vpop.f32.mrf.mxu0  ;;  %17887 = vst [vmem:[#allocation73_spill] sm:$0xff] %v13206_v6  ;;  %3957 = vmatpush1.msra.mxu1 %v8071_v8  ;;  %v8048_v29 = vld [vmem:[%s17662_s3 + $0xaa8] sm:$0xff]  ;;  %v8359_v8 = vld [vmem:[%s17662_s3 + $0x1460] sm:$0xff] }
 0x2be   : > { %17886 = vst [vmem:[#allocation72_spill] sm:$0xff] %v13204_v21  ;;  %4102 = vmatpush1.msra.mxu0 %v8239_v50  ;;  %3898 = vmatmul.mubr.f32.gmra.mxu1 %v12494_v63  ;;  %v8059_v63 = vld [vmem:[%s17662_s3 + $0xb00] sm:$0xff] }
 0x2bf   : > { %3773 = vmatmul.mubr.f32.gmra.mxu0 %v12819_v31  ;;  %3958 = vmatprep.subr.mxu1 %v8066_v58  ;;  %v8372_v31 = vld [vmem:[%s17662_s3 + $0x14c8] sm:$0xff]  ;;  %v8511_v6 = vld [vmem:[%s17662_s3 + $0x1800] sm:$0xff] }
 0x2c0   : > { %4119 = vmatprep.subr.mxu0 %v8378_v5  ;;  %3778 = vmatprep.mubr.f32.mxu0 %v12831_v45  ;;  %v2797_v40 = vpop.f32.mrf.mxu1  ;;  %v8366_v45 = vld [vmem:[%s17662_s3 + $0x1498] sm:$0xff] }
 0x2c1   : > { %8398 = vmatprep.mubr.msk.f32.mxu1 %vm1565_vm1, %v12506_v16  ;;  %v2672_v61 = vpop.f32.mrf.mxu0  ;;  %3959 = vmatpush1.msra.mxu1 %v8065_v51  ;;  %v13231_v54 = vadd.f32 %v2797_v40, %v2660_v15  ;;  %v8054_v16 = vld [vmem:[%s17662_s3 + $0xad8] sm:$0xff]  ;;  %v8053_v15 = vld [vmem:[%s17662_s3 + $0xad0] sm:$0xff] }
 0x2c2   : > { %4120 = vmatpush2.msra.mxu0 %v8377_v23  ;;  %3960 = vmatprep.subr.mxu1 %v8060_v11  ;;  %v13241_v22 = vpop.f32.mrf.mxu1  ;;  %v8353_v23 = vld [vmem:[%s17662_s3 + $0x1430] sm:$0xff]  ;;  %v8228_v11 = vld [vmem:[%s17662_s3 + $0x1048] sm:$0xff] }
 0x2c3   : > { %4121 = vmatprep.subr.mxu0 %v8372_v31  ;;  %v13239_v37 = vpop.f32.mrf.mxu0  ;;  %17889 = vst [vmem:[#allocation75_spill] sm:$0xff] %v13241_v22  ;;  %3961 = vmatpush1.msra.mxu1 %v8059_v63  ;;  %v8347_v31 = vld [vmem:[%s17662_s3 + $0x1400] sm:$0xff] }
 0x2c4   : > { %17888 = vst [vmem:[#allocation74_spill] sm:$0xff] %v13239_v37  ;;  %4122 = vmatpush2.msra.mxu0 %v8371_v43  ;;  %3904 = vmatmul.mubr.f32.gmra.mxu1 %v12541_v62  ;;  %v8047_v62 = vld [vmem:[%s17662_s3 + $0xaa0] sm:$0xff] }
 0x2c5   : > { %3779 = vmatmul.mubr.f32.gmra.mxu0 %v12856_v20  ;;  %3962 = vmatprep.subr.mxu1 %v8054_v16  ;;  %v8360_v20 = vld [vmem:[%s17662_s3 + $0x1468] sm:$0xff] }
 0x2c6   : > { %4123 = vmatprep.subr.mxu0 %v8366_v45  ;;  %3784 = vmatprep.mubr.f32.mxu0 %v12867_v30  ;;  %v2803_v1 = vpop.f32.mrf.mxu1  ;;  %v8354_v30 = vld [vmem:[%s17662_s3 + $0x1438] sm:$0xff] }
 0x2c7   : > { %8399 = vmatprep.mubr.msk.f32.mxu1 %vm1565_vm1, %v12553_v27  ;;  %v2678_v50 = vpop.f32.mrf.mxu0  ;;  %3963 = vmatpush1.msra.mxu1 %v8053_v15  ;;  %v13266_v58 = vadd.f32 %v2803_v1, %v2666_v34  ;;  %v8234_v27 = vld [vmem:[%s17662_s3 + $0x1078] sm:$0xff]  ;;  %v8233_v34 = vld [vmem:[%s17662_s3 + $0x1070] sm:$0xff] }
 0x2c8   : > { %4124 = vmatpush2.msra.mxu0 %v8365_v57  ;;  %3964 = vmatprep.subr.mxu1 %v8048_v29  ;;  %v13276_v51 = vpop.f32.mrf.mxu1  ;;  %v8341_v15 = vld [vmem:[%s17662_s3 + $0x13d0] sm:$0xff]  ;;  %v8216_v57 = vld [vmem:[%s17662_s3 + $0xfe8] sm:$0xff]  ;;  %v8210_v1 = vld [vmem:[%s17662_s3 + $0xfb8] sm:$0xff] }
 0x2c9   : > { %17890 = vst [vmem:[#allocation76_spill] sm:$0xff] %v13266_v58  ;;  %4125 = vmatprep.subr.mxu0 %v8360_v20  ;;  %v13274_v5 = vpop.f32.mrf.mxu0  ;;  %17892 = vst [vmem:[#allocation78_spill] sm:$0xff] %v13276_v51  ;;  %3965 = vmatpush1.msra.mxu1 %v8047_v62  ;;  %v8336_v29 = vld [vmem:[%s17662_s3 + $0x13a8] sm:$0xff]  ;;  %v8614_v51 = vld [vmem:[%s17662_s3 + $0x1b38] sm:$0xff] }
 0x2ca   : > { %17891 = vst [vmem:[#allocation77_spill] sm:$0xff] %v13274_v5  ;;  %4126 = vmatpush2.msra.mxu0 %v8359_v8  ;;  %3910 = vmatmul.mubr.f32.gmra.mxu1 %v12586_v59  ;;  %v8227_v59 = vld [vmem:[%s17662_s3 + $0x1040] sm:$0xff]  ;;  %v9426_v8 = vld [vmem:[#allocation2 + $0x38] sm:$0xff] }
 0x2cb   : > { %3785 = vmatmul.mubr.f32.gmra.mxu0 %v12895_v32  ;;  %3966 = vmatprep.subr.mxu1 %v8234_v27  ;;  %v8348_v32 = vld [vmem:[%s17662_s3 + $0x1408] sm:$0xff]  ;;  %v8506_v27 = vld [vmem:[%s17662_s3 + $0x17d8] sm:$0xff] }
 0x2cc   : > { %4127 = vmatprep.subr.mxu0 %v8354_v30  ;;  %3790 = vmatprep.mubr.f32.mxu0 %v12905_v48  ;;  %v2809_v43 = vpop.f32.mrf.mxu1  ;;  %v8342_v48 = vld [vmem:[%s17662_s3 + $0x13d8] sm:$0xff] }
 0x2cd   : > { %8400 = vmatprep.mubr.msk.f32.mxu1 %vm1565_vm1, %v12598_v24  ;;  %v2684_v63 = vpop.f32.mrf.mxu0  ;;  %3967 = vmatpush2.msra.mxu1 %v8233_v34  ;;  %v13301_v40 = vadd.f32 %v2809_v43, %v2672_v61  ;;  %v8222_v24 = vld [vmem:[%s17662_s3 + $0x1018] sm:$0xff]  ;;  %v8221_v61 = vld [vmem:[%s17662_s3 + $0x1010] sm:$0xff] }
 0x2ce   : > { %4128 = vmatpush2.msra.mxu0 %v8353_v23  ;;  %3968 = vmatprep.subr.mxu1 %v8228_v11  ;;  %v13311_v45 = vpop.f32.mrf.mxu1  ;;  %v8209_v23 = vld [vmem:[%s17662_s3 + $0xfb0] sm:$0xff]  ;;  %v8626_v5 = vld [vmem:[%s17662_s3 + $0x1b98] sm:$0xff] }
 0x2cf   : > { %17893 = vst [vmem:[#allocation79_spill] sm:$0xff] %v13301_v40  ;;  %4129 = vmatprep.subr.mxu0 %v8348_v32  ;;  %v13309_v16 = vpop.f32.mrf.mxu0  ;;  %17895 = vst [vmem:[#allocation81_spill] sm:$0xff] %v13311_v45  ;;  %3969 = vmatpush2.msra.mxu1 %v8227_v59  ;;  %v9427_v11 = vld [vmem:[#allocation2 + $0x30] sm:$0xff]  ;;  %v8204_v32 = vld [vmem:[%s17662_s3 + $0xf88] sm:$0xff] }
 0x2d0   : > { %17894 = vst [vmem:[#allocation80_spill] sm:$0xff] %v13309_v16  ;;  %4130 = vmatpush2.msra.mxu0 %v8347_v31  ;;  %3916 = vmatmul.mubr.f32.gmra.mxu1 %v12627_v19  ;;  %v8215_v19 = vld [vmem:[%s17662_s3 + $0xfe0] sm:$0xff]  ;;  %v8500_v59 = vld [vmem:[%s17662_s3 + $0x17a8] sm:$0xff] }
 0x2d1   : > { %3791 = vmatmul.mubr.f32.gmra.mxu0 %v12940_v33  ;;  %3970 = vmatprep.subr.mxu1 %v8222_v24  ;;  %v8335_v33 = vld [vmem:[%s17662_s3 + $0x13a0] sm:$0xff] }
 0x2d2   : > { %4131 = vmatprep.subr.mxu0 %v8342_v48  ;;  %8401 = vmatprep.mubr.msk.f32.mxu1 %vm1565_vm1, %v12641_v28  ;;  %v2815_v62 = vpop.f32.mrf.mxu1  ;;  %v8499_v31 = vld [vmem:[%s17662_s3 + $0x17a0] sm:$0xff]  ;;  %v9428_v48 = vld [vmem:[#allocation2 + $0x58] sm:$0xff] }
 0x2d3   : > { %3971 = vmatpush2.msra.mxu1 %v8221_v61  ;;  %v2690_v20 = vpop.f32.mrf.mxu0  ;;  %4132 = vmatpush2.msra.mxu0 %v8341_v15  ;;  %v13339_v28 = vadd.f32 %v2815_v62, %v2678_v50  ;;  %v8505_v50 = vld [vmem:[%s17662_s3 + $0x17d0] sm:$0xff]  ;;  %v8494_v15 = vld [vmem:[%s17662_s3 + $0x1778] sm:$0xff]  ;;  %v8192_v62 = vld [vmem:[%s17662_s3 + $0xf28] sm:$0xff] }
 0x2d4   : > { %8403 = vmatprep.mubr.msk.f32.mxu0 %vm1565_vm1, %v9426_v8  ;;  %3972 = vmatprep.subr.mxu1 %v8216_v57  ;;  %v13346_v34 = vpop.f32.mrf.mxu1  ;;  %v8488_v8 = vld [vmem:[%s17662_s3 + $0x1748] sm:$0xff]  ;;  %v9460_v16 = vld [vmem:[#allocation2 + $0xc0] sm:$0xff] }
 0x2d5   : > { %17896 = vst [vmem:[#allocation82_spill] sm:$0xff] %v13339_v28  ;;  %4133 = vmatprep.subr.mxu0 %v8336_v29  ;;  %v13344_v30 = vpop.f32.mrf.mxu0  ;;  %17898 = vst [vmem:[#allocation84_spill] sm:$0xff] %v13346_v34  ;;  %3973 = vmatpush2.msra.mxu1 %v8215_v19  ;;  %v8197_v19 = vld [vmem:[%s17662_s3 + $0xf50] sm:$0xff]  ;;  %v2893_v34 = vadd.f32 %v12168_v46, %v12115_v56 }
 0x2d6   : > { %17897 = vst [vmem:[#allocation83_spill] sm:$0xff] %v13344_v30  ;;  %4134 = vmatpush2.msra.mxu0 %v8335_v33  ;;  %3922 = vmatmul.mubr.f32.gmra.mxu1 %v12668_v44  ;;  %v8203_v44 = vld [vmem:[%s17662_s3 + $0xf80] sm:$0xff]  ;;  %v9429_v33 = vld [vmem:[#allocation2 + $0x50] sm:$0xff] }
 0x2d7   : > { %3974 = vmatprep.subr.mxu1 %v8210_v1  ;;  %4136 = vmatmul.mubr.f32.vlgmr.msra.gmra.mxu0 %v9427_v11  ;;  %v9430_v1 = vld [vmem:[#allocation2 + $0x28] sm:$0xff]  ;;  %v9431_v11 = vld [vmem:[#allocation2 + $0x78] sm:$0xff]  ;;  %v9456_v30 = vld [vmem:[#allocation2 + $0xa0] sm:$0xff] }
 0x2d8   : > { %4701 = vmatprep.subr.mxu0 %v8506_v27  ;;  %8402 = vmatprep.mubr.msk.f32.mxu1 %vm1565_vm1, %v12680_v0  ;;  %v2821_v24 = vpop.f32.mrf.mxu1  ;;  %v8198_v0 = vld [vmem:[%s17662_s3 + $0xf58] sm:$0xff]  ;;  %v8487_v27 = vld [vmem:[%s17662_s3 + $0x1740] sm:$0xff]  ;;  %v8553_v56 = vld [vmem:[%s17662_s3 + $0x1950] sm:$0xff] }
 0x2d9   : > { %3975 = vmatpush2.msra.mxu1 %v8209_v23  ;;  %v13369_v43 = vpop.f32.mrf.mxu0  ;;  %8404 = vmatprep.mubr.msk.f32.mxu0 %vm1565_vm1, %v9428_v48  ;;  %v13375_v61 = vadd.f32 %v2821_v24, %v2684_v63  ;;  %v8493_v63 = vld [vmem:[%s17662_s3 + $0x1770] sm:$0xff] }
 0x2da   : > { %4702 = vmatpush1.msra.mxu0 %v8505_v50  ;;  %3976 = vmatprep.subr.mxu1 %v8204_v32  ;;  %v13382_v29 = vpop.f32.mrf.mxu1  ;;  %v8186_v32 = vld [vmem:[%s17662_s3 + $0xef8] sm:$0xff] }
 0x2db   : > { %17899 = vst [vmem:[#allocation85_spill] sm:$0xff] %v13375_v61  ;;  %4703 = vmatprep.subr.mxu0 %v8500_v59  ;;  %v13380_v57 = vpop.f32.mrf.mxu0  ;;  %17901 = vst [vmem:[#allocation87_spill] sm:$0xff] %v13382_v29  ;;  %3977 = vmatpush2.msra.mxu1 %v8203_v44  ;;  %v8482_v44 = vld [vmem:[%s17662_s3 + $0x1718] sm:$0xff]  ;;  %v9457_v29 = vld [vmem:[#allocation2 + $0x170] sm:$0xff] }
 0x2dc   : > { %17900 = vst [vmem:[#allocation86_spill] sm:$0xff] %v13380_v57  ;;  %4704 = vmatpush1.msra.mxu0 %v8499_v31  ;;  %3928 = vmatmul.mubr.f32.gmra.mxu1 %v12707_v36  ;;  %v8191_v36 = vld [vmem:[%s17662_s3 + $0xf20] sm:$0xff]  ;;  %v8185_v31 = vld [vmem:[%s17662_s3 + $0xef0] sm:$0xff] }
 0x2dd   : > { %3978 = vmatprep.subr.mxu1 %v8198_v0  ;;  %4142 = vmatmul.mubr.f32.gmra.mxu0 %v9429_v33  ;;  %v9432_v0 = vld [vmem:[#allocation2 + $0x70] sm:$0xff]  ;;  %v8475_v33 = vld [vmem:[%s17662_s3 + $0x16e0] sm:$0xff] }
 0x2de   : > { %4705 = vmatprep.subr.mxu0 %v8494_v15  ;;  %3979 = vmatpush2.msra.mxu1 %v8197_v19  ;;  %v2827_v50 = vpop.f32.mrf.mxu1  ;;  %v8180_v15 = vld [vmem:[%s17662_s3 + $0xec8] sm:$0xff]  ;;  %v9452_v57 = vld [vmem:[#allocation2 + $0x80] sm:$0xff] }
 0x2df   : > { %3998 = vmatprep.mubr.f32.mxu1 %v9430_v1  ;;  %v13403_v23 = vpop.f32.mrf.mxu0  ;;  %8405 = vmatprep.mubr.msk.f32.mxu0 %vm1565_vm1, %v9431_v11  ;;  %v13409_v59 = vadd.f32 %v2827_v50, %v2690_v20  ;;  %v8481_v20 = vld [vmem:[%s17662_s3 + $0x1710] sm:$0xff]  ;;  %v8476_v19 = vld [vmem:[%s17662_s3 + $0x16e8] sm:$0xff] }
 0x2e0   : > { %4706 = vmatpush1.msra.mxu0 %v8493_v63  ;;  %3980 = vmatprep.subr.mxu1 %v8192_v62  ;;  %v13419_v48 = vpop.f32.mrf.mxu1  ;;  %v8179_v63 = vld [vmem:[%s17662_s3 + $0xec0] sm:$0xff]  ;;  %v9433_v62 = vld [vmem:[#allocation2 + $0x98] sm:$0xff]  ;;  %v8173_v50 = vld [vmem:[%s17662_s3 + $0xe90] sm:$0xff] }
 0x2e1   : > { %17902 = vst [vmem:[#allocation88_spill] sm:$0xff] %v13409_v59  ;;  %4707 = vmatprep.subr.mxu0 %v8488_v8  ;;  %v13417_v24 = vpop.f32.mrf.mxu0  ;;  %17904 = vst [vmem:[#allocation90_spill] sm:$0xff] %v13419_v48  ;;  %3981 = vmatpush2.msra.mxu1 %v8191_v36  ;;  %v8174_v8 = vld [vmem:[%s17662_s3 + $0xe98] sm:$0xff]  ;;  %v9453_v48 = vld [vmem:[#allocation2 + $0x150] sm:$0xff] }
 0x2e2   : > { %17903 = vst [vmem:[#allocation89_spill] sm:$0xff] %v13417_v24  ;;  %4708 = vmatpush1.msra.mxu0 %v8487_v27  ;;  %3982 = vmatprep.subr.mxu1 %v8186_v32  ;;  %v8470_v27 = vld [vmem:[%s17662_s3 + $0x16b8] sm:$0xff]  ;;  %v8469_v32 = vld [vmem:[%s17662_s3 + $0x16b0] sm:$0xff]  ;;  %v8736_v59 = vld [vmem:[%s17662_s3 + $0x1f08] sm:$0xff] }
 0x2e3   : > { %4148 = vmatmul.mubr.f32.gmra.mxu0 %v9432_v0  ;;  %4709 = vmatprep.subr.mxu0 %v8482_v44  ;;  %v8168_v0 = vld [vmem:[%s17662_s3 + $0xe68] sm:$0xff]  ;;  %v9445_v24 = vld [vmem:[#allocation2 + $0x110] sm:$0xff] }
 0x2e4   : > { %3983 = vmatpush2.msra.mxu1 %v8185_v31  ;;  %8406 = vmatprep.mubr.msk.f32.mxu0 %vm1565_vm1, %v9433_v62  ;;  %v2833_v36 = vpop.f32.mrf.mxu1  ;;  %v8458_v62 = vld [vmem:[%s17662_s3 + $0x1658] sm:$0xff] }
 0x2e5   : > { %4710 = vmatpush1.msra.mxu0 %v8481_v20  ;;  %v13440_v1 = vpop.f32.mrf.mxu0  ;;  %3984 = vmatprep.subr.mxu1 %v8180_v15  ;;  %v13449_v11 = vadd.f32 %v2833_v36, %v13369_v43  ;;  %v9434_v20 = vld [vmem:[#allocation2 + $0x90] sm:$0xff]  ;;  %v8464_v43 = vld [vmem:[%s17662_s3 + $0x1688] sm:$0xff]  ;;  %v8167_v15 = vld [vmem:[%s17662_s3 + $0xe60] sm:$0xff] }
 0x2e6   : > { %4711 = vmatprep.subr.mxu0 %v8476_v19  ;;  %3985 = vmatpush2.msra.mxu1 %v8179_v63  ;;  %v13456_v31 = vpop.f32.mrf.mxu1  ;;  %v8463_v19 = vld [vmem:[%s17662_s3 + $0x1680] sm:$0xff]  ;;  %v9435_v63 = vld [vmem:[#allocation2 + $0xb8] sm:$0xff] }
 0x2e7   : > { %17905 = vst [vmem:[#allocation91_spill] sm:$0xff] %v13449_v11  ;;  %4712 = vmatpush1.msra.mxu0 %v8475_v33  ;;  %v13454_v44 = vpop.f32.mrf.mxu0  ;;  %17907 = vst [vmem:[#allocation93_spill] sm:$0xff] %v13456_v31  ;;  %3986 = vmatprep.subr.mxu1 %v8174_v8  ;;  %v8162_v33 = vld [vmem:[%s17662_s3 + $0xe38] sm:$0xff]  ;;  %v8161_v8 = vld [vmem:[%s17662_s3 + $0xe30] sm:$0xff] }
 0x2e8   : > { %17906 = vst [vmem:[#allocation92_spill] sm:$0xff] %v13454_v44  ;;  %4154 = vmatmul.mubr.f32.gmra.mxu0 %v9434_v20  ;;  %4713 = vmatprep.subr.mxu0 %v8470_v27  ;;  %v9436_v20 = vld [vmem:[#allocation2 + $0xb0] sm:$0xff]  ;;  %v9439_v44 = vld [vmem:[#allocation2 + $0xf8] sm:$0xff]  ;;  %v8424_v11 = vld [vmem:[%s17662_s3 + $0x1548] sm:$0xff] }
 0x2e9   : > { %3987 = vmatpush2.msra.mxu1 %v8173_v50  ;;  %8407 = vmatprep.mubr.msk.f32.mxu0 %vm1565_vm1, %v9435_v63  ;;  %v8457_v50 = vld [vmem:[%s17662_s3 + $0x1650] sm:$0xff]  ;;  %v8451_v63 = vld [vmem:[%s17662_s3 + $0x1620] sm:$0xff] }
 0x2ea   : > { %4714 = vmatpush1.msra.mxu0 %v8469_v32  ;;  %3988 = vmatprep.subr.mxu1 %v8168_v0  ;;  %v2839_v27 = vpop.f32.mrf.mxu1  ;;  %v8156_v0 = vld [vmem:[%s17662_s3 + $0xe08] sm:$0xff] }
 0x2eb   : > { %4715 = vmatprep.subr.mxu0 %v8464_v43  ;;  %v2714_v36 = vpop.f32.mrf.mxu0  ;;  %3989 = vmatpush2.msra.mxu1 %v8167_v15  ;;  %v13484_v32 = vadd.f32 %v2839_v27, %v13403_v23  ;;  %v8452_v43 = vld [vmem:[%s17662_s3 + $0x1628] sm:$0xff]  ;;  %v8155_v23 = vld [vmem:[%s17662_s3 + $0xe00] sm:$0xff]  ;;  %v8150_v27 = vld [vmem:[%s17662_s3 + $0xdd8] sm:$0xff] }
 0x2ec   : > { %4716 = vmatpush1.msra.mxu0 %v8463_v19  ;;  %3990 = vmatprep.subr.mxu1 %v8162_v33  ;;  %v13494_v19 = vpop.f32.mrf.mxu1  ;;  %v9437_v33 = vld [vmem:[#allocation2 + $0xd8] sm:$0xff] }
 0x2ed   : > { %17908 = vst [vmem:[#allocation94_spill] sm:$0xff] %v13484_v32  ;;  %4160 = vmatmul.mubr.f32.gmra.mxu0 %v9436_v20  ;;  %v13492_v15 = vpop.f32.mrf.mxu0  ;;  %17910 = vst [vmem:[#allocation96_spill] sm:$0xff] %v13494_v19  ;;  %4717 = vmatprep.subr.mxu0 %v8458_v62  ;;  %v8446_v62 = vld [vmem:[%s17662_s3 + $0x15f8] sm:$0xff] }
 0x2ee   : > { %17909 = vst [vmem:[#allocation95_spill] sm:$0xff] %v13492_v15  ;;  %3991 = vmatpush2.msra.mxu1 %v8161_v8  ;;  %8408 = vmatprep.mubr.msk.f32.mxu0 %vm1565_vm1, %v9437_v33  ;;  %v8149_v8 = vld [vmem:[%s17662_s3 + $0xdd0] sm:$0xff]  ;;  %v8440_v15 = vld [vmem:[%s17662_s3 + $0x15c8] sm:$0xff] }
 0x2ef   : > { %4718 = vmatpush1.msra.mxu0 %v8457_v50  ;;  %3992 = vmatprep.subr.mxu1 %v8156_v0  ;;  %v8445_v50 = vld [vmem:[%s17662_s3 + $0x15f0] sm:$0xff] }
 0x2f0   : > { %4719 = vmatprep.subr.mxu0 %v8452_v43  ;;  %3993 = vmatpush2.msra.mxu1 %v8155_v23  ;;  %v2845_v33 = vpop.f32.mrf.mxu1  ;;  %v9438_v0 = vld [vmem:[#allocation2 + $0xd0] sm:$0xff]  ;;  %v8144_v43 = vld [vmem:[%s17662_s3 + $0xda8] sm:$0xff] }
 0x2f1   : > { %4720 = vmatpush1.msra.mxu0 %v8451_v63  ;;  %v13515_v20 = vpop.f32.mrf.mxu0  ;;  %3994 = vmatprep.subr.mxu1 %v8150_v27  ;;  %v13524_v23 = vadd.f32 %v2845_v33, %v13440_v1  ;;  %v8143_v63 = vld [vmem:[%s17662_s3 + $0xda0] sm:$0xff]  ;;  %v8434_v1 = vld [vmem:[%s17662_s3 + $0x1598] sm:$0xff]  ;;  %v9441_v33 = vld [vmem:[#allocation2 + $0xf0] sm:$0xff] }
 0x2f2   : > { %4166 = vmatmul.mubr.f32.gmra.mxu0 %v9438_v0  ;;  %4721 = vmatprep.subr.mxu0 %v8446_v62  ;;  %v8439_v27 = vld [vmem:[%s17662_s3 + $0x15c0] sm:$0xff]  ;;  %v13532_v0 = vpop.f32.mrf.mxu1  ;;  %v8698_v62 = vld [vmem:[%s17662_s3 + $0x1dd8] sm:$0xff] }
 0x2f3   : > { %17911 = vst [vmem:[#allocation97_spill] sm:$0xff] %v13524_v23  ;;  %3995 = vmatpush2.msra.mxu1 %v8149_v8  ;;  %17912 = vst [vmem:[#allocation98_spill] sm:$0xff] %v13532_v0  ;;  %8409 = vmatprep.mubr.msk.f32.mxu0 %vm1565_vm1, %v9439_v44  ;;  %v13535_v19 = vpop.f32.mrf.mxu0  ;;  %v9440_v8 = vld [vmem:[#allocation2 + $0x20] sm:$0xff]  ;;  %v8433_v44 = vld [vmem:[%s17662_s3 + $0x1590] sm:$0xff] }
 0x2f4   : > { %4722 = vmatpush1.msra.mxu0 %v8445_v50  ;;  %17913 = vst [vmem:[#allocation99_spill] sm:$0xff] %v13535_v19  ;;  %3996 = vmatprep.subr.mxu1 %v8144_v43  ;;  %v8428_v43 = vld [vmem:[%s17662_s3 + $0x1568] sm:$0xff]  ;;  %v9443_v19 = vld [vmem:[#allocation2 + $0x118] sm:$0xff] }
 0x2f5   : > { %4723 = vmatprep.subr.mxu0 %v8440_v15  ;;  %3997 = vmatpush2.msra.mxu1 %v8143_v63  ;;  %v8697_v15 = vld [vmem:[%s17662_s3 + $0x1dd0] sm:$0xff]  ;;  %v8692_v63 = vld [vmem:[%s17662_s3 + $0x1da8] sm:$0xff] }
 0x2f6   : > { %4724 = vmatpush1.msra.mxu0 %v8439_v27  ;;  %3999 = vmatmul.mubr.f32.vlgmr.msra.gmra.mxu1 %v9440_v8  ;;  %v2851_v50 = vpop.f32.mrf.mxu1 }
 0x2f7   : > { %4172 = vmatmul.mubr.f32.gmra.mxu0 %v9441_v33  ;;  %4725 = vmatprep.subr.mxu0 %v8434_v1  ;;  %v13555_v27 = vadd.f32 %v2851_v50, %v2714_v36  ;;  %v13557_v8 = vpop.f32.mrf.mxu0  ;;  %v9442_v33 = vld [vmem:[#allocation2 + $0x48] sm:$0xff]  ;;  %v8427_v1 = vld [vmem:[%s17662_s3 + $0x1560] sm:$0xff]  ;;  %v8686_v50 = vld [vmem:[%s17662_s3 + $0x1d78] sm:$0xff] }
 0x2f8   : > { %4838 = vmatprep.subr.mxu1 %v8698_v62  ;;  %4004 = vmatprep.mubr.f32.mxu1 %v9442_v33  ;;  %v8691_v62 = vld [vmem:[%s17662_s3 + $0x1da0] sm:$0xff]  ;;  %v13566_v0 = vpop.f32.mrf.mxu1 }
 0x2f9   : > { %17914 = vst [vmem:[#allocation100_spill] sm:$0xff] %v13555_v27  ;;  %8410 = vmatprep.mubr.msk.f32.mxu0 %vm1565_vm1, %v9443_v19  ;;  %17915 = vst [vmem:[#allocation101_spill] sm:$0xff] %v13566_v0  ;;  %4726 = vmatpush1.msra.mxu0 %v8433_v44  ;;  %v13568_v36 = vpop.f32.mrf.mxu0  ;;  %v8422_v19 = vld [vmem:[%s17662_s3 + $0x1538] sm:$0xff]  ;;  %v9444_v33 = vld [vmem:[#allocation2 + $0x40] sm:$0xff] }
 0x2fa   : > { %4839 = vmatpush1.msra.mxu1 %v8697_v15  ;;  %17916 = vst [vmem:[#allocation102_spill] sm:$0xff] %v13568_v36  ;;  %4727 = vmatprep.subr.mxu0 %v8428_v43  ;;  %v8421_v44 = vld [vmem:[%s17662_s3 + $0x1530] sm:$0xff]  ;;  %v9447_v0 = vld [vmem:[#allocation2 + $0x138] sm:$0xff]  ;;  %v13985_v36 = vld [vmem:[#allocation2 + $0xa0] sm:$0xff] }
 0x2fb   : > { %4840 = vmatprep.subr.mxu1 %v8692_v63  ;;  %4728 = vmatpush1.msra.mxu0 %v8427_v1  ;;  %v8685_v15 = vld [vmem:[%s17662_s3 + $0x1d70] sm:$0xff]  ;;  %v8416_v63 = vld [vmem:[%s17662_s3 + $0x1508] sm:$0xff] }
 0x2fc   : > { %4841 = vmatpush1.msra.mxu1 %v8691_v62  ;;  %4178 = vmatmul.mubr.f32.gmra.mxu0 %v9445_v24  ;;  %v2857_v43 = vpop.f32.mrf.mxu1  ;;  %v8680_v1 = vld [vmem:[%s17662_s3 + $0x1d48] sm:$0xff] }
 0x2fd   : > { %4005 = vmatmul.mubr.f32.gmra.mxu1 %v9444_v33  ;;  %4729 = vmatprep.subr.mxu0 %v8422_v19  ;;  %v13589_v24 = vadd.f32 %v2857_v43, %v13515_v20  ;;  %v13591_v62 = vpop.f32.mrf.mxu0  ;;  %v9446_v33 = vld [vmem:[#allocation2 + $0x68] sm:$0xff]  ;;  %v8415_v19 = vld [vmem:[%s17662_s3 + $0x1500] sm:$0xff]  ;;  %v8602_v20 = vld [vmem:[%s17662_s3 + $0x1ad8] sm:$0xff] }
 0x2fe   : > { %4842 = vmatprep.subr.mxu1 %v8686_v50  ;;  %4010 = vmatprep.mubr.f32.mxu1 %v9446_v33  ;;  %v8679_v50 = vld [vmem:[%s17662_s3 + $0x1d40] sm:$0xff]  ;;  %v9449_v33 = vld [vmem:[#allocation2 + $0x130] sm:$0xff]  ;;  %v8748_v27 = vld [vmem:[%s17662_s3 + $0x1f68] sm:$0xff] }
 0x2ff   : > { %17917 = vst [vmem:[#allocation103_spill] sm:$0xff] %v13589_v24  ;;  %8411 = vmatprep.mubr.msk.f32.mxu0 %vm1565_vm1, %v9447_v0  ;;  %4730 = vmatpush1.msra.mxu0 %v8421_v44  ;;  %v13600_v31 = vpop.f32.mrf.mxu0  ;;  %v8674_v0 = vld [vmem:[%s17662_s3 + $0x1d18] sm:$0xff]  ;;  %v9448_v43 = vld [vmem:[#allocation2 + $0x60] sm:$0xff]  ;;  %v8601_v44 = vld [vmem:[%s17662_s3 + $0x1ad0] sm:$0xff] }
 0x300   : > { %4843 = vmatpush1.msra.mxu1 %v8685_v15  ;;  %17918 = vst [vmem:[#allocation104_spill] sm:$0xff] %v13600_v31  ;;  %4731 = vmatprep.subr.mxu0 %v8416_v63  ;;  %v8673_v15 = vld [vmem:[%s17662_s3 + $0x1d10] sm:$0xff]  ;;  %v8658_v31 = vld [vmem:[%s17662_s3 + $0x1c98] sm:$0xff]  ;;  %v8436_v24 = vld [vmem:[%s17662_s3 + $0x15a8] sm:$0xff] }
 0x301   : > { %4844 = vmatprep.subr.mxu1 %v8680_v1  ;;  %4732 = vmatpush1.msra.mxu0 %v8415_v19  ;;  %v8596_v1 = vld [vmem:[%s17662_s3 + $0x1aa8] sm:$0xff] }
 0x302   : > { %4845 = vmatpush1.msra.mxu1 %v8679_v50  ;;  %4184 = vmatmul.mubr.f32.gmra.mxu0 %v9449_v33  ;;  %v8668_v19 = vld [vmem:[%s17662_s3 + $0x1ce8] sm:$0xff]  ;;  %v8595_v33 = vld [vmem:[%s17662_s3 + $0x1aa0] sm:$0xff] }
 0x303   : > { %4011 = vmatmul.mubr.f32.gmra.mxu1 %v9448_v43  ;;  %v13614_v63 = vpop.f32.mrf.mxu0  ;;  %4733 = vmatprep.subr.mxu0 %v8602_v20  ;;  %v9450_v50 = vld [vmem:[#allocation2 + $0x88] sm:$0xff]  ;;  %v9451_v43 = vld [vmem:[#allocation2 + $0x158] sm:$0xff]  ;;  %v8667_v20 = vld [vmem:[%s17662_s3 + $0x1ce0] sm:$0xff] }
 0x304   : > { %4846 = vmatprep.subr.mxu1 %v8674_v0  ;;  %4016 = vmatprep.mubr.f32.mxu1 %v9450_v50  ;;  %v8590_v50 = vld [vmem:[%s17662_s3 + $0x1a78] sm:$0xff] }
 0x305   : > { %8412 = vmatprep.mubr.msk.f32.mxu0 %vm1565_vm1, %v9451_v43  ;;  %v13629_v0 = vpop.f32.mrf.mxu0  ;;  %4734 = vmatpush2.msra.mxu0 %v8601_v44  ;;  %v8662_v43 = vld [vmem:[%s17662_s3 + $0x1cb8] sm:$0xff]  ;;  %v8589_v44 = vld [vmem:[%s17662_s3 + $0x1a70] sm:$0xff] }
 0x306   : > { %17919 = vst [vmem:[#allocation105_spill] sm:$0xff] %v13629_v0  ;;  %4847 = vmatpush1.msra.mxu1 %v8673_v15  ;;  %4735 = vmatprep.subr.mxu0 %v8596_v1  ;;  %v8661_v15 = vld [vmem:[%s17662_s3 + $0x1cb0] sm:$0xff] }
 0x307   : > { %4848 = vmatprep.subr.mxu1 %v8668_v19  ;;  %4736 = vmatpush2.msra.mxu0 %v8595_v33  ;;  %v8584_v19 = vld [vmem:[%s17662_s3 + $0x1a48] sm:$0xff]  ;;  %v9455_v33 = vld [vmem:[#allocation2 + $0x178] sm:$0xff] }
 0x308   : > { %4849 = vmatpush1.msra.mxu1 %v8667_v20  ;;  %4190 = vmatmul.mubr.f32.gmra.mxu0 %v9453_v48  ;;  %v13643_v1 = vpop.f32.mrf.mxu0  ;;  %v9454_v48 = vld [vmem:[#allocation2 + $0xa8] sm:$0xff]  ;;  %v8583_v20 = vld [vmem:[%s17662_s3 + $0x1a40] sm:$0xff] }
 0x309   : > { %4017 = vmatmul.mubr.f32.gmra.mxu1 %v9452_v57  ;;  %4737 = vmatprep.subr.mxu0 %v8590_v50  ;;  %v8656_v57 = vld [vmem:[%s17662_s3 + $0x1c88] sm:$0xff]  ;;  %v8655_v50 = vld [vmem:[%s17662_s3 + $0x1c80] sm:$0xff] }
 0x30a   : > { %4850 = vmatprep.subr.mxu1 %v8662_v43  ;;  %4022 = vmatprep.mubr.f32.mxu1 %v9454_v48  ;;  %v8578_v43 = vld [vmem:[%s17662_s3 + $0x1a18] sm:$0xff] }
 0x30b   : > { %8413 = vmatprep.mubr.msk.f32.mxu0 %vm1565_vm1, %v9455_v33  ;;  %4738 = vmatpush2.msra.mxu0 %v8589_v44  ;;  %v8650_v48 = vld [vmem:[%s17662_s3 + $0x1c58] sm:$0xff]  ;;  %v13664_v33 = vpop.f32.mrf.mxu0  ;;  %v8577_v44 = vld [vmem:[%s17662_s3 + $0x1a10] sm:$0xff] }
 0x30c   : > { %4851 = vmatpush1.msra.mxu1 %v8661_v15  ;;  %4739 = vmatprep.subr.mxu0 %v8584_v19  ;;  %17920 = vst [vmem:[#allocation106_spill] sm:$0xff] %v13664_v33  ;;  %v8649_v15 = vld [vmem:[%s17662_s3 + $0x1c50] sm:$0xff]  ;;  %v8572_v19 = vld [vmem:[%s17662_s3 + $0x19e8] sm:$0xff] }
 0x30d   : > { %4852 = vmatprep.subr.mxu1 %v8656_v57  ;;  %4740 = vmatpush2.msra.mxu0 %v8583_v20  ;;  %v9458_v57 = vld [vmem:[#allocation2 + $0xc8] sm:$0xff]  ;;  %v8571_v20 = vld [vmem:[%s17662_s3 + $0x19e0] sm:$0xff] }
 0x30e   : > { %4853 = vmatpush1.msra.mxu1 %v8655_v50  ;;  %4196 = vmatmul.mubr.f32.gmra.mxu0 %v9457_v29  ;;  %v9459_v29 = vld [vmem:[#allocation2 + $0x198] sm:$0xff]  ;;  %v8643_v50 = vld [vmem:[%s17662_s3 + $0x1c20] sm:$0xff]  ;;  %v8496_v33 = vld [vmem:[%s17662_s3 + $0x1788] sm:$0xff] }
 0x30f   : > { %4023 = vmatmul.mubr.f32.gmra.mxu1 %v9456_v30  ;;  %4741 = vmatprep.subr.mxu0 %v8578_v43  ;;  %v8644_v30 = vld [vmem:[%s17662_s3 + $0x1c28] sm:$0xff]  ;;  %v13685_v43 = vpop.f32.mrf.mxu0 }
 0x310   : > { %4854 = vmatprep.subr.mxu1 %v8650_v48  ;;  %4028 = vmatprep.mubr.f32.mxu1 %v9458_v57  ;;  %v8566_v48 = vld [vmem:[%s17662_s3 + $0x19b8] sm:$0xff] }
 0x311   : > { %8414 = vmatprep.mubr.msk.f32.mxu0 %vm1565_vm1, %v9459_v29  ;;  %4742 = vmatpush2.msra.mxu0 %v8577_v44  ;;  %v8638_v57 = vld [vmem:[%s17662_s3 + $0x1bf8] sm:$0xff]  ;;  %v8565_v29 = vld [vmem:[%s17662_s3 + $0x19b0] sm:$0xff] }
 0x312   : > { %4855 = vmatpush1.msra.mxu1 %v8649_v15  ;;  %4743 = vmatprep.subr.mxu0 %v8572_v19  ;;  %v9461_v44 = vld [vmem:[#allocation2 + $0x190] sm:$0xff]  ;;  %v13699_v19 = vpop.f32.mrf.mxu1 }
 0x313   : > { %4856 = vmatprep.subr.mxu1 %v8644_v30  ;;  %4744 = vmatpush2.msra.mxu0 %v8571_v20  ;;  %v8637_v15 = vld [vmem:[%s17662_s3 + $0x1bf0] sm:$0xff]  ;;  %17921 = vst [vmem:[#allocation107_spill] sm:$0xff] %v13699_v19  ;;  %v13701_v30 = vpop.f32.mrf.mxu0  ;;  %v8560_v20 = vld [vmem:[%s17662_s3 + $0x1988] sm:$0xff]  ;;  %v8559_v19 = vld [vmem:[%s17662_s3 + $0x1980] sm:$0xff] }
 0x314   : > { %4857 = vmatpush1.msra.mxu1 %v8643_v50  ;;  %4202 = vmatmul.mubr.f32.gmra.mxu0 %v9461_v44  ;;  %17922 = vst [vmem:[#allocation108_spill] sm:$0xff] %v13701_v30  ;;  %v9462_v50 = vld [vmem:[#allocation2 + $0xe8] sm:$0xff] }
 0x315   : > { %4029 = vmatmul.mubr.f32.gmra.mxu1 %v9460_v16  ;;  %4745 = vmatprep.subr.mxu0 %v8566_v48  ;;  %v8632_v16 = vld [vmem:[%s17662_s3 + $0x1bc8] sm:$0xff]  ;;  %v8631_v48 = vld [vmem:[%s17662_s3 + $0x1bc0] sm:$0xff]  ;;  %v13727_v45 = vpop.f32.mrf.mxu0 }
 0x316   : > { %4858 = vmatprep.subr.mxu1 %v8638_v57  ;;  %4034 = vmatprep.mubr.f32.mxu1 %v9462_v50  ;;  %v13709_v44 = vld [vmem:[#allocation2 + $0x48] sm:$0xff]  ;;  %v3452_v57 = vpop.f32.mrf.mxu1 }
 0x317   : > { %4746 = vmatpush2.msra.mxu0 %v8565_v29  ;;  %4765 = vmatprep.mubr.f32.mxu0 %v13709_v44  ;;  %v8554_v29 = vld [vmem:[%s17662_s3 + $0x1958] sm:$0xff]  ;;  %v3590_v50 = vadd.f32 %v13557_v8, %v3452_v57  ;;  %v8625_v8 = vld [vmem:[%s17662_s3 + $0x1b90] sm:$0xff]  ;;  %v8547_v57 = vld [vmem:[%s17662_s3 + $0x1920] sm:$0xff] }
 0x318   : > { %4859 = vmatpush1.msra.mxu1 %v8637_v15  ;;  %4747 = vmatprep.subr.mxu0 %v8560_v20  ;;  %v13729_v37 = vpop.f32.mrf.mxu1  ;;  %v9463_v20 = vld [vmem:[#allocation2 + $0xe0] sm:$0xff]  ;;  %v8448_v30 = vld [vmem:[%s17662_s3 + $0x1608] sm:$0xff] }
 0x319   : > { %4860 = vmatprep.subr.mxu1 %v8632_v16  ;;  %17923 = vst [vmem:[#allocation109_spill] sm:$0xff] %v13729_v37  ;;  %4748 = vmatpush2.msra.mxu0 %v8559_v19  ;;  %v13737_v15 = vadd.f32 %v3590_v50, %v2893_v34  ;;  %v8548_v16 = vld [vmem:[%s17662_s3 + $0x1928] sm:$0xff]  ;;  %v8619_v34 = vld [vmem:[%s17662_s3 + $0x1b60] sm:$0xff]  ;;  %v13754_v50 = vpop.f32.mrf.mxu0  ;;  %v13987_v37 = vld [vmem:[#allocation2 + $0x70] sm:$0xff] }
 0x31a   : > { %4861 = vmatpush1.msra.mxu1 %v8631_v48  ;;  %4749 = vmatprep.subr.mxu0 %v8554_v29  ;;  %v8620_v19 = vld [vmem:[%s17662_s3 + $0x1b68] sm:$0xff]  ;;  %v8542_v29 = vld [vmem:[%s17662_s3 + $0x18f8] sm:$0xff]  ;;  %17925 = vst [vmem:[#allocation111_spill] sm:$0xff] %v13754_v50 }
 0x31b   : > { %17924 = vst [vmem:[#allocation110_spill] sm:$0xff] %v13737_v15  ;;  %4035 = vmatmul.mubr.f32.gmra.mxu1 %v9463_v20  ;;  %4862 = vmatprep.subr.mxu1 %v8626_v5  ;;  %v9464_v48 = vld [vmem:[#allocation2 + $0x108] sm:$0xff]  ;;  %v17926_v5 = vld [vmem:[#allocation31_spill] sm:$0xff] }
 0x31c   : > { %4040 = vmatprep.mubr.f32.mxu1 %v9464_v48  ;;  %4750 = vmatpush2.msra.mxu0 %v8553_v56  ;;  %v2899_v48 = vadd.f32 %v12168_v46, %v17926_v5  ;;  %v8541_v56 = vld [vmem:[%s17662_s3 + $0x18f0] sm:$0xff]  ;;  %v9465_v46 = vld [vmem:[#allocation2 + $0x100] sm:$0xff]  ;;  %v8628_v50 = vld [vmem:[%s17662_s3 + $0x1ba8] sm:$0xff] }
 0x31d   : > { %4863 = vmatpush1.msra.mxu1 %v8625_v8  ;;  %v3458_v20 = vpop.f32.mrf.mxu1  ;;  %4751 = vmatprep.subr.mxu0 %v8548_v16  ;;  %v8613_v8 = vld [vmem:[%s17662_s3 + $0x1b30] sm:$0xff]  ;;  %v8536_v16 = vld [vmem:[%s17662_s3 + $0x18c8] sm:$0xff] }
 0x31e   : > { %4864 = vmatprep.subr.mxu1 %v8620_v19  ;;  %v3596_v21 = vadd.f32 %v13591_v62, %v3458_v20  ;;  %4752 = vmatpush2.msra.mxu0 %v8547_v57  ;;  %v8608_v62 = vld [vmem:[%s17662_s3 + $0x1b08] sm:$0xff]  ;;  %v13784_v20 = vpop.f32.mrf.mxu0 }
 0x31f   : > { %4865 = vmatpush1.msra.mxu1 %v8619_v34  ;;  %v13768_v22 = vpop.f32.mrf.mxu1  ;;  %4753 = vmatprep.subr.mxu0 %v8542_v29  ;;  %v9466_v57 = vld [vmem:[#allocation2 + $0x128] sm:$0xff]  ;;  %v8535_v34 = vld [vmem:[%s17662_s3 + $0x18c0] sm:$0xff] }
 0x320   : > { %17927 = vst [vmem:[#allocation31_spill] sm:$0xff] %v13768_v22  ;;  %4041 = vmatmul.mubr.f32.gmra.mxu1 %v9465_v46  ;;  %v13776_v19 = vadd.f32 %v3596_v21, %v2899_v48  ;;  %4866 = vmatprep.subr.mxu1 %v8614_v51  ;;  %v8607_v29 = vld [vmem:[%s17662_s3 + $0x1b00] sm:$0xff]  ;;  %v8530_v21 = vld [vmem:[%s17662_s3 + $0x1898] sm:$0xff]  ;;  %v8529_v48 = vld [vmem:[%s17662_s3 + $0x1890] sm:$0xff] }
 0x321   : > { %4046 = vmatprep.mubr.f32.mxu1 %v9466_v57  ;;  %4754 = vmatpush2.msra.mxu0 %v8541_v56  ;;  %v8746_v51 = vld [vmem:[%s17662_s3 + $0x1f58] sm:$0xff]  ;;  %v8745_v56 = vld [vmem:[%s17662_s3 + $0x1f50] sm:$0xff]  ;;  %v9467_v46 = vld [vmem:[#allocation2 + $0x120] sm:$0xff]  ;;  %v13805_v57 = vpop.f32.mrf.mxu0 }
 0x322   : > { %17928 = vst [vmem:[#allocation112_spill] sm:$0xff] %v13776_v19  ;;  %4867 = vmatpush1.msra.mxu1 %v8613_v8  ;;  %4755 = vmatprep.subr.mxu0 %v8536_v16  ;;  %v8524_v16 = vld [vmem:[%s17662_s3 + $0x1868] sm:$0xff]  ;;  %17929 = vst [vmem:[#allocation113_spill] sm:$0xff] %v13805_v57  ;;  %v14078_v57 = vld [vmem:[#allocation2 + $0xe0] sm:$0xff] }
 0x323   : > { %4868 = vmatprep.subr.mxu1 %v8608_v62  ;;  %v3464_v5 = vpop.f32.mrf.mxu1  ;;  %4756 = vmatpush2.msra.mxu0 %v8535_v34  ;;  %v8740_v62 = vld [vmem:[%s17662_s3 + $0x1f28] sm:$0xff] }
 0x324   : > { %4869 = vmatpush1.msra.mxu1 %v8607_v29  ;;  %v3602_v8 = vadd.f32 %v13614_v63, %v3464_v5  ;;  %4757 = vmatprep.subr.mxu0 %v8530_v21  ;;  %v9468_v29 = vld [vmem:[#allocation2 + $0x148] sm:$0xff]  ;;  %v8523_v63 = vld [vmem:[%s17662_s3 + $0x1860] sm:$0xff] }
 0x325   : > { %4047 = vmatmul.mubr.f32.gmra.mxu1 %v9467_v46  ;;  %v13807_v34 = vpop.f32.mrf.mxu1  ;;  %4886 = vmatprep.subr.mxu1 %v8746_v51  ;;  %v8739_v21 = vld [vmem:[%s17662_s3 + $0x1f20] sm:$0xff]  ;;  %v17931_v5 = vld [vmem:[#allocation33_spill] sm:$0xff]  ;;  %v8734_v51 = vld [vmem:[%s17662_s3 + $0x1ef8] sm:$0xff] }
 0x326   : > { %17930 = vst [vmem:[#allocation114_spill] sm:$0xff] %v13807_v34  ;;  %4052 = vmatprep.mubr.f32.mxu1 %v9468_v29  ;;  %v13816_v46 = vadd.f32 %v3602_v8, %v17931_v5  ;;  %4758 = vmatpush2.msra.mxu0 %v8529_v48  ;;  %v8517_v29 = vld [vmem:[%s17662_s3 + $0x1830] sm:$0xff]  ;;  %v9469_v5 = vld [vmem:[#allocation2 + $0x140] sm:$0xff] }
 0x327   : > { %4887 = vmatpush2.msra.mxu1 %v8745_v56  ;;  %4759 = vmatprep.subr.mxu0 %v8524_v16  ;;  %v8733_v48 = vld [vmem:[%s17662_s3 + $0x1ef0] sm:$0xff]  ;;  %v13830_v56 = vpop.f32.mrf.mxu0  ;;  %v8512_v16 = vld [vmem:[%s17662_s3 + $0x1808] sm:$0xff] }
 0x328   : > { %17932 = vst [vmem:[#allocation33_spill] sm:$0xff] %v13816_v46  ;;  %4888 = vmatprep.subr.mxu1 %v8740_v62  ;;  %4760 = vmatpush2.msra.mxu0 %v8523_v63  ;;  %v8728_v62 = vld [vmem:[%s17662_s3 + $0x1ec8] sm:$0xff] }
 0x329   : > { %4889 = vmatpush2.msra.mxu1 %v8739_v21  ;;  %v3470_v8 = vpop.f32.mrf.mxu1  ;;  %4761 = vmatprep.subr.mxu0 %v8518_v38  ;;  %v9470_v21 = vld [vmem:[#allocation2 + $0x168] sm:$0xff]  ;;  %v8727_v38 = vld [vmem:[%s17662_s3 + $0x1ec0] sm:$0xff] }
 0x32a   : > { %4053 = vmatmul.mubr.f32.gmra.mxu1 %v9469_v5  ;;  %v3608_v63 = vadd.f32 %v13643_v1, %v3470_v8  ;;  %4890 = vmatprep.subr.mxu1 %v8734_v51  ;;  %v8722_v1 = vld [vmem:[%s17662_s3 + $0x1e98] sm:$0xff]  ;;  %v8700_v51 = vld [vmem:[%s17662_s3 + $0x1de8] sm:$0xff]  ;;  %v13856_v8 = vpop.f32.mrf.mxu0 }
 0x32b   : > { %4058 = vmatprep.mubr.f32.mxu1 %v9470_v21  ;;  %v13845_v5 = vpop.f32.mrf.mxu1  ;;  %4762 = vmatpush2.msra.mxu0 %v8517_v29  ;;  %17936 = vst [vmem:[#allocation116_spill] sm:$0xff] %v13856_v8  ;;  %v13858_v21 = vld [vmem:[#allocation2 + $0x40] sm:$0xff] }
 0x32c   : > { %17933 = vst [vmem:[#allocation115_spill] sm:$0xff] %v13845_v5  ;;  %4891 = vmatpush2.msra.mxu1 %v8733_v48  ;;  %v13848_v42 = vadd.f32 %v3608_v63, %v17934_v13  ;;  %4763 = vmatprep.subr.mxu0 %v8512_v16  ;;  %v9471_v29 = vld [vmem:[#allocation2 + $0x160] sm:$0xff]  ;;  %v8721_v13 = vld [vmem:[%s17662_s3 + $0x1e90] sm:$0xff]  ;;  %v8694_v63 = vld [vmem:[%s17662_s3 + $0x1db8] sm:$0xff]  ;;  %v13883_v52 = vpop.f32.mrf.mxu0 }
 0x32d   : > { %4892 = vmatprep.subr.mxu1 %v8728_v62  ;;  %4764 = vmatpush2.msra.mxu0 %v8511_v6  ;;  %v8699_v48 = vld [vmem:[%s17662_s3 + $0x1de0] sm:$0xff]  ;;  %v13867_v62 = vld [vmem:[#allocation2 + $0x68] sm:$0xff] }
 0x32e   : > { %17935 = vst [vmem:[#allocation35_spill] sm:$0xff] %v13848_v42  ;;  %4893 = vmatpush2.msra.mxu1 %v8727_v38  ;;  %4766 = vmatmul.mubr.f32.vlgmr.msra.gmra.mxu0 %v13858_v21  ;;  %v8716_v6 = vld [vmem:[%s17662_s3 + $0x1e68] sm:$0xff] }
 0x32f   : > { %4059 = vmatmul.mubr.f32.gmra.mxu1 %v9471_v29  ;;  %v3476_v16 = vpop.f32.mrf.mxu1  ;;  %4894 = vmatprep.subr.mxu1 %v8722_v1  ;;  %v9472_v29 = vld [vmem:[#allocation2 + $0x188] sm:$0xff]  ;;  %v8715_v1 = vld [vmem:[%s17662_s3 + $0x1e60] sm:$0xff] }
 0x330   : > { %5112 = vmatprep.subr.mxu0 %v8700_v51  ;;  %v3614_v38 = vadd.f32 %v13685_v43, %v3476_v16  ;;  %4064 = vmatprep.mubr.f32.mxu1 %v9472_v29  ;;  %v8693_v51 = vld [vmem:[%s17662_s3 + $0x1db0] sm:$0xff]  ;;  %v8710_v16 = vld [vmem:[%s17662_s3 + $0x1e38] sm:$0xff]  ;;  %v8688_v29 = vld [vmem:[%s17662_s3 + $0x1d88] sm:$0xff] }
 0x331   : > { %4771 = vmatprep.mubr.f32.mxu0 %v13867_v62  ;;  %v13885_v25 = vpop.f32.mrf.mxu1  ;;  %4895 = vmatpush2.msra.mxu1 %v8721_v13  ;;  %v8709_v13 = vld [vmem:[%s17662_s3 + $0x1e30] sm:$0xff]  ;;  %v8664_v5 = vld [vmem:[%s17662_s3 + $0x1cc8] sm:$0xff] }
 0x332   : > { %17937 = vst [vmem:[#allocation117_spill] sm:$0xff] %v13885_v25  ;;  %5113 = vmatpush1.msra.mxu0 %v8699_v48  ;;  %v13888_v43 = vadd.f32 %v3614_v38, %v17938_v2  ;;  %4896 = vmatprep.subr.mxu1 %v8716_v6  ;;  %v9473_v2 = vld [vmem:[#allocation2 + $0x180] sm:$0xff]  ;;  %v13905_v6 = vpop.f32.mrf.mxu0  ;;  %v13907_v38 = vld [vmem:[#allocation2 + $0x88] sm:$0xff] }
 0x333   : > { %5114 = vmatprep.subr.mxu0 %v8694_v63  ;;  %4897 = vmatpush2.msra.mxu1 %v8715_v1  ;;  %v8687_v48 = vld [vmem:[%s17662_s3 + $0x1d80] sm:$0xff]  ;;  %17940 = vst [vmem:[#allocation118_spill] sm:$0xff] %v13905_v6  ;;  %v8704_v1 = vld [vmem:[%s17662_s3 + $0x1e08] sm:$0xff] }
 0x334   : > { %17939 = vst [vmem:[#allocation37_spill] sm:$0xff] %v13888_v43  ;;  %5115 = vmatpush1.msra.mxu0 %v8693_v51  ;;  %4065 = vmatmul.mubr.f32.gmra.mxu1 %v9473_v2  ;;  %v8682_v51 = vld [vmem:[%s17662_s3 + $0x1d58] sm:$0xff]  ;;  %v13938_v60 = vpop.f32.mrf.mxu0  ;;  %v8652_v6 = vld [vmem:[%s17662_s3 + $0x1c68] sm:$0xff] }
 0x335   : > { %4772 = vmatmul.mubr.f32.gmra.mxu0 %v13896_v26  ;;  %v3482_v63 = vpop.f32.mrf.mxu1  ;;  %4898 = vmatprep.subr.mxu1 %v8710_v16  ;;  %v8703_v16 = vld [vmem:[%s17662_s3 + $0x1e00] sm:$0xff]  ;;  %v8616_v25 = vld [vmem:[%s17662_s3 + $0x1b48] sm:$0xff] }
 0x336   : > { %5116 = vmatprep.subr.mxu0 %v8688_v29  ;;  %v3620_v2 = vadd.f32 %v13727_v45, %v3482_v63  ;;  %4777 = vmatprep.mubr.f32.mxu0 %v13907_v38  ;;  %v8681_v29 = vld [vmem:[%s17662_s3 + $0x1d50] sm:$0xff]  ;;  %v17942_v45 = vld [vmem:[#allocation39_spill] sm:$0xff]  ;;  %v13972_v0 = vpop.f32.mrf.mxu0 }
 0x337   : > { %4899 = vmatpush2.msra.mxu1 %v8709_v13  ;;  %v13925_v17 = vpop.f32.mrf.mxu1  ;;  %8751 = vmatprep.mubr.msk.f32.mxu1 %vm1565_vm1, %v13917_v49  ;;  %v8508_v13 = vld [vmem:[%s17662_s3 + $0x17e8] sm:$0xff]  ;;  %17944 = vst [vmem:[#allocation120_spill] sm:$0xff] %v13972_v0 }
 0x338   : > { %17941 = vst [vmem:[#allocation119_spill] sm:$0xff] %v13925_v17  ;;  %5117 = vmatpush1.msra.mxu0 %v8687_v48  ;;  %v13930_v63 = vadd.f32 %v3620_v2, %v17942_v45  ;;  %4900 = vmatprep.subr.mxu1 %v8704_v1  ;;  %v13942_v48 = vld [vmem:[#allocation2 + $0x50] sm:$0xff]  ;;  %v13946_v1 = vld [vmem:[#allocation2 + $0xa8] sm:$0xff]  ;;  %v8675_v2 = vld [vmem:[%s17662_s3 + $0x1d20] sm:$0xff] }
 0x339   : > { %5118 = vmatprep.subr.mxu0 %v8682_v51  ;;  %4901 = vmatpush2.msra.mxu1 %v8703_v16  ;;  %v8507_v51 = vld [vmem:[%s17662_s3 + $0x17e0] sm:$0xff]  ;;  %v8502_v45 = vld [vmem:[%s17662_s3 + $0x17b8] sm:$0xff]  ;;  %v8484_v0 = vld [vmem:[%s17662_s3 + $0x1728] sm:$0xff] }
 0x33a   : > { %17943 = vst [vmem:[#allocation39_spill] sm:$0xff] %v13930_v63  ;;  %5119 = vmatpush1.msra.mxu0 %v8681_v29  ;;  %4903 = vmatmul.mubr.f32.vlgmr.msra.gmra.mxu1 %v13942_v48  ;;  %v13954_v29 = vld [vmem:[#allocation2 + $0x78] sm:$0xff] }
 0x33b   : > { %4778 = vmatmul.mubr.f32.gmra.mxu0 %v13940_v35  ;;  %v3488_v16 = vpop.f32.mrf.mxu1  ;;  %4975 = vmatprep.subr.mxu1 %v8508_v13  ;;  %v8669_v13 = vld [vmem:[%s17662_s3 + $0x1cf0] sm:$0xff]  ;;  %v8634_v63 = vld [vmem:[%s17662_s3 + $0x1bd8] sm:$0xff] }
 0x33c   : > { %5120 = vmatprep.subr.mxu0 %v8676_v14  ;;  %v3626_v4 = vadd.f32 %v13784_v20, %v3488_v16  ;;  %4783 = vmatprep.mubr.f32.mxu0 %v13946_v1  ;;  %v8501_v14 = vld [vmem:[%s17662_s3 + $0x17b0] sm:$0xff]  ;;  %v17946_v20 = vld [vmem:[#allocation41_spill] sm:$0xff] }
 0x33d   : > { %8752 = vmatprep.mubr.msk.f32.mxu1 %vm1565_vm1, %v13954_v29  ;;  %v13974_v34 = vpop.f32.mrf.mxu1  ;;  %4976 = vmatpush1.msra.mxu1 %v8507_v51 }
 0x33e   : > { %17945 = vst [vmem:[#allocation121_spill] sm:$0xff] %v13974_v34  ;;  %5121 = vmatpush1.msra.mxu0 %v8675_v2  ;;  %v13977_v16 = vadd.f32 %v3626_v4, %v17946_v20  ;;  %4977 = vmatprep.subr.mxu1 %v8502_v45  ;;  %v13991_v4 = vld [vmem:[#allocation2 + $0xc8] sm:$0xff]  ;;  %v8663_v2 = vld [vmem:[%s17662_s3 + $0x1cc0] sm:$0xff]  ;;  %v13999_v45 = vpop.f32.mrf.mxu0  ;;  %v8490_v20 = vld [vmem:[%s17662_s3 + $0x1758] sm:$0xff] }
 0x33f   : > { %5122 = vmatprep.subr.mxu0 %v8670_v47  ;;  %4978 = vmatpush1.msra.mxu1 %v8501_v14  ;;  %v8495_v47 = vld [vmem:[%s17662_s3 + $0x1780] sm:$0xff]  ;;  %v14080_v34 = vld [vmem:[#allocation2 + $0xb0] sm:$0xff] }
 0x340   : > { %17947 = vst [vmem:[#allocation41_spill] sm:$0xff] %v13977_v16  ;;  %5123 = vmatpush1.msra.mxu0 %v8669_v13  ;;  %v3494_v51 = vpop.f32.mrf.mxu1  ;;  %4909 = vmatmul.mubr.f32.gmra.mxu1 %v13987_v37  ;;  %v14002_v13 = vld [vmem:[#allocation2 + $0x98] sm:$0xff]  ;;  %v14030_v8 = vpop.f32.mrf.mxu0  ;;  %v14032_v16 = vld [vmem:[#allocation2 + $0xc0] sm:$0xff] }
 0x341   : > { %4784 = vmatmul.mubr.f32.gmra.mxu0 %v13985_v36  ;;  %v3632_v14 = vadd.f32 %v13830_v56, %v3494_v51  ;;  %4979 = vmatprep.subr.mxu1 %v8496_v33  ;;  %v8489_v33 = vld [vmem:[%s17662_s3 + $0x1750] sm:$0xff]  ;;  %17951 = vst [vmem:[#allocation123_spill] sm:$0xff] %v14030_v8 }
 0x342   : > { %5124 = vmatprep.subr.mxu0 %v8664_v5  ;;  %v14010_v22 = vpop.f32.mrf.mxu1  ;;  %4789 = vmatprep.mubr.f32.mxu0 %v13991_v4  ;;  %v8657_v56 = vld [vmem:[%s17662_s3 + $0x1c90] sm:$0xff]  ;;  %v17949_v5 = vld [vmem:[#allocation43_spill] sm:$0xff] }
 0x343   : > { %17948 = vst [vmem:[#allocation122_spill] sm:$0xff] %v14010_v22  ;;  %8753 = vmatprep.mubr.msk.f32.mxu1 %vm1565_vm1, %v14002_v13  ;;  %v14022_v51 = vadd.f32 %v3632_v14, %v17949_v5  ;;  %4980 = vmatpush1.msra.mxu1 %v8495_v47  ;;  %v14034_v14 = vld [vmem:[#allocation2 + $0x90] sm:$0xff]  ;;  %v17953_v5 = vld [vmem:[#allocation45_spill] sm:$0xff] }
 0x344   : > { %5125 = vmatpush1.msra.mxu0 %v8663_v2  ;;  %4981 = vmatprep.subr.mxu1 %v8490_v20  ;;  %v8483_v2 = vld [vmem:[%s17662_s3 + $0x1720] sm:$0xff] }
 0x345   : > { %17950 = vst [vmem:[#allocation43_spill] sm:$0xff] %v14022_v51  ;;  %5126 = vmatprep.subr.mxu0 %v8658_v31  ;;  %v3500_v22 = vpop.f32.mrf.mxu1  ;;  %4982 = vmatpush1.msra.mxu1 %v8489_v33  ;;  %v14039_v31 = vld [vmem:[#allocation2 + $0xe8] sm:$0xff]  ;;  %v8651_v20 = vld [vmem:[%s17662_s3 + $0x1c60] sm:$0xff] }
 0x346   : > { %5127 = vmatpush1.msra.mxu0 %v8657_v56  ;;  %v3638_v47 = vadd.f32 %v13883_v52, %v3500_v22  ;;  %4915 = vmatmul.mubr.f32.gmra.mxu1 %v14034_v14  ;;  %v14049_v56 = vld [vmem:[#allocation2 + $0xb8] sm:$0xff] }
 0x347   : > { %4790 = vmatmul.mubr.f32.gmra.mxu0 %v14032_v16  ;;  %v14047_v33 = vpop.f32.mrf.mxu1  ;;  %4983 = vmatprep.subr.mxu1 %v8484_v0  ;;  %v8478_v52 = vld [vmem:[%s17662_s3 + $0x16f8] sm:$0xff]  ;;  %v8477_v0 = vld [vmem:[%s17662_s3 + $0x16f0] sm:$0xff] }
 0x348   : > { %17952 = vst [vmem:[#allocation124_spill] sm:$0xff] %v14047_v33  ;;  %5128 = vmatprep.subr.mxu0 %v8652_v6  ;;  %v8646_v22 = vld [vmem:[%s17662_s3 + $0x1c38] sm:$0xff]  ;;  %v14058_v8 = vadd.f32 %v3638_v47, %v17953_v5  ;;  %4795 = vmatprep.mubr.f32.mxu0 %v14039_v31  ;;  %v8645_v6 = vld [vmem:[%s17662_s3 + $0x1c30] sm:$0xff]  ;;  %v14069_v33 = vpop.f32.mrf.mxu0  ;;  %v8472_v47 = vld [vmem:[%s17662_s3 + $0x16c8] sm:$0xff] }
 0x349   : > { %8754 = vmatprep.mubr.msk.f32.mxu1 %vm1565_vm1, %v14049_v56  ;;  %4984 = vmatpush1.msra.mxu1 %v8483_v2  ;;  %v8640_v5 = vld [vmem:[%s17662_s3 + $0x1c08] sm:$0xff] }
 0x34a   : > { %17954 = vst [vmem:[#allocation45_spill] sm:$0xff] %v14058_v8  ;;  %5129 = vmatpush1.msra.mxu0 %v8651_v20  ;;  %v3506_v51 = vpop.f32.mrf.mxu1  ;;  %4985 = vmatprep.subr.mxu1 %v8478_v52  ;;  %v14086_v20 = vld [vmem:[#allocation2 + $0x108] sm:$0xff]  ;;  %v8471_v52 = vld [vmem:[%s17662_s3 + $0x16c0] sm:$0xff] }
 0x34b   : > { %5130 = vmatprep.subr.mxu0 %v8646_v22  ;;  %v3644_v8 = vadd.f32 %v13938_v60, %v3506_v51  ;;  %4986 = vmatpush1.msra.mxu1 %v8477_v0  ;;  %v8639_v60 = vld [vmem:[%s17662_s3 + $0x1c00] sm:$0xff]  ;;  %v14094_v51 = vpop.f32.mrf.mxu0  ;;  %v17957_v22 = vld [vmem:[#allocation47_spill] sm:$0xff] }
 0x34c   : > { %5131 = vmatpush1.msra.mxu0 %v8645_v6  ;;  %v14082_v2 = vpop.f32.mrf.mxu1  ;;  %4921 = vmatmul.mubr.f32.gmra.mxu1 %v14080_v34  ;;  %17956 = vst [vmem:[#allocation126_spill] sm:$0xff] %v14094_v51  ;;  %v14099_v6 = vld [vmem:[#allocation2 + $0xd8] sm:$0xff] }
 0x34d   : > { %17955 = vst [vmem:[#allocation125_spill] sm:$0xff] %v14082_v2  ;;  %4796 = vmatmul.mubr.f32.gmra.mxu0 %v14078_v57  ;;  %v14097_v0 = vadd.f32 %v3644_v8, %v17957_v22  ;;  %4987 = vmatprep.subr.mxu1 %v8472_v47  ;;  %v8466_v2 = vld [vmem:[%s17662_s3 + $0x1698] sm:$0xff]  ;;  %v8465_v8 = vld [vmem:[%s17662_s3 + $0x1690] sm:$0xff] }
 0x34e   : > { %5132 = vmatprep.subr.mxu0 %v8640_v5  ;;  %4801 = vmatprep.mubr.f32.mxu0 %v14086_v20  ;;  %v8633_v47 = vld [vmem:[%s17662_s3 + $0x1bd0] sm:$0xff]  ;;  %v14116_v22 = vpop.f32.mrf.mxu0 }
 0x34f   : > { %17958 = vst [vmem:[#allocation47_spill] sm:$0xff] %v14097_v0  ;;  %8755 = vmatprep.mubr.msk.f32.mxu1 %vm1565_vm1, %v14099_v6  ;;  %v3512_v5 = vpop.f32.mrf.mxu1  ;;  %4988 = vmatpush1.msra.mxu1 %v8471_v52  ;;  %v8460_v0 = vld [vmem:[%s17662_s3 + $0x1668] sm:$0xff]  ;;  %v14129_v52 = vld [vmem:[#allocation2 + $0x100] sm:$0xff] }
 0x350   : > { %5133 = vmatpush1.msra.mxu0 %v8639_v60  ;;  %v3650_v51 = vadd.f32 %v13999_v45, %v3512_v5  ;;  %4989 = vmatprep.subr.mxu1 %v8466_v2  ;;  %v14127_v43 = vpop.f32.mrf.mxu0  ;;  %v14131_v60 = vld [vmem:[#allocation2 + $0xd0] sm:$0xff]  ;;  %v17961_v45 = vld [vmem:[#allocation49_spill] sm:$0xff]  ;;  %v8459_v5 = vld [vmem:[%s17662_s3 + $0x1660] sm:$0xff] }
 0x351   : > { %5134 = vmatprep.subr.mxu0 %v8634_v63  ;;  %v14125_v17 = vpop.f32.mrf.mxu1  ;;  %17960 = vst [vmem:[#allocation128_spill] sm:$0xff] %v14127_v43  ;;  %4990 = vmatpush1.msra.mxu1 %v8465_v8  ;;  %v14138_v2 = vld [vmem:[#allocation2 + $0x128] sm:$0xff]  ;;  %v8627_v8 = vld [vmem:[%s17662_s3 + $0x1ba0] sm:$0xff] }
 0x352   : > { %17959 = vst [vmem:[#allocation127_spill] sm:$0xff] %v14125_v17  ;;  %5135 = vmatpush1.msra.mxu0 %v8633_v47  ;;  %v14134_v63 = vadd.f32 %v3650_v51, %v17961_v45  ;;  %4927 = vmatmul.mubr.f32.gmra.mxu1 %v14131_v60  ;;  %v14146_v47 = vld [vmem:[#allocation2 + $0xf8] sm:$0xff] }
 0x353   : > { %4802 = vmatmul.mubr.f32.gmra.mxu0 %v14129_v52  ;;  %4991 = vmatprep.subr.mxu1 %v8460_v0  ;;  %v8454_v51 = vld [vmem:[%s17662_s3 + $0x1638] sm:$0xff]  ;;  %v8453_v0 = vld [vmem:[%s17662_s3 + $0x1630] sm:$0xff] }
 0x354   : > { %17962 = vst [vmem:[#allocation49_spill] sm:$0xff] %v14134_v63  ;;  %5136 = vmatprep.subr.mxu0 %v8628_v50  ;;  %v8622_v45 = vld [vmem:[%s17662_s3 + $0x1b78] sm:$0xff]  ;;  %4807 = vmatprep.mubr.f32.mxu0 %v14138_v2  ;;  %v8621_v50 = vld [vmem:[%s17662_s3 + $0x1b70] sm:$0xff]  ;;  %v3518_v43 = vpop.f32.mrf.mxu1 }
 0x355   : > { %8756 = vmatprep.mubr.msk.f32.mxu1 %vm1565_vm1, %v14146_v47  ;;  %v14163_v63 = vpop.f32.mrf.mxu0  ;;  %4992 = vmatpush1.msra.mxu1 %v8459_v5  ;;  %v3656_v17 = vadd.f32 %v14069_v33, %v3518_v43  ;;  %v14176_v5 = vld [vmem:[#allocation2 + $0x120] sm:$0xff]  ;;  %v17965_v43 = vld [vmem:[#allocation50_spill] sm:$0xff] }
 0x356   : > { %5137 = vmatpush1.msra.mxu0 %v8627_v8  ;;  %4993 = vmatprep.subr.mxu1 %v8454_v51  ;;  %v14172_v42 = vpop.f32.mrf.mxu1  ;;  %v14178_v8 = vld [vmem:[#allocation2 + $0xf0] sm:$0xff]  ;;  %v14185_v51 = vld [vmem:[#allocation2 + $0x148] sm:$0xff] }
 0x357   : > { %5138 = vmatprep.subr.mxu0 %v8622_v45  ;;  %17963 = vst [vmem:[#allocation129_spill] sm:$0xff] %v14172_v42  ;;  %v14174_v46 = vpop.f32.mrf.mxu0  ;;  %4994 = vmatpush1.msra.mxu1 %v8453_v0  ;;  %v14181_v33 = vadd.f32 %v3656_v17, %v17965_v43  ;;  %v8447_v45 = vld [vmem:[%s17662_s3 + $0x1600] sm:$0xff]  ;;  %v8442_v17 = vld [vmem:[%s17662_s3 + $0x15d8] sm:$0xff] }
 0x358   : > { %17964 = vst [vmem:[#allocation130_spill] sm:$0xff] %v14174_v46  ;;  %5139 = vmatpush1.msra.mxu0 %v8621_v50  ;;  %4933 = vmatmul.mubr.f32.gmra.mxu1 %v14178_v8  ;;  %v8615_v0 = vld [vmem:[%s17662_s3 + $0x1b40] sm:$0xff]  ;;  %v14193_v50 = vld [vmem:[#allocation2 + $0x118] sm:$0xff] }
 0x359   : > { %17966 = vst [vmem:[#allocation50_spill] sm:$0xff] %v14181_v33  ;;  %4808 = vmatmul.mubr.f32.gmra.mxu0 %v14176_v5  ;;  %4995 = vmatprep.subr.mxu1 %v8448_v30  ;;  %v8610_v43 = vld [vmem:[%s17662_s3 + $0x1b18] sm:$0xff]  ;;  %v8441_v30 = vld [vmem:[%s17662_s3 + $0x15d0] sm:$0xff]  ;;  %v17967_v42 = vld [vmem:[#allocation20_spill] sm:$0xff] }
 0x35a   : > { %5140 = vmatprep.subr.mxu0 %v8616_v25  ;;  %4813 = vmatprep.mubr.f32.mxu0 %v14185_v51  ;;  %v8609_v25 = vld [vmem:[%s17662_s3 + $0x1b10] sm:$0xff]  ;;  %v3863_v33 = vpop.f32.mrf.mxu1  ;;  %v2895_v19 = vadd.f32 %v12916_v55, %v17967_v42  ;;  %v14225_v42 = vld [vmem:[#allocation2 + $0x140] sm:$0xff] }
 0x35b   : > { %8757 = vmatprep.mubr.msk.f32.mxu1 %vm1565_vm1, %v14193_v50  ;;  %v14210_v46 = vpop.f32.mrf.mxu0  ;;  %4996 = vmatpush1.msra.mxu1 %v8447_v45  ;;  %v3864_v15 = vadd.f32 %v3863_v33, %v14116_v22  ;;  %17970 = vst [vmem:[#allocation132_spill] sm:$0xff] %v14225_v42  ;;  %v14227_v45 = vld [vmem:[#allocation2 + $0x110] sm:$0xff]  ;;  %v14233_v33 = vld [vmem:[#allocation2 + $0x168] sm:$0xff] }
 0x35c   : > { %5141 = vmatpush1.msra.mxu0 %v8615_v0  ;;  %4997 = vmatprep.subr.mxu1 %v8442_v17  ;;  %v14223_v32 = vpop.f32.mrf.mxu1  ;;  %17972 = vst [vmem:[#allocation134_spill] sm:$0xff] %v14233_v33  ;;  %v8435_v0 = vld [vmem:[%s17662_s3 + $0x15a0] sm:$0xff] }
 0x35d   : > { %5142 = vmatprep.subr.mxu0 %v8610_v43  ;;  %v14221_v23 = vpop.f32.mrf.mxu0  ;;  %17969 = vst [vmem:[#allocation131_spill] sm:$0xff] %v14223_v32  ;;  %4998 = vmatpush1.msra.mxu1 %v8441_v30  ;;  %v14229_v22 = vadd.f32 %v3864_v15, %v2895_v19  ;;  %v8747_v17 = vld [vmem:[%s17662_s3 + $0x1f60] sm:$0xff]  ;;  %v14241_v43 = vld [vmem:[#allocation2 + $0x138] sm:$0xff] }
 0x35e   : > { %17968 = vst [vmem:[#allocation20_spill] sm:$0xff] %v14221_v23  ;;  %5143 = vmatpush1.msra.mxu0 %v8609_v25  ;;  %4939 = vmatmul.mubr.f32.gmra.mxu1 %v14227_v45  ;;  %v8430_v15 = vld [vmem:[%s17662_s3 + $0x1578] sm:$0xff]  ;;  %v17973_v23 = vld [vmem:[#allocation22_spill] sm:$0xff] }
 0x35f   : > { %17971 = vst [vmem:[#allocation133_spill] sm:$0xff] %v14229_v22  ;;  %4814 = vmatmul.mubr.f32.gmra.mxu0 %v14225_v42  ;;  %4999 = vmatprep.subr.mxu1 %v8436_v24  ;;  %v8742_v19 = vld [vmem:[%s17662_s3 + $0x1f38] sm:$0xff]  ;;  %v8429_v24 = vld [vmem:[%s17662_s3 + $0x1570] sm:$0xff]  ;;  %v2901_v32 = vadd.f32 %v12916_v55, %v17973_v23  ;;  %v14273_v23 = vld [vmem:[#allocation2 + $0x160] sm:$0xff] }
 0x360   : > { %5160 = vmatprep.subr.mxu0 %v8748_v27  ;;  %4819 = vmatprep.mubr.f32.mxu0 %v14233_v33  ;;  %v8741_v27 = vld [vmem:[%s17662_s3 + $0x1f30] sm:$0xff]  ;;  %v3869_v25 = vpop.f32.mrf.mxu1  ;;  %17976 = vst [vmem:[#allocation136_spill] sm:$0xff] %v14273_v23 }
 0x361   : > { %8758 = vmatprep.mubr.msk.f32.mxu1 %vm1565_vm1, %v14241_v43  ;;  %v14258_v30 = vpop.f32.mrf.mxu0  ;;  %5000 = vmatpush1.msra.mxu1 %v8435_v0  ;;  %v3870_v22 = vadd.f32 %v3869_v25, %v14163_v63  ;;  %v14275_v0 = vld [vmem:[#allocation2 + $0x130] sm:$0xff] }
 0x362   : > { %5161 = vmatpush2.msra.mxu0 %v8747_v17  ;;  %5001 = vmatprep.subr.mxu1 %v8430_v15  ;;  %v14271_v28 = vpop.f32.mrf.mxu1  ;;  %v14281_v17 = vld [vmem:[#allocation2 + $0x188] sm:$0xff]  ;;  %v8423_v15 = vld [vmem:[%s17662_s3 + $0x1540] sm:$0xff] }
 0x363   : > { %5162 = vmatprep.subr.mxu0 %v8742_v19  ;;  %v14269_v61 = vpop.f32.mrf.mxu0  ;;  %17975 = vst [vmem:[#allocation135_spill] sm:$0xff] %v14271_v28  ;;  %5002 = vmatpush1.msra.mxu1 %v8429_v24  ;;  %v14277_v63 = vadd.f32 %v3870_v22, %v2901_v32  ;;  %17978 = vst [vmem:[#allocation138_spill] sm:$0xff] %v14281_v17  ;;  %v8735_v19 = vld [vmem:[%s17662_s3 + $0x1f00] sm:$0xff]  ;;  %v14289_v24 = vld [vmem:[#allocation2 + $0x158] sm:$0xff] }
 0x364   : > { %17974 = vst [vmem:[#allocation22_spill] sm:$0xff] %v14269_v61  ;;  %5163 = vmatpush2.msra.mxu0 %v8741_v27  ;;  %4945 = vmatmul.mubr.f32.gmra.mxu1 %v14275_v0  ;;  %v8418_v32 = vld [vmem:[%s17662_s3 + $0x1518] sm:$0xff]  ;;  %v17979_v61 = vld [vmem:[#allocation58_spill] sm:$0xff] }
 0x365   : > { %17977 = vst [vmem:[#allocation137_spill] sm:$0xff] %v14277_v63  ;;  %4820 = vmatmul.mubr.f32.gmra.mxu0 %v14273_v23  ;;  %5003 = vmatprep.subr.mxu1 %v8424_v11  ;;  %v8730_v22 = vld [vmem:[%s17662_s3 + $0x1ed8] sm:$0xff]  ;;  %v8417_v11 = vld [vmem:[%s17662_s3 + $0x1510] sm:$0xff]  ;;  %v2907_v28 = vadd.f32 %v12916_v55, %v17979_v61  ;;  %v8724_v23 = vld [vmem:[%s17662_s3 + $0x1ea8] sm:$0xff] }
 0x366   : > { %5164 = vmatprep.subr.mxu0 %v8736_v59  ;;  %4825 = vmatprep.mubr.f32.mxu0 %v14281_v17  ;;  %v8729_v59 = vld [vmem:[%s17662_s3 + $0x1ed0] sm:$0xff]  ;;  %v3875_v25 = vpop.f32.mrf.mxu1  ;;  %v8604_v17 = vld [vmem:[%s17662_s3 + $0x1ae8] sm:$0xff]  ;;  %v14321_v61 = vld [vmem:[#allocation2 + $0x180] sm:$0xff] }
 0x367   : > { %8759 = vmatprep.mubr.msk.f32.mxu1 %vm1565_vm1, %v14289_v24  ;;  %v14306_v27 = vpop.f32.mrf.mxu0  ;;  %5004 = vmatpush1.msra.mxu1 %v8423_v15  ;;  %v3876_v63 = vadd.f32 %v3875_v25, %v14210_v46  ;;  %17982 = vst [vmem:[#allocation140_spill] sm:$0xff] %v14321_v61  ;;  %v14323_v15 = vld [vmem:[#allocation2 + $0x150] sm:$0xff] }
 0x368   : > { %5165 = vmatpush2.msra.mxu0 %v8735_v19  ;;  %5005 = vmatprep.subr.mxu1 %v8418_v32  ;;  %v14319_v33 = vpop.f32.mrf.mxu1  ;;  %v14329_v19 = vld [vmem:[#allocation2 + $0x1a8] sm:$0xff]  ;;  %v8603_v32 = vld [vmem:[%s17662_s3 + $0x1ae0] sm:$0xff] }
 0x369   : > { %5166 = vmatprep.subr.mxu0 %v8730_v22  ;;  %v14317_v40 = vpop.f32.mrf.mxu0  ;;  %17981 = vst [vmem:[#allocation139_spill] sm:$0xff] %v14319_v33  ;;  %5006 = vmatpush1.msra.mxu1 %v8417_v11  ;;  %v14325_v46 = vadd.f32 %v3876_v63, %v2907_v28  ;;  %17984 = vst [vmem:[#allocation142_spill] sm:$0xff] %v14329_v19  ;;  %v8723_v22 = vld [vmem:[%s17662_s3 + $0x1ea0] sm:$0xff]  ;;  %v14337_v11 = vld [vmem:[#allocation2 + $0x178] sm:$0xff] }
 0x36a   : > { %17980 = vst [vmem:[#allocation58_spill] sm:$0xff] %v14317_v40  ;;  %5167 = vmatpush2.msra.mxu0 %v8729_v59  ;;  %4951 = vmatmul.mubr.f32.gmra.mxu1 %v14323_v15  ;;  %v8598_v28 = vld [vmem:[%s17662_s3 + $0x1ab8] sm:$0xff]  ;;  %v17985_v40 = vld [vmem:[#allocation60_spill] sm:$0xff] }
 0x36b   : > { %17983 = vst [vmem:[#allocation141_spill] sm:$0xff] %v14325_v46  ;;  %4826 = vmatmul.mubr.f32.gmra.mxu0 %v14321_v61  ;;  %5007 = vmatprep.subr.mxu1 %v8604_v17  ;;  %v8718_v63 = vld [vmem:[%s17662_s3 + $0x1e78] sm:$0xff]  ;;  %v8597_v17 = vld [vmem:[%s17662_s3 + $0x1ab0] sm:$0xff]  ;;  %v2913_v33 = vadd.f32 %v12916_v55, %v17985_v40  ;;  %v8712_v61 = vld [vmem:[%s17662_s3 + $0x1e48] sm:$0xff] }
 0x36c   : > { %5168 = vmatprep.subr.mxu0 %v8724_v23  ;;  %4831 = vmatprep.mubr.f32.mxu0 %v14329_v19  ;;  %v8717_v23 = vld [vmem:[%s17662_s3 + $0x1e70] sm:$0xff]  ;;  %v3881_v25 = vpop.f32.mrf.mxu1  ;;  %v8592_v19 = vld [vmem:[%s17662_s3 + $0x1a88] sm:$0xff]  ;;  %v14369_v55 = vld [vmem:[#allocation2 + $0x1a0] sm:$0xff] }
 0x36d   : > { %8760 = vmatprep.mubr.msk.f32.mxu1 %vm1565_vm1, %v14337_v11  ;;  %v14354_v59 = vpop.f32.mrf.mxu0  ;;  %5008 = vmatpush2.msra.mxu1 %v8603_v32  ;;  %v3882_v46 = vadd.f32 %v3881_v25, %v14258_v30  ;;  %v14371_v40 = vld [vmem:[#allocation2 + $0x170] sm:$0xff]  ;;  %v8591_v30 = vld [vmem:[%s17662_s3 + $0x1a80] sm:$0xff] }
 0x36e   : > { %5169 = vmatpush2.msra.mxu0 %v8723_v22  ;;  %5009 = vmatprep.subr.mxu1 %v8598_v28  ;;  %v14367_v58 = vpop.f32.mrf.mxu1  ;;  %v8711_v22 = vld [vmem:[%s17662_s3 + $0x1e40] sm:$0xff]  ;;  %v14383_v28 = vld [vmem:[#allocation2 + $0x198] sm:$0xff] }
 0x36f   : > { %5170 = vmatprep.subr.mxu0 %v8718_v63  ;;  %v14365_v42 = vpop.f32.mrf.mxu0  ;;  %17987 = vst [vmem:[#allocation143_spill] sm:$0xff] %v14367_v58  ;;  %5010 = vmatpush2.msra.mxu1 %v8597_v17  ;;  %v14376_v32 = vadd.f32 %v3882_v46, %v2913_v33  ;;  %v8586_v63 = vld [vmem:[%s17662_s3 + $0x1a58] sm:$0xff]  ;;  %v8585_v46 = vld [vmem:[%s17662_s3 + $0x1a50] sm:$0xff] }
 0x370   : > { %17986 = vst [vmem:[#allocation60_spill] sm:$0xff] %v14365_v42  ;;  %5171 = vmatpush2.msra.mxu0 %v8717_v23  ;;  %4957 = vmatmul.mubr.f32.gmra.mxu1 %v14371_v40  ;;  %v8706_v33 = vld [vmem:[%s17662_s3 + $0x1e18] sm:$0xff]  ;;  %v8580_v23 = vld [vmem:[%s17662_s3 + $0x1a28] sm:$0xff] }
 0x371   : > { %4832 = vmatmul.mubr.f32.gmra.mxu0 %v14369_v55  ;;  %5011 = vmatprep.subr.mxu1 %v8592_v19 }
 0x372   : > { %5172 = vmatprep.subr.mxu0 %v8712_v61  ;;  %8761 = vmatprep.mubr.msk.f32.mxu1 %vm1565_vm1, %v14383_v28  ;;  %v8705_v61 = vld [vmem:[%s17662_s3 + $0x1e10] sm:$0xff]  ;;  %v3887_v17 = vpop.f32.mrf.mxu1 }
 0x373   : > { %5012 = vmatpush2.msra.mxu1 %v8591_v30  ;;  %v3762_v19 = vpop.f32.mrf.mxu0  ;;  %5173 = vmatpush2.msra.mxu0 %v8711_v22  ;;  %v3888_v25 = vadd.f32 %v3887_v17, %v14306_v27  ;;  %v8510_v30 = vld [vmem:[%s17662_s3 + $0x17f8] sm:$0xff]  ;;  %v14412_v22 = vld [vmem:[#allocation2 + $0x190] sm:$0xff] }
 0x374   : > { %8763 = vmatprep.mubr.msk.f32.mxu0 %vm1565_vm1, %v13917_v49  ;;  %5013 = vmatprep.subr.mxu1 %v8586_v63  ;;  %v14410_v58 = vpop.f32.mrf.mxu1  ;;  %v8579_v49 = vld [vmem:[%s17662_s3 + $0x1a20] sm:$0xff]  ;;  %v8509_v63 = vld [vmem:[%s17662_s3 + $0x17f0] sm:$0xff] }
 0x375   : > { %5174 = vmatprep.subr.mxu0 %v8706_v33  ;;  %v14408_v42 = vpop.f32.mrf.mxu0  ;;  %17989 = vst [vmem:[#allocation145_spill] sm:$0xff] %v14410_v58  ;;  %5014 = vmatpush2.msra.mxu1 %v8585_v46  ;;  %v14418_v27 = vadd.f32 %v3888_v25, %v12932_v53  ;;  %v14425_v33 = vld [vmem:[#allocation2 + $0x1b8] sm:$0xff]  ;;  %v8504_v53 = vld [vmem:[%s17662_s3 + $0x17c8] sm:$0xff] }
 0x376   : > { %17988 = vst [vmem:[#allocation144_spill] sm:$0xff] %v14408_v42  ;;  %5175 = vmatpush2.msra.mxu0 %v8705_v61  ;;  %4963 = vmatmul.mubr.f32.gmra.mxu1 %v14412_v22  ;;  %v8574_v46 = vld [vmem:[%s17662_s3 + $0x19f8] sm:$0xff]  ;;  %v8573_v61 = vld [vmem:[%s17662_s3 + $0x19f0] sm:$0xff]  ;;  %v8568_v25 = vld [vmem:[%s17662_s3 + $0x19c8] sm:$0xff] }
 0x377   : > { %5015 = vmatprep.subr.mxu1 %v8580_v23  ;;  %5177 = vmatmul.mubr.f32.vlgmr.msra.gmra.mxu0 %v13942_v48  ;;  %v8503_v48 = vld [vmem:[%s17662_s3 + $0x17c0] sm:$0xff] }
 0x378   : > { %5249 = vmatprep.subr.mxu0 %v8510_v30  ;;  %8762 = vmatprep.mubr.msk.f32.mxu1 %vm1565_vm1, %v14425_v33  ;;  %v3893_v23 = vpop.f32.mrf.mxu1 }
 0x379   : > { %5016 = vmatpush2.msra.mxu1 %v8579_v49  ;;  %v3768_v17 = vpop.f32.mrf.mxu0  ;;  %8764 = vmatprep.mubr.msk.f32.mxu0 %vm1565_vm1, %v13954_v29  ;;  %v3894_v30 = vadd.f32 %v3893_v23, %v14354_v59  ;;  %v8498_v49 = vld [vmem:[%s17662_s3 + $0x1798] sm:$0xff]  ;;  %v14454_v29 = vld [vmem:[#allocation2 + $0x1b0] sm:$0xff] }
 0x37a   : > { %5250 = vmatpush1.msra.mxu0 %v8509_v63  ;;  %5017 = vmatprep.subr.mxu1 %v8574_v46  ;;  %v14452_v58 = vpop.f32.mrf.mxu1  ;;  %v8567_v63 = vld [vmem:[%s17662_s3 + $0x19c0] sm:$0xff]  ;;  %v8497_v46 = vld [vmem:[%s17662_s3 + $0x1790] sm:$0xff] }
 0x37b   : > { %5251 = vmatprep.subr.mxu0 %v8504_v53  ;;  %v14450_v42 = vpop.f32.mrf.mxu0  ;;  %5018 = vmatpush2.msra.mxu1 %v8573_v61  ;;  %v14460_v59 = vadd.f32 %v3894_v30, %v12971_v41  ;;  %v8562_v53 = vld [vmem:[%s17662_s3 + $0x1998] sm:$0xff]  ;;  %v8492_v61 = vld [vmem:[%s17662_s3 + $0x1768] sm:$0xff]  ;;  %v8561_v41 = vld [vmem:[%s17662_s3 + $0x1990] sm:$0xff] }
 0x37c   : > { %17990 = vst [vmem:[#allocation146_spill] sm:$0xff] %v14450_v42  ;;  %5252 = vmatpush1.msra.mxu0 %v8503_v48  ;;  %4969 = vmatmul.mubr.f32.gmra.mxu1 %v14454_v29 }
 0x37d   : > { %5019 = vmatprep.subr.mxu1 %v8568_v25  ;;  %5183 = vmatmul.mubr.f32.gmra.mxu0 %v13987_v37  ;;  %v8491_v37 = vld [vmem:[%s17662_s3 + $0x1760] sm:$0xff]  ;;  %v8556_v25 = vld [vmem:[%s17662_s3 + $0x1968] sm:$0xff] }
 0x37e   : > { %5253 = vmatprep.subr.mxu0 %v8498_v49  ;;  %5020 = vmatpush2.msra.mxu1 %v8567_v63  ;;  %v3899_v23 = vpop.f32.mrf.mxu1  ;;  %v8555_v49 = vld [vmem:[%s17662_s3 + $0x1960] sm:$0xff] }
 0x37f   : > { %5039 = vmatprep.mubr.f32.mxu1 %v13709_v44  ;;  %v3774_v48 = vpop.f32.mrf.mxu0  ;;  %8765 = vmatprep.mubr.msk.f32.mxu0 %vm1565_vm1, %v14002_v13  ;;  %v3900_v30 = vadd.f32 %v3899_v23, %v3762_v19  ;;  %v8486_v44 = vld [vmem:[%s17662_s3 + $0x1738] sm:$0xff]  ;;  %v8485_v13 = vld [vmem:[%s17662_s3 + $0x1730] sm:$0xff] }
 0x380   : > { %5254 = vmatpush1.msra.mxu0 %v8497_v46  ;;  %5021 = vmatprep.subr.mxu1 %v8562_v53  ;;  %v14493_v42 = vpop.f32.mrf.mxu1  ;;  %v8550_v46 = vld [vmem:[%s17662_s3 + $0x1938] sm:$0xff]  ;;  %v8480_v53 = vld [vmem:[%s17662_s3 + $0x1708] sm:$0xff] }
 0x381   : > { %5255 = vmatprep.subr.mxu0 %v8492_v61  ;;  %v14491_v63 = vpop.f32.mrf.mxu0  ;;  %5022 = vmatpush2.msra.mxu1 %v8561_v41  ;;  %v14499_v19 = vadd.f32 %v3900_v30, %v13010_v10  ;;  %v8549_v61 = vld [vmem:[%s17662_s3 + $0x1930] sm:$0xff]  ;;  %v8479_v10 = vld [vmem:[%s17662_s3 + $0x1700] sm:$0xff]  ;;  %v8474_v23 = vld [vmem:[%s17662_s3 + $0x16d8] sm:$0xff] }
 0x382   : > { %17991 = vst [vmem:[#allocation147_spill] sm:$0xff] %v14491_v63  ;;  %5256 = vmatpush1.msra.mxu0 %v8491_v37  ;;  %5023 = vmatprep.subr.mxu1 %v8556_v25  ;;  %v8543_v25 = vld [vmem:[%s17662_s3 + $0x1900] sm:$0xff] }
 0x383   : > { %5189 = vmatmul.mubr.f32.gmra.mxu0 %v14034_v14  ;;  %5257 = vmatprep.subr.mxu0 %v8486_v44  ;;  %v8544_v14 = vld [vmem:[%s17662_s3 + $0x1908] sm:$0xff] }
 0x384   : > { %5024 = vmatpush2.msra.mxu1 %v8555_v49  ;;  %8766 = vmatprep.mubr.msk.f32.mxu0 %vm1565_vm1, %v14049_v56  ;;  %v3905_v37 = vpop.f32.mrf.mxu1  ;;  %v8473_v56 = vld [vmem:[%s17662_s3 + $0x16d0] sm:$0xff] }
 0x385   : > { %5258 = vmatpush1.msra.mxu0 %v8485_v13  ;;  %v3780_v41 = vpop.f32.mrf.mxu0  ;;  %5025 = vmatprep.subr.mxu1 %v8550_v46  ;;  %v3906_v30 = vadd.f32 %v3905_v37, %v3768_v17  ;;  %v8538_v13 = vld [vmem:[%s17662_s3 + $0x18d8] sm:$0xff]  ;;  %v8468_v17 = vld [vmem:[%s17662_s3 + $0x16a8] sm:$0xff] }
 0x386   : > { %5259 = vmatprep.subr.mxu0 %v8480_v53  ;;  %5026 = vmatpush2.msra.mxu1 %v8549_v61  ;;  %v14530_v49 = vpop.f32.mrf.mxu1  ;;  %v8537_v53 = vld [vmem:[%s17662_s3 + $0x18d0] sm:$0xff]  ;;  %v8532_v61 = vld [vmem:[%s17662_s3 + $0x18a8] sm:$0xff] }
 0x387   : > { %5260 = vmatpush1.msra.mxu0 %v8479_v10  ;;  %v14528_v44 = vpop.f32.mrf.mxu0  ;;  %5027 = vmatprep.subr.mxu1 %v8544_v14  ;;  %v14540_v46 = vadd.f32 %v3906_v30, %v13047_v12  ;;  %v8462_v12 = vld [vmem:[%s17662_s3 + $0x1678] sm:$0xff]  ;;  %v8531_v10 = vld [vmem:[%s17662_s3 + $0x18a0] sm:$0xff]  ;;  %v8456_v30 = vld [vmem:[%s17662_s3 + $0x1648] sm:$0xff] }
 0x388   : > { %17992 = vst [vmem:[#allocation148_spill] sm:$0xff] %v14528_v44  ;;  %5195 = vmatmul.mubr.f32.gmra.mxu0 %v14080_v34  ;;  %5261 = vmatprep.subr.mxu0 %v8474_v23  ;;  %v8467_v34 = vld [vmem:[%s17662_s3 + $0x16a0] sm:$0xff] }
 0x389   : > { %5028 = vmatpush2.msra.mxu1 %v8543_v25  ;;  %8767 = vmatprep.mubr.msk.f32.mxu0 %vm1565_vm1, %v14099_v6  ;;  %v8461_v6 = vld [vmem:[%s17662_s3 + $0x1670] sm:$0xff]  ;;  %v8526_v25 = vld [vmem:[%s17662_s3 + $0x1878] sm:$0xff] }
 0x38a   : > { %5262 = vmatpush1.msra.mxu0 %v8473_v56  ;;  %5029 = vmatprep.subr.mxu1 %v8538_v13  ;;  %v3911_v37 = vpop.f32.mrf.mxu1 }
 0x38b   : > { %5263 = vmatprep.subr.mxu0 %v8468_v17  ;;  %v3786_v14 = vpop.f32.mrf.mxu0  ;;  %5030 = vmatpush2.msra.mxu1 %v8537_v53  ;;  %v3912_v23 = vadd.f32 %v3911_v37, %v3774_v48  ;;  %v8525_v48 = vld [vmem:[%s17662_s3 + $0x1870] sm:$0xff]  ;;  %v8520_v53 = vld [vmem:[%s17662_s3 + $0x1848] sm:$0xff] }
 0x38c   : > { %5264 = vmatpush1.msra.mxu0 %v8467_v34  ;;  %5031 = vmatprep.subr.mxu1 %v8532_v61  ;;  %v14571_v13 = vpop.f32.mrf.mxu1  ;;  %v8450_v34 = vld [vmem:[%s17662_s3 + $0x1618] sm:$0xff]  ;;  %v8519_v61 = vld [vmem:[%s17662_s3 + $0x1840] sm:$0xff]  ;;  %v8444_v37 = vld [vmem:[%s17662_s3 + $0x15e8] sm:$0xff] }
 0x38d   : > { %5201 = vmatmul.mubr.f32.gmra.mxu0 %v14131_v60  ;;  %v14569_v56 = vpop.f32.mrf.mxu0  ;;  %17994 = vst [vmem:[#allocation150_spill] sm:$0xff] %v14571_v13  ;;  %5265 = vmatprep.subr.mxu0 %v8462_v12  ;;  %v8455_v60 = vld [vmem:[%s17662_s3 + $0x1640] sm:$0xff]  ;;  %v14580_v17 = vadd.f32 %v3912_v23, %v13075_v39  ;;  %v8449_v39 = vld [vmem:[%s17662_s3 + $0x1610] sm:$0xff] }
 0x38e   : > { %17993 = vst [vmem:[#allocation149_spill] sm:$0xff] %v14569_v56  ;;  %5032 = vmatpush2.msra.mxu1 %v8531_v10  ;;  %8768 = vmatprep.mubr.msk.f32.mxu0 %vm1565_vm1, %v14146_v47  ;;  %v8514_v10 = vld [vmem:[%s17662_s3 + $0x1818] sm:$0xff]  ;;  %v8513_v23 = vld [vmem:[%s17662_s3 + $0x1810] sm:$0xff] }
 0x38f   : > { %5266 = vmatpush1.msra.mxu0 %v8461_v6  ;;  %5033 = vmatprep.subr.mxu1 %v8526_v25  ;;  %v8443_v25 = vld [vmem:[%s17662_s3 + $0x15e0] sm:$0xff] }
 0x390   : > { %5267 = vmatprep.subr.mxu0 %v8456_v30  ;;  %5034 = vmatpush2.msra.mxu1 %v8525_v48  ;;  %v3917_v12 = vpop.f32.mrf.mxu1  ;;  %v8438_v48 = vld [vmem:[%s17662_s3 + $0x15b8] sm:$0xff] }
 0x391   : > { %5268 = vmatpush1.msra.mxu0 %v8455_v60  ;;  %v3792_v47 = vpop.f32.mrf.mxu0  ;;  %5035 = vmatprep.subr.mxu1 %v8520_v53  ;;  %v3918_v6 = vadd.f32 %v3917_v12, %v3780_v41  ;;  %v8702_v60 = vld [vmem:[%s17662_s3 + $0x1df8] sm:$0xff]  ;;  %v8695_v12 = vld [vmem:[%s17662_s3 + $0x1dc0] sm:$0xff] }
 0x392   : > { %5207 = vmatmul.mubr.f32.gmra.mxu0 %v14178_v8  ;;  %5269 = vmatprep.subr.mxu0 %v8450_v34  ;;  %v14609_v8 = vpop.f32.mrf.mxu1  ;;  %v8432_v34 = vld [vmem:[%s17662_s3 + $0x1588] sm:$0xff] }
 0x393   : > { %5036 = vmatpush2.msra.mxu1 %v8519_v61  ;;  %17995 = vst [vmem:[#allocation151_spill] sm:$0xff] %v14609_v8  ;;  %8769 = vmatprep.mubr.msk.f32.mxu0 %vm1565_vm1, %v14193_v50  ;;  %v14614_v30 = vadd.f32 %v3918_v6, %v13106_v18  ;;  %v14616_v41 = vpop.f32.mrf.mxu0  ;;  %v8437_v18 = vld [vmem:[%s17662_s3 + $0x15b0] sm:$0xff] }
 0x394   : > { %5270 = vmatpush1.msra.mxu0 %v8449_v39  ;;  %17996 = vst [vmem:[#allocation152_spill] sm:$0xff] %v14616_v41  ;;  %5037 = vmatprep.subr.mxu1 %v8514_v10  ;;  %v8701_v50 = vld [vmem:[%s17662_s3 + $0x1df0] sm:$0xff]  ;;  %v8431_v39 = vld [vmem:[%s17662_s3 + $0x1580] sm:$0xff] }
 0x395   : > { %5271 = vmatprep.subr.mxu0 %v8444_v37  ;;  %5038 = vmatpush2.msra.mxu1 %v8513_v23  ;;  %v8689_v6 = vld [vmem:[%s17662_s3 + $0x1d90] sm:$0xff] }
 0x396   : > { %5272 = vmatpush1.msra.mxu0 %v8443_v25  ;;  %5040 = vmatmul.mubr.f32.vlgmr.msra.gmra.mxu1 %v13858_v21  ;;  %v3923_v53 = vpop.f32.mrf.mxu1  ;;  %v8696_v21 = vld [vmem:[%s17662_s3 + $0x1dc8] sm:$0xff] }
 0x397   : > { %5213 = vmatmul.mubr.f32.gmra.mxu0 %v14227_v45  ;;  %5273 = vmatprep.subr.mxu0 %v8438_v48  ;;  %v3924_v45 = vadd.f32 %v3923_v53, %v3786_v14  ;;  %v14638_v61 = vpop.f32.mrf.mxu0  ;;  %v8420_v25 = vld [vmem:[%s17662_s3 + $0x1528] sm:$0xff]  ;;  %v8677_v53 = vld [vmem:[%s17662_s3 + $0x1d30] sm:$0xff] }
 0x398   : > { %5386 = vmatprep.subr.mxu1 %v8702_v60  ;;  %5045 = vmatprep.mubr.f32.mxu1 %v13867_v62  ;;  %v14649_v10 = vpop.f32.mrf.mxu1  ;;  %v8426_v62 = vld [vmem:[%s17662_s3 + $0x1558] sm:$0xff]  ;;  %v8419_v60 = vld [vmem:[%s17662_s3 + $0x1520] sm:$0xff] }
 0x399   : > { %8770 = vmatprep.mubr.msk.f32.mxu0 %vm1565_vm1, %v14241_v43  ;;  %17997 = vst [vmem:[#allocation153_spill] sm:$0xff] %v14649_v10  ;;  %5274 = vmatpush1.msra.mxu0 %v8437_v18  ;;  %v14652_v14 = vadd.f32 %v3924_v45, %v13135_v7  ;;  %v14654_v37 = vpop.f32.mrf.mxu0  ;;  %v8690_v43 = vld [vmem:[%s17662_s3 + $0x1d98] sm:$0xff]  ;;  %v8425_v7 = vld [vmem:[%s17662_s3 + $0x1550] sm:$0xff]  ;;  %v8683_v18 = vld [vmem:[%s17662_s3 + $0x1d60] sm:$0xff] }
 0x39a   : > { %5387 = vmatpush1.msra.mxu1 %v8701_v50  ;;  %5275 = vmatprep.subr.mxu0 %v8432_v34  ;;  %v8671_v45 = vld [vmem:[%s17662_s3 + $0x1d00] sm:$0xff] }
 0x39b   : > { %5388 = vmatprep.subr.mxu1 %v8696_v21  ;;  %5276 = vmatpush1.msra.mxu0 %v8431_v39  ;;  %v8600_v21 = vld [vmem:[%s17662_s3 + $0x1ac8] sm:$0xff] }
 0x39c   : > { %5389 = vmatpush1.msra.mxu1 %v8695_v12  ;;  %5219 = vmatmul.mubr.f32.gmra.mxu0 %v14275_v0  ;;  %v3929_v23 = vpop.f32.mrf.mxu1  ;;  %v8593_v12 = vld [vmem:[%s17662_s3 + $0x1a90] sm:$0xff] }
 0x39d   : > { %5046 = vmatmul.mubr.f32.gmra.mxu1 %v13896_v26  ;;  %5277 = vmatprep.subr.mxu0 %v8426_v62  ;;  %v8684_v26 = vld [vmem:[%s17662_s3 + $0x1d68] sm:$0xff]  ;;  %v3930_v0 = vadd.f32 %v3929_v23, %v3792_v47  ;;  %v14676_v48 = vpop.f32.mrf.mxu0  ;;  %v8665_v62 = vld [vmem:[%s17662_s3 + $0x1cd0] sm:$0xff]  ;;  %v8582_v23 = vld [vmem:[%s17662_s3 + $0x1a38] sm:$0xff] }
 0x39e   : > { %5390 = vmatprep.subr.mxu1 %v8690_v43  ;;  %5051 = vmatprep.mubr.f32.mxu1 %v13907_v38  ;;  %v8606_v38 = vld [vmem:[%s17662_s3 + $0x1af8] sm:$0xff] }
 0x39f   : > { %8771 = vmatprep.mubr.msk.f32.mxu0 %vm1565_vm1, %v14289_v24  ;;  %5278 = vmatpush1.msra.mxu0 %v8425_v7  ;;  %v14688_v50 = vadd.f32 %v3930_v0, %v13171_v9  ;;  %v14690_v47 = vpop.f32.mrf.mxu0  ;;  %v8678_v24 = vld [vmem:[%s17662_s3 + $0x1d38] sm:$0xff]  ;;  %v8605_v9 = vld [vmem:[%s17662_s3 + $0x1af0] sm:$0xff]  ;;  %v8588_v7 = vld [vmem:[%s17662_s3 + $0x1a68] sm:$0xff] }
 0x3a0   : > { %5391 = vmatpush1.msra.mxu1 %v8689_v6  ;;  %5279 = vmatprep.subr.mxu0 %v8420_v25  ;;  %v8659_v6 = vld [vmem:[%s17662_s3 + $0x1ca0] sm:$0xff]  ;;  %v8581_v25 = vld [vmem:[%s17662_s3 + $0x1a30] sm:$0xff] }
 0x3a1   : > { %5392 = vmatprep.subr.mxu1 %v8684_v26  ;;  %5280 = vmatpush1.msra.mxu0 %v8419_v60  ;;  %v8653_v26 = vld [vmem:[%s17662_s3 + $0x1c70] sm:$0xff]  ;;  %v17998_v0 = vld [vmem:[#allocation52_spill] sm:$0xff] }
 0x3a2   : > { %5393 = vmatpush1.msra.mxu1 %v8683_v18  ;;  %5225 = vmatmul.mubr.f32.gmra.mxu0 %v14323_v15  ;;  %v8599_v15 = vld [vmem:[%s17662_s3 + $0x1ac0] sm:$0xff]  ;;  %v2881_v60 = vsub.s32 4, %v17998_v0  ;;  %v8576_v18 = vld [vmem:[%s17662_s3 + $0x1a08] sm:$0xff] }
 0x3a3   : > { %5052 = vmatmul.mubr.f32.gmra.mxu1 %v13940_v35  ;;  %v14706_v34 = vpop.f32.mrf.mxu0  ;;  %5281 = vmatprep.subr.mxu0 %v8606_v38  ;;  %v8672_v35 = vld [vmem:[%s17662_s3 + $0x1d08] sm:$0xff]  ;;  %v8647_v38 = vld [vmem:[%s17662_s3 + $0x1c40] sm:$0xff] }
 0x3a4   : > { %5394 = vmatprep.subr.mxu1 %v8678_v24  ;;  %5057 = vmatprep.mubr.f32.mxu1 %v13946_v1  ;;  %v8594_v1 = vld [vmem:[%s17662_s3 + $0x1a98] sm:$0xff] }
 0x3a5   : > { %8772 = vmatprep.mubr.msk.f32.mxu0 %vm1565_vm1, %v14337_v11  ;;  %v14723_v39 = vpop.f32.mrf.mxu0  ;;  %5282 = vmatpush2.msra.mxu0 %v8605_v9  ;;  %v8666_v11 = vld [vmem:[%s17662_s3 + $0x1cd8] sm:$0xff] }
 0x3a6   : > { %5395 = vmatpush1.msra.mxu1 %v8677_v53  ;;  %5283 = vmatprep.subr.mxu0 %v8600_v21  ;;  %v8642_v9 = vld [vmem:[%s17662_s3 + $0x1c18] sm:$0xff]  ;;  %v14799_v53 = vld [vmem:[%s17663_s4] sm:$0x3f] }
 0x3a7   : > { %5396 = vmatprep.subr.mxu1 %v8672_v35  ;;  %5284 = vmatpush2.msra.mxu0 %v8599_v15  ;;  %v14802_v21 = vrot.slane %v14799_v53, %v2881_v60  ;;  %v8569_v35 = vld [vmem:[%s17662_s3 + $0x19d0] sm:$0xff]  ;;  %v8552_v60 = vld [vmem:[%s17662_s3 + $0x1948] sm:$0xff] }
 0x3a8   : > { %5397 = vmatpush1.msra.mxu1 %v8671_v45  ;;  %5231 = vmatmul.mubr.f32.gmra.mxu0 %v14371_v40  ;;  %v14739_v43 = vpop.f32.mrf.mxu0  ;;  %v8587_v40 = vld [vmem:[%s17662_s3 + $0x1a60] sm:$0xff]  ;;  %v8641_v15 = vld [vmem:[%s17662_s3 + $0x1c10] sm:$0xff]  ;;  %v14812_v45 = vpop.f32.mrf.mxu1 }
 0x3a9   : > { %5058 = vmatmul.mubr.f32.gmra.mxu1 %v13985_v36  ;;  %5285 = vmatprep.subr.mxu0 %v8594_v1  ;;  %v8660_v36 = vld [vmem:[%s17662_s3 + $0x1ca8] sm:$0xff]  ;;  %17999 = vst [vmem:[#allocation52_spill] sm:$0xff] %v14812_v45 }
 0x3aa   : > { %5398 = vmatprep.subr.mxu1 %v8666_v11  ;;  %5063 = vmatprep.mubr.f32.mxu1 %v13991_v4  ;;  %v8654_v4 = vld [vmem:[%s17662_s3 + $0x1c78] sm:$0xff]  ;;  %v8564_v11 = vld [vmem:[%s17662_s3 + $0x19a8] sm:$0xff] }
 0x3ab   : > { %8773 = vmatprep.mubr.msk.f32.mxu0 %vm1565_vm1, %v14383_v28  ;;  %5286 = vmatpush2.msra.mxu0 %v8593_v12  ;;  %v14762_v28 = vpop.f32.mrf.mxu0  ;;  %v8563_v12 = vld [vmem:[%s17662_s3 + $0x19a0] sm:$0xff] }
 0x3ac   : > { %5399 = vmatpush1.msra.mxu1 %v8665_v62  ;;  %5287 = vmatprep.subr.mxu0 %v8588_v7  ;;  %v8635_v62 = vld [vmem:[%s17662_s3 + $0x1be0] sm:$0xff] }
 0x3ad   : > { %5400 = vmatprep.subr.mxu1 %v8660_v36  ;;  %5288 = vmatpush2.msra.mxu0 %v8587_v40  ;;  %v14788_v24 = vpop.f32.mrf.mxu0  ;;  %v2897_v36 = vadd.f32 %v14802_v21, %v13196_v3  ;;  %v9475_v40 = vld [vmem:[#allocation2 + $0x48] sm:$0xff]  ;;  %v8557_v3 = vld [vmem:[%s17662_s3 + $0x1970] sm:$0xff] }
 0x3ae   : > { %5401 = vmatpush1.msra.mxu1 %v8659_v6  ;;  %5237 = vmatmul.mubr.f32.gmra.mxu0 %v14412_v22  ;;  %v8575_v22 = vld [vmem:[%s17662_s3 + $0x1a00] sm:$0xff] }
 0x3af   : > { %5064 = vmatmul.mubr.f32.gmra.mxu1 %v14032_v16  ;;  %5289 = vmatprep.subr.mxu0 %v8582_v23  ;;  %v8648_v16 = vld [vmem:[%s17662_s3 + $0x1c48] sm:$0xff]  ;;  %v14814_v1 = vpop.f32.mrf.mxu0  ;;  %v8630_v23 = vld [vmem:[%s17662_s3 + $0x1bb8] sm:$0xff] }
 0x3b0   : > { %5402 = vmatprep.subr.mxu1 %v8654_v4  ;;  %5069 = vmatprep.mubr.f32.mxu1 %v14039_v31  ;;  %v8570_v31 = vld [vmem:[%s17662_s3 + $0x19d8] sm:$0xff] }
 0x3b1   : > { %8774 = vmatprep.mubr.msk.f32.mxu0 %vm1565_vm1, %v14425_v33  ;;  %5290 = vmatpush2.msra.mxu0 %v8581_v25 }
 0x3b2   : > { %5403 = vmatpush1.msra.mxu1 %v8653_v26  ;;  %5291 = vmatprep.subr.mxu0 %v8576_v18  ;;  %v14838_v4 = vpop.f32.mrf.mxu0  ;;  %v8624_v18 = vld [vmem:[%s17662_s3 + $0x1b88] sm:$0xff] }
 0x3b3   : > { %5404 = vmatprep.subr.mxu1 %v8648_v16  ;;  %5292 = vmatpush2.msra.mxu0 %v8575_v22  ;;  %v8551_v16 = vld [vmem:[%s17662_s3 + $0x1940] sm:$0xff]  ;;  %v8546_v22 = vld [vmem:[%s17662_s3 + $0x1918] sm:$0xff] }
 0x3b4   : > { %5405 = vmatpush1.msra.mxu1 %v8647_v38  ;;  %5243 = vmatmul.mubr.f32.gmra.mxu0 %v14454_v29  ;;  %v14867_v38 = vpop.f32.mrf.mxu0 }
 0x3b5   : > { %5070 = vmatmul.mubr.f32.gmra.mxu1 %v14078_v57  ;;  %5293 = vmatprep.subr.mxu0 %v8570_v31  ;;  %v8636_v57 = vld [vmem:[%s17662_s3 + $0x1be8] sm:$0xff] }
 0x3b6   : > { %5406 = vmatprep.subr.mxu1 %v8642_v9  ;;  %5075 = vmatprep.mubr.f32.mxu1 %v14086_v20  ;;  %v4000_v7 = vpop.f32.mrf.mxu1  ;;  %v8558_v20 = vld [vmem:[%s17662_s3 + $0x1978] sm:$0xff] }
 0x3b7   : > { %5294 = vmatpush2.msra.mxu0 %v8569_v35  ;;  %5313 = vmatprep.mubr.f32.mxu0 %v9475_v40  ;;  %v4138_v6 = vadd.f32 %v14638_v61, %v4000_v7  ;;  %v8629_v61 = vld [vmem:[%s17662_s3 + $0x1bb0] sm:$0xff]  ;;  %v8618_v9 = vld [vmem:[%s17662_s3 + $0x1b58] sm:$0xff]  ;;  %v14899_v7 = vpop.f32.mrf.mxu0 }
 0x3b8   : > { %5407 = vmatpush1.msra.mxu1 %v8641_v15  ;;  %5295 = vmatprep.subr.mxu0 %v8564_v11  ;;  %v14840_v25 = vpop.f32.mrf.mxu1  ;;  %v8545_v15 = vld [vmem:[%s17662_s3 + $0x1910] sm:$0xff] }
 0x3b9   : > { %5408 = vmatprep.subr.mxu1 %v8636_v57  ;;  %5296 = vmatpush2.msra.mxu0 %v8563_v12  ;;  %v14848_v26 = vadd.f32 %v4138_v6, %v2897_v36  ;;  %v8617_v11 = vld [vmem:[%s17662_s3 + $0x1b50] sm:$0xff]  ;;  %v8534_v36 = vld [vmem:[%s17662_s3 + $0x18b8] sm:$0xff] }
 0x3ba   : > { %5409 = vmatpush1.msra.mxu1 %v8635_v62  ;;  %5297 = vmatprep.subr.mxu0 %v8558_v20  ;;  %v8539_v62 = vld [vmem:[%s17662_s3 + $0x18e0] sm:$0xff] }
 0x3bb   : > { %5076 = vmatmul.mubr.f32.gmra.mxu1 %v14129_v52  ;;  %5410 = vmatprep.subr.mxu1 %v8630_v23  ;;  %v8623_v52 = vld [vmem:[%s17662_s3 + $0x1b80] sm:$0xff]  ;;  %v8533_v23 = vld [vmem:[%s17662_s3 + $0x18b0] sm:$0xff] }
 0x3bc   : > { %5081 = vmatprep.mubr.f32.mxu1 %v14138_v2  ;;  %5298 = vmatpush2.msra.mxu0 %v8557_v3  ;;  %v2903_v2 = vadd.f32 %v14802_v21, %v13231_v54  ;;  %v8540_v54 = vld [vmem:[%s17662_s3 + $0x18e8] sm:$0xff]  ;;  %v18000_v20 = vld [vmem:[#allocation76_spill] sm:$0xff]  ;;  %v8749_v3 = vld [vmem:[%s17662_s3 + $0x1f70] sm:$0xff] }
 0x3bd   : > { %5411 = vmatpush1.msra.mxu1 %v8629_v61  ;;  %v4006_v31 = vpop.f32.mrf.mxu1  ;;  %5299 = vmatprep.subr.mxu0 %v8552_v60  ;;  %v2909_v6 = vadd.f32 %v14802_v21, %v18000_v20  ;;  %v18001_v60 = vld [vmem:[#allocation132_spill] sm:$0xff]  ;;  %v8732_v20 = vld [vmem:[%s17662_s3 + $0x1ee8] sm:$0xff] }
 0x3be   : > { %5412 = vmatprep.subr.mxu1 %v8624_v18  ;;  %v4144_v35 = vadd.f32 %v14676_v48, %v4006_v31  ;;  %5300 = vmatpush2.msra.mxu0 %v8551_v16  ;;  %v8612_v48 = vld [vmem:[%s17662_s3 + $0x1b28] sm:$0xff]  ;;  %v18002_v31 = vld [vmem:[#allocation134_spill] sm:$0xff] }
 0x3bf   : > { %5413 = vmatpush1.msra.mxu1 %v8623_v52  ;;  %v14881_v57 = vpop.f32.mrf.mxu1  ;;  %5301 = vmatprep.subr.mxu0 %v8546_v22  ;;  %v8528_v18 = vld [vmem:[%s17662_s3 + $0x1888] sm:$0xff]  ;;  %v14923_v52 = vpop.f32.mrf.mxu0 }
 0x3c0   : > { %5082 = vmatmul.mubr.f32.gmra.mxu1 %v14176_v5  ;;  %v14890_v12 = vadd.f32 %v4144_v35, %v2903_v2  ;;  %5414 = vmatprep.subr.mxu1 %v8618_v9  ;;  %v8611_v5 = vld [vmem:[%s17662_s3 + $0x1b20] sm:$0xff]  ;;  %v8744_v16 = vld [vmem:[%s17662_s3 + $0x1f48] sm:$0xff] }
 0x3c1   : > { %5087 = vmatprep.mubr.f32.mxu1 %v14185_v51  ;;  %5302 = vmatpush2.msra.mxu0 %v8545_v15  ;;  %v8750_v51 = vld [vmem:[%s17662_s3 + $0x1f78] sm:$0xff]  ;;  %v8743_v2 = vld [vmem:[%s17662_s3 + $0x1f40] sm:$0xff] }
 0x3c2   : > { %5415 = vmatpush1.msra.mxu1 %v8617_v11  ;;  %5303 = vmatprep.subr.mxu0 %v8540_v54  ;;  %v8522_v15 = vld [vmem:[%s17662_s3 + $0x1858] sm:$0xff]  ;;  %v8521_v54 = vld [vmem:[%s17662_s3 + $0x1850] sm:$0xff] }
 0x3c3   : > { %5416 = vmatprep.subr.mxu1 %v8612_v48  ;;  %v4012_v40 = vpop.f32.mrf.mxu1  ;;  %5304 = vmatpush2.msra.mxu0 %v8539_v62  ;;  %v8738_v11 = vld [vmem:[%s17662_s3 + $0x1f18] sm:$0xff]  ;;  %v14949_v48 = vpop.f32.mrf.mxu0 }
 0x3c4   : > { %5417 = vmatpush1.msra.mxu1 %v8611_v5  ;;  %v4150_v61 = vadd.f32 %v14706_v34, %v4012_v40  ;;  %5305 = vmatprep.subr.mxu0 %v8534_v36  ;;  %v8527_v34 = vld [vmem:[%s17662_s3 + $0x1880] sm:$0xff]  ;;  %v18003_v5 = vld [vmem:[#allocation79_spill] sm:$0xff]  ;;  %v8516_v40 = vld [vmem:[%s17662_s3 + $0x1828] sm:$0xff] }
 0x3c5   : > { %5088 = vmatmul.mubr.f32.gmra.mxu1 %v18001_v60  ;;  %v4014_v22 = vpop.f32.mrf.mxu1  ;;  %5434 = vmatprep.subr.mxu1 %v8750_v51  ;;  %v2915_v36 = vadd.f32 %v14802_v21, %v18003_v5  ;;  %v18004_v51 = vld [vmem:[#allocation136_spill] sm:$0xff] }
 0x3c6   : > { %5093 = vmatprep.mubr.f32.mxu1 %v18002_v31  ;;  %v14932_v9 = vadd.f32 %v4150_v61, %v2909_v6  ;;  %v14935_v35 = vadd.f32 %v14723_v39, %v4014_v22  ;;  %5306 = vmatpush2.msra.mxu0 %v8533_v23  ;;  %v8737_v39 = vld [vmem:[%s17662_s3 + $0x1f10] sm:$0xff]  ;;  %v8731_v61 = vld [vmem:[%s17662_s3 + $0x1ee0] sm:$0xff]  ;;  %v14976_v22 = vpop.f32.mrf.mxu0 }
 0x3c7   : > { %5435 = vmatpush2.msra.mxu1 %v8749_v3  ;;  %5307 = vmatprep.subr.mxu0 %v8528_v18  ;;  %v18005_v23 = vld [vmem:[#allocation138_spill] sm:$0xff]  ;;  %v8515_v3 = vld [vmem:[%s17662_s3 + $0x1820] sm:$0xff] }
 0x3c8   : > { %5436 = vmatprep.subr.mxu1 %v8744_v16  ;;  %5308 = vmatpush2.msra.mxu0 %v8527_v34  ;;  %v8725_v31 = vld [vmem:[%s17662_s3 + $0x1eb0] sm:$0xff]  ;;  %v18006_v34 = vld [vmem:[#allocation140_spill] sm:$0xff] }
 0x3c9   : > { %5437 = vmatpush2.msra.mxu1 %v8743_v2  ;;  %v4018_v62 = vpop.f32.mrf.mxu1  ;;  %5309 = vmatprep.subr.mxu0 %v8522_v15  ;;  %v9476_v2 = vld [vmem:[#allocation2 + $0x40] sm:$0xff] }
 0x3ca   : > { %5094 = vmatmul.mubr.f32.gmra.mxu1 %v18004_v51  ;;  %v4156_v6 = vadd.f32 %v14739_v43, %v4018_v62  ;;  %5438 = vmatprep.subr.mxu1 %v8738_v11  ;;  %v8726_v43 = vld [vmem:[%s17662_s3 + $0x1eb8] sm:$0xff]  ;;  %v18007_v11 = vld [vmem:[#allocation82_spill] sm:$0xff]  ;;  %v8719_v62 = vld [vmem:[%s17662_s3 + $0x1e80] sm:$0xff] }
 0x3cb   : > { %5099 = vmatprep.mubr.f32.mxu1 %v18005_v23  ;;  %v4020_v60 = vpop.f32.mrf.mxu1  ;;  %5310 = vmatpush2.msra.mxu0 %v8521_v54  ;;  %v2921_v54 = vadd.f32 %v14802_v21, %v18007_v11  ;;  %v8714_v51 = vld [vmem:[%s17662_s3 + $0x1e58] sm:$0xff] }
 0x3cc   : > { %5439 = vmatpush2.msra.mxu1 %v8737_v39  ;;  %v14968_v18 = vadd.f32 %v4156_v6, %v2915_v36  ;;  %v14971_v16 = vadd.f32 %v14762_v28, %v4020_v60  ;;  %5311 = vmatprep.subr.mxu0 %v8516_v40  ;;  %v8720_v28 = vld [vmem:[%s17662_s3 + $0x1e88] sm:$0xff]  ;;  %v18008_v39 = vld [vmem:[#allocation142_spill] sm:$0xff]  ;;  %v14995_v40 = vpop.f32.mrf.mxu0  ;;  %v8707_v60 = vld [vmem:[%s17662_s3 + $0x1e20] sm:$0xff] }
 0x3cd   : > { %5440 = vmatprep.subr.mxu1 %v8732_v20  ;;  %5312 = vmatpush2.msra.mxu0 %v8515_v3  ;;  %v9477_v36 = vld [vmem:[#allocation2 + $0x68] sm:$0xff]  ;;  %v8713_v6 = vld [vmem:[%s17662_s3 + $0x1e50] sm:$0xff] }
 0x3ce   : > { %5441 = vmatpush2.msra.mxu1 %v8731_v61  ;;  %5314 = vmatmul.mubr.f32.vlgmr.msra.gmra.mxu0 %v9476_v2  ;;  %v8708_v61 = vld [vmem:[%s17662_s3 + $0x1e28] sm:$0xff] }
 0x3cf   : > { %5100 = vmatmul.mubr.f32.gmra.mxu1 %v18006_v34  ;;  %v4024_v15 = vpop.f32.mrf.mxu1  ;;  %5442 = vmatprep.subr.mxu1 %v8726_v43  ;;  %v9479_v43 = vld [vmem:[#allocation2 + $0x88] sm:$0xff] }
 0x3d0   : > { %5105 = vmatprep.mubr.f32.mxu1 %v18008_v39  ;;  %v4162_v5 = vadd.f32 %v14788_v24, %v4024_v15  ;;  %5319 = vmatprep.mubr.f32.mxu0 %v9477_v36  ;;  %v9478_v24 = vld [vmem:[#allocation2 + $0x60] sm:$0xff]  ;;  %v18011_v34 = vld [vmem:[#allocation85_spill] sm:$0xff]  ;;  %v9484_v36 = vld [vmem:[#allocation2 + $0x78] sm:$0xff] }
 0x3d1   : > { %5443 = vmatpush2.msra.mxu1 %v8725_v31  ;;  %v4026_v20 = vpop.f32.mrf.mxu1  ;;  %v15012_v31 = vpop.f32.mrf.mxu0  ;;  %v2927_v2 = vadd.f32 %v14802_v21, %v18011_v34  ;;  %v9481_v15 = vld [vmem:[#allocation2 + $0x80] sm:$0xff]  ;;  %v9483_v39 = vld [vmem:[#allocation2 + $0xa8] sm:$0xff] }
 0x3d2   : > { %5444 = vmatprep.subr.mxu1 %v8720_v28  ;;  %v15000_v23 = vadd.f32 %v4162_v5, %v2921_v54  ;;  %v15003_v3 = vadd.f32 %v14814_v1, %v4026_v20  ;;  %5320 = vmatmul.mubr.f32.gmra.mxu0 %v9478_v24  ;;  %v9480_v28 = vld [vmem:[#allocation2 + $0x58] sm:$0xff]  ;;  %v9482_v54 = vld [vmem:[#allocation2 + $0x50] sm:$0xff]  ;;  %v9485_v20 = vld [vmem:[#allocation2 + $0xa0] sm:$0xff] }
 0x3d3   : > { %5445 = vmatpush2.msra.mxu1 %v8719_v62  ;;  %5325 = vmatprep.mubr.f32.mxu0 %v9479_v43 }
 0x3d4   : > { %18009 = vst [vmem:[#allocation76_spill] sm:$0xff] %v15000_v23  ;;  %18010 = vst [vmem:[#allocation132_spill] sm:$0xff] %v15003_v3  ;;  %5106 = vmatmul.mubr.f32.gmra.mxu1 %v14369_v55  ;;  %5446 = vmatprep.subr.mxu1 %v8714_v51  ;;  %v4191_v51 = vpop.f32.mrf.mxu0 }
 0x3d5   : > { %5447 = vmatpush2.msra.mxu1 %v8713_v6  ;;  %v4030_v1 = vpop.f32.mrf.mxu1  ;;  %8775 = vmatprep.mubr.msk.f32.mxu1 %vm1565_vm1, %v9480_v28  ;;  %v18014_v6 = vld [vmem:[#allocation88_spill] sm:$0xff] }
 0x3d6   : > { %5448 = vmatprep.subr.mxu1 %v8708_v61  ;;  %v4168_v55 = vadd.f32 %v14838_v4, %v4030_v1  ;;  %5326 = vmatmul.mubr.f32.gmra.mxu0 %v9481_v15  ;;  %v2933_v24 = vadd.f32 %v14802_v21, %v18014_v6  ;;  %v9486_v61 = vld [vmem:[#allocation2 + $0x70] sm:$0xff]  ;;  %v9488_v1 = vld [vmem:[#allocation2 + $0x98] sm:$0xff] }
 0x3d7   : > { %5449 = vmatpush2.msra.mxu1 %v8707_v60  ;;  %v4032_v11 = vpop.f32.mrf.mxu1  ;;  %5331 = vmatprep.mubr.f32.mxu0 %v9483_v39  ;;  %v9487_v60 = vld [vmem:[#allocation2 + $0xc8] sm:$0xff]  ;;  %v9490_v15 = vld [vmem:[#allocation2 + $0x90] sm:$0xff]  ;;  %v18017_v39 = vld [vmem:[#allocation91_spill] sm:$0xff] }
 0x3d8   : > { %5451 = vmatmul.mubr.f32.vlgmr.msra.gmra.mxu1 %v9482_v54  ;;  %v15018_v62 = vadd.f32 %v4168_v55, %v2927_v2  ;;  %v15021_v5 = vadd.f32 %v14867_v38, %v4032_v11  ;;  %v4193_v38 = vpop.f32.mrf.mxu0  ;;  %v9489_v55 = vld [vmem:[#allocation2 + $0xc0] sm:$0xff]  ;;  %v9491_v11 = vld [vmem:[#allocation2 + $0xe8] sm:$0xff] }
 0x3d9   : > { %8776 = vmatprep.mubr.msk.f32.mxu1 %vm1565_vm1, %v9484_v36  ;;  %v9492_v36 = vld [vmem:[#allocation2 + $0xb8] sm:$0xff] }
 0x3da   : > { %18012 = vst [vmem:[#allocation134_spill] sm:$0xff] %v15018_v62  ;;  %18013 = vst [vmem:[#allocation79_spill] sm:$0xff] %v15021_v5  ;;  %5332 = vmatmul.mubr.f32.gmra.mxu0 %v9485_v20  ;;  %v4197_v20 = vpop.f32.mrf.mxu0  ;;  %v18046_v5 = vld [vmem:[#allocation119_spill] sm:$0xff] }
 0x3db   : > { %v4036_v4 = vpop.f32.mrf.mxu1  ;;  %5337 = vmatprep.mubr.f32.mxu0 %v9487_v60  ;;  %v9494_v60 = vld [vmem:[#allocation2 + $0xb0] sm:$0xff] }
 0x3dc   : > { %5457 = vmatmul.mubr.f32.gmra.mxu1 %v9486_v61  ;;  %v4174_v43 = vadd.f32 %v14899_v7, %v4036_v4  ;;  %v2939_v7 = vadd.f32 %v14802_v21, %v18017_v39 }
 0x3dd   : > { %8777 = vmatprep.mubr.msk.f32.mxu1 %vm1565_vm1, %v9488_v1  ;;  %v4038_v34 = vpop.f32.mrf.mxu1  ;;  %v9496_v1 = vld [vmem:[#allocation2 + $0xd8] sm:$0xff] }
 0x3de   : > { %v15028_v2 = vadd.f32 %v4174_v43, %v2933_v24  ;;  %v15031_v28 = vadd.f32 %v14923_v52, %v4038_v34  ;;  %5338 = vmatmul.mubr.f32.gmra.mxu0 %v9489_v55  ;;  %v9493_v24 = vld [vmem:[#allocation2 + $0xe0] sm:$0xff]  ;;  %v9495_v43 = vld [vmem:[#allocation2 + $0x108] sm:$0xff]  ;;  %v4199_v34 = vpop.f32.mrf.mxu0 }
 0x3df   : > { %5343 = vmatprep.mubr.f32.mxu0 %v9491_v11 }
 0x3e0   : > { %18015 = vst [vmem:[#allocation136_spill] sm:$0xff] %v15028_v2  ;;  %18016 = vst [vmem:[#allocation138_spill] sm:$0xff] %v15031_v28  ;;  %5463 = vmatmul.mubr.f32.gmra.mxu1 %v9490_v15  ;;  %v4042_v54 = vpop.f32.mrf.mxu1  ;;  %v18020_v15 = vld [vmem:[#allocation94_spill] sm:$0xff] }
 0x3e1   : > { %8778 = vmatprep.mubr.msk.f32.mxu1 %vm1565_vm1, %v9492_v36  ;;  %v4180_v4 = vadd.f32 %v14949_v48, %v4042_v54  ;;  %v2945_v48 = vadd.f32 %v14802_v21, %v18020_v15  ;;  %v9497_v54 = vld [vmem:[#allocation2 + $0x100] sm:$0xff]  ;;  %v9502_v15 = vld [vmem:[#allocation2 + $0xf0] sm:$0xff] }
 0x3e2   : > { %v4044_v6 = vpop.f32.mrf.mxu1  ;;  %5344 = vmatmul.mubr.f32.gmra.mxu0 %v9493_v24  ;;  %v4203_v24 = vpop.f32.mrf.mxu0 }
 0x3e3   : > { %v15037_v52 = vadd.f32 %v4180_v4, %v2939_v7  ;;  %v15040_v61 = vadd.f32 %v14976_v22, %v4044_v6  ;;  %5349 = vmatprep.mubr.f32.mxu0 %v9495_v43  ;;  %v9498_v7 = vld [vmem:[#allocation2 + $0xd0] sm:$0xff]  ;;  %v9499_v22 = vld [vmem:[#allocation2 + $0x128] sm:$0xff]  ;;  %v9500_v6 = vld [vmem:[#allocation2 + $0xf8] sm:$0xff] }
 0x3e4   : > { %5469 = vmatmul.mubr.f32.gmra.mxu1 %v9494_v60  ;;  %v18023_v43 = vld [vmem:[#allocation97_spill] sm:$0xff] }
 0x3e5   : > { %18018 = vst [vmem:[#allocation140_spill] sm:$0xff] %v15037_v52  ;;  %18019 = vst [vmem:[#allocation82_spill] sm:$0xff] %v15040_v61  ;;  %8779 = vmatprep.mubr.msk.f32.mxu1 %vm1565_vm1, %v9496_v1  ;;  %v4048_v55 = vpop.f32.mrf.mxu1  ;;  %v9501_v1 = vld [vmem:[#allocation2 + $0x120] sm:$0xff] }
 0x3e6   : > { %v4186_v11 = vadd.f32 %v14995_v40, %v4048_v55  ;;  %5350 = vmatmul.mubr.f32.gmra.mxu0 %v9497_v54  ;;  %v2951_v40 = vadd.f32 %v14802_v21, %v18023_v43  ;;  %v9503_v54 = vld [vmem:[#allocation2 + $0x148] sm:$0xff] }
 0x3e7   : > { %v4050_v39 = vpop.f32.mrf.mxu1  ;;  %5355 = vmatprep.mubr.f32.mxu0 %v9499_v22  ;;  %v9505_v22 = vld [vmem:[#allocation2 + $0x140] sm:$0xff] }
 0x3e8   : > { %5475 = vmatmul.mubr.f32.gmra.mxu1 %v9498_v7  ;;  %v15046_v36 = vadd.f32 %v4186_v11, %v2945_v48  ;;  %v15049_v4 = vadd.f32 %v15012_v31, %v4050_v39  ;;  %v9504_v11 = vld [vmem:[#allocation2 + $0x118] sm:$0xff]  ;;  %v4205_v31 = vpop.f32.mrf.mxu0 }
 0x3e9   : > { %8780 = vmatprep.mubr.msk.f32.mxu1 %vm1565_vm1, %v9500_v6 }
 0x3ea   : > { %18021 = vst [vmem:[#allocation142_spill] sm:$0xff] %v15046_v36  ;;  %18022 = vst [vmem:[#allocation85_spill] sm:$0xff] %v15049_v4  ;;  %v4054_v60 = vpop.f32.mrf.mxu1  ;;  %5356 = vmatmul.mubr.f32.gmra.mxu0 %v9501_v1  ;;  %v18026_v4 = vld [vmem:[#allocation100_spill] sm:$0xff]  ;;  %v9507_v1 = vld [vmem:[#allocation2 + $0x168] sm:$0xff] }
 0x3eb   : > { %v4192_v55 = vadd.f32 %v4191_v51, %v4054_v60  ;;  %5361 = vmatprep.mubr.f32.mxu0 %v9503_v54  ;;  %v2957_v51 = vadd.f32 %v14802_v21, %v18026_v4  ;;  %v9506_v60 = vld [vmem:[#allocation2 + $0x110] sm:$0xff]  ;;  %v9508_v54 = vld [vmem:[#allocation2 + $0x138] sm:$0xff]  ;;  %v9511_v4 = vld [vmem:[#allocation2 + $0x188] sm:$0xff] }
 0x3ec   : > { %5481 = vmatmul.mubr.f32.gmra.mxu1 %v9502_v15  ;;  %v4056_v48 = vpop.f32.mrf.mxu1 }
 0x3ed   : > { %8781 = vmatprep.mubr.msk.f32.mxu1 %vm1565_vm1, %v9504_v11  ;;  %v15055_v39 = vadd.f32 %v4192_v55, %v2951_v40  ;;  %v15057_v7 = vadd.f32 %v4193_v38, %v4056_v48  ;;  %v9509_v48 = vld [vmem:[#allocation2 + $0x160] sm:$0xff] }
 0x3ee   : > { %5362 = vmatmul.mubr.f32.gmra.mxu0 %v9505_v22  ;;  %v4767_v43 = vpop.f32.mrf.mxu0  ;;  %v9510_v22 = vld [vmem:[#allocation2 + $0x130] sm:$0xff] }
 0x3ef   : > { %18024 = vst [vmem:[#allocation88_spill] sm:$0xff] %v15055_v39  ;;  %18025 = vst [vmem:[#allocation91_spill] sm:$0xff] %v15057_v7  ;;  %v4060_v6 = vpop.f32.mrf.mxu1  ;;  %5367 = vmatprep.mubr.f32.mxu0 %v9507_v1  ;;  %v18029_v1 = vld [vmem:[#allocation103_spill] sm:$0xff]  ;;  %v9513_v7 = vld [vmem:[#allocation2 + $0x180] sm:$0xff] }
 0x3f0   : > { %5487 = vmatmul.mubr.f32.gmra.mxu1 %v9506_v60  ;;  %v4198_v15 = vadd.f32 %v4197_v20, %v4060_v6  ;;  %v15062_v40 = vpop.f32.mrf.mxu0  ;;  %v9512_v60 = vld [vmem:[#allocation2 + $0x158] sm:$0xff] }
 0x3f1   : > { %8782 = vmatprep.mubr.msk.f32.mxu1 %vm1565_vm1, %v9508_v54  ;;  %v4062_v11 = vpop.f32.mrf.mxu1  ;;  %v2963_v54 = vadd.f32 %v14802_v21, %v18029_v1 }
 0x3f2   : > { %v15064_v38 = vadd.f32 %v4198_v15, %v2957_v51  ;;  %v15066_v55 = vadd.f32 %v4199_v34, %v4062_v11  ;;  %5368 = vmatmul.mubr.f32.gmra.mxu0 %v9509_v48  ;;  %v9514_v15 = vld [vmem:[#allocation2 + $0x150] sm:$0xff]  ;;  %v9515_v11 = vld [vmem:[#allocation2 + $0x1a8] sm:$0xff] }
 0x3f3   : > { %5373 = vmatprep.mubr.f32.mxu0 %v9511_v4  ;;  %v9516_v4 = vld [vmem:[#allocation2 + $0x178] sm:$0xff] }
 0x3f4   : > { %18027 = vst [vmem:[#allocation94_spill] sm:$0xff] %v15064_v38  ;;  %18028 = vst [vmem:[#allocation97_spill] sm:$0xff] %v15066_v55  ;;  %5493 = vmatmul.mubr.f32.gmra.mxu1 %v9510_v22  ;;  %v4066_v20 = vpop.f32.mrf.mxu1 }
 0x3f5   : > { %8783 = vmatprep.mubr.msk.f32.mxu1 %vm1565_vm1, %v9512_v60  ;;  %v4773_v6 = vpop.f32.mrf.mxu0  ;;  %v4204_v39 = vadd.f32 %v4203_v24, %v4066_v20  ;;  %v9517_v60 = vld [vmem:[#allocation2 + $0x1a0] sm:$0xff]  ;;  %v9518_v20 = vld [vmem:[#allocation2 + $0x170] sm:$0xff] }
 0x3f6   : > { %5374 = vmatmul.mubr.f32.gmra.mxu0 %v9513_v7  ;;  %v4068_v51 = vpop.f32.mrf.mxu1  ;;  %v9519_v7 = vld [vmem:[#allocation2 + $0x198] sm:$0xff] }
 0x3f7   : > { %v15071_v34 = vpop.f32.mrf.mxu0  ;;  %5379 = vmatprep.mubr.f32.mxu0 %v9515_v11  ;;  %v15073_v48 = vadd.f32 %v4204_v39, %v2963_v54  ;;  %v15075_v22 = vadd.f32 %v4205_v31, %v4068_v51  ;;  %v9520_v54 = vld [vmem:[#allocation2 + $0x190] sm:$0xff] }
 0x3f8   : > { %5499 = vmatmul.mubr.f32.gmra.mxu1 %v9514_v15  ;;  %v18032_v11 = vld [vmem:[#allocation110_spill] sm:$0xff] }
 0x3f9   : > { %18030 = vst [vmem:[#allocation100_spill] sm:$0xff] %v15073_v48  ;;  %18031 = vst [vmem:[#allocation103_spill] sm:$0xff] %v15075_v22  ;;  %8784 = vmatprep.mubr.msk.f32.mxu1 %vm1565_vm1, %v9516_v4 }
 0x3fa   : > { %5380 = vmatmul.mubr.f32.gmra.mxu0 %v9517_v60  ;;  %v4904_v24 = vpop.f32.mrf.mxu1 }
 0x3fb   : > { %v4779_v21 = vpop.f32.mrf.mxu0  ;;  %v4905_v39 = vadd.f32 %v4904_v24, %v4767_v43 }
 0x3fc   : > { %5505 = vmatmul.mubr.f32.gmra.mxu1 %v9518_v20  ;;  %v15081_v15 = vpop.f32.mrf.mxu1 }
 0x3fd   : > { %8785 = vmatprep.mubr.msk.f32.mxu1 %vm1565_vm1, %v9519_v7  ;;  %v15079_v1 = vpop.f32.mrf.mxu0  ;;  %v5523_v4 = vadd.f32 %v4905_v39, %v18032_v11  ;;  %v18033_v7 = vld [vmem:[#allocation112_spill] sm:$0xff]  ;;  %v18035_v39 = vld [vmem:[#allocation33_spill] sm:$0xff] }
 0x3ff   : > { %v5595_v38 = vmax.f32 %v5523_v4, 0.0 }
 0x400   : > { %5511 = vmatmul.mubr.f32.gmra.mxu1 %v9520_v54  ;;  %v4910_v51 = vpop.f32.mrf.mxu1 }
 0x401   : > { %8786 = vmatprep.mubr.msk.f32.mxu1 %vm1565_vm1, %v14425_v33  ;;  %v4785_v31 = vpop.f32.mrf.mxu0  ;;  %v4911_v60 = vadd.f32 %v4910_v51, %v4773_v6 }
 0x402   : > { %v15088_v20 = vpop.f32.mrf.mxu1 }
 0x403   : > { %v15086_v48 = vpop.f32.mrf.mxu0  ;;  %v5529_v22 = vadd.f32 %v4911_v60, %v18033_v7  ;;  %v18037_v60 = vld [vmem:[#allocation36_spill] sm:$0xff] }
 0x404   : > { %5517 = vmatmul.mubr.f32.gmra.mxu1 %v14454_v29  ;;  %v18036_v29 = vld [vmem:[#allocation9_spill] sm:$0xff] }
 0x405   : > { %v5601_v43 = vmax.f32 %v5529_v22, 0.0  ;;  %v2270_v4 = vadd.f32 %v18037_v60, %v18036_v29  ;;  %v18038_v22 = vld [vmem:[#allocation35_spill] sm:$0xff] }
 0x406   : > { %v4916_v54 = vpop.f32.mrf.mxu1 }
 0x407   : > { %v4791_v24 = vpop.f32.mrf.mxu0  ;;  %v4917_v55 = vadd.f32 %v4916_v54, %v4779_v21  ;;  %v15092_v36 = vmax.f32 %v5595_v38, %v5601_v43  ;;  %v18039_v21 = vsub.s32 1, %v17998_v0  ;;  %v18040_v43 = vld [vmem:[#allocation117_spill] sm:$0xff]  ;;  %v18041_v54 = vld [vmem:[#allocation108_spill] sm:$0xff] }
 0x408   : > { %v15094_v10 = vpop.f32.mrf.mxu1  ;;  %v3616_v28 = vadd.f32 %v18041_v54, %v18040_v43  ;;  %v18047_v43 = vld [vmem:[#allocation111_spill] sm:$0xff] }
 0x409   : > { %18034 = vst [vmem:[#allocation110_spill] sm:$0xff] %v15092_v36  ;;  %v4793_v33 = vpop.f32.mrf.mxu0  ;;  %v5535_v6 = vadd.f32 %v4917_v55, %v18035_v39  ;;  %v15105_v38 = vrot.slane %v14799_v53, %v18039_v21  ;;  %v18045_v53 = vld [vmem:[#allocation37_spill] sm:$0xff] }
 0x40b   : > { %v5607_v55 = vmax.f32 %v5535_v6, 0.0  ;;  %v3622_v6 = vadd.f32 %v18047_v43, %v18046_v5 }
 0x40c   : > { %v4922_v11 = vpop.f32.mrf.mxu1 }
 0x40d   : > { %v4797_v51 = vpop.f32.mrf.mxu0  ;;  %v4923_v56 = vadd.f32 %v4922_v11, %v4785_v31  ;;  %v2918_v11 = vadd.f32 %v15105_v38, %v2270_v4 }
 0x40e   : > { %v15097_v61 = vpop.f32.mrf.mxu1 }
 0x40f   : > { %v4799_v52 = vpop.f32.mrf.mxu0  ;;  %v5541_v7 = vadd.f32 %v4923_v56, %v18038_v22  ;;  %v18043_v56 = vld [vmem:[#allocation10_spill] sm:$0xff]  ;;  %v4233_v63 = vadd.f32 %v3616_v28, %v2918_v11 }
 0x410   : > { %v18044_v22 = vld [vmem:[#allocation38_spill] sm:$0xff] }
 0x411   : > { %v5613_v39 = vmax.f32 %v5541_v7, 0.0  ;;  %v2276_v13 = vadd.f32 %v18044_v22, %v18043_v56  ;;  %v18050_v56 = vld [vmem:[#allocation39_spill] sm:$0xff] }
 0x412   : > { %v4928_v31 = vpop.f32.mrf.mxu1 }
 0x413   : > { %v4803_v45 = vpop.f32.mrf.mxu0  ;;  %v4929_v41 = vadd.f32 %v4928_v31, %v4791_v24  ;;  %v15110_v2 = vmax.f32 %v5607_v55, %v5613_v39  ;;  %v2924_v4 = vadd.f32 %v15105_v38, %v2276_v13  ;;  %v18048_v55 = vld [vmem:[#allocation11_spill] sm:$0xff]  ;;  %v18049_v39 = vld [vmem:[#allocation40_spill] sm:$0xff] }
 0x414   : > { %v4930_v60 = vpop.f32.mrf.mxu1  ;;  %v2282_v31 = vadd.f32 %v18049_v39, %v18048_v55  ;;  %v18054_v39 = vld [vmem:[#allocation12_spill] sm:$0xff] }
 0x415   : > { %18042 = vst [vmem:[#allocation112_spill] sm:$0xff] %v15110_v2  ;;  %v4805_v29 = vpop.f32.mrf.mxu0  ;;  %v5547_v21 = vadd.f32 %v4929_v41, %v18045_v53  ;;  %v4931_v62 = vadd.f32 %v4930_v60, %v4793_v33  ;;  %v4239_v44 = vadd.f32 %v3622_v6, %v2924_v4  ;;  %v18051_v41 = vld [vmem:[#allocation121_spill] sm:$0xff]  ;;  %v18055_v6 = vld [vmem:[#allocation42_spill] sm:$0xff] }
 0x416   : > { %v18052_v33 = vld [vmem:[#allocation113_spill] sm:$0xff]  ;;  %v2288_v4 = vadd.f32 %v18055_v6, %v18054_v39 }
 0x417   : > { %v5548_v7 = vadd.f32 %v4931_v62, %v4233_v63  ;;  %v3628_v60 = vadd.f32 %v18052_v33, %v18051_v41  ;;  %v5619_v22 = vmax.f32 %v5547_v21, 0.0  ;;  %v2930_v62 = vadd.f32 %v15105_v38, %v2282_v31  ;;  %v18057_v21 = vld [vmem:[#allocation41_spill] sm:$0xff]  ;;  %v18059_v31 = vld [vmem:[#allocation116_spill] sm:$0xff] }
 0x418   : > { %v4934_v3 = vpop.f32.mrf.mxu1 }
 0x419   : > { %v4809_v54 = vpop.f32.mrf.mxu0  ;;  %v4935_v24 = vadd.f32 %v4934_v3, %v4797_v51  ;;  %v5620_v3 = vmax.f32 %v5548_v7, 0.0 }
 0x41a   : > { %v4936_v8 = vpop.f32.mrf.mxu1 }
 0x41b   : > { %v4811_v2 = vpop.f32.mrf.mxu0  ;;  %v5553_v28 = vadd.f32 %v4935_v24, %v18050_v56  ;;  %v4937_v11 = vadd.f32 %v4936_v8, %v4799_v52  ;;  %v4245_v52 = vadd.f32 %v3628_v60, %v2930_v62  ;;  %v18062_v62 = vld [vmem:[#allocation43_spill] sm:$0xff] }
 0x41d   : > { %v5625_v5 = vmax.f32 %v5553_v28, 0.0  ;;  %v5554_v63 = vadd.f32 %v4937_v11, %v4239_v44  ;;  %v18058_v11 = vld [vmem:[#allocation122_spill] sm:$0xff] }
 0x41e   : > { %v4940_v13 = vpop.f32.mrf.mxu1  ;;  %v3634_v41 = vadd.f32 %v18059_v31, %v18058_v11 }
 0x41f   : > { %v4815_v53 = vpop.f32.mrf.mxu0  ;;  %v5626_v51 = vmax.f32 %v5554_v63, 0.0  ;;  %v4941_v43 = vadd.f32 %v4940_v13, %v4803_v45  ;;  %v15124_v55 = vmax.f32 %v5619_v22, %v5625_v5  ;;  %v2936_v45 = vadd.f32 %v15105_v38, %v2288_v4  ;;  %v18060_v5 = vld [vmem:[#allocation13_spill] sm:$0xff]  ;;  %v18061_v13 = vld [vmem:[#allocation44_spill] sm:$0xff] }
 0x420   : > { %v4942_v8 = vpop.f32.mrf.mxu1  ;;  %v2294_v39 = vadd.f32 %v18061_v13, %v18060_v5  ;;  %v18066_v13 = vld [vmem:[#allocation14_spill] sm:$0xff] }
 0x421   : > { %18053 = vst [vmem:[#allocation33_spill] sm:$0xff] %v15124_v55  ;;  %v4817_v24 = vpop.f32.mrf.mxu0  ;;  %v15128_v56 = vmax.f32 %v5620_v3, %v5626_v51  ;;  %v5559_v28 = vadd.f32 %v4941_v43, %v18057_v21  ;;  %v4943_v44 = vadd.f32 %v4942_v8, %v4805_v29  ;;  %v4251_v60 = vadd.f32 %v3634_v41, %v2936_v45  ;;  %v18063_v43 = vld [vmem:[#allocation124_spill] sm:$0xff]  ;;  %v18064_v29 = vld [vmem:[#allocation118_spill] sm:$0xff] }
 0x422   : > { %v3640_v8 = vadd.f32 %v18064_v29, %v18063_v43  ;;  %v18067_v41 = vld [vmem:[#allocation46_spill] sm:$0xff] }
 0x423   : > { %18056 = vst [vmem:[#allocation9_spill] sm:$0xff] %v15128_v56  ;;  %v5560_v33 = vadd.f32 %v4943_v44, %v4245_v52  ;;  %v5631_v21 = vmax.f32 %v5559_v28, 0.0  ;;  %v2942_v44 = vadd.f32 %v15105_v38, %v2294_v39  ;;  %v2300_v45 = vadd.f32 %v18067_v41, %v18066_v13  ;;  %v18069_v28 = vld [vmem:[#allocation45_spill] sm:$0xff]  ;;  %v18071_v39 = vld [vmem:[#allocation120_spill] sm:$0xff] }
 0x424   : > { %v4946_v63 = vpop.f32.mrf.mxu1 }
 0x425   : > { %v4821_v7 = vpop.f32.mrf.mxu0  ;;  %v4947_v22 = vadd.f32 %v4946_v63, %v4809_v54  ;;  %v5632_v54 = vmax.f32 %v5560_v33, 0.0 }
 0x426   : > { %v4948_v55 = vpop.f32.mrf.mxu1 }
 0x427   : > { %v4823_v6 = vpop.f32.mrf.mxu0  ;;  %v5565_v3 = vadd.f32 %v4947_v22, %v18062_v62  ;;  %v4949_v51 = vadd.f32 %v4948_v55, %v4811_v2  ;;  %v4257_v55 = vadd.f32 %v3640_v8, %v2942_v44  ;;  %v18074_v8 = vld [vmem:[#allocation47_spill] sm:$0xff] }
 0x429   : > { %v5637_v11 = vmax.f32 %v5565_v3, 0.0  ;;  %v5566_v52 = vadd.f32 %v4949_v51, %v4251_v60  ;;  %v18070_v51 = vld [vmem:[#allocation125_spill] sm:$0xff] }
 0x42a   : > { %v4952_v4 = vpop.f32.mrf.mxu1  ;;  %v3646_v43 = vadd.f32 %v18071_v39, %v18070_v51 }
 0x42b   : > { %v4827_v31 = vpop.f32.mrf.mxu0  ;;  %v5638_v63 = vmax.f32 %v5566_v52, 0.0  ;;  %v4953_v56 = vadd.f32 %v4952_v4, %v4815_v53  ;;  %v15140_v5 = vmax.f32 %v5631_v21, %v5637_v11  ;;  %v2948_v53 = vadd.f32 %v15105_v38, %v2300_v45  ;;  %v18072_v11 = vld [vmem:[#allocation15_spill] sm:$0xff]  ;;  %v18073_v4 = vld [vmem:[#allocation17_spill] sm:$0xff] }
 0x42c   : > { %v4954_v2 = vpop.f32.mrf.mxu1  ;;  %v2306_v13 = vadd.f32 %v18073_v4, %v18072_v11 }
 0x42d   : > { %18065 = vst [vmem:[#allocation36_spill] sm:$0xff] %v15140_v5  ;;  %v4829_v22 = vpop.f32.mrf.mxu0  ;;  %v15144_v62 = vmax.f32 %v5632_v54, %v5638_v63  ;;  %v5571_v3 = vadd.f32 %v4953_v56, %v18069_v28  ;;  %v4955_v60 = vadd.f32 %v4954_v2, %v4817_v24  ;;  %v4263_v5 = vadd.f32 %v3646_v43, %v2948_v53  ;;  %v18075_v56 = vld [vmem:[#allocation127_spill] sm:$0xff]  ;;  %v18078_v43 = vld [vmem:[#allocation16_spill] sm:$0xff]  ;;  %v18079_v53 = vld [vmem:[#allocation53_spill] sm:$0xff] }
 0x42e   : > { %v18076_v24 = vld [vmem:[#allocation123_spill] sm:$0xff] }
 0x42f   : > { %18068 = vst [vmem:[#allocation35_spill] sm:$0xff] %v15144_v62  ;;  %v5572_v29 = vadd.f32 %v4955_v60, %v4257_v55  ;;  %v3652_v2 = vadd.f32 %v18076_v24, %v18075_v56  ;;  %v5643_v28 = vmax.f32 %v5571_v3, 0.0  ;;  %v2954_v60 = vadd.f32 %v15105_v38, %v2306_v13  ;;  %v18081_v3 = vld [vmem:[#allocation49_spill] sm:$0xff] }
 0x430   : > { %v4958_v52 = vpop.f32.mrf.mxu1  ;;  %v18082_v13 = vld [vmem:[#allocation129_spill] sm:$0xff] }
 0x431   : > { %v4833_v33 = vpop.f32.mrf.mxu0  ;;  %v4959_v21 = vadd.f32 %v4958_v52, %v4821_v7  ;;  %v5644_v45 = vmax.f32 %v5572_v29, 0.0  ;;  %v4269_v4 = vadd.f32 %v3652_v2, %v2954_v60 }
 0x432   : > { %v4960_v41 = vpop.f32.mrf.mxu1 }
 0x433   : > { %v5577_v44 = vadd.f32 %v4959_v21, %v18074_v8  ;;  %v4835_v54 = vpop.f32.mrf.mxu0  ;;  %v4961_v63 = vadd.f32 %v4960_v41, %v4823_v6  ;;  %v2312_v21 = vadd.f32 %v18079_v53, %v18078_v43  ;;  %v18084_v43 = vld [vmem:[#allocation50_spill] sm:$0xff] }
 0x435   : > { %v5649_v51 = vmax.f32 %v5577_v44, 0.0  ;;  %v5578_v55 = vadd.f32 %v4961_v63, %v4263_v5  ;;  %v18083_v63 = vld [vmem:[#allocation126_spill] sm:$0xff]  ;;  %v2960_v24 = vadd.f32 %v15105_v38, %v2312_v21 }
 0x436   : > { %v4964_v39 = vpop.f32.mrf.mxu1  ;;  %v3658_v29 = vadd.f32 %v18083_v63, %v18082_v13  ;;  %v5943_v63 = vld [vmem:[%s17664_s5 + $0xf0] sm:$0xff] }
 0x437   : > { %v5650_v7 = vmax.f32 %v5578_v55, 0.0  ;;  %v4965_v52 = vadd.f32 %v4964_v39, %v4827_v31  ;;  %v15156_v62 = vpop.f32.mrf.mxu0  ;;  %v15158_v11 = vmax.f32 %v5643_v28, %v5649_v51 }
 0x438   : > { %v4966_v6 = vpop.f32.mrf.mxu1  ;;  %v4275_v39 = vadd.f32 %v3658_v29, %v2960_v24  ;;  %v5927_v29 = vld [vmem:[%s17664_s5 + $0x70] sm:$0xff]  ;;  %v5926_v24 = vld [vmem:[%s17664_s5 + $0x68] sm:$0xff] }
 0x439   : > { %18077 = vst [vmem:[#allocation117_spill] sm:$0xff] %v15158_v11  ;;  %v15162_v41 = vmax.f32 %v5644_v45, %v5650_v7  ;;  %v5583_v8 = vadd.f32 %v4965_v52, %v18081_v3  ;;  %v4967_v5 = vadd.f32 %v4966_v6, %v4829_v22  ;;  %v5180_v44 = vpop.f32.mrf.mxu0  ;;  %v18103_v11 = vld [vmem:[#allocation114_spill] sm:$0xff] }
 0x43b   : > { %18080 = vst [vmem:[#allocation108_spill] sm:$0xff] %v15162_v41  ;;  %v5584_v56 = vadd.f32 %v4967_v5, %v4269_v4  ;;  %v5655_v7 = vmax.f32 %v5583_v8, 0.0  ;;  %v5928_v8 = vld [vmem:[%s17664_s5 + $0x78] sm:$0xff]  ;;  %v18104_v41 = vld [vmem:[#allocation105_spill] sm:$0xff] }
 0x43c   : > { %v4970_v31 = vpop.f32.mrf.mxu1 }
 0x43d   : > { %v4971_v28 = vadd.f32 %v4970_v31, %v4833_v33  ;;  %v15168_v51 = vpop.f32.mrf.mxu0  ;;  %v5656_v6 = vmax.f32 %v5584_v56, 0.0  ;;  %v5942_v31 = vld [vmem:[%s17664_s5 + $0xe8] sm:$0xff] }
 0x43e   : > { %v4972_v55 = vpop.f32.mrf.mxu1 }
 0x43f   : > { %v5589_v2 = vadd.f32 %v4971_v28, %v18084_v43  ;;  %v4973_v60 = vadd.f32 %v4972_v55, %v4835_v54  ;;  %v15171_v45 = vpop.f32.mrf.mxu0  ;;  %v5944_v54 = vld [vmem:[%s17664_s5 + $0xf8] sm:$0xff]  ;;  %v5941_v28 = vld [vmem:[%s17664_s5 + $0xe0] sm:$0xff] }
 0x440   : > { %8800 = vmatprep.subr.mxu1 %v5944_v54  ;;  %v18087_v55 = vld [vmem:[#allocation28_spill] sm:$0xff] }
 0x441   : > { %v5661_v22 = vmax.f32 %v5589_v2, 0.0  ;;  %v5590_v52 = vadd.f32 %v4973_v60, %v4275_v39  ;;  %8801 = vmatpush3.msra.mxu1 %v5928_v8  ;;  %v18088_v39 = vld [vmem:[#allocation8_spill] sm:$0xff]  ;;  %v18089_v60 = vld [vmem:[#allocation6_spill] sm:$0xff] }
 0x442   : > { %8802 = vmatprep.subr.mxu1 %v5943_v63  ;;  %v2252_v43 = vadd.f32 %v18088_v39, %v18087_v55  ;;  %v5925_v2 = vld [vmem:[%s17664_s5 + $0x60] sm:$0xff]  ;;  %v5924_v63 = vld [vmem:[%s17664_s5 + $0x58] sm:$0xff]  ;;  %v18093_v55 = vld [vmem:[#allocation109_spill] sm:$0xff] }
 0x443   : > { %v15173_v53 = vpop.f32.mrf.mxu0  ;;  %v5662_v4 = vmax.f32 %v5590_v52, 0.0  ;;  %v15175_v3 = vmax.f32 %v5655_v7, %v5661_v22  ;;  %8803 = vmatpush3.msra.mxu1 %v5927_v29  ;;  %v18090_v7 = vld [vmem:[#allocation30_spill] sm:$0xff]  ;;  %v18092_v54 = vld [vmem:[#allocation104_spill] sm:$0xff] }
 0x444   : > { %8804 = vmatprep.subr.mxu1 %v5942_v31  ;;  %v2246_v22 = vadd.f32 %v18090_v7, %v18089_v60  ;;  %v5939_v31 = vld [vmem:[%s17664_s5 + $0xd0] sm:$0xff]  ;;  %v4913_v7 = vadd.f32 %v15088_v20, %v15071_v34 }
 0x445   : > { %18085 = vst [vmem:[#allocation10_spill] sm:$0xff] %v15175_v3  ;;  %v15177_v21 = vpop.f32.mrf.mxu0  ;;  %v15179_v33 = vmax.f32 %v5656_v6, %v5662_v4  ;;  %8805 = vmatpush3.msra.mxu1 %v5926_v24  ;;  %v5940_v6 = vld [vmem:[%s17664_s5 + $0xd8] sm:$0xff]  ;;  %v2900_v24 = vadd.f32 %v15105_v38, %v2252_v43  ;;  %v18094_v39 = vld [vmem:[#allocation102_spill] sm:$0xff]  ;;  %v5938_v43 = vld [vmem:[%s17664_s5 + $0xc8] sm:$0xff] }
 0x446   : > { %v18091_v4 = vld [vmem:[#allocation31_spill] sm:$0xff]  ;;  %8806 = vmatprep.subr.mxu1 %v5941_v28  ;;  %v3592_v60 = vadd.f32 %v18094_v39, %v18093_v55  ;;  %v5923_v28 = vld [vmem:[%s17664_s5 + $0x50] sm:$0xff]  ;;  %v4907_v55 = vadd.f32 %v15081_v15, %v15062_v40  ;;  %v5921_v40 = vld [vmem:[%s17664_s5 + $0x40] sm:$0xff] }
 0x447   : > { %18086 = vst [vmem:[#allocation38_spill] sm:$0xff] %v15179_v33  ;;  %v3598_v8 = vadd.f32 %v18092_v54, %v18091_v4  ;;  %8807 = vmatpush3.msra.mxu1 %v5925_v2  ;;  %v2894_v4 = vadd.f32 %v15105_v38, %v2246_v22  ;;  %v5922_v22 = vld [vmem:[%s17664_s5 + $0x48] sm:$0xff] }
 0x448   : > { %v15181_v5 = vpop.f32.mrf.mxu0  ;;  %8808 = vmatprep.subr.mxu1 %v5940_v6  ;;  %v5937_v6 = vld [vmem:[%s17664_s5 + $0xc0] sm:$0xff] }
 0x449   : > { %8809 = vmatpush3.msra.mxu1 %v5924_v63  ;;  %v4215_v3 = vadd.f32 %v3598_v8, %v2900_v24  ;;  %v4209_v63 = vadd.f32 %v3592_v60, %v2894_v4  ;;  %v18096_v60 = vld [vmem:[#allocation7_spill] sm:$0xff] }
 0x44a   : > { %v15183_v13 = vpop.f32.mrf.mxu0  ;;  %8810 = vmatprep.subr.mxu1 %v5939_v31 }
 0x44b   : > { %8811 = vmatpush3.msra.mxu1 %v5923_v28  ;;  %v5530_v39 = vadd.f32 %v4913_v7, %v4215_v3  ;;  %v5524_v8 = vadd.f32 %v4907_v55, %v4209_v63  ;;  %v5920_v3 = vld [vmem:[%s17664_s5 + $0x38] sm:$0xff]  ;;  %v18097_v7 = vld [vmem:[#allocation34_spill] sm:$0xff]  ;;  %v18098_v55 = vld [vmem:[#allocation137_spill] sm:$0xff] }
 0x44c   : > { %8812 = vmatprep.subr.mxu1 %v5938_v43  ;;  %v2264_v28 = vadd.f32 %v18097_v7, %v18096_v60  ;;  %v18100_v63 = vld [vmem:[#allocation32_spill] sm:$0xff] }
 0x44d   : > { %v15197_v56 = vpop.f32.mrf.mxu0  ;;  %8813 = vmatpush3.msra.mxu1 %v5922_v22  ;;  %v5602_v43 = vmax.f32 %v5530_v39, 0.0  ;;  %v5976_v22 = vld [vmem:[%s17664_s5 + $0x1f8] sm:$0xff]  ;;  %v5934_v39 = vld [vmem:[%s17664_s5 + $0xa8] sm:$0xff]  ;;  %v5596_v7 = vmax.f32 %v5524_v8, 0.0  ;;  %v4925_v8 = vadd.f32 %v15097_v61, %v15086_v48 }
 0x44e   : > { %8814 = vmatprep.subr.mxu1 %v5937_v6  ;;  %v18099_v6 = vld [vmem:[#allocation29_spill] sm:$0xff]  ;;  %8835 = vmatprep.subr.mxu0 %v5976_v22  ;;  %v5933_v22 = vld [vmem:[%s17664_s5 + $0xa0] sm:$0xff]  ;;  %v5932_v61 = vld [vmem:[%s17664_s5 + $0x98] sm:$0xff] }
 0x44f   : > { %v15215_v52 = vpop.f32.mrf.mxu0  ;;  %8815 = vmatpush3.msra.mxu1 %v5921_v40 }
 0x452   : > { %v15237_v2 = vpop.f32.mrf.mxu0 }
 0x454   : > { %v15256_v15 = vpop.f32.mrf.mxu0 }
 0x456   : > { %v5041_v29 = vpop.f32.mrf.mxu1 }
 0x457   : > { %v5179_v34 = vadd.f32 %v15156_v62, %v5041_v29  ;;  %v18095_v29 = vld [vmem:[#allocation133_spill] sm:$0xff]  ;;  %v15282_v40 = vpop.f32.mrf.mxu0 }
 0x458   : > { %v5043_v54 = vpop.f32.mrf.mxu1 }
 0x459   : > { %v15245_v20 = vadd.f32 %v5180_v44, %v5043_v54  ;;  %v5936_v44 = vld [vmem:[%s17664_s5 + $0xb8] sm:$0xff]  ;;  %v5525_v31 = vadd.f32 %v5179_v34, %v18095_v29  ;;  %v5935_v54 = vld [vmem:[%s17664_s5 + $0xb0] sm:$0xff] }
 0x45a   : > { %8816 = vmatprep.subr.mxu1 %v5936_v44  ;;  %v5960_v44 = vld [vmem:[%s17664_s5 + $0x178] sm:$0xff] }
 0x45b   : > { %8817 = vmatpush3.msra.mxu1 %v5920_v3  ;;  %v18101_v29 = vld [vmem:[#allocation115_spill] sm:$0xff]  ;;  %v5918_v3 = vld [vmem:[%s17664_s5 + $0x28] sm:$0xff]  ;;  %8836 = vmatpush3.msra.mxu0 %v5960_v44 }
 0x45c   : > { %8818 = vmatprep.subr.mxu1 %v5935_v54 }
 0x45d   : > { %v5047_v62 = vpop.f32.mrf.mxu1 }
 0x45e   : > { %v5185_v24 = vadd.f32 %v15168_v51, %v5047_v62  ;;  %v5919_v51 = vld [vmem:[%s17664_s5 + $0x30] sm:$0xff]  ;;  %v2258_v62 = vadd.f32 %v18100_v63, %v18099_v6  ;;  %v2912_v6 = vadd.f32 %v15105_v38, %v2264_v28  ;;  %v5917_v28 = vld [vmem:[%s17664_s5 + $0x20] sm:$0xff] }
 0x45f   : > { %v15268_v4 = vpop.f32.mrf.mxu1  ;;  %8819 = vmatpush3.msra.mxu1 %v5919_v51  ;;  %v15311_v51 = vpop.f32.mrf.mxu0 }
 0x460   : > { %v5531_v34 = vadd.f32 %v5185_v24, %v18098_v55  ;;  %v18102_v24 = vld [vmem:[#allocation106_spill] sm:$0xff]  ;;  %v5597_v55 = vmax.f32 %v5525_v31, 0.0  ;;  %v15303_v31 = vmax.f32 %v5596_v7, %v5602_v43  ;;  %8820 = vmatprep.subr.mxu1 %v5934_v39  ;;  %18107 = vst [vmem:[#allocation111_spill] sm:$0xff] %v15311_v51 }
 0x461   : > { %v3610_v60 = vadd.f32 %v18102_v24, %v18101_v29  ;;  %v3604_v29 = vadd.f32 %v18104_v41, %v18103_v11  ;;  %8821 = vmatpush3.msra.mxu1 %v5918_v3  ;;  %v4919_v11 = vadd.f32 %v15094_v10, %v15079_v1  ;;  %v5931_v43 = vld [vmem:[%s17664_s5 + $0x90] sm:$0xff]  ;;  %v5974_v24 = vld [vmem:[%s17664_s5 + $0x1e8] sm:$0xff] }
 0x462   : > { %v5603_v33 = vmax.f32 %v5531_v34, 0.0  ;;  %18105 = vst [vmem:[#allocation37_spill] sm:$0xff] %v15303_v31  ;;  %v2906_v34 = vadd.f32 %v15105_v38, %v2258_v62  ;;  %8822 = vmatprep.subr.mxu1 %v5933_v22  ;;  %v5916_v38 = vld [vmem:[%s17664_s5 + $0x18] sm:$0xff]  ;;  %v5975_v62 = vld [vmem:[%s17664_s5 + $0x1f0] sm:$0xff] }
 0x463   : > { %v5053_v63 = vpop.f32.mrf.mxu1  ;;  %v4227_v48 = vadd.f32 %v3610_v60, %v2912_v6  ;;  %8823 = vmatpush3.msra.mxu1 %v5917_v28  ;;  %v5959_v39 = vld [vmem:[%s17664_s5 + $0x170] sm:$0xff]  ;;  %v15342_v60 = vpop.f32.mrf.mxu0  ;;  %8837 = vmatprep.subr.mxu0 %v5975_v62  ;;  %v18108_v6 = vld [vmem:[#allocation141_spill] sm:$0xff] }
 0x464   : > { %v15305_v54 = vmax.f32 %v5597_v55, %v5603_v33  ;;  %v5191_v41 = vadd.f32 %v15173_v53, %v5053_v63  ;;  %v4221_v10 = vadd.f32 %v3604_v29, %v2906_v34  ;;  %8824 = vmatprep.subr.mxu1 %v5932_v61  ;;  %v5915_v53 = vld [vmem:[%s17664_s5 + $0x10] sm:$0xff]  ;;  %v5930_v55 = vld [vmem:[%s17664_s5 + $0x88] sm:$0xff]  ;;  %8838 = vmatpush3.msra.mxu0 %v5959_v39  ;;  %v5929_v34 = vld [vmem:[%s17664_s5 + $0x80] sm:$0xff] }
 0x465   : > { %v15313_v44 = vpop.f32.mrf.mxu1  ;;  %v5542_v1 = vadd.f32 %v4925_v8, %v4227_v48  ;;  %8825 = vmatpush3.msra.mxu1 %v5916_v38  ;;  %v5914_v29 = vld [vmem:[%s17664_s5 + $0x8] sm:$0xff]  ;;  %8839 = vmatprep.subr.mxu0 %v5974_v24  ;;  %v18112_v24 = vmov 0.0  }
 0x466   : > { %18106 = vst [vmem:[#allocation119_spill] sm:$0xff] %v15305_v54  ;;  %v9318_v33 = vpack.i.bf16 %v15305_v54, %v15303_v31  ;;  %v5536_v3 = vadd.f32 %v4919_v11, %v4221_v10  ;;  %v5537_v63 = vadd.f32 %v5191_v41, %v18108_v6  ;;  %8826 = vmatprep.subr.mxu1 %v5931_v43  ;;  %v5958_v8 = vld [vmem:[%s17664_s5 + $0x168] sm:$0xff]  ;;  %v5913_v11 = vld [vmem:[%s17664_s5] sm:$0xff]  ;;  %v5956_v10 = vld [vmem:[%s17664_s5 + $0x158] sm:$0xff] }
 0x467   : > { %8827 = vmatpush3.msra.mxu1 %v5915_v53  ;;  %v5614_v61 = vmax.f32 %v5542_v1, 0.0  ;;  %v5957_v41 = vld [vmem:[%s17664_s5 + $0x160] sm:$0xff]  ;;  %8840 = vmatpush3.msra.mxu0 %v5958_v8  ;;  %v5955_v6 = vld [vmem:[%s17664_s5 + $0x150] sm:$0xff]  ;;  %v5954_v8 = vld [vmem:[%s17664_s5 + $0x148] sm:$0xff] }
 0x468   : > { %9319 = vrot.lane.b32.xlu0 %v9318_v33, %s9585_s29  ;;  %8828 = vmatprep.subr.mxu1 %v5930_v55  ;;  %v15372_v33 = vpop.f32.mrf.mxu0  ;;  %v5608_v38 = vmax.f32 %v5536_v3, 0.0  ;;  %v5609_v43 = vmax.f32 %v5537_v63, 0.0 }
 0x469   : > { %v5059_v7 = vpop.f32.mrf.mxu1  ;;  %18109 = vst [vmem:[#allocation11_spill] sm:$0xff] %v15372_v33  ;;  %8829 = vmatpush3.msra.mxu1 %v5914_v29  ;;  %v5970_v29 = vld [vmem:[%s17664_s5 + $0x1c8] sm:$0xff] }
 0x46a   : > { %v5197_v22 = vadd.f32 %v15181_v5, %v5059_v7  ;;  %v5973_v5 = vld [vmem:[%s17664_s5 + $0x1e0] sm:$0xff]  ;;  %8830 = vmatprep.subr.mxu1 %v5929_v34  ;;  %v15380_v53 = vmax.f32 %v5608_v38, %v5614_v61  ;;  %v5971_v7 = vld [vmem:[%s17664_s5 + $0x1d0] sm:$0xff]  ;;  %v5226_v55 = vpop.f32.mrf.mxu0 }
 0x46b   : > { %v15355_v28 = vpop.f32.mrf.mxu1  ;;  %8841 = vmatprep.subr.mxu0 %v5973_v5  ;;  %8831 = vmatpush3.msra.mxu1 %v5913_v11 }
 0x46c   : > { %v5543_v48 = vadd.f32 %v5197_v22, %v14376_v32  ;;  %5739 = vrot.lane.b32.xlu0 %v15092_v36, %s9585_s29  ;;  %v5972_v32 = vld [vmem:[%s17664_s5 + $0x1d8] sm:$0xff]  ;;  %8842 = vmatpush3.msra.mxu0 %v5957_v41  ;;  %18110 = vst [vmem:[#allocation40_spill] sm:$0xff] %v15380_v53  ;;  %v15403_v34 = vpop.f32.mrf.mxu0  ;;  %v5953_v41 = vld [vmem:[%s17664_s5 + $0x140] sm:$0xff] }
 0x46d   : > { %6584 = vmatprep.subr.mxu1 %v18112_v24  ;;  %8843 = vmatprep.subr.mxu0 %v5972_v32  ;;  %18113 = vst [vmem:[#allocation121_spill] sm:$0xff] %v15403_v34  ;;  %v18136_v34 = vld [vmem:[#allocation26_spill] sm:$0xff] }
 0x46e   : > { %v5615_v62 = vmax.f32 %v5543_v48, 0.0  ;;  %8844 = vmatpush3.msra.mxu0 %v5956_v10  ;;  %v5969_v48 = vld [vmem:[%s17664_s5 + $0x1c0] sm:$0xff]  ;;  %v5232_v38 = vpop.f32.mrf.mxu0 }
 0x46f   : > { %v5065_v1 = vpop.f32.mrf.mxu1  ;;  %8845 = vmatprep.subr.mxu0 %v5971_v7 }
 0x470   : > { %v15382_v39 = vmax.f32 %v5609_v43, %v5615_v62  ;;  %v5203_v63 = vadd.f32 %v15197_v56, %v5065_v1  ;;  %8846 = vmatpush3.msra.mxu0 %v5955_v6  ;;  %v5952_v62 = vld [vmem:[%s17664_s5 + $0x138] sm:$0xff]  ;;  %v15427_v7 = vpop.f32.mrf.mxu0 }
 0x471   : > { %v15388_v3 = vpop.f32.mrf.mxu1  ;;  %8847 = vmatprep.subr.mxu0 %v5970_v29  ;;  %18115 = vst [vmem:[#allocation12_spill] sm:$0xff] %v15427_v7  ;;  %v5966_v29 = vld [vmem:[%s17664_s5 + $0x1a8] sm:$0xff]  ;;  %v18143_v7 = vld [vmem:[#allocation62_spill] sm:$0xff] }
 0x472   : > { %18111 = vst [vmem:[#allocation39_spill] sm:$0xff] %v15382_v39  ;;  %v9328_v22 = vpack.i.bf16 %v15382_v39, %v15380_v53  ;;  %8848 = vmatpush3.msra.mxu0 %v5954_v8  ;;  %v5549_v56 = vadd.f32 %v5203_v63, %v14418_v27  ;;  %v5968_v27 = vld [vmem:[%s17664_s5 + $0x1b8] sm:$0xff] }
 0x473   : > { %8849 = vmatprep.subr.mxu0 %v5969_v48  ;;  %v18130_v39 = vld [vmem:[#allocation23_spill] sm:$0xff] }
 0x474   : > { %9329 = vrot.lane.b32.xlu0 %v9328_v22, %s9585_s29  ;;  %8850 = vmatpush3.msra.mxu0 %v5953_v41  ;;  %v5951_v22 = vld [vmem:[%s17664_s5 + $0x130] sm:$0xff]  ;;  %v5965_v41 = vld [vmem:[%s17664_s5 + $0x1a0] sm:$0xff]  ;;  %v18131_v53 = vld [vmem:[#allocation19_spill] sm:$0xff] }
 0x475   : > { %v5071_v5 = vpop.f32.mrf.mxu1  ;;  %8851 = vmatprep.subr.mxu0 %v5968_v27  ;;  %v5949_v27 = vld [vmem:[%s17664_s5 + $0x120] sm:$0xff]  ;;  %v2538_v54 = vadd.f32 %v18131_v53, %v18130_v39 }
 0x476   : > { %v5209_v61 = vadd.f32 %v15237_v2, %v5071_v5  ;;  %v5621_v2 = vmax.f32 %v5549_v56, 0.0  ;;  %8852 = vmatpush3.msra.mxu0 %v5952_v62  ;;  %v5950_v5 = vld [vmem:[%s17664_s5 + $0x128] sm:$0xff]  ;;  %v5238_v56 = vpop.f32.mrf.mxu0  ;;  %v5964_v62 = vld [vmem:[%s17664_s5 + $0x198] sm:$0xff] }
 0x477   : > { %v15410_v11 = vpop.f32.mrf.mxu1 }
 0x478   : > { %v5555_v32 = vadd.f32 %v5209_v61, %v14460_v59  ;;  %v5967_v59 = vld [vmem:[%s17664_s5 + $0x1b0] sm:$0xff] }
 0x479   : > { %8853 = vmatprep.subr.mxu0 %v5967_v59 }
 0x47a   : > { %v5627_v43 = vmax.f32 %v5555_v32, 0.0  ;;  %8854 = vmatpush3.msra.mxu0 %v5951_v22  ;;  %v5963_v22 = vld [vmem:[%s17664_s5 + $0x190] sm:$0xff] }
 0x47b   : > { %v5077_v10 = vpop.f32.mrf.mxu1  ;;  %8855 = vmatprep.subr.mxu0 %v5966_v29 }
 0x47c   : > { %v15422_v1 = vmax.f32 %v5621_v2, %v5627_v43  ;;  %v5215_v6 = vadd.f32 %v15282_v40, %v5077_v10  ;;  %8856 = vmatpush3.msra.mxu0 %v5950_v5  ;;  %v15452_v2 = vpop.f32.mrf.mxu0 }
 0x47d   : > { %v15430_v63 = vpop.f32.mrf.mxu1  ;;  %8857 = vmatprep.subr.mxu0 %v5965_v41  ;;  %18118 = vst [vmem:[#allocation122_spill] sm:$0xff] %v15452_v2  ;;  %v18134_v2 = vld [vmem:[#allocation25_spill] sm:$0xff] }
 0x47e   : > { %18114 = vst [vmem:[#allocation113_spill] sm:$0xff] %v15422_v1  ;;  %18116 = vst [vmem:[#allocation42_spill] sm:$0xff] %v15430_v63  ;;  %v5561_v40 = vadd.f32 %v5215_v6, %v14499_v19  ;;  %8858 = vmatpush3.msra.mxu0 %v5949_v27  ;;  %v5244_v29 = vpop.f32.mrf.mxu0  ;;  %v18123_v27 = vld [vmem:[#allocation55_spill] sm:$0xff] }
 0x47f   : > { %8859 = vmatprep.subr.mxu0 %v5964_v62  ;;  %v18125_v62 = vsub.s32 3, %v17998_v0 }
 0x480   : > { %v5083_v8 = vpop.f32.mrf.mxu1  ;;  %v5633_v19 = vmax.f32 %v5561_v40, 0.0 }
 0x481   : > { %v5221_v61 = vadd.f32 %v15342_v60, %v5083_v8  ;;  %v5947_v8 = vld [vmem:[%s17664_s5 + $0x110] sm:$0xff] }
 0x482   : > { %v15443_v48 = vpop.f32.mrf.mxu1 }
 0x483   : > { %18117 = vst [vmem:[#allocation41_spill] sm:$0xff] %v15443_v48  ;;  %v5567_v32 = vadd.f32 %v5221_v61, %v14540_v46  ;;  %v5948_v46 = vld [vmem:[%s17664_s5 + $0x118] sm:$0xff] }
 0x484   : > { %8860 = vmatpush3.msra.mxu0 %v5948_v46 }
 0x485   : > { %v5639_v43 = vmax.f32 %v5567_v32, 0.0  ;;  %v5089_v60 = vpop.f32.mrf.mxu1  ;;  %8861 = vmatprep.subr.mxu0 %v5963_v22  ;;  %v18126_v22 = vld [vmem:[#allocation57_spill] sm:$0xff] }
 0x486   : > { %v5227_v59 = vadd.f32 %v5226_v55, %v5089_v60  ;;  %8862 = vmatpush3.msra.mxu0 %v5947_v8  ;;  %v15473_v55 = vpop.f32.mrf.mxu0  ;;  %v9521_v60 = vld [vmem:[%s17663_s4] sm:$0x3f]  ;;  %v18127_v8 = vld [vmem:[#allocation18_spill] sm:$0xff] }
 0x487   : > { %v15460_v10 = vmax.f32 %v5633_v19, %v5639_v43  ;;  %v15462_v6 = vpop.f32.mrf.mxu1  ;;  %18122 = vst [vmem:[#allocation43_spill] sm:$0xff] %v15473_v55  ;;  %v18124_v19 = vld [vmem:[#allocation48_spill] sm:$0xff]  ;;  %v2878_v46 = vrot.slane %v9521_v60, %v18125_v62  ;;  %v2885_v62 = vsub.s32 5, %v17998_v0 }
 0x488   : > { %18120 = vst [vmem:[#allocation13_spill] sm:$0xff] %v15462_v6  ;;  %v5573_v40 = vadd.f32 %v5227_v59, %v14580_v17  ;;  %v2520_v43 = vadd.f32 %v18124_v19, %v18123_v27  ;;  %v2526_v17 = vadd.f32 %v18127_v8, %v18126_v22  ;;  %v18129_v59 = vld [vmem:[#allocation51_spill] sm:$0xff]  ;;  %v18135_v55 = vld [vmem:[#allocation56_spill] sm:$0xff]  ;;  %v18137_v22 = vld [vmem:[#allocation21_spill] sm:$0xff] }
 0x489   : > { %18119 = vst [vmem:[#allocation116_spill] sm:$0xff] %v15460_v10  ;;  %v2550_v10 = vadd.f32 %v18135_v55, %v18134_v2  ;;  %v2556_v8 = vadd.f32 %v18137_v22, %v18136_v34  ;;  %v2914_v0 = vadd.f32 %v2878_v46, %v2538_v54  ;;  %v18146_v22 = vld [vmem:[#allocation68_spill] sm:$0xff] }
 0x48a   : > { %v5095_v5 = vpop.f32.mrf.mxu1  ;;  %v5645_v27 = vmax.f32 %v5573_v40, 0.0  ;;  %v2896_v39 = vadd.f32 %v2878_v46, %v2520_v43  ;;  %v18140_v40 = vld [vmem:[#allocation27_spill] sm:$0xff]  ;;  %v2902_v2 = vadd.f32 %v2878_v46, %v2526_v17  ;;  %v18147_v43 = vld [vmem:[#allocation64_spill] sm:$0xff] }
 0x48b   : > { %v5233_v61 = vadd.f32 %v5232_v38, %v5095_v5  ;;  %v18128_v38 = vld [vmem:[#allocation59_spill] sm:$0xff] }
 0x48c   : > { %v15471_v41 = vpop.f32.mrf.mxu1  ;;  %v2532_v5 = vadd.f32 %v18129_v59, %v18128_v38  ;;  %v18150_v17 = vld [vmem:[#allocation135_spill] sm:$0xff] }
 0x48d   : > { %18121 = vst [vmem:[#allocation44_spill] sm:$0xff] %v15471_v41  ;;  %v5579_v32 = vadd.f32 %v5233_v61, %v14614_v30  ;;  %v18132_v30 = vld [vmem:[#allocation61_spill] sm:$0xff]  ;;  %v18133_v61 = vld [vmem:[#allocation54_spill] sm:$0xff] }
 0x48e   : > { %v2544_v24 = vadd.f32 %v18133_v61, %v18132_v30  ;;  %v5315_v31 = vpop.f32.mrf.mxu0  ;;  %v18142_v61 = vld [vmem:[#allocation65_spill] sm:$0xff]  ;;  %v15506_v55 = vadd.f32 %v2878_v46, %v2532_v5 }
 0x48f   : > { %v5651_v19 = vmax.f32 %v5579_v32, 0.0  ;;  %v5101_v36 = vpop.f32.mrf.mxu1  ;;  %v18141_v32 = vld [vmem:[#allocation24_spill] sm:$0xff]  ;;  %v2568_v41 = vadd.f32 %v18143_v7, %v18142_v61  ;;  %v18149_v7 = vld [vmem:[#allocation130_spill] sm:$0xff] }
 0x490   : > { %v5239_v38 = vadd.f32 %v5238_v56, %v5101_v36  ;;  %v15500_v53 = vpop.f32.mrf.mxu0  ;;  %v2562_v30 = vadd.f32 %v18141_v32, %v18140_v40  ;;  %v15508_v1 = vadd.f32 %v2878_v46, %v2544_v24  ;;  %v18144_v36 = vld [vmem:[#allocation66_spill] sm:$0xff]  ;;  %v18145_v56 = vld [vmem:[#allocation63_spill] sm:$0xff]  ;;  %v15518_v32 = vadd.f32 %v2878_v46, %v2556_v8  ;;  %v18157_v8 = vld [vmem:[#allocation69_spill] sm:$0xff] }
 0x491   : > { %v15496_v6 = vmax.f32 %v5645_v27, %v5651_v19  ;;  %v15498_v59 = vpop.f32.mrf.mxu1  ;;  %v15510_v27 = vadd.f32 %v2878_v46, %v2550_v10  ;;  %v2574_v19 = vadd.f32 %v18145_v56, %v18144_v36  ;;  %v3872_v5 = vadd.f32 %v18150_v17, %v18149_v7  ;;  %v18152_v36 = vld [vmem:[#allocation70_spill] sm:$0xff]  ;;  %v18153_v56 = vld [vmem:[#allocation67_spill] sm:$0xff] }
 0x492   : > { %18139 = vst [vmem:[#allocation118_spill] sm:$0xff] %v15498_v59  ;;  %v5321_v34 = vpop.f32.mrf.mxu0  ;;  %v15516_v59 = vrot.slane %v9521_v60, %v2885_v62  ;;  %18148 = vst [vmem:[#allocation14_spill] sm:$0xff] %v15518_v32  ;;  %v5585_v54 = vadd.f32 %v5239_v38, %v14652_v14  ;;  %v15523_v10 = vadd.f32 %v2878_v46, %v2562_v30  ;;  %v18155_v60 = vld [vmem:[#allocation131_spill] sm:$0xff]  ;;  %v18158_v32 = vld [vmem:[#allocation73_spill] sm:$0xff] }
 0x493   : > { %18138 = vst [vmem:[#allocation124_spill] sm:$0xff] %v15496_v6  ;;  %v2580_v6 = vadd.f32 %v18147_v43, %v18146_v22  ;;  %v15525_v51 = vadd.f32 %v2878_v46, %v2568_v41  ;;  %v2586_v63 = vadd.f32 %v18153_v56, %v18152_v36  ;;  %v18154_v22 = vld [vmem:[#allocation128_spill] sm:$0xff]  ;;  %v2794_v33 = vadd.f32 %v18158_v32, %v18157_v8  ;;  %v18159_v7 = vld [vmem:[#allocation71_spill] sm:$0xff]  ;;  %v18162_v56 = vld [vmem:[#allocation78_spill] sm:$0xff] }
 0x494   : > { %v5107_v40 = vpop.f32.mrf.mxu1  ;;  %v5323_v61 = vpop.f32.mrf.mxu0  ;;  %v3866_v62 = vadd.f32 %v18155_v60, %v18154_v22  ;;  %v18160_v17 = vld [vmem:[#allocation75_spill] sm:$0xff]  ;;  %v15540_v30 = vadd.f32 %v2878_v46, %v2574_v19  ;;  %v18161_v36 = vld [vmem:[#allocation72_spill] sm:$0xff]  ;;  %v18163_v60 = vld [vmem:[#allocation74_spill] sm:$0xff]  ;;  %v4217_v8 = vadd.f32 %v3872_v5, %v2902_v2  ;;  %v5657_v48 = vmax.f32 %v5585_v54, 0.0 }
 0x495   : > { %v5245_v24 = vadd.f32 %v5244_v29, %v5107_v40  ;;  %18151 = vst [vmem:[#allocation46_spill] sm:$0xff] %v15525_v51  ;;  %v2800_v14 = vadd.f32 %v18160_v17, %v18159_v7  ;;  %v5187_v29 = vadd.f32 %v15171_v45, %v15268_v4  ;;  %v15542_v40 = vadd.f32 %v2878_v46, %v2580_v6  ;;  %v18165_v4 = vld [vmem:[#allocation22_spill] sm:$0xff]  ;;  %v18166_v19 = vld [vmem:[#allocation143_spill] sm:$0xff] }
 0x496   : > { %v15531_v43 = vpop.f32.mrf.mxu1  ;;  %v5327_v38 = vpop.f32.mrf.mxu0  ;;  %v2806_v22 = vadd.f32 %v18162_v56, %v18161_v36  ;;  %v15550_v45 = vadd.f32 %v2878_v46, %v2586_v63  ;;  %v3884_v6 = vadd.f32 %v18166_v19, %v18165_v4  ;;  %v2898_v56 = vadd.f32 %v15516_v59, %v2794_v33  ;;  %v18169_v33 = vld [vmem:[#allocation80_spill] sm:$0xff] }
 0x497   : > { %18156 = vst [vmem:[#allocation45_spill] sm:$0xff] %v15531_v43  ;;  %v5591_v41 = vadd.f32 %v5245_v24, %v14688_v50  ;;  %v18164_v43 = vld [vmem:[#allocation81_spill] sm:$0xff]  ;;  %v4211_v50 = vadd.f32 %v3866_v62, %v2896_v39  ;;  %v4146_v24 = vadd.f32 %v14690_v47, %v14881_v57  ;;  %v5532_v2 = vadd.f32 %v5187_v29, %v4217_v8  ;;  %v18168_v57 = vld [vmem:[#allocation84_spill] sm:$0xff] }
 0x498   : > { %v2812_v51 = vadd.f32 %v18164_v43, %v18163_v60  ;;  %v5452_v32 = vpop.f32.mrf.mxu1  ;;  %v15548_v23 = vpop.f32.mrf.mxu0  ;;  %v2904_v43 = vadd.f32 %v15516_v59, %v2800_v14  ;;  %v2910_v54 = vadd.f32 %v15516_v59, %v2806_v22  ;;  %v4140_v46 = vadd.f32 %v14654_v37, %v14840_v25  ;;  %v18167_v47 = vld [vmem:[#allocation77_spill] sm:$0xff]  ;;  %v18170_v60 = vld [vmem:[#allocation87_spill] sm:$0xff]  ;;  %v18171_v25 = vld [vmem:[#allocation20_spill] sm:$0xff] }
 0x499   : > { %v5663_v7 = vmax.f32 %v5591_v41, 0.0  ;;  %v5453_v17 = vadd.f32 %v5452_v32, %v5315_v31  ;;  %v5526_v39 = vadd.f32 %v15245_v20, %v4211_v50  ;;  %v2818_v41 = vadd.f32 %v18168_v57, %v18167_v47  ;;  %v5946_v37 = vld [vmem:[%s17664_s5 + $0x108] sm:$0xff]  ;;  %v18172_v20 = vld [vmem:[#allocation139_spill] sm:$0xff] }
 0x49a   : > { %v5454_v36 = vpop.f32.mrf.mxu1  ;;  %v5333_v31 = vpop.f32.mrf.mxu0  ;;  %v2916_v63 = vadd.f32 %v15516_v59, %v2812_v51  ;;  %v2824_v14 = vadd.f32 %v18170_v60, %v18169_v33  ;;  %v5962_v51 = vld [vmem:[%s17664_s5 + $0x188] sm:$0xff]  ;;  %v3878_v22 = vadd.f32 %v18172_v20, %v18171_v25  ;;  %v4229_v8 = vadd.f32 %v3884_v6, %v2914_v0  ;;  %v5945_v0 = vld [vmem:[%s17664_s5 + $0x100] sm:$0xff]  ;;  %v18176_v25 = vld [vmem:[#allocation58_spill] sm:$0xff] }
 0x49b   : > { %v15558_v5 = vmax.f32 %v5657_v48, %v5663_v7  ;;  %v5527_v48 = vadd.f32 %v5453_v17, %v14848_v26  ;;  %v4219_v7 = vadd.f32 %v4146_v24, %v2904_v43  ;;  %v5199_v50 = vadd.f32 %v15183_v13, %v15355_v28  ;;  %8863 = vmatprep.subr.mxu0 %v5962_v51  ;;  %v5961_v26 = vld [vmem:[%s17664_s5 + $0x180] sm:$0xff] }
 0x49c   : > { %v5458_v62 = vpop.f32.mrf.mxu1  ;;  %v5335_v32 = vpop.f32.mrf.mxu0  ;;  %v5455_v17 = vadd.f32 %v5454_v36, %v15500_v53  ;;  %8864 = vmatpush3.msra.mxu0 %v5946_v37  ;;  %v18173_v6 = vld [vmem:[#allocation60_spill] sm:$0xff]  ;;  %v4213_v28 = vadd.f32 %v4140_v46, %v2898_v56  ;;  %v5598_v24 = vmax.f32 %v5526_v39, 0.0  ;;  %v5193_v43 = vadd.f32 %v15177_v21, %v15313_v44  ;;  %v18174_v46 = vld [vmem:[#allocation83_spill] sm:$0xff]  ;;  %v18175_v39 = vld [vmem:[#allocation90_spill] sm:$0xff] }
 0x49d   : > { %v5459_v29 = vadd.f32 %v5458_v62, %v5321_v34  ;;  %v5604_v34 = vmax.f32 %v5532_v2, 0.0  ;;  %v3896_v13 = vadd.f32 %v14452_v58, %v18173_v6  ;;  %8865 = vmatprep.subr.mxu0 %v5961_v26  ;;  %v5599_v53 = vmax.f32 %v5527_v48, 0.0 }
 0x49e   : > { %v5460_v4 = vpop.f32.mrf.mxu1  ;;  %v5339_v47 = vpop.f32.mrf.mxu0  ;;  %8866 = vmatpush3.msra.mxu0 %v5945_v0  ;;  %v15596_v60 = vadd.f32 %v15516_v59, %v2818_v41  ;;  %v15599_v58 = vadd.f32 %v15516_v59, %v2824_v14  ;;  %v4223_v21 = vadd.f32 %v3878_v22, %v15506_v55  ;;  %v5544_v44 = vadd.f32 %v5199_v50, %v4229_v8  ;;  %v18177_v41 = vld [vmem:[#allocation145_spill] sm:$0xff] }
 0x49f   : > { %v5533_v19 = vadd.f32 %v5459_v29, %v14890_v12  ;;  %v5461_v62 = vadd.f32 %v5460_v4, %v5323_v61  ;;  %v6032_v12 = vld [vmem:[%s17664_s5 + $0x3b8] sm:$0xff]  ;;  %v2830_v29 = vadd.f32 %v18175_v39, %v18174_v46  ;;  %v5528_v48 = vadd.f32 %v5455_v17, %v4213_v28  ;;  %v18178_v17 = vld [vmem:[#allocation146_spill] sm:$0xff]  ;;  %v18183_v39 = vld [vmem:[#allocation144_spill] sm:$0xff] }
 0x4a0   : > { %v5464_v2 = vpop.f32.mrf.mxu1  ;;  %v5341_v33 = vpop.f32.mrf.mxu0  ;;  %8870 = vmatprep.subr.mxu0 %v6032_v12  ;;  %v15604_v37 = vmax.f32 %v5598_v24, %v5604_v34  ;;  %v3890_v20 = vadd.f32 %v18177_v41, %v18176_v25  ;;  %v4241_v8 = vadd.f32 %v3896_v13, %v15510_v27  ;;  %v4231_v0 = vadd.f32 %v14971_v16, %v2916_v63 }
 0x4a1   : > { %v5605_v61 = vmax.f32 %v5533_v19, 0.0  ;;  %v5534_v36 = vadd.f32 %v5461_v62, %v4219_v7  ;;  %v5465_v57 = vadd.f32 %v5464_v2, %v5327_v38  ;;  %v5538_v7 = vadd.f32 %v5193_v43, %v4223_v21 }
 0x4a2   : > { %v5466_v56 = vpop.f32.mrf.mxu1  ;;  %v5345_v51 = vpop.f32.mrf.mxu0  ;;  %v3908_v19 = vadd.f32 %v14530_v49, %v18178_v17  ;;  %v4225_v62 = vadd.f32 %v14935_v35, %v2910_v54  ;;  %v5616_v6 = vmax.f32 %v5544_v44, 0.0  ;;  %v5600_v28 = vmax.f32 %v5528_v48, 0.0  ;;  %v18187_v17 = vld [vmem:[#allocation132_spill] sm:$0xff] }
 0x4a3   : > { %v15606_v38 = vmax.f32 %v5599_v53, %v5605_v61  ;;  %v5539_v14 = vadd.f32 %v5465_v57, %v14932_v9  ;;  %v5467_v55 = vadd.f32 %v5466_v56, %v15548_v23  ;;  %v5606_v50 = vmax.f32 %v5534_v36, 0.0  ;;  %v18181_v61 = vld [vmem:[#allocation89_spill] sm:$0xff]  ;;  %v18182_v36 = vld [vmem:[#allocation96_spill] sm:$0xff] }
 0x4a4   : > { %v5470_v22 = vpop.f32.mrf.mxu1  ;;  %v5347_v26 = vpop.f32.mrf.mxu0  ;;  %v5211_v23 = vadd.f32 %v15256_v15, %v15410_v11  ;;  %v5610_v24 = vmax.f32 %v5538_v7, 0.0  ;;  %v5205_v49 = vadd.f32 %v15215_v52, %v15388_v3  ;;  %v15628_v15 = vadd.f32 %v15516_v59, %v2830_v29  ;;  %v18180_v11 = vld [vmem:[#allocation93_spill] sm:$0xff] }
 0x4a5   : > { %v5471_v4 = vadd.f32 %v5470_v22, %v5333_v31  ;;  %v9323_v34 = vpack.i.bf16 %v15606_v38, %v15604_v37  ;;  %v5611_v43 = vmax.f32 %v5539_v14, 0.0  ;;  %v5540_v35 = vadd.f32 %v5467_v55, %v4225_v62 }
 0x4a6   : > { %v5472_v9 = vpop.f32.mrf.mxu1  ;;  %v5351_v13 = vpop.f32.mrf.mxu0  ;;  %v15625_v53 = vmax.f32 %v5600_v28, %v5606_v50  ;;  %v2842_v57 = vadd.f32 %v18182_v36, %v18181_v61  ;;  %v4235_v52 = vadd.f32 %v3890_v20, %v15508_v1  ;;  %v15635_v21 = vmax.f32 %v5610_v24, %v5616_v6  ;;  %v18184_v20 = vld [vmem:[#allocation76_spill] sm:$0xff] }
 0x4a7   : > { %v5545_v27 = vadd.f32 %v5471_v4, %v14968_v18  ;;  %v5473_v31 = vadd.f32 %v5472_v9, %v5335_v32  ;;  %9324 = vrot.lane.b32.xlu1 %v9323_v34, %s9585_s29  ;;  %v18179_v18 = vld [vmem:[#allocation86_spill] sm:$0xff]  ;;  %v5556_v44 = vadd.f32 %v5211_v23, %v4241_v8  ;;  %v3902_v29 = vadd.f32 %v14493_v42, %v18183_v39  ;;  %v18185_v50 = vld [vmem:[#allocation148_spill] sm:$0xff]  ;;  %v18186_v4 = vld [vmem:[#allocation151_spill] sm:$0xff] }
 0x4a8   : > { %v5476_v54 = vpop.f32.mrf.mxu1  ;;  %v5353_v12 = vpop.f32.mrf.mxu0  ;;  %v2836_v32 = vadd.f32 %v18180_v11, %v18179_v18  ;;  %v5550_v48 = vadd.f32 %v5205_v49, %v4235_v52  ;;  %v5612_v25 = vmax.f32 %v5540_v35, 0.0  ;;  %v4253_v1 = vadd.f32 %v3908_v19, %v15523_v10  ;;  %v18188_v42 = vld [vmem:[#allocation79_spill] sm:$0xff]  ;;  %v18189_v19 = vld [vmem:[#allocation41_spill] sm:$0xff]  ;;  %v18191_v23 = vld [vmem:[#allocation134_spill] sm:$0xff] }
 0x4a9   : > { %v5617_v16 = vmax.f32 %v5545_v27, 0.0  ;;  %v5546_v63 = vadd.f32 %v5473_v31, %v4231_v0  ;;  %v5477_v2 = vadd.f32 %v5476_v54, %v5339_v47  ;;  %v3920_v34 = vadd.f32 %v18186_v4, %v18185_v50  ;;  %v18190_v9 = vld [vmem:[#allocation11_spill] sm:$0xff]  ;;  %v18192_v31 = vld [vmem:[#allocation112_spill] sm:$0xff]  ;;  %v18193_v49 = vld [vmem:[#allocation42_spill] sm:$0xff] }
 0x4aa   : > { %v5478_v3 = vpop.f32.mrf.mxu1  ;;  %v5357_v46 = vpop.f32.mrf.mxu0  ;;  %v4237_v62 = vadd.f32 %v18187_v17, %v15596_v60  ;;  %v4243_v0 = vadd.f32 %v18188_v42, %v15599_v58  ;;  %v5628_v10 = vmax.f32 %v5556_v44, 0.0  ;;  %v5622_v60 = vmax.f32 %v5550_v48, 0.0  ;;  %v18197_v44 = vld [vmem:[#allocation92_spill] sm:$0xff]  ;;  %v18199_v48 = vld [vmem:[#allocation14_spill] sm:$0xff] }
 0x4ab   : > { %v15637_v56 = vmax.f32 %v5611_v43, %v5617_v16  ;;  %v5618_v47 = vmax.f32 %v5546_v63, 0.0  ;;  %5749 = vrot.lane.b32.xlu1 %v15625_v53, %s9585_s29  ;;  %v5479_v41 = vadd.f32 %v5478_v3, %v5341_v33  ;;  %v5551_v14 = vadd.f32 %v5477_v2, %v18184_v20  ;;  %v18194_v43 = vld [vmem:[#allocation111_spill] sm:$0xff]  ;;  %v18195_v16 = vld [vmem:[#allocation9_spill] sm:$0xff]  ;;  %v18202_v42 = vld [vmem:[#allocation136_spill] sm:$0xff] }
 0x4ac   : > { %v5482_v7 = vpop.f32.mrf.mxu1  ;;  %v5359_v22 = vpop.f32.mrf.mxu0  ;;  %v5217_v58 = vadd.f32 %v18194_v43, %v18193_v49  ;;  %v18196_v63 = vld [vmem:[#allocation113_spill] sm:$0xff]  ;;  %v2940_v52 = vadd.f32 %v15516_v59, %v2836_v32  ;;  %v2946_v3 = vadd.f32 %v15516_v59, %v2842_v57  ;;  %v18200_v32 = vld [vmem:[#allocation147_spill] sm:$0xff]  ;;  %v18201_v57 = vld [vmem:[#allocation150_spill] sm:$0xff] }
 0x4ad   : > { %v5483_v55 = vadd.f32 %v5482_v7, %v5345_v51  ;;  %v9333_v8 = vpack.i.bf16 %v15637_v56, %v15635_v21  ;;  %v15653_v6 = vmax.f32 %v5612_v25, %v5618_v47  ;;  %v5223_v51 = vadd.f32 %v18190_v9, %v18189_v19  ;;  %v18198_v47 = vld [vmem:[#allocation98_spill] sm:$0xff]  ;;  %v18204_v19 = vld [vmem:[#allocation52_spill] sm:$0xff] }
 0x4ae   : > { %v5484_v33 = vpop.f32.mrf.mxu1  ;;  %v5363_v24 = vpop.f32.mrf.mxu0  ;;  %v5552_v35 = vadd.f32 %v5479_v41, %v4237_v62  ;;  %v9338_v2 = vpack.i.bf16 %v18196_v63, %v18195_v16  ;;  %v5623_v18 = vmax.f32 %v5551_v14, 0.0  ;;  %v2848_v39 = vadd.f32 %v18198_v47, %v18197_v44  ;;  %v18213_v47 = vld [vmem:[#allocation35_spill] sm:$0xff] }
 0x4af   : > { %v5557_v28 = vadd.f32 %v5483_v55, %v18191_v23  ;;  %v5485_v27 = vadd.f32 %v5484_v33, %v5347_v26  ;;  %5751 = vrot.lane.b32.xlu1 %v18192_v31, %s9585_s29  ;;  %9334 = vrot.lane.b32.xlu0 %v9333_v8, %s9585_s29  ;;  %v4247_v25 = vadd.f32 %v3902_v29, %v18199_v48  ;;  %v18214_v48 = vld [vmem:[#allocation116_spill] sm:$0xff] }
 0x4b0   : > { %v5488_v54 = vpop.f32.mrf.mxu1  ;;  %v5365_v26 = vpop.f32.mrf.mxu0  ;;  %v15670_v41 = vmax.f32 %v5622_v60, %v5628_v10  ;;  %v5568_v20 = vadd.f32 %v5223_v51, %v4253_v1  ;;  %v3914_v8 = vadd.f32 %v18201_v57, %v18200_v32  ;;  %v5624_v4 = vmax.f32 %v5552_v35, 0.0  ;;  %v18203_v10 = vld [vmem:[#allocation152_spill] sm:$0xff]  ;;  %v18205_v51 = vld [vmem:[#allocation138_spill] sm:$0xff]  ;;  %v18215_v32 = vld [vmem:[#allocation95_spill] sm:$0xff] }
 0x4b1   : > { %v5629_v11 = vmax.f32 %v5557_v28, 0.0  ;;  %v5558_v61 = vadd.f32 %v5485_v27, %v4243_v0  ;;  %v5489_v36 = vadd.f32 %v5488_v54, %v5351_v13  ;;  %v5562_v50 = vadd.f32 %v5217_v58, %v4247_v25  ;;  %v18206_v28 = vld [vmem:[#allocation44_spill] sm:$0xff]  ;;  %v18216_v57 = vld [vmem:[#allocation101_spill] sm:$0xff] }
 0x4b2   : > { %v5490_v7 = vpop.f32.mrf.mxu1  ;;  %v5369_v13 = vpop.f32.mrf.mxu0  ;;  %v4265_v62 = vadd.f32 %v3920_v34, %v15540_v30  ;;  %v3932_v9 = vadd.f32 %v18204_v19, %v18203_v10  ;;  %v4249_v23 = vadd.f32 %v18205_v51, %v15628_v15  ;;  %v18207_v27 = vld [vmem:[#allocation12_spill] sm:$0xff]  ;;  %v18208_v30 = vld [vmem:[#allocation82_spill] sm:$0xff]  ;;  %v5640_v58 = vmax.f32 %v5568_v20, 0.0  ;;  %v18211_v15 = vld [vmem:[#allocation13_spill] sm:$0xff] }
 0x4b3   : > { %v15672_v55 = vmax.f32 %v5623_v18, %v5629_v11  ;;  %v5630_v14 = vmax.f32 %v5558_v61, 0.0  ;;  %5761 = vrot.lane.b32.xlu1 %v15653_v6, %s9585_s29  ;;  %9339 = vrot.lane.b32.xlu0 %v9338_v2, %s9585_s29  ;;  %v5491_v17 = vadd.f32 %v5490_v7, %v5353_v12  ;;  %v5563_v1 = vadd.f32 %v5489_v36, %v18202_v42  ;;  %v18210_v2 = vld [vmem:[#allocation33_spill] sm:$0xff]  ;;  %v18218_v10 = vld [vmem:[#allocation99_spill] sm:$0xff] }
 0x4b4   : > { %v5494_v29 = vpop.f32.mrf.mxu1  ;;  %v5235_v60 = vadd.f32 %v18207_v27, %v18206_v28  ;;  %v5371_v49 = vpop.f32.mrf.mxu0  ;;  %v4255_v34 = vadd.f32 %v18208_v30, %v2940_v52  ;;  %v5634_v18 = vmax.f32 %v5562_v50, 0.0  ;;  %v18212_v11 = vld [vmem:[#allocation121_spill] sm:$0xff]  ;;  %v9348_v25 = vpack.i.bf16 %v18214_v48, %v18213_v47 }
 0x4b5   : > { %v5495_v0 = vadd.f32 %v5494_v29, %v5357_v46  ;;  %v9343_v33 = vpack.i.bf16 %v15672_v55, %v15670_v41  ;;  %v15689_v43 = vmax.f32 %v5624_v4, %v5630_v14  ;;  %v18209_v46 = vld [vmem:[#allocation140_spill] sm:$0xff]  ;;  %v5229_v61 = vadd.f32 %v18212_v11, %v18211_v15  ;;  %v18217_v29 = vld [vmem:[#allocation46_spill] sm:$0xff]  ;;  %v18222_v28 = vld [vmem:[#allocation153_spill] sm:$0xff] }
 0x4b6   : > { %v5496_v12 = vpop.f32.mrf.mxu1  ;;  %v5564_v36 = vadd.f32 %v5491_v17, %v4249_v23  ;;  %v5635_v7 = vmax.f32 %v5563_v1, 0.0  ;;  %v2854_v4 = vadd.f32 %v18216_v57, %v18215_v32  ;;  %v4259_v42 = vadd.f32 %v3914_v8, %v18217_v29  ;;  %v18219_v17 = vld [vmem:[#allocation107_spill] sm:$0xff]  ;;  %v18231_v29 = vld [vmem:[#allocation108_spill] sm:$0xff] }
 0x4b7   : > { %v5569_v35 = vadd.f32 %v5495_v0, %v18209_v46  ;;  %v5497_v54 = vadd.f32 %v5496_v12, %v5359_v22  ;;  %5763 = vrot.lane.b32.xlu1 %v18210_v2, %s9585_s29  ;;  %9344 = vrot.lane.b32.xlu0 %v9343_v33, %s9585_s29  ;;  %v2952_v22 = vadd.f32 %v15516_v59, %v2848_v39  ;;  %v5375_v0 = vpop.f32.mrf.mxu0  ;;  %v18221_v39 = vld [vmem:[#allocation149_spill] sm:$0xff]  ;;  %v18225_v15 = vld [vmem:[#allocation91_spill] sm:$0xff] }
 0x4b8   : > { %v5500_v44 = vpop.f32.mrf.mxu1  ;;  %v5580_v50 = vadd.f32 %v5235_v60, %v4265_v62  ;;  %v2860_v19 = vadd.f32 %v18219_v17, %v18218_v10  ;;  %v15706_v51 = vmax.f32 %v5634_v18, %v5640_v58  ;;  %v3926_v27 = vadd.f32 %v18222_v28, %v18221_v39 }
 0x4b9   : > { %v5641_v52 = vmax.f32 %v5569_v35, 0.0  ;;  %v5570_v20 = vadd.f32 %v5497_v54, %v4255_v34  ;;  %v5501_v14 = vadd.f32 %v5500_v44, %v5363_v24  ;;  %v18220_v24 = vld [vmem:[#allocation36_spill] sm:$0xff]  ;;  %v5574_v8 = vadd.f32 %v5229_v61, %v4259_v42  ;;  %v18223_v34 = vld [vmem:[#allocation142_spill] sm:$0xff]  ;;  %v18224_v54 = vld [vmem:[#allocation85_spill] sm:$0xff] }
 0x4ba   : > { %v5502_v33 = vpop.f32.mrf.mxu1  ;;  %v5636_v62 = vmax.f32 %v5564_v36, 0.0  ;;  %v4277_v30 = vadd.f32 %v3932_v9, %v15550_v45  ;;  %v4261_v18 = vadd.f32 %v18224_v54, %v2946_v3  ;;  %v4267_v11 = vadd.f32 %v18225_v15, %v2952_v22  ;;  %v18226_v61 = vld [vmem:[#allocation45_spill] sm:$0xff]  ;;  %v18229_v3 = vld [vmem:[#allocation118_spill] sm:$0xff]  ;;  %v18232_v42 = vld [vmem:[#allocation124_spill] sm:$0xff] }
 0x4bb   : > { %v15708_v23 = vmax.f32 %v5635_v7, %v5641_v52  ;;  %v5642_v1 = vmax.f32 %v5570_v20, 0.0  ;;  %9349 = vrot.lane.b32.xlu1 %v9348_v25, %s9585_s29  ;;  %5775 = vrot.lane.b32.xlu0 %v18220_v24, %s9585_s29  ;;  %v5503_v60 = vadd.f32 %v5502_v33, %v5365_v26  ;;  %v5575_v58 = vadd.f32 %v5501_v14, %v18223_v34  ;;  %v5377_v25 = vpop.f32.mrf.mxu0  ;;  %v18227_v26 = vld [vmem:[#allocation43_spill] sm:$0xff]  ;;  %v18228_v20 = vld [vmem:[#allocation88_spill] sm:$0xff]  ;;  %v18230_v14 = vld [vmem:[#allocation122_spill] sm:$0xff] }
 0x4bc   : > { %v5506_v12 = vpop.f32.mrf.mxu1  ;;  %v5652_v44 = vmax.f32 %v5580_v50, 0.0  ;;  %v5247_v36 = vadd.f32 %v18227_v26, %v18226_v61  ;;  %v5241_v22 = vadd.f32 %v18230_v14, %v18229_v3  ;;  %v9358_v50 = vpack.i.bf16 %v18232_v42, %v18231_v29  ;;  %v18234_v54 = vld [vmem:[#allocation94_spill] sm:$0xff] }
 0x4bd   : > { %v5507_v46 = vadd.f32 %v5506_v12, %v5369_v13  ;;  %v9353_v35 = vpack.i.bf16 %v15708_v23, %v15706_v51  ;;  %v15721_v52 = vmax.f32 %v5636_v62, %v5642_v1  ;;  %v5646_v13 = vmax.f32 %v5574_v8, 0.0  ;;  %v5381_v62 = vpop.f32.mrf.mxu0 }
 0x4be   : > { %v5508_v7 = vpop.f32.mrf.mxu1  ;;  %v5576_v32 = vadd.f32 %v5503_v60, %v4261_v18  ;;  %v5647_v33 = vmax.f32 %v5575_v58, 0.0  ;;  %v4271_v39 = vadd.f32 %v3926_v27, %v15542_v40  ;;  %v5592_v12 = vadd.f32 %v5247_v36, %v4277_v30  ;;  %v18233_v40 = vld [vmem:[#allocation97_spill] sm:$0xff] }
 0x4bf   : > { %v5581_v45 = vadd.f32 %v5507_v46, %v18228_v20  ;;  %v5509_v9 = vadd.f32 %v5508_v7, %v5371_v49  ;;  %5773 = vrot.lane.b32.xlu1 %v15689_v43, %s9585_s29  ;;  %9354 = vrot.lane.b32.xlu0 %v9353_v35, %s9585_s29  ;;  %v2958_v49 = vadd.f32 %v15516_v59, %v2854_v4 }
 0x4c0   : > { %v5512_v57 = vpop.f32.mrf.mxu1  ;;  %v15735_v28 = vmax.f32 %v5646_v13, %v5652_v44  ;;  %v5586_v58 = vadd.f32 %v5241_v22, %v4271_v39  ;;  %v5648_v4 = vmax.f32 %v5576_v32, 0.0  ;;  %v5664_v26 = vmax.f32 %v5592_v12, 0.0  ;;  %v18238_v22 = vld [vmem:[#allocation38_spill] sm:$0xff] }
 0x4c1   : > { %v5653_v10 = vmax.f32 %v5581_v45, 0.0  ;;  %v5582_v17 = vadd.f32 %v5509_v9, %v4267_v11  ;;  %v5513_v1 = vadd.f32 %v5512_v57, %v5375_v0  ;;  %v2964_v0 = vadd.f32 %v15516_v59, %v2860_v19  ;;  %v18235_v11 = vld [vmem:[#allocation103_spill] sm:$0xff]  ;;  %v18236_v59 = vld [vmem:[#allocation100_spill] sm:$0xff]  ;;  %v18237_v45 = vld [vmem:[#allocation117_spill] sm:$0xff] }
 0x4c2   : > { %v5514_v8 = vpop.f32.mrf.mxu1  ;;  %v4273_v27 = vadd.f32 %v18233_v40, %v2958_v49  ;;  %v5658_v9 = vmax.f32 %v5586_v58, 0.0  ;;  %v9368_v32 = vpack.i.bf16 %v15558_v5, %v18238_v22  ;;  %v5992_v40 = vld [vmem:[%s17664_s5 + $0x278] sm:$0xff] }
 0x4c3   : > { %v15737_v34 = vmax.f32 %v5647_v33, %v5653_v10  ;;  %v5654_v60 = vmax.f32 %v5582_v17, 0.0  ;;  %v5515_v46 = vadd.f32 %v5514_v8, %v5377_v25  ;;  %5785 = vrot.lane.b32.xlu1 %v15721_v52, %s9585_s29  ;;  %9359 = vrot.lane.b32.xlu0 %v9358_v50, %s9585_s29  ;;  %v5587_v18 = vadd.f32 %v5513_v1, %v18234_v54  ;;  %v5383_v25 = vpop.f32.mrf.mxu0  ;;  %v18239_v17 = vld [vmem:[#allocation10_spill] sm:$0xff] }
 0x4c4   : > { %v5518_v35 = vpop.f32.mrf.mxu1  ;;  %v4279_v44 = vadd.f32 %v18235_v11, %v2964_v0  ;;  %v15756_v57 = vmax.f32 %v5658_v9, %v5664_v26  ;;  %v18242_v54 = vmov 0.0   ;;  %v5987_v11 = vld [vmem:[%s17664_s5 + $0x250] sm:$0xff]  ;;  %v5978_v9 = vld [vmem:[%s17664_s5 + $0x208] sm:$0xff] }
 0x4c5   : > { %v5519_v15 = vadd.f32 %v5518_v35, %v5381_v62  ;;  %v9363_v30 = vpack.i.bf16 %v15737_v34, %v15735_v28  ;;  %v15748_v61 = vmax.f32 %v5648_v4, %v5654_v60  ;;  %v5588_v36 = vadd.f32 %v5515_v46, %v4273_v27  ;;  %v18240_v46 = vld [vmem:[#allocation37_spill] sm:$0xff]  ;;  %v18241_v4 = vld [vmem:[#allocation110_spill] sm:$0xff] }
 0x4c6   : > { %v5520_v7 = vpop.f32.mrf.mxu1  ;;  %v5659_v13 = vmax.f32 %v5587_v18, 0.0  ;;  %v5991_v27 = vld [vmem:[%s17664_s5 + $0x270] sm:$0xff]  ;;  %v5990_v18 = vld [vmem:[%s17664_s5 + $0x268] sm:$0xff] }
 0x4c7   : > { %v5593_v19 = vadd.f32 %v5519_v15, %v18236_v59  ;;  %v5521_v20 = vadd.f32 %v5520_v7, %v5383_v25  ;;  %5787 = vrot.lane.b32.xlu1 %v18237_v45, %s9585_s29  ;;  %9364 = vrot.lane.b32.xlu0 %v9363_v30, %s9585_s29  ;;  %v5660_v50 = vmax.f32 %v5588_v36, 0.0  ;;  %v5989_v15 = vld [vmem:[%s17664_s5 + $0x260] sm:$0xff]  ;;  %v5988_v30 = vld [vmem:[%s17664_s5 + $0x258] sm:$0xff] }
 0x4c8   : > { %v5985_v25 = vld [vmem:[%s17664_s5 + $0x240] sm:$0xff]  ;;  %v5984_v7 = vld [vmem:[%s17664_s5 + $0x238] sm:$0xff]  ;;  %v5983_v26 = vld [vmem:[%s17664_s5 + $0x230] sm:$0xff] }
 0x4c9   : > { %v5665_v3 = vmax.f32 %v5593_v19, 0.0  ;;  %v5594_v14 = vadd.f32 %v5521_v20, %v4279_v44  ;;  %v5986_v44 = vld [vmem:[%s17664_s5 + $0x248] sm:$0xff]  ;;  %v5981_v59 = vld [vmem:[%s17664_s5 + $0x220] sm:$0xff]  ;;  %v5980_v19 = vld [vmem:[%s17664_s5 + $0x218] sm:$0xff] }
 0x4ca   : > { %v5982_v36 = vld [vmem:[%s17664_s5 + $0x228] sm:$0xff]  ;;  %v5979_v20 = vld [vmem:[%s17664_s5 + $0x210] sm:$0xff] }
 0x4cb   : > { %v15758_v33 = vmax.f32 %v5659_v13, %v5665_v3  ;;  %v5666_v10 = vmax.f32 %v5594_v14, 0.0  ;;  %5799 = vrot.lane.b32.xlu0 %v18239_v17, %s9585_s29  ;;  %9369 = vrot.lane.b32.xlu1 %v9368_v32, %s9585_s29  ;;  %v5977_v13 = vld [vmem:[%s17664_s5 + $0x200] sm:$0xff]  ;;  %v6000_v3 = vld [vmem:[%s17664_s5 + $0x2b8] sm:$0xff] }
 0x4cc   : > { %v5999_v14 = vld [vmem:[%s17664_s5 + $0x2b0] sm:$0xff]  ;;  %v5998_v32 = vld [vmem:[%s17664_s5 + $0x2a8] sm:$0xff] }
 0x4cd   : > { %v9373_v1 = vpack.i.bf16 %v15758_v33, %v15756_v57  ;;  %v15765_v49 = vmax.f32 %v5660_v50, %v5666_v10  ;;  %v5997_v50 = vld [vmem:[%s17664_s5 + $0x2a0] sm:$0xff]  ;;  %v5996_v10 = vld [vmem:[%s17664_s5 + $0x298] sm:$0xff] }
 0x4cf   : > { %9374 = vrot.lane.b32.xlu0 %v9373_v1, %s9585_s29  ;;  %5797 = vrot.lane.b32.xlu1 %v15748_v61, %s9585_s29  ;;  %v5995_v1 = vld [vmem:[%s17664_s5 + $0x290] sm:$0xff] }
 0x4d3   : > { %5809 = vrot.lane.b32.xlu1 %v15765_v49, %s9585_s29  ;;  %s7904_s29 = sshll.u32 %s323_s23, 3 }
 0x4d4   : > { %s325_s28 = scalar_lea.vmem [#allocation3], %s7904_s29  ;;  %s9528_s29 = scalar_lea.vmem %s9527_s13, 256 }
 0x4d5   : > { %s7841_s14 = sshll.u32 %s325_s28, 4  ;;  %s7842_s14 = int_to_ptr.vmem [resolvable:$true] %s7841_s14 }
 0x4d6   : > { %s9522_s25 = scalar_lea.vmem %s7842_s14, 128  ;;  %p9529_p0 = scmp.lt.s32.totalorder %s7842_s14, %s9527_s13 }
 0x4d7   : > { %p9523_p11 = scmp.ne.s32.totalorder %s7842_s14, %s9522_s25  ;;  %p9530_p1 = scmp.lt.s32.totalorder %s9528_s29, %s9522_s25 }
 0x4d9   : > { %p9524_p12 = pnand %p9523_p11, %p9676_p5  ;;  %p9531_p2 = por %p9530_p1, %p9529_p0 }
 0x4da   : > { %v15772_v39 = vpop.permute.xlu0 %9319 }
 0x4db   : > { %v9322_v62 = vunpack.i.h.bf16 %v15772_v39  ;;  %v9321_v8 = vunpack.i.l.bf16 %v15772_v39  ;;  %v6016_v39 = vld [vmem:[%s17664_s5 + $0x338] sm:$0xff]  ;;  %p9525_p13 = pneg %p9524_p12 }
 0x4dd   : > { %v5812_v12 = vsel %vm1565_vm1, %v9321_v8, %v9322_v62  ;;  %p9532_p3 = pnand %p9531_p2, %p9525_p13 }
 0x4de   : > { %v5740_v60 = vpop.permute.xlu0 %5739  ;;  %v5878_v0 = vmax.f32 %v18240_v46, %v5812_v12  ;;  %v5993_v12 = vld [vmem:[%s17664_s5 + $0x280] sm:$0xff] }
 0x4df   : > { %v5811_v58 = vsel %vm1565_vm1, %v5740_v60, %v9321_v8  ;;  %v5994_v8 = vld [vmem:[%s17664_s5 + $0x288] sm:$0xff] }
 0x4e0   : > { %v5877_v35 = vmax.f32 %v18241_v4, %v5811_v58  ;;  %6508 = vmatprep.mubr.f32.mxu1 %v5878_v0 }
 0x4e2   : > { %6509 = vmatmul.mubr.f32.vlgmr.msra.gmra.mxu1 %v5877_v35 }
 0x4e3   : > { %6585 = vmatpush1.msra.mxu1 %v5992_v40 }
 0x4e4   : > { %6586 = vmatprep.subr.mxu1 %v18242_v54 }
 0x4e5   : > { %6587 = vmatpush1.msra.mxu1 %v5991_v27 }
 0x4e6   : > { %6588 = vmatprep.subr.mxu1 %v18242_v54  ;;  %v15878_v60 = vpop.permute.xlu0 %9329 }
 0x4e7   : > { %6589 = vmatpush1.msra.mxu1 %v5990_v18  ;;  %v9332_v46 = vunpack.i.h.bf16 %v15878_v60  ;;  %v9331_v0 = vunpack.i.l.bf16 %v15878_v60  ;;  %v18243_v18 = vld [vmem:[#allocation119_spill] sm:$0xff]  ;;  %v6145_v60 = vld [vmem:[%s17664_s5 + $0x740] sm:$0xff] }
 0x4e8   : > { %6590 = vmatprep.subr.mxu1 %v18242_v54 }
 0x4e9   : > { %6591 = vmatpush1.msra.mxu1 %v5989_v15 }
 0x4ea   : > { %6592 = vmatprep.subr.mxu1 %v18242_v54 }
 0x4eb   : > { %6593 = vmatpush1.msra.mxu1 %v5988_v30 }
 0x4ec   : > { %6594 = vmatprep.subr.mxu1 %v18242_v54 }
 0x4ed   : > { %6595 = vmatpush1.msra.mxu1 %v5987_v11 }
 0x4ee   : > { %6596 = vmatprep.subr.mxu1 %v18242_v54 }
 0x4ef   : > { %6597 = vmatpush1.msra.mxu1 %v5986_v44  ;;  %v5817_v44 = vsel %vm1565_vm1, %v9331_v0, %v9332_v46 }
 0x4f0   : > { %6598 = vmatprep.subr.mxu1 %v18242_v54 }
 0x4f1   : > { %6599 = vmatpush1.msra.mxu1 %v5985_v25 }
 0x4f2   : > { %6600 = vmatprep.subr.mxu1 %v18242_v54 }
 0x4f3   : > { %6601 = vmatpush1.msra.mxu1 %v5984_v7 }
 0x4f4   : > { %6602 = vmatprep.subr.mxu1 %v18242_v54 }
 0x4f5   : > { %6603 = vmatpush1.msra.mxu1 %v5983_v26  ;;  %v18244_v26 = vld [vmem:[#allocation40_spill] sm:$0xff] }
 0x4f6   : > { %6604 = vmatprep.subr.mxu1 %v18242_v54 }
 0x4f7   : > { %6605 = vmatpush1.msra.mxu1 %v5982_v36  ;;  %v5884_v36 = vmax.f32 %v18244_v26, %v5817_v44  ;;  %v6008_v44 = vld [vmem:[%s17664_s5 + $0x2f8] sm:$0xff]  ;;  %v6006_v26 = vld [vmem:[%s17664_s5 + $0x2e8] sm:$0xff] }
 0x4f8   : > { %6606 = vmatprep.subr.mxu1 %v18242_v54 }
 0x4f9   : > { %6607 = vmatpush1.msra.mxu1 %v5981_v59  ;;  %v6015_v59 = vld [vmem:[%s17664_s5 + $0x330] sm:$0xff] }
 0x4fa   : > { %6608 = vmatprep.subr.mxu1 %v18242_v54 }
 0x4fb   : > { %6609 = vmatpush1.msra.mxu1 %v5980_v19  ;;  %v6030_v19 = vld [vmem:[%s17664_s5 + $0x3a8] sm:$0xff] }
 0x4fc   : > { %6610 = vmatprep.subr.mxu1 %v18242_v54 }
 0x4fd   : > { %6611 = vmatpush1.msra.mxu1 %v5979_v20  ;;  %v6079_v20 = vld [vmem:[%s17664_s5 + $0x530] sm:$0xff] }
 0x4fe   : > { %6612 = vmatprep.subr.mxu1 %v18242_v54 }
 0x4ff   : > { %6613 = vmatpush1.msra.mxu1 %v5978_v9  ;;  %v6014_v9 = vld [vmem:[%s17664_s5 + $0x328] sm:$0xff] }
 0x500   : > { %6614 = vmatprep.subr.mxu1 %v18242_v54 }
 0x501   : > { %6615 = vmatpush1.msra.mxu1 %v5977_v13  ;;  %v6029_v13 = vld [vmem:[%s17664_s5 + $0x3a0] sm:$0xff] }
 0x502   : > { %6632 = vmatprep.subr.mxu1 %v18242_v54 }
 0x503   : > { %6633 = vmatpush2.msra.mxu1 %v6000_v3  ;;  %v6078_v3 = vld [vmem:[%s17664_s5 + $0x528] sm:$0xff] }
 0x504   : > { %6634 = vmatprep.subr.mxu1 %v18242_v54 }
 0x505   : > { %6635 = vmatpush2.msra.mxu1 %v5999_v14  ;;  %v6013_v14 = vld [vmem:[%s17664_s5 + $0x320] sm:$0xff] }
 0x506   : > { %6636 = vmatprep.subr.mxu1 %v18242_v54 }
 0x507   : > { %6637 = vmatpush2.msra.mxu1 %v5998_v32 }
 0x508   : > { %6638 = vmatprep.subr.mxu1 %v18242_v54 }
 0x509   : > { %6639 = vmatpush2.msra.mxu1 %v5997_v50  ;;  %v6028_v50 = vld [vmem:[%s17664_s5 + $0x398] sm:$0xff] }
 0x50a   : > { %6640 = vmatprep.subr.mxu1 %v18242_v54 }
 0x50b   : > { %6641 = vmatpush2.msra.mxu1 %v5996_v10 }
 0x50c   : > { %6642 = vmatprep.subr.mxu1 %v18242_v54 }
 0x50d   : > { %6643 = vmatpush2.msra.mxu1 %v5995_v1  ;;  %v6077_v1 = vld [vmem:[%s17664_s5 + $0x520] sm:$0xff] }
 0x50e   : > { %6644 = vmatprep.subr.mxu1 %v18242_v54 }
 0x50f   : > { %6645 = vmatpush2.msra.mxu1 %v5994_v8  ;;  %v6012_v8 = vld [vmem:[%s17664_s5 + $0x318] sm:$0xff] }
 0x510   : > { %6646 = vmatprep.subr.mxu1 %v18242_v54 }
 0x511   : > { %6647 = vmatpush2.msra.mxu1 %v5993_v12  ;;  %v6027_v12 = vld [vmem:[%s17664_s5 + $0x390] sm:$0xff] }
 0x512   : > { %6797 = vmatprep.subr.mxu1 %v18242_v54 }
 0x519   : > { %v9325_v58 = vpop.permute.xlu1 %9324 }
 0x51a   : > { %v9327_v4 = vunpack.i.h.bf16 %v9325_v58  ;;  %v9326_v35 = vunpack.i.l.bf16 %v9325_v58  ;;  %v6011_v58 = vld [vmem:[%s17664_s5 + $0x310] sm:$0xff] }
 0x51c   : > { %v5813_v40 = vsel %vm1565_vm1, %v9322_v62, %v9326_v35  ;;  %v5814_v27 = vsel %vm1565_vm1, %v9326_v35, %v9327_v4  ;;  %v6075_v35 = vld [vmem:[%s17664_s5 + $0x510] sm:$0xff] }
 0x51d   : > { %v5879_v15 = vmax.f32 %v18243_v18, %v5813_v40  ;;  %v5750_v30 = vpop.permute.xlu1 %5749  ;;  %v5880_v11 = vmax.f32 %v15604_v37, %v5814_v27  ;;  %v6031_v37 = vld [vmem:[%s17664_s5 + $0x3b0] sm:$0xff]  ;;  %v6010_v40 = vld [vmem:[%s17664_s5 + $0x308] sm:$0xff]  ;;  %v6025_v27 = vld [vmem:[%s17664_s5 + $0x380] sm:$0xff] }
 0x51e   : > { %v5815_v25 = vsel %vm1565_vm1, %v9327_v4, %v5750_v30  ;;  %v5882_v7 = vmax.f32 %v15625_v53, %v5750_v30  ;;  %v6080_v53 = vld [vmem:[%s17664_s5 + $0x538] sm:$0xff]  ;;  %v6026_v4 = vld [vmem:[%s17664_s5 + $0x388] sm:$0xff] }
 0x51f   : > { %v5881_v62 = vmax.f32 %v15606_v38, %v5815_v25  ;;  %6578 = vmatprep.mubr.f32.mxu0 %v5880_v11  ;;  %v6074_v18 = vld [vmem:[%s17664_s5 + $0x508] sm:$0xff]  ;;  %v6024_v30 = vld [vmem:[%s17664_s5 + $0x378] sm:$0xff]  ;;  %v6073_v11 = vld [vmem:[%s17664_s5 + $0x500] sm:$0xff] }
 0x520   : > { %6579 = vmatmul.mubr.f32.vlgmr.msra.gmra.mxu0 %v5879_v15  ;;  %8787 = vmatprep.mubr.msk.f32.mxu1 %vm1565_vm1, %v5882_v7  ;;  %v6009_v15 = vld [vmem:[%s17664_s5 + $0x300] sm:$0xff]  ;;  %v6023_v25 = vld [vmem:[%s17664_s5 + $0x370] sm:$0xff]  ;;  %v6072_v7 = vld [vmem:[%s17664_s5 + $0x4f8] sm:$0xff] }
 0x521   : > { %8871 = vmatpush3.msra.mxu0 %v6016_v39  ;;  %v15910_v38 = vpop.permute.xlu1 %5751  ;;  %6649 = vmatmul.mubr.f32.vlgmr.msra.gmra.mxu1 %v5881_v62  ;;  %v6007_v39 = vld [vmem:[%s17664_s5 + $0x2f0] sm:$0xff]  ;;  %v6022_v62 = vld [vmem:[%s17664_s5 + $0x368] sm:$0xff] }
 0x522   : > { %8872 = vmatprep.subr.mxu0 %v6031_v37  ;;  %6721 = vmatprep.mubr.f32.mxu0 %v5884_v36  ;;  %v6071_v37 = vld [vmem:[%s17664_s5 + $0x4f0] sm:$0xff]  ;;  %v6021_v36 = vld [vmem:[%s17664_s5 + $0x360] sm:$0xff] }
 0x523   : > { %6798 = vmatpush1.msra.mxu1 %v6080_v53  ;;  %8873 = vmatpush3.msra.mxu0 %v6015_v59  ;;  %v6070_v53 = vld [vmem:[%s17664_s5 + $0x4e8] sm:$0xff]  ;;  %v6005_v59 = vld [vmem:[%s17664_s5 + $0x2e0] sm:$0xff] }
 0x524   : > { %6799 = vmatprep.subr.mxu1 %v18242_v54  ;;  %8874 = vmatprep.subr.mxu0 %v6030_v19  ;;  %v6020_v19 = vld [vmem:[%s17664_s5 + $0x358] sm:$0xff] }
 0x525   : > { %6800 = vmatpush1.msra.mxu1 %v6079_v20  ;;  %8875 = vmatpush3.msra.mxu0 %v6014_v9  ;;  %v15931_v32 = vpop.permute.xlu1 %5761  ;;  %v6069_v20 = vld [vmem:[%s17664_s5 + $0x4e0] sm:$0xff]  ;;  %v16023_v9 = vpop.permute.xlu0 %9334 }
 0x526   : > { %6801 = vmatprep.subr.mxu1 %v18242_v54  ;;  %v5888_v10 = vmax.f32 %v15653_v6, %v15931_v32  ;;  %8876 = vmatprep.subr.mxu0 %v6029_v13  ;;  %v6076_v6 = vld [vmem:[%s17664_s5 + $0x518] sm:$0xff] }
 0x527   : > { %6802 = vmatpush1.msra.mxu1 %v6078_v3  ;;  %8877 = vmatpush3.msra.mxu0 %v6013_v14  ;;  %v6004_v13 = vld [vmem:[%s17664_s5 + $0x2d8] sm:$0xff]  ;;  %v6019_v3 = vld [vmem:[%s17664_s5 + $0x350] sm:$0xff] }
 0x528   : > { %6803 = vmatprep.subr.mxu1 %v18242_v54  ;;  %8878 = vmatprep.subr.mxu0 %v6028_v50  ;;  %v6068_v14 = vld [vmem:[%s17664_s5 + $0x4d8] sm:$0xff]  ;;  %v6003_v50 = vld [vmem:[%s17664_s5 + $0x2d0] sm:$0xff] }
 0x529   : > { %6804 = vmatpush1.msra.mxu1 %v6077_v1  ;;  %8879 = vmatpush3.msra.mxu0 %v6012_v8  ;;  %v9336_v1 = vunpack.i.l.bf16 %v16023_v9  ;;  %v6018_v8 = vld [vmem:[%s17664_s5 + $0x348] sm:$0xff] }
 0x52a   : > { %6805 = vmatprep.subr.mxu1 %v18242_v54  ;;  %8788 = vmatprep.mubr.msk.f32.mxu1 %vm1565_vm1, %v5888_v10  ;;  %v9337_v10 = vunpack.i.h.bf16 %v16023_v9  ;;  %v6033_v9 = vld [vmem:[%s17664_s5 + $0x3c0] sm:$0xff] }
 0x52b   : > { %8880 = vmatprep.subr.mxu0 %v6027_v12  ;;  %6806 = vmatpush1.msra.mxu1 %v6076_v6  ;;  %v6067_v12 = vld [vmem:[%s17664_s5 + $0x4d0] sm:$0xff]  ;;  %v6002_v6 = vld [vmem:[%s17664_s5 + $0x2c8] sm:$0xff] }
 0x52c   : > { %8881 = vmatpush3.msra.mxu0 %v6011_v58  ;;  %6807 = vmatprep.subr.mxu1 %v18242_v54  ;;  %v5816_v58 = vsel %vm1565_vm1, %v15910_v38, %v9331_v0  ;;  %v6064_v0 = vld [vmem:[%s17664_s5 + $0x4b8] sm:$0xff]  ;;  %v5819_v38 = vsel %vm1565_vm1, %v9336_v1, %v9337_v10 }
 0x52d   : > { %8882 = vmatprep.subr.mxu0 %v6026_v4  ;;  %6808 = vmatpush1.msra.mxu1 %v6075_v35  ;;  %v6017_v4 = vld [vmem:[%s17664_s5 + $0x340] sm:$0xff]  ;;  %v6066_v35 = vld [vmem:[%s17664_s5 + $0x4c8] sm:$0xff] }
 0x52e   : > { %8883 = vmatpush3.msra.mxu0 %v6010_v40  ;;  %6809 = vmatprep.subr.mxu1 %v18242_v54  ;;  %v6001_v40 = vld [vmem:[%s17664_s5 + $0x2c0] sm:$0xff] }
 0x52f   : > { %8884 = vmatprep.subr.mxu0 %v6025_v27  ;;  %6810 = vmatpush1.msra.mxu1 %v6074_v18  ;;  %v5883_v27 = vmax.f32 %v18192_v31, %v5816_v58  ;;  %v6065_v18 = vld [vmem:[%s17664_s5 + $0x4c0] sm:$0xff]  ;;  %v6063_v31 = vld [vmem:[%s17664_s5 + $0x4b0] sm:$0xff] }
 0x530   : > { %8885 = vmatpush3.msra.mxu0 %v6009_v15  ;;  %6811 = vmatprep.subr.mxu1 %v18242_v54  ;;  %v6048_v15 = vld [vmem:[%s17664_s5 + $0x438] sm:$0xff]  ;;  %v6057_v58 = vld [vmem:[%s17664_s5 + $0x480] sm:$0xff] }
 0x531   : > { %8886 = vmatprep.subr.mxu0 %v6024_v30  ;;  %6812 = vmatpush1.msra.mxu1 %v6073_v11  ;;  %v5886_v30 = vmax.f32 %v15635_v21, %v5819_v38  ;;  %v6088_v11 = vld [vmem:[%s17664_s5 + $0x578] sm:$0xff]  ;;  %v6062_v21 = vld [vmem:[%s17664_s5 + $0x4a8] sm:$0xff]  ;;  %v6081_v38 = vld [vmem:[%s17664_s5 + $0x540] sm:$0xff] }
 0x532   : > { %8887 = vmatpush3.msra.mxu0 %v6008_v44  ;;  %6813 = vmatprep.subr.mxu1 %v18242_v54  ;;  %v6047_v44 = vld [vmem:[%s17664_s5 + $0x430] sm:$0xff] }
 0x533   : > { %8888 = vmatprep.subr.mxu0 %v6023_v25  ;;  %6814 = vmatpush1.msra.mxu1 %v6072_v7  ;;  %v16091_v25 = vpop.permute.xlu0 %9339  ;;  %v6087_v7 = vld [vmem:[%s17664_s5 + $0x570] sm:$0xff] }
 0x534   : > { %8889 = vmatpush3.msra.mxu0 %v6007_v39  ;;  %6815 = vmatprep.subr.mxu1 %v18242_v54  ;;  %v6046_v39 = vld [vmem:[%s17664_s5 + $0x428] sm:$0xff] }
 0x535   : > { %8890 = vmatprep.subr.mxu0 %v6022_v62  ;;  %6816 = vmatpush1.msra.mxu1 %v6071_v37  ;;  %v6061_v62 = vld [vmem:[%s17664_s5 + $0x4a0] sm:$0xff]  ;;  %v6086_v37 = vld [vmem:[%s17664_s5 + $0x568] sm:$0xff] }
 0x536   : > { %8891 = vmatpush3.msra.mxu0 %v6006_v26  ;;  %6817 = vmatprep.subr.mxu1 %v18242_v54  ;;  %v6045_v26 = vld [vmem:[%s17664_s5 + $0x420] sm:$0xff] }
 0x537   : > { %8892 = vmatprep.subr.mxu0 %v6021_v36  ;;  %6818 = vmatpush1.msra.mxu1 %v6070_v53  ;;  %v6060_v36 = vld [vmem:[%s17664_s5 + $0x498] sm:$0xff]  ;;  %v6085_v53 = vld [vmem:[%s17664_s5 + $0x560] sm:$0xff] }
 0x538   : > { %8893 = vmatpush3.msra.mxu0 %v6005_v59  ;;  %6819 = vmatprep.subr.mxu1 %v18242_v54  ;;  %v6044_v59 = vld [vmem:[%s17664_s5 + $0x418] sm:$0xff] }
 0x539   : > { %8894 = vmatprep.subr.mxu0 %v6020_v19  ;;  %6820 = vmatpush1.msra.mxu1 %v6069_v20  ;;  %v16123_v19 = vpop.permute.xlu0 %9344  ;;  %v6059_v20 = vld [vmem:[%s17664_s5 + $0x490] sm:$0xff] }
 0x53a   : > { %8895 = vmatpush3.msra.mxu0 %v6004_v13  ;;  %6821 = vmatprep.subr.mxu1 %v18242_v54  ;;  %v6084_v13 = vld [vmem:[%s17664_s5 + $0x558] sm:$0xff] }
 0x53b   : > { %8896 = vmatprep.subr.mxu0 %v6019_v3  ;;  %6822 = vmatpush1.msra.mxu1 %v6068_v14  ;;  %v6043_v3 = vld [vmem:[%s17664_s5 + $0x410] sm:$0xff]  ;;  %v6058_v14 = vld [vmem:[%s17664_s5 + $0x488] sm:$0xff] }
 0x53c   : > { %8897 = vmatpush3.msra.mxu0 %v6003_v50  ;;  %6823 = vmatprep.subr.mxu1 %v18242_v54  ;;  %v6083_v50 = vld [vmem:[%s17664_s5 + $0x550] sm:$0xff] }
 0x53d   : > { %8898 = vmatprep.subr.mxu0 %v6018_v8  ;;  %6824 = vmatpush1.msra.mxu1 %v6067_v12  ;;  %v9347_v8 = vunpack.i.h.bf16 %v16123_v19  ;;  %v9346_v12 = vunpack.i.l.bf16 %v16123_v19  ;;  %v6240_v19 = vld [vmem:[%s17664_s5 + $0xa38] sm:$0xff] }
 0x53e   : > { %8899 = vmatpush3.msra.mxu0 %v6002_v6  ;;  %6825 = vmatprep.subr.mxu1 %v18242_v54  ;;  %v6042_v6 = vld [vmem:[%s17664_s5 + $0x408] sm:$0xff] }
 0x53f   : > { %8900 = vmatprep.subr.mxu0 %v6017_v4  ;;  %6826 = vmatpush1.msra.mxu1 %v6066_v35  ;;  %v6082_v4 = vld [vmem:[%s17664_s5 + $0x548] sm:$0xff]  ;;  %v5820_v35 = vsel %vm1565_vm1, %v9337_v10, %v15931_v32  ;;  %v6040_v32 = vld [vmem:[%s17664_s5 + $0x3f8] sm:$0xff]  ;;  %v5824_v10 = vsel %vm1565_vm1, %v9346_v12, %v9347_v8 }
 0x540   : > { %8901 = vmatpush3.msra.mxu0 %v6001_v40  ;;  %6827 = vmatprep.subr.mxu1 %v18242_v54  ;;  %v6041_v40 = vld [vmem:[%s17664_s5 + $0x400] sm:$0xff] }
 0x541   : > { %6722 = vmatmul.mubr.f32.vlgmr.msra.gmra.mxu0 %v5883_v27  ;;  %8905 = vmatprep.subr.mxu0 %v6064_v0  ;;  %v6056_v0 = vld [vmem:[%s17664_s5 + $0x478] sm:$0xff]  ;;  %v5887_v27 = vmax.f32 %v15637_v56, %v5820_v35  ;;  %v5892_v56 = vmax.f32 %v15670_v41, %v5824_v10  ;;  %v6038_v41 = vld [vmem:[%s17664_s5 + $0x3e8] sm:$0xff]  ;;  %v6131_v35 = vld [vmem:[%s17664_s5 + $0x6d0] sm:$0xff] }
 0x542   : > { %6828 = vmatpush1.msra.mxu1 %v6065_v18  ;;  %8906 = vmatpush3.msra.mxu0 %v6048_v15  ;;  %v6152_v18 = vld [vmem:[%s17664_s5 + $0x778] sm:$0xff]  ;;  %v6055_v15 = vld [vmem:[%s17664_s5 + $0x470] sm:$0xff]  ;;  %v6130_v10 = vld [vmem:[%s17664_s5 + $0x6c8] sm:$0xff] }
 0x543   : > { %6791 = vmatprep.mubr.f32.mxu0 %v5886_v30  ;;  %6845 = vmatprep.subr.mxu1 %v18242_v54  ;;  %v6136_v30 = vld [vmem:[%s17664_s5 + $0x6f8] sm:$0xff] }
 0x544   : > { %8907 = vmatprep.subr.mxu0 %v6063_v31  ;;  %6846 = vmatpush2.msra.mxu1 %v6088_v11  ;;  %v6039_v31 = vld [vmem:[%s17664_s5 + $0x3f0] sm:$0xff] }
 0x545   : > { %8908 = vmatpush3.msra.mxu0 %v6047_v44  ;;  %6847 = vmatprep.subr.mxu1 %v18242_v54  ;;  %v6151_v11 = vld [vmem:[%s17664_s5 + $0x770] sm:$0xff]  ;;  %v6054_v44 = vld [vmem:[%s17664_s5 + $0x468] sm:$0xff] }
 0x546   : > { %8909 = vmatprep.subr.mxu0 %v6062_v21  ;;  %6848 = vmatpush2.msra.mxu1 %v6087_v7  ;;  %v6135_v21 = vld [vmem:[%s17664_s5 + $0x6f0] sm:$0xff]  ;;  %v6150_v7 = vld [vmem:[%s17664_s5 + $0x768] sm:$0xff] }
 0x547   : > { %8910 = vmatpush3.msra.mxu0 %v6046_v39  ;;  %6849 = vmatprep.subr.mxu1 %v18242_v54  ;;  %v6053_v39 = vld [vmem:[%s17664_s5 + $0x460] sm:$0xff] }
 0x548   : > { %8911 = vmatprep.subr.mxu0 %v6061_v62  ;;  %6850 = vmatpush2.msra.mxu1 %v6086_v37  ;;  %v6134_v62 = vld [vmem:[%s17664_s5 + $0x6e8] sm:$0xff]  ;;  %v6037_v37 = vld [vmem:[%s17664_s5 + $0x3e0] sm:$0xff] }
 0x549   : > { %8912 = vmatpush3.msra.mxu0 %v6045_v26  ;;  %6851 = vmatprep.subr.mxu1 %v18242_v54  ;;  %v6149_v26 = vld [vmem:[%s17664_s5 + $0x760] sm:$0xff] }
 0x54a   : > { %8913 = vmatprep.subr.mxu0 %v6060_v36  ;;  %6852 = vmatpush2.msra.mxu1 %v6085_v53  ;;  %v6052_v36 = vld [vmem:[%s17664_s5 + $0x458] sm:$0xff]  ;;  %v6133_v53 = vld [vmem:[%s17664_s5 + $0x6e0] sm:$0xff] }
 0x54b   : > { %8914 = vmatpush3.msra.mxu0 %v6044_v59  ;;  %6853 = vmatprep.subr.mxu1 %v18242_v54  ;;  %v6036_v59 = vld [vmem:[%s17664_s5 + $0x3d8] sm:$0xff] }
 0x54c   : > { %8915 = vmatprep.subr.mxu0 %v6059_v20  ;;  %6854 = vmatpush2.msra.mxu1 %v6084_v13  ;;  %v6148_v20 = vld [vmem:[%s17664_s5 + $0x758] sm:$0xff]  ;;  %v6051_v13 = vld [vmem:[%s17664_s5 + $0x450] sm:$0xff] }
 0x54d   : > { %8916 = vmatpush3.msra.mxu0 %v6043_v3  ;;  %6855 = vmatprep.subr.mxu1 %v18242_v54  ;;  %v6132_v3 = vld [vmem:[%s17664_s5 + $0x6d8] sm:$0xff] }
 0x54e   : > { %8917 = vmatprep.subr.mxu0 %v6058_v14  ;;  %6856 = vmatpush2.msra.mxu1 %v6083_v50  ;;  %v6035_v14 = vld [vmem:[%s17664_s5 + $0x3d0] sm:$0xff] }
 0x54f   : > { %8918 = vmatpush3.msra.mxu0 %v6042_v6  ;;  %6857 = vmatprep.subr.mxu1 %v18242_v54  ;;  %v6147_v50 = vld [vmem:[%s17664_s5 + $0x750] sm:$0xff]  ;;  %v9342_v6 = vunpack.i.h.bf16 %v16091_v25 }
 0x550   : > { %8919 = vmatprep.subr.mxu0 %v6057_v58  ;;  %6858 = vmatpush2.msra.mxu1 %v6082_v4  ;;  %v9341_v58 = vunpack.i.l.bf16 %v16091_v25  ;;  %v6050_v4 = vld [vmem:[%s17664_s5 + $0x448] sm:$0xff]  ;;  %v6201_v25 = vld [vmem:[%s17664_s5 + $0x900] sm:$0xff] }
 0x551   : > { %8920 = vmatpush3.msra.mxu0 %v6041_v40  ;;  %6859 = vmatprep.subr.mxu1 %v18242_v54  ;;  %v6034_v40 = vld [vmem:[%s17664_s5 + $0x3c8] sm:$0xff] }
 0x552   : > { %8921 = vmatprep.subr.mxu0 %v6056_v0  ;;  %6860 = vmatpush2.msra.mxu1 %v6081_v38  ;;  %v6146_v0 = vld [vmem:[%s17664_s5 + $0x748] sm:$0xff]  ;;  %v5818_v38 = vsel %vm1565_vm1, %v9332_v46, %v9336_v1  ;;  %v6120_v46 = vld [vmem:[%s17664_s5 + $0x678] sm:$0xff]  ;;  %v5822_v1 = vsel %vm1565_vm1, %v9341_v58, %v9342_v6 }
 0x553   : > { %8922 = vmatpush3.msra.mxu0 %v6040_v32  ;;  %6862 = vmatmul.mubr.f32.vlgmr.msra.gmra.mxu1 %v5887_v27  ;;  %v6049_v32 = vld [vmem:[%s17664_s5 + $0x440] sm:$0xff]  ;;  %v18245_v27 = vld [vmem:[#allocation39_spill] sm:$0xff] }
 0x554   : > { %8975 = vmatprep.subr.mxu1 %v6152_v18  ;;  %8923 = vmatprep.subr.mxu0 %v6055_v15  ;;  %v5885_v18 = vmax.f32 %v18245_v27, %v5818_v38  ;;  %v6129_v15 = vld [vmem:[%s17664_s5 + $0x6c0] sm:$0xff]  ;;  %v6114_v38 = vld [vmem:[%s17664_s5 + $0x648] sm:$0xff] }
 0x555   : > { %8976 = vmatpush3.msra.mxu1 %v6136_v30  ;;  %7004 = vmatprep.mubr.f32.mxu1 %v5892_v56  ;;  %v6104_v30 = vld [vmem:[%s17664_s5 + $0x5f8] sm:$0xff]  ;;  %v6122_v27 = vld [vmem:[%s17664_s5 + $0x688] sm:$0xff] }
 0x556   : > { %8924 = vmatpush3.msra.mxu0 %v6039_v31  ;;  %8977 = vmatprep.subr.mxu1 %v6151_v11  ;;  %v6144_v56 = vld [vmem:[%s17664_s5 + $0x738] sm:$0xff]  ;;  %v5890_v31 = vmax.f32 %v18195_v16, %v5822_v1  ;;  %v6119_v11 = vld [vmem:[%s17664_s5 + $0x670] sm:$0xff]  ;;  %v6118_v16 = vld [vmem:[%s17664_s5 + $0x668] sm:$0xff] }
 0x557   : > { %8925 = vmatprep.subr.mxu0 %v6054_v44  ;;  %8978 = vmatpush3.msra.mxu1 %v6135_v21  ;;  %v6128_v44 = vld [vmem:[%s17664_s5 + $0x6b8] sm:$0xff]  ;;  %v6103_v21 = vld [vmem:[%s17664_s5 + $0x5f0] sm:$0xff]  ;;  %v6113_v1 = vld [vmem:[%s17664_s5 + $0x640] sm:$0xff] }
 0x558   : > { %8926 = vmatpush3.msra.mxu0 %v6038_v41  ;;  %8979 = vmatprep.subr.mxu1 %v6150_v7  ;;  %v6143_v41 = vld [vmem:[%s17664_s5 + $0x730] sm:$0xff]  ;;  %v16304_v7 = vpop.permute.xlu1 %5763 }
 0x559   : > { %8927 = vmatprep.subr.mxu0 %v6053_v39  ;;  %8980 = vmatpush3.msra.mxu1 %v6134_v62  ;;  %v6127_v39 = vld [vmem:[%s17664_s5 + $0x6b0] sm:$0xff]  ;;  %v6102_v62 = vld [vmem:[%s17664_s5 + $0x5e8] sm:$0xff] }
 0x55a   : > { %8928 = vmatpush3.msra.mxu0 %v6037_v37  ;;  %8981 = vmatprep.subr.mxu1 %v6149_v26  ;;  %v6142_v37 = vld [vmem:[%s17664_s5 + $0x728] sm:$0xff]  ;;  %v6117_v26 = vld [vmem:[%s17664_s5 + $0x660] sm:$0xff] }
 0x55b   : > { %8929 = vmatprep.subr.mxu0 %v6052_v36  ;;  %8982 = vmatpush3.msra.mxu1 %v6133_v53  ;;  %v6126_v36 = vld [vmem:[%s17664_s5 + $0x6a8] sm:$0xff]  ;;  %v6101_v53 = vld [vmem:[%s17664_s5 + $0x5e0] sm:$0xff] }
 0x55c   : > { %8930 = vmatpush3.msra.mxu0 %v6036_v59  ;;  %8983 = vmatprep.subr.mxu1 %v6148_v20  ;;  %v6141_v59 = vld [vmem:[%s17664_s5 + $0x720] sm:$0xff]  ;;  %v6116_v20 = vld [vmem:[%s17664_s5 + $0x658] sm:$0xff] }
 0x55d   : > { %8931 = vmatprep.subr.mxu0 %v6051_v13  ;;  %8984 = vmatpush3.msra.mxu1 %v6132_v3  ;;  %v6125_v13 = vld [vmem:[%s17664_s5 + $0x6a0] sm:$0xff]  ;;  %v6100_v3 = vld [vmem:[%s17664_s5 + $0x5d8] sm:$0xff] }
 0x55e   : > { %8932 = vmatpush3.msra.mxu0 %v6035_v14  ;;  %8985 = vmatprep.subr.mxu1 %v6147_v50  ;;  %v6140_v14 = vld [vmem:[%s17664_s5 + $0x718] sm:$0xff]  ;;  %v16342_v50 = vpop.permute.xlu1 %9349 }
 0x55f   : > { %8933 = vmatprep.subr.mxu0 %v6050_v4  ;;  %8986 = vmatpush3.msra.mxu1 %v6131_v35  ;;  %v6115_v4 = vld [vmem:[%s17664_s5 + $0x650] sm:$0xff]  ;;  %v6124_v35 = vld [vmem:[%s17664_s5 + $0x698] sm:$0xff] }
 0x560   : > { %8934 = vmatpush3.msra.mxu0 %v6034_v40  ;;  %8987 = vmatprep.subr.mxu1 %v6146_v0  ;;  %v6099_v40 = vld [vmem:[%s17664_s5 + $0x5d0] sm:$0xff] }
 0x561   : > { %8935 = vmatprep.subr.mxu0 %v6049_v32  ;;  %8988 = vmatpush3.msra.mxu1 %v6130_v10  ;;  %v6139_v0 = vld [vmem:[%s17664_s5 + $0x710] sm:$0xff]  ;;  %v9352_v10 = vunpack.i.h.bf16 %v16342_v50 }
 0x562   : > { %8936 = vmatpush3.msra.mxu0 %v6033_v9  ;;  %8989 = vmatprep.subr.mxu1 %v6145_v60  ;;  %v6123_v32 = vld [vmem:[%s17664_s5 + $0x690] sm:$0xff]  ;;  %v9351_v9 = vunpack.i.l.bf16 %v16342_v50  ;;  %v6098_v60 = vld [vmem:[%s17664_s5 + $0x5c8] sm:$0xff]  ;;  %v6321_v50 = vld [vmem:[%s17664_s5 + $0xcc0] sm:$0xff] }
 0x563   : > { %6792 = vmatmul.mubr.f32.vlgmr.msra.gmra.mxu0 %v5885_v18  ;;  %8940 = vmatprep.subr.mxu0 %v6120_v46  ;;  %v6138_v46 = vld [vmem:[%s17664_s5 + $0x708] sm:$0xff]  ;;  %v5823_v18 = vsel %vm1565_vm1, %v9342_v6, %v9346_v12  ;;  %v6121_v12 = vld [vmem:[%s17664_s5 + $0x680] sm:$0xff]  ;;  %v6096_v6 = vld [vmem:[%s17664_s5 + $0x5b8] sm:$0xff] }
 0x564   : > { %8990 = vmatpush3.msra.mxu1 %v6129_v15  ;;  %8941 = vmatpush3.msra.mxu0 %v6104_v30  ;;  %v6097_v15 = vld [vmem:[%s17664_s5 + $0x5c0] sm:$0xff] }
 0x565   : > { %6934 = vmatprep.mubr.f32.mxu0 %v5890_v31  ;;  %8991 = vmatprep.subr.mxu1 %v6144_v56  ;;  %v6137_v30 = vld [vmem:[%s17664_s5 + $0x700] sm:$0xff]  ;;  %v6112_v56 = vld [vmem:[%s17664_s5 + $0x638] sm:$0xff]  ;;  %v5827_v31 = vsel %vm1565_vm1, %v9351_v9, %v9352_v10 }
 0x566   : > { %8942 = vmatprep.subr.mxu0 %v6119_v11  ;;  %8992 = vmatpush3.msra.mxu1 %v6128_v44  ;;  %v5891_v11 = vmax.f32 %v18196_v63, %v5823_v18  ;;  %v6208_v44 = vld [vmem:[%s17664_s5 + $0x938] sm:$0xff]  ;;  %v5896_v63 = vmax.f32 %v18213_v47, %v5827_v31  ;;  %v6094_v47 = vld [vmem:[%s17664_s5 + $0x5a8] sm:$0xff]  ;;  %v6105_v18 = vld [vmem:[%s17664_s5 + $0x600] sm:$0xff] }
 0x567   : > { %8943 = vmatpush3.msra.mxu0 %v6103_v21  ;;  %8993 = vmatprep.subr.mxu1 %v6143_v41  ;;  %v6111_v21 = vld [vmem:[%s17664_s5 + $0x630] sm:$0xff]  ;;  %v6192_v41 = vld [vmem:[%s17664_s5 + $0x8b8] sm:$0xff] }
 0x568   : > { %8944 = vmatprep.subr.mxu0 %v6118_v16  ;;  %8994 = vmatpush3.msra.mxu1 %v6127_v39  ;;  %v6095_v16 = vld [vmem:[%s17664_s5 + $0x5b0] sm:$0xff] }
 0x569   : > { %8945 = vmatpush3.msra.mxu0 %v6102_v62  ;;  %8995 = vmatprep.subr.mxu1 %v6142_v37  ;;  %v6207_v39 = vld [vmem:[%s17664_s5 + $0x930] sm:$0xff]  ;;  %v6110_v62 = vld [vmem:[%s17664_s5 + $0x628] sm:$0xff] }
 0x56a   : > { %8946 = vmatprep.subr.mxu0 %v6117_v26  ;;  %8996 = vmatpush3.msra.mxu1 %v6126_v36  ;;  %v6191_v37 = vld [vmem:[%s17664_s5 + $0x8b0] sm:$0xff]  ;;  %v6206_v26 = vld [vmem:[%s17664_s5 + $0x928] sm:$0xff]  ;;  %v6109_v36 = vld [vmem:[%s17664_s5 + $0x620] sm:$0xff] }
 0x56b   : > { %8947 = vmatpush3.msra.mxu0 %v6101_v53  ;;  %8997 = vmatprep.subr.mxu1 %v6141_v59  ;;  %v6190_v53 = vld [vmem:[%s17664_s5 + $0x8a8] sm:$0xff]  ;;  %v6093_v59 = vld [vmem:[%s17664_s5 + $0x5a0] sm:$0xff] }
 0x56c   : > { %8948 = vmatprep.subr.mxu0 %v6116_v20  ;;  %8998 = vmatpush3.msra.mxu1 %v6125_v13  ;;  %v6205_v20 = vld [vmem:[%s17664_s5 + $0x920] sm:$0xff]  ;;  %v6108_v13 = vld [vmem:[%s17664_s5 + $0x618] sm:$0xff] }
 0x56d   : > { %8949 = vmatpush3.msra.mxu0 %v6100_v3  ;;  %8999 = vmatprep.subr.mxu1 %v6140_v14  ;;  %v6189_v3 = vld [vmem:[%s17664_s5 + $0x8a0] sm:$0xff]  ;;  %v6092_v14 = vld [vmem:[%s17664_s5 + $0x598] sm:$0xff] }
 0x56e   : > { %8950 = vmatprep.subr.mxu0 %v6115_v4  ;;  %9000 = vmatpush3.msra.mxu1 %v6124_v35  ;;  %v6204_v4 = vld [vmem:[%s17664_s5 + $0x918] sm:$0xff]  ;;  %v6107_v35 = vld [vmem:[%s17664_s5 + $0x610] sm:$0xff] }
 0x56f   : > { %8951 = vmatpush3.msra.mxu0 %v6099_v40  ;;  %9001 = vmatprep.subr.mxu1 %v6139_v0  ;;  %v6188_v40 = vld [vmem:[%s17664_s5 + $0x898] sm:$0xff]  ;;  %v6091_v0 = vld [vmem:[%s17664_s5 + $0x590] sm:$0xff] }
 0x570   : > { %8952 = vmatprep.subr.mxu0 %v6114_v38  ;;  %9002 = vmatpush3.msra.mxu1 %v6123_v32  ;;  %v6203_v38 = vld [vmem:[%s17664_s5 + $0x910] sm:$0xff]  ;;  %v6106_v32 = vld [vmem:[%s17664_s5 + $0x608] sm:$0xff] }
 0x571   : > { %8953 = vmatpush3.msra.mxu0 %v6098_v60  ;;  %9003 = vmatprep.subr.mxu1 %v6138_v46  ;;  %v6187_v60 = vld [vmem:[%s17664_s5 + $0x890] sm:$0xff]  ;;  %v6090_v46 = vld [vmem:[%s17664_s5 + $0x588] sm:$0xff] }
 0x572   : > { %8954 = vmatprep.subr.mxu0 %v6113_v1  ;;  %9004 = vmatpush3.msra.mxu1 %v6122_v27  ;;  %v6202_v1 = vld [vmem:[%s17664_s5 + $0x908] sm:$0xff]  ;;  %v5821_v27 = vsel %vm1565_vm1, %v16304_v7, %v9341_v58  ;;  %v16494_v58 = vpop.permute.xlu1 %5773 }
 0x573   : > { %8955 = vmatpush3.msra.mxu0 %v6097_v15  ;;  %9005 = vmatprep.subr.mxu1 %v6137_v30  ;;  %v6186_v15 = vld [vmem:[%s17664_s5 + $0x888] sm:$0xff]  ;;  %v6089_v30 = vld [vmem:[%s17664_s5 + $0x580] sm:$0xff]  ;;  %v5889_v7 = vmax.f32 %v18210_v2, %v5821_v27  ;;  %v5894_v31 = vmax.f32 %v15689_v43, %v16494_v58  ;;  %v6184_v2 = vld [vmem:[%s17664_s5 + $0x878] sm:$0xff] }
 0x574   : > { %8956 = vmatprep.subr.mxu0 %v6112_v56  ;;  %9006 = vmatpush3.msra.mxu1 %v6121_v12  ;;  %v6185_v56 = vld [vmem:[%s17664_s5 + $0x880] sm:$0xff]  ;;  %v6168_v12 = vld [vmem:[%s17664_s5 + $0x7f8] sm:$0xff]  ;;  %v6183_v43 = vld [vmem:[%s17664_s5 + $0x870] sm:$0xff] }
 0x575   : > { %8957 = vmatpush3.msra.mxu0 %v6096_v6  ;;  %7005 = vmatmul.mubr.f32.vlgmr.msra.gmra.mxu1 %v5891_v11  ;;  %v6200_v6 = vld [vmem:[%s17664_s5 + $0x8f8] sm:$0xff]  ;;  %v6167_v11 = vld [vmem:[%s17664_s5 + $0x7f0] sm:$0xff]  ;;  %v6254_v27 = vld [vmem:[%s17664_s5 + $0xaa8] sm:$0xff] }
 0x576   : > { %9010 = vmatprep.subr.mxu1 %v6208_v44  ;;  %8958 = vmatprep.subr.mxu0 %v6111_v21  ;;  %v6199_v44 = vld [vmem:[%s17664_s5 + $0x8f0] sm:$0xff]  ;;  %v6166_v21 = vld [vmem:[%s17664_s5 + $0x7e8] sm:$0xff] }
 0x577   : > { %9011 = vmatpush3.msra.mxu1 %v6192_v41  ;;  %7147 = vmatprep.mubr.f32.mxu1 %v5896_v63  ;;  %v6198_v41 = vld [vmem:[%s17664_s5 + $0x8e8] sm:$0xff] }
 0x578   : > { %8959 = vmatpush3.msra.mxu0 %v6095_v16  ;;  %9012 = vmatprep.subr.mxu1 %v6207_v39  ;;  %v6182_v63 = vld [vmem:[%s17664_s5 + $0x868] sm:$0xff]  ;;  %v6165_v16 = vld [vmem:[%s17664_s5 + $0x7e0] sm:$0xff] }
 0x579   : > { %8960 = vmatprep.subr.mxu0 %v6110_v62  ;;  %9013 = vmatpush3.msra.mxu1 %v6191_v37  ;;  %v6197_v39 = vld [vmem:[%s17664_s5 + $0x8e0] sm:$0xff]  ;;  %v6164_v37 = vld [vmem:[%s17664_s5 + $0x7d8] sm:$0xff] }
 0x57a   : > { %8961 = vmatpush3.msra.mxu0 %v6094_v47  ;;  %9014 = vmatprep.subr.mxu1 %v6206_v26  ;;  %v6181_v62 = vld [vmem:[%s17664_s5 + $0x860] sm:$0xff]  ;;  %v6196_v47 = vld [vmem:[%s17664_s5 + $0x8d8] sm:$0xff] }
 0x57b   : > { %8962 = vmatprep.subr.mxu0 %v6109_v36  ;;  %9015 = vmatpush3.msra.mxu1 %v6190_v53  ;;  %v6180_v26 = vld [vmem:[%s17664_s5 + $0x858] sm:$0xff]  ;;  %v6163_v36 = vld [vmem:[%s17664_s5 + $0x7d0] sm:$0xff] }
 0x57c   : > { %8963 = vmatpush3.msra.mxu0 %v6093_v59  ;;  %9016 = vmatprep.subr.mxu1 %v6205_v20  ;;  %v6195_v53 = vld [vmem:[%s17664_s5 + $0x8d0] sm:$0xff]  ;;  %v6162_v20 = vld [vmem:[%s17664_s5 + $0x7c8] sm:$0xff] }
 0x57d   : > { %8964 = vmatprep.subr.mxu0 %v6108_v13  ;;  %9017 = vmatpush3.msra.mxu1 %v6189_v3  ;;  %v6179_v59 = vld [vmem:[%s17664_s5 + $0x850] sm:$0xff]  ;;  %v6194_v13 = vld [vmem:[%s17664_s5 + $0x8c8] sm:$0xff]  ;;  %v5776_v3 = vpop.permute.xlu0 %5775 }
 0x57e   : > { %8965 = vmatpush3.msra.mxu0 %v6092_v14  ;;  %9018 = vmatprep.subr.mxu1 %v6204_v4  ;;  %v6178_v14 = vld [vmem:[%s17664_s5 + $0x848] sm:$0xff]  ;;  %v5826_v4 = vsel %vm1565_vm1, %v5776_v3, %v9351_v9  ;;  %v6160_v9 = vld [vmem:[%s17664_s5 + $0x7b8] sm:$0xff]  ;;  %v6243_v3 = vld [vmem:[%s17664_s5 + $0xa50] sm:$0xff] }
 0x57f   : > { %8966 = vmatprep.subr.mxu0 %v6107_v35  ;;  %9019 = vmatpush3.msra.mxu1 %v6188_v40  ;;  %v6161_v35 = vld [vmem:[%s17664_s5 + $0x7c0] sm:$0xff] }
 0x580   : > { %8967 = vmatpush3.msra.mxu0 %v6091_v0  ;;  %9020 = vmatprep.subr.mxu1 %v6203_v38  ;;  %v6193_v40 = vld [vmem:[%s17664_s5 + $0x8c0] sm:$0xff]  ;;  %v16585_v38 = vpop.permute.xlu1 %5785 }
 0x581   : > { %8968 = vmatprep.subr.mxu0 %v6106_v32  ;;  %9021 = vmatpush3.msra.mxu1 %v6187_v60  ;;  %v6177_v0 = vld [vmem:[%s17664_s5 + $0x840] sm:$0xff]  ;;  %v5895_v32 = vmax.f32 %v18220_v24, %v5826_v4  ;;  %v6256_v60 = vld [vmem:[%s17664_s5 + $0xab8] sm:$0xff]  ;;  %v6255_v24 = vld [vmem:[%s17664_s5 + $0xab0] sm:$0xff]  ;;  %v5825_v4 = vsel %vm1565_vm1, %v9347_v8, %v16494_v58 }
 0x582   : > { %8969 = vmatpush3.msra.mxu0 %v6090_v46  ;;  %9022 = vmatprep.subr.mxu1 %v6202_v1  ;;  %v5900_v46 = vmax.f32 %v15721_v52, %v16585_v38  ;;  %v6159_v1 = vld [vmem:[%s17664_s5 + $0x7b0] sm:$0xff]  ;;  %v6158_v52 = vld [vmem:[%s17664_s5 + $0x7a8] sm:$0xff]  ;;  %v5893_v58 = vmax.f32 %v15672_v55, %v5825_v4 }
 0x583   : > { %8970 = vmatprep.subr.mxu0 %v6105_v18  ;;  %9023 = vmatpush3.msra.mxu1 %v6186_v15  ;;  %v6157_v18 = vld [vmem:[%s17664_s5 + $0x7a0] sm:$0xff]  ;;  %v6239_v55 = vld [vmem:[%s17664_s5 + $0xa30] sm:$0xff] }
 0x584   : > { %8971 = vmatpush3.msra.mxu0 %v6089_v30  ;;  %9024 = vmatprep.subr.mxu1 %v6201_v25  ;;  %v6253_v15 = vld [vmem:[%s17664_s5 + $0xaa0] sm:$0xff]  ;;  %v6156_v30 = vld [vmem:[%s17664_s5 + $0x798] sm:$0xff]  ;;  %v6327_v4 = vld [vmem:[%s17664_s5 + $0xcf0] sm:$0xff] }
 0x585   : > { %6935 = vmatmul.mubr.f32.vlgmr.msra.gmra.mxu0 %v5889_v7  ;;  %7010 = vmatprep.subr.mxu0 %v18242_v54  ;;  %v6252_v25 = vld [vmem:[%s17664_s5 + $0xa98] sm:$0xff]  ;;  %v6155_v7 = vld [vmem:[%s17664_s5 + $0x790] sm:$0xff] }
 0x586   : > { %9025 = vmatpush3.msra.mxu1 %v6185_v56  ;;  %7011 = vmatpush1.msra.mxu0 %v6168_v12  ;;  %v6251_v56 = vld [vmem:[%s17664_s5 + $0xa90] sm:$0xff]  ;;  %v6154_v12 = vld [vmem:[%s17664_s5 + $0x788] sm:$0xff] }
 0x587   : > { %8789 = vmatprep.mubr.msk.f32.mxu0 %vm1565_vm1, %v5894_v31  ;;  %9026 = vmatprep.subr.mxu1 %v6200_v6  ;;  %v6250_v6 = vld [vmem:[%s17664_s5 + $0xa88] sm:$0xff] }
 0x588   : > { %7012 = vmatprep.subr.mxu0 %v18242_v54  ;;  %9027 = vmatpush3.msra.mxu1 %v6184_v2  ;;  %v6153_v2 = vld [vmem:[%s17664_s5 + $0x780] sm:$0xff] }
 0x589   : > { %7013 = vmatpush1.msra.mxu0 %v6167_v11  ;;  %9028 = vmatprep.subr.mxu1 %v6199_v44  ;;  %v6249_v11 = vld [vmem:[%s17664_s5 + $0xa80] sm:$0xff] }
 0x58a   : > { %7014 = vmatprep.subr.mxu0 %v18242_v54  ;;  %9029 = vmatpush3.msra.mxu1 %v6183_v43  ;;  %v6176_v43 = vld [vmem:[%s17664_s5 + $0x838] sm:$0xff] }
 0x58b   : > { %7015 = vmatpush1.msra.mxu0 %v6166_v21  ;;  %9030 = vmatprep.subr.mxu1 %v6198_v41  ;;  %v6248_v41 = vld [vmem:[%s17664_s5 + $0xa78] sm:$0xff] }
 0x58c   : > { %7016 = vmatprep.subr.mxu0 %v18242_v54  ;;  %9031 = vmatpush3.msra.mxu1 %v6182_v63  ;;  %v6175_v63 = vld [vmem:[%s17664_s5 + $0x830] sm:$0xff] }
 0x58d   : > { %7017 = vmatpush1.msra.mxu0 %v6165_v16  ;;  %9032 = vmatprep.subr.mxu1 %v6197_v39  ;;  %v6247_v16 = vld [vmem:[%s17664_s5 + $0xa70] sm:$0xff]  ;;  %v6174_v39 = vld [vmem:[%s17664_s5 + $0x828] sm:$0xff] }
 0x58e   : > { %7018 = vmatprep.subr.mxu0 %v18242_v54  ;;  %9033 = vmatpush3.msra.mxu1 %v6181_v62  ;;  %v6246_v62 = vld [vmem:[%s17664_s5 + $0xa68] sm:$0xff] }
 0x58f   : > { %7019 = vmatpush1.msra.mxu0 %v6164_v37  ;;  %9034 = vmatprep.subr.mxu1 %v6196_v47  ;;  %v6173_v37 = vld [vmem:[%s17664_s5 + $0x820] sm:$0xff] }
 0x590   : > { %7020 = vmatprep.subr.mxu0 %v18242_v54  ;;  %9035 = vmatpush3.msra.mxu1 %v6180_v26  ;;  %v6245_v47 = vld [vmem:[%s17664_s5 + $0xa60] sm:$0xff]  ;;  %v16688_v26 = vpop.permute.xlu0 %9354 }
 0x591   : > { %7021 = vmatpush1.msra.mxu0 %v6163_v36  ;;  %9036 = vmatprep.subr.mxu1 %v6195_v53  ;;  %v6172_v36 = vld [vmem:[%s17664_s5 + $0x818] sm:$0xff] }
 0x592   : > { %7022 = vmatprep.subr.mxu0 %v18242_v54  ;;  %9037 = vmatpush3.msra.mxu1 %v6179_v59  ;;  %v6244_v53 = vld [vmem:[%s17664_s5 + $0xa58] sm:$0xff]  ;;  %v6171_v59 = vld [vmem:[%s17664_s5 + $0x810] sm:$0xff] }
 0x593   : > { %7023 = vmatpush1.msra.mxu0 %v6162_v20  ;;  %9038 = vmatprep.subr.mxu1 %v6194_v13  ;;  %v9357_v20 = vunpack.i.h.bf16 %v16688_v26  ;;  %v9356_v13 = vunpack.i.l.bf16 %v16688_v26  ;;  %v6209_v26 = vld [vmem:[%s17664_s5 + $0x940] sm:$0xff] }
 0x594   : > { %7024 = vmatprep.subr.mxu0 %v18242_v54  ;;  %9039 = vmatpush3.msra.mxu1 %v6178_v14  ;;  %v6170_v14 = vld [vmem:[%s17664_s5 + $0x808] sm:$0xff] }
 0x595   : > { %7025 = vmatpush1.msra.mxu0 %v6161_v35  ;;  %9040 = vmatprep.subr.mxu1 %v6193_v40  ;;  %v6242_v35 = vld [vmem:[%s17664_s5 + $0xa48] sm:$0xff]  ;;  %v6169_v40 = vld [vmem:[%s17664_s5 + $0x800] sm:$0xff]  ;;  %v5829_v8 = vsel %vm1565_vm1, %v9356_v13, %v9357_v20 }
 0x596   : > { %7026 = vmatprep.subr.mxu0 %v18242_v54  ;;  %9041 = vmatpush3.msra.mxu1 %v6177_v0  ;;  %v6241_v0 = vld [vmem:[%s17664_s5 + $0xa40] sm:$0xff] }
 0x597   : > { %7027 = vmatpush1.msra.mxu0 %v6160_v9  ;;  %7148 = vmatmul.mubr.f32.vlgmr.msra.gmra.mxu1 %v5895_v32  ;;  %v6224_v9 = vld [vmem:[%s17664_s5 + $0x9b8] sm:$0xff]  ;;  %v5898_v32 = vmax.f32 %v15706_v51, %v5829_v8  ;;  %v6238_v51 = vld [vmem:[%s17664_s5 + $0xa28] sm:$0xff]  ;;  %v6229_v8 = vld [vmem:[%s17664_s5 + $0x9e0] sm:$0xff] }
 0x598   : > { %7223 = vmatprep.subr.mxu1 %v18242_v54  ;;  %7028 = vmatprep.subr.mxu0 %v18242_v54 }
 0x599   : > { %7224 = vmatpush1.msra.mxu1 %v6256_v60  ;;  %8790 = vmatprep.mubr.msk.f32.mxu1 %vm1565_vm1, %v5900_v46  ;;  %v6264_v60 = vld [vmem:[%s17664_s5 + $0xaf8] sm:$0xff]  ;;  %v6223_v46 = vld [vmem:[%s17664_s5 + $0x9b0] sm:$0xff] }
 0x59a   : > { %7029 = vmatpush1.msra.mxu0 %v6159_v1  ;;  %7225 = vmatprep.subr.mxu1 %v18242_v54  ;;  %v16752_v1 = vpop.permute.xlu0 %9359 }
 0x59b   : > { %7030 = vmatprep.subr.mxu0 %v18242_v54  ;;  %7226 = vmatpush1.msra.mxu1 %v6255_v24  ;;  %v6263_v24 = vld [vmem:[%s17664_s5 + $0xaf0] sm:$0xff] }
 0x59c   : > { %7031 = vmatpush1.msra.mxu0 %v6158_v52  ;;  %7227 = vmatprep.subr.mxu1 %v18242_v54  ;;  %v6222_v52 = vld [vmem:[%s17664_s5 + $0x9a8] sm:$0xff] }
 0x59d   : > { %7032 = vmatprep.subr.mxu0 %v18242_v54  ;;  %7228 = vmatpush1.msra.mxu1 %v6254_v27  ;;  %v6237_v27 = vld [vmem:[%s17664_s5 + $0xa20] sm:$0xff] }
 0x59e   : > { %7033 = vmatpush1.msra.mxu0 %v6157_v18  ;;  %7229 = vmatprep.subr.mxu1 %v18242_v54  ;;  %v6262_v18 = vld [vmem:[%s17664_s5 + $0xae8] sm:$0xff] }
 0x59f   : > { %7034 = vmatprep.subr.mxu0 %v18242_v54  ;;  %7230 = vmatpush1.msra.mxu1 %v6253_v15  ;;  %v6221_v15 = vld [vmem:[%s17664_s5 + $0x9a0] sm:$0xff] }
 0x5a0   : > { %7035 = vmatpush1.msra.mxu0 %v6156_v30  ;;  %7231 = vmatprep.subr.mxu1 %v18242_v54  ;;  %v6236_v30 = vld [vmem:[%s17664_s5 + $0xa18] sm:$0xff] }
 0x5a1   : > { %7036 = vmatprep.subr.mxu0 %v18242_v54  ;;  %7232 = vmatpush1.msra.mxu1 %v6252_v25  ;;  %v6261_v25 = vld [vmem:[%s17664_s5 + $0xae0] sm:$0xff] }
 0x5a2   : > { %7037 = vmatpush1.msra.mxu0 %v6155_v7  ;;  %7233 = vmatprep.subr.mxu1 %v18242_v54  ;;  %v8832_v31 = vpop.f32.mrf.mxu1  ;;  %v6220_v7 = vld [vmem:[%s17664_s5 + $0x998] sm:$0xff] }
 0x5a3   : > { %7038 = vmatprep.subr.mxu0 %v18242_v54  ;;  %7234 = vmatpush1.msra.mxu1 %v6251_v56  ;;  %v16784_v56 = vpop.permute.xlu0 %9364 }
 0x5a4   : > { %7039 = vmatpush1.msra.mxu0 %v6154_v12  ;;  %7235 = vmatprep.subr.mxu1 %v18242_v54  ;;  %v8833_v44 = vpop.f32.mrf.mxu1  ;;  %v6235_v12 = vld [vmem:[%s17664_s5 + $0xa10] sm:$0xff] }
 0x5a5   : > { %7040 = vmatprep.subr.mxu0 %v18242_v54  ;;  %7236 = vmatpush1.msra.mxu1 %v6250_v6  ;;  %v16658_v21 = vadd.f32 %v8833_v44, %v8832_v31  ;;  %v6260_v6 = vld [vmem:[%s17664_s5 + $0xad8] sm:$0xff]  ;;  %v6219_v31 = vld [vmem:[%s17664_s5 + $0x990] sm:$0xff]  ;;  %v9367_v44 = vunpack.i.h.bf16 %v16784_v56 }
 0x5a6   : > { %7041 = vmatpush1.msra.mxu0 %v6153_v2  ;;  %7237 = vmatprep.subr.mxu1 %v18242_v54  ;;  %v6234_v2 = vld [vmem:[%s17664_s5 + $0xa08] sm:$0xff] }
 0x5a7   : > { %7058 = vmatprep.subr.mxu0 %v18242_v54  ;;  %7238 = vmatpush1.msra.mxu1 %v6249_v11  ;;  %v6259_v11 = vld [vmem:[%s17664_s5 + $0xad0] sm:$0xff] }
 0x5a8   : > { %7059 = vmatpush2.msra.mxu0 %v6176_v43  ;;  %7239 = vmatprep.subr.mxu1 %v18242_v54  ;;  %v9366_v43 = vunpack.i.l.bf16 %v16784_v56  ;;  %v6416_v56 = vld [vmem:[%s17664_s5 + $0xfb8] sm:$0xff] }
 0x5a9   : > { %7060 = vmatprep.subr.mxu0 %v18242_v54  ;;  %7240 = vmatpush1.msra.mxu1 %v6248_v41  ;;  %v6218_v41 = vld [vmem:[%s17664_s5 + $0x988] sm:$0xff] }
 0x5aa   : > { %7061 = vmatpush2.msra.mxu0 %v6175_v63  ;;  %7241 = vmatprep.subr.mxu1 %v18242_v54  ;;  %v6233_v63 = vld [vmem:[%s17664_s5 + $0xa00] sm:$0xff] }
 0x5ab   : > { %7062 = vmatprep.subr.mxu0 %v18242_v54  ;;  %7242 = vmatpush1.msra.mxu1 %v6247_v16  ;;  %v6258_v16 = vld [vmem:[%s17664_s5 + $0xac8] sm:$0xff] }
 0x5ac   : > { %7063 = vmatpush2.msra.mxu0 %v6174_v39  ;;  %7243 = vmatprep.subr.mxu1 %v18242_v54  ;;  %v5830_v39 = vsel %vm1565_vm1, %v9357_v20, %v16585_v38  ;;  %v6216_v38 = vld [vmem:[%s17664_s5 + $0x978] sm:$0xff]  ;;  %v6231_v20 = vld [vmem:[%s17664_s5 + $0x9f0] sm:$0xff] }
 0x5ad   : > { %7064 = vmatprep.subr.mxu0 %v18242_v54  ;;  %7244 = vmatpush1.msra.mxu1 %v6246_v62  ;;  %v6217_v62 = vld [vmem:[%s17664_s5 + $0x980] sm:$0xff] }
 0x5ae   : > { %7065 = vmatpush2.msra.mxu0 %v6173_v37  ;;  %7245 = vmatprep.subr.mxu1 %v18242_v54  ;;  %v6232_v37 = vld [vmem:[%s17664_s5 + $0x9f8] sm:$0xff] }
 0x5af   : > { %7066 = vmatprep.subr.mxu0 %v18242_v54  ;;  %7246 = vmatpush1.msra.mxu1 %v6245_v47  ;;  %v6257_v47 = vld [vmem:[%s17664_s5 + $0xac0] sm:$0xff] }
 0x5b0   : > { %7067 = vmatpush2.msra.mxu0 %v6172_v36  ;;  %7247 = vmatprep.subr.mxu1 %v18242_v54  ;;  %v5834_v36 = vsel %vm1565_vm1, %v9366_v43, %v9367_v44 }
 0x5b1   : > { %7068 = vmatprep.subr.mxu0 %v18242_v54  ;;  %7248 = vmatpush1.msra.mxu1 %v6244_v53  ;;  %v5899_v53 = vmax.f32 %v15708_v23, %v5830_v39  ;;  %v5904_v23 = vmax.f32 %v15735_v28, %v5834_v36  ;;  %v6214_v28 = vld [vmem:[%s17664_s5 + $0x968] sm:$0xff]  ;;  %v6295_v39 = vld [vmem:[%s17664_s5 + $0xbf0] sm:$0xff] }
 0x5b2   : > { %7069 = vmatpush2.msra.mxu0 %v6171_v59  ;;  %7249 = vmatprep.subr.mxu1 %v18242_v54  ;;  %v6328_v59 = vld [vmem:[%s17664_s5 + $0xcf8] sm:$0xff]  ;;  %v6303_v36 = vld [vmem:[%s17664_s5 + $0xc30] sm:$0xff] }
 0x5b3   : > { %7070 = vmatprep.subr.mxu0 %v18242_v54  ;;  %7250 = vmatpush1.msra.mxu1 %v6243_v3  ;;  %v6312_v3 = vld [vmem:[%s17664_s5 + $0xc78] sm:$0xff] }
 0x5b4   : > { %7071 = vmatpush2.msra.mxu0 %v6170_v14  ;;  %7251 = vmatprep.subr.mxu1 %v18242_v54  ;;  %v6215_v14 = vld [vmem:[%s17664_s5 + $0x970] sm:$0xff] }
 0x5b5   : > { %7072 = vmatprep.subr.mxu0 %v18242_v54  ;;  %7252 = vmatpush1.msra.mxu1 %v6242_v35  ;;  %v6230_v35 = vld [vmem:[%s17664_s5 + $0x9e8] sm:$0xff] }
 0x5b6   : > { %7073 = vmatpush2.msra.mxu0 %v6169_v40  ;;  %7253 = vmatprep.subr.mxu1 %v18242_v54  ;;  %v6311_v40 = vld [vmem:[%s17664_s5 + $0xc70] sm:$0xff] }
 0x5b7   : > { %7075 = vmatmul.mubr.f32.vlgmr.msra.gmra.mxu0 %v5893_v58  ;;  %9045 = vmatprep.subr.mxu0 %v6240_v19  ;;  %v6326_v19 = vld [vmem:[%s17664_s5 + $0xce8] sm:$0xff] }
 0x5b8   : > { %7254 = vmatpush1.msra.mxu1 %v6241_v0  ;;  %9046 = vmatpush3.msra.mxu0 %v6224_v9  ;;  %v6310_v58 = vld [vmem:[%s17664_s5 + $0xc68] sm:$0xff]  ;;  %v6213_v0 = vld [vmem:[%s17664_s5 + $0x960] sm:$0xff] }
 0x5b9   : > { %7217 = vmatprep.mubr.f32.mxu0 %v5898_v32  ;;  %7271 = vmatprep.subr.mxu1 %v18242_v54  ;;  %v6325_v9 = vld [vmem:[%s17664_s5 + $0xce0] sm:$0xff]  ;;  %v6228_v32 = vld [vmem:[%s17664_s5 + $0x9d8] sm:$0xff] }
 0x5ba   : > { %9047 = vmatprep.subr.mxu0 %v6239_v55  ;;  %7272 = vmatpush2.msra.mxu1 %v6264_v60  ;;  %v6309_v55 = vld [vmem:[%s17664_s5 + $0xc60] sm:$0xff]  ;;  %v6212_v60 = vld [vmem:[%s17664_s5 + $0x958] sm:$0xff] }
 0x5bb   : > { %9048 = vmatpush3.msra.mxu0 %v6223_v46  ;;  %7273 = vmatprep.subr.mxu1 %v18242_v54  ;;  %v6324_v46 = vld [vmem:[%s17664_s5 + $0xcd8] sm:$0xff] }
 0x5bc   : > { %9049 = vmatprep.subr.mxu0 %v6238_v51  ;;  %7274 = vmatpush2.msra.mxu1 %v6263_v24  ;;  %v6227_v51 = vld [vmem:[%s17664_s5 + $0x9d0] sm:$0xff]  ;;  %v6308_v24 = vld [vmem:[%s17664_s5 + $0xc58] sm:$0xff] }
 0x5bd   : > { %9050 = vmatpush3.msra.mxu0 %v6222_v52  ;;  %7275 = vmatprep.subr.mxu1 %v18242_v54  ;;  %v6211_v52 = vld [vmem:[%s17664_s5 + $0x950] sm:$0xff] }
 0x5be   : > { %9051 = vmatprep.subr.mxu0 %v6237_v27  ;;  %7276 = vmatpush2.msra.mxu1 %v6262_v18  ;;  %v6323_v27 = vld [vmem:[%s17664_s5 + $0xcd0] sm:$0xff]  ;;  %v9362_v18 = vunpack.i.h.bf16 %v16752_v1 }
 0x5bf   : > { %9052 = vmatpush3.msra.mxu0 %v6221_v15  ;;  %7277 = vmatprep.subr.mxu1 %v18242_v54  ;;  %v9361_v15 = vunpack.i.l.bf16 %v16752_v1  ;;  %v6377_v1 = vld [vmem:[%s17664_s5 + $0xe80] sm:$0xff] }
 0x5c0   : > { %9053 = vmatprep.subr.mxu0 %v6236_v30  ;;  %7278 = vmatpush2.msra.mxu1 %v6261_v25  ;;  %v6226_v30 = vld [vmem:[%s17664_s5 + $0x9c8] sm:$0xff]  ;;  %v6307_v25 = vld [vmem:[%s17664_s5 + $0xc50] sm:$0xff] }
 0x5c1   : > { %9054 = vmatpush3.msra.mxu0 %v6220_v7  ;;  %7279 = vmatprep.subr.mxu1 %v18242_v54  ;;  %v6210_v7 = vld [vmem:[%s17664_s5 + $0x948] sm:$0xff] }
 0x5c2   : > { %9055 = vmatprep.subr.mxu0 %v6235_v12  ;;  %7280 = vmatpush2.msra.mxu1 %v6260_v6  ;;  %v6322_v12 = vld [vmem:[%s17664_s5 + $0xcc8] sm:$0xff]  ;;  %v5828_v6 = vsel %vm1565_vm1, %v9352_v10, %v9356_v13  ;;  %v6296_v10 = vld [vmem:[%s17664_s5 + $0xbf8] sm:$0xff]  ;;  %v5832_v13 = vsel %vm1565_vm1, %v9361_v15, %v9362_v18 }
 0x5c3   : > { %9056 = vmatpush3.msra.mxu0 %v6219_v31  ;;  %7281 = vmatprep.subr.mxu1 %v18242_v54  ;;  %v6225_v31 = vld [vmem:[%s17664_s5 + $0x9c0] sm:$0xff] }
 0x5c4   : > { %9057 = vmatprep.subr.mxu0 %v6234_v2  ;;  %7282 = vmatpush2.msra.mxu1 %v6259_v11  ;;  %v6306_v2 = vld [vmem:[%s17664_s5 + $0xc48] sm:$0xff]  ;;  %v5897_v11 = vmax.f32 %v18214_v48, %v5828_v6  ;;  %v5902_v48 = vmax.f32 %v18231_v29, %v5832_v13 }
 0x5c5   : > { %9058 = vmatpush3.msra.mxu0 %v6218_v41  ;;  %7283 = vmatprep.subr.mxu1 %v18242_v54  ;;  %v6305_v41 = vld [vmem:[%s17664_s5 + $0xc40] sm:$0xff]  ;;  %v6294_v29 = vld [vmem:[%s17664_s5 + $0xbe8] sm:$0xff] }
 0x5c6   : > { %9059 = vmatprep.subr.mxu0 %v6233_v63  ;;  %7284 = vmatpush2.msra.mxu1 %v6258_v16  ;;  %v6280_v63 = vld [vmem:[%s17664_s5 + $0xb78] sm:$0xff]  ;;  %v6298_v6 = vld [vmem:[%s17664_s5 + $0xc08] sm:$0xff] }
 0x5c7   : > { %9060 = vmatpush3.msra.mxu0 %v6217_v62  ;;  %7285 = vmatprep.subr.mxu1 %v18242_v54  ;;  %v6320_v16 = vld [vmem:[%s17664_s5 + $0xcb8] sm:$0xff] }
 0x5c8   : > { %9061 = vmatprep.subr.mxu0 %v6232_v37  ;;  %7286 = vmatpush2.msra.mxu1 %v6257_v47  ;;  %v6304_v62 = vld [vmem:[%s17664_s5 + $0xc38] sm:$0xff]  ;;  %v6279_v37 = vld [vmem:[%s17664_s5 + $0xb70] sm:$0xff] }
 0x5c9   : > { %9062 = vmatpush3.msra.mxu0 %v6216_v38  ;;  %7288 = vmatmul.mubr.f32.vlgmr.msra.gmra.mxu1 %v5899_v53  ;;  %v6319_v47 = vld [vmem:[%s17664_s5 + $0xcb0] sm:$0xff]  ;;  %v16965_v38 = vpop.permute.xlu1 %5787  ;;  %v6278_v53 = vld [vmem:[%s17664_s5 + $0xb68] sm:$0xff] }
 0x5ca   : > { %9115 = vmatprep.subr.mxu1 %v6328_v59  ;;  %9063 = vmatprep.subr.mxu0 %v6231_v20  ;;  %v6318_v59 = vld [vmem:[%s17664_s5 + $0xca8] sm:$0xff]  ;;  %v6293_v20 = vld [vmem:[%s17664_s5 + $0xbe0] sm:$0xff] }
 0x5cb   : > { %9116 = vmatpush3.msra.mxu1 %v6312_v3  ;;  %7430 = vmatprep.mubr.f32.mxu1 %v5904_v23  ;;  %v6302_v3 = vld [vmem:[%s17664_s5 + $0xc28] sm:$0xff]  ;;  %v6277_v23 = vld [vmem:[%s17664_s5 + $0xb60] sm:$0xff] }
 0x5cc   : > { %9064 = vmatpush3.msra.mxu0 %v6215_v14  ;;  %9117 = vmatprep.subr.mxu1 %v6327_v4  ;;  %v6317_v14 = vld [vmem:[%s17664_s5 + $0xca0] sm:$0xff]  ;;  %v6292_v4 = vld [vmem:[%s17664_s5 + $0xbd8] sm:$0xff] }
 0x5cd   : > { %9065 = vmatprep.subr.mxu0 %v6230_v35  ;;  %9118 = vmatpush3.msra.mxu1 %v6311_v40  ;;  %v6301_v35 = vld [vmem:[%s17664_s5 + $0xc20] sm:$0xff]  ;;  %v6276_v40 = vld [vmem:[%s17664_s5 + $0xb58] sm:$0xff] }
 0x5ce   : > { %9066 = vmatpush3.msra.mxu0 %v6214_v28  ;;  %9119 = vmatprep.subr.mxu1 %v6326_v19  ;;  %v6316_v28 = vld [vmem:[%s17664_s5 + $0xc98] sm:$0xff] }
 0x5cf   : > { %9067 = vmatprep.subr.mxu0 %v6229_v8  ;;  %9120 = vmatpush3.msra.mxu1 %v6310_v58  ;;  %v17003_v8 = vpop.permute.xlu1 %9369  ;;  %v6291_v58 = vld [vmem:[%s17664_s5 + $0xbd0] sm:$0xff] }
 0x5d0   : > { %9068 = vmatpush3.msra.mxu0 %v6213_v0  ;;  %9121 = vmatprep.subr.mxu1 %v6325_v9  ;;  %v6300_v0 = vld [vmem:[%s17664_s5 + $0xc18] sm:$0xff] }
 0x5d1   : > { %9069 = vmatprep.subr.mxu0 %v6228_v32  ;;  %9122 = vmatpush3.msra.mxu1 %v6309_v55  ;;  %v6275_v32 = vld [vmem:[%s17664_s5 + $0xb50] sm:$0xff] }
 0x5d2   : > { %9070 = vmatpush3.msra.mxu0 %v6212_v60  ;;  %9123 = vmatprep.subr.mxu1 %v6324_v46  ;;  %v6315_v55 = vld [vmem:[%s17664_s5 + $0xc90] sm:$0xff]  ;;  %v6290_v46 = vld [vmem:[%s17664_s5 + $0xbc8] sm:$0xff] }
 0x5d3   : > { %9071 = vmatprep.subr.mxu0 %v6227_v51  ;;  %9124 = vmatpush3.msra.mxu1 %v6308_v24  ;;  %v6299_v51 = vld [vmem:[%s17664_s5 + $0xc10] sm:$0xff] }
 0x5d4   : > { %9072 = vmatpush3.msra.mxu0 %v6211_v52  ;;  %9125 = vmatprep.subr.mxu1 %v6323_v27  ;;  %v9372_v27 = vunpack.i.h.bf16 %v17003_v8 }
 0x5d5   : > { %9073 = vmatprep.subr.mxu0 %v6226_v30  ;;  %9126 = vmatpush3.msra.mxu1 %v6307_v25  ;;  %v9371_v30 = vunpack.i.l.bf16 %v17003_v8  ;;  %v6274_v25 = vld [vmem:[%s17664_s5 + $0xb48] sm:$0xff] }
 0x5d6   : > { %9074 = vmatpush3.msra.mxu0 %v6210_v7  ;;  %9127 = vmatprep.subr.mxu1 %v6322_v12  ;;  %v6314_v7 = vld [vmem:[%s17664_s5 + $0xc88] sm:$0xff]  ;;  %v6289_v12 = vld [vmem:[%s17664_s5 + $0xbc0] sm:$0xff] }
 0x5d7   : > { %9075 = vmatprep.subr.mxu0 %v6225_v31  ;;  %9128 = vmatpush3.msra.mxu1 %v6306_v2  ;;  %v5833_v2 = vsel %vm1565_vm1, %v9362_v18, %v9366_v43  ;;  %v6297_v43 = vld [vmem:[%s17664_s5 + $0xc00] sm:$0xff]  ;;  %v5837_v13 = vsel %vm1565_vm1, %v9371_v30, %v9372_v27 }
 0x5d8   : > { %9076 = vmatpush3.msra.mxu0 %v6209_v26  ;;  %9129 = vmatprep.subr.mxu1 %v6321_v50  ;;  %v6273_v26 = vld [vmem:[%s17664_s5 + $0xb40] sm:$0xff] }
 0x5d9   : > { %7218 = vmatmul.mubr.f32.vlgmr.msra.gmra.mxu0 %v5897_v11  ;;  %9080 = vmatprep.subr.mxu0 %v6296_v10  ;;  %v6313_v50 = vld [vmem:[%s17664_s5 + $0xc80] sm:$0xff]  ;;  %v6272_v10 = vld [vmem:[%s17664_s5 + $0xb38] sm:$0xff]  ;;  %v5903_v11 = vmax.f32 %v18232_v42, %v5833_v2  ;;  %v5908_v42 = vmax.f32 %v18238_v22, %v5837_v13  ;;  %v6270_v22 = vld [vmem:[%s17664_s5 + $0xb28] sm:$0xff] }
 0x5da   : > { %9130 = vmatpush3.msra.mxu1 %v6305_v41  ;;  %9081 = vmatpush3.msra.mxu0 %v6280_v63  ;;  %v6384_v41 = vld [vmem:[%s17664_s5 + $0xeb8] sm:$0xff]  ;;  %v6287_v63 = vld [vmem:[%s17664_s5 + $0xbb0] sm:$0xff]  ;;  %v6358_v2 = vld [vmem:[%s17664_s5 + $0xde8] sm:$0xff] }
 0x5db   : > { %7360 = vmatprep.mubr.f32.mxu0 %v5902_v48  ;;  %9131 = vmatprep.subr.mxu1 %v6320_v16  ;;  %v6368_v16 = vld [vmem:[%s17664_s5 + $0xe38] sm:$0xff]  ;;  %v6271_v48 = vld [vmem:[%s17664_s5 + $0xb30] sm:$0xff] }
 0x5dc   : > { %9082 = vmatprep.subr.mxu0 %v6295_v39  ;;  %9132 = vmatpush3.msra.mxu1 %v6304_v62  ;;  %v6383_v39 = vld [vmem:[%s17664_s5 + $0xeb0] sm:$0xff]  ;;  %v6286_v62 = vld [vmem:[%s17664_s5 + $0xba8] sm:$0xff]  ;;  %v6372_v13 = vld [vmem:[%s17664_s5 + $0xe58] sm:$0xff] }
 0x5dd   : > { %9083 = vmatpush3.msra.mxu0 %v6279_v37  ;;  %9133 = vmatprep.subr.mxu1 %v6319_v47  ;;  %v6367_v37 = vld [vmem:[%s17664_s5 + $0xe30] sm:$0xff]  ;;  %v6382_v47 = vld [vmem:[%s17664_s5 + $0xea8] sm:$0xff] }
 0x5de   : > { %9084 = vmatprep.subr.mxu0 %v6294_v29  ;;  %9134 = vmatpush3.msra.mxu1 %v6303_v36  ;;  %v6285_v29 = vld [vmem:[%s17664_s5 + $0xba0] sm:$0xff]  ;;  %v6366_v36 = vld [vmem:[%s17664_s5 + $0xe28] sm:$0xff] }
 0x5df   : > { %9085 = vmatpush3.msra.mxu0 %v6278_v53  ;;  %9135 = vmatprep.subr.mxu1 %v6318_v59  ;;  %v6269_v53 = vld [vmem:[%s17664_s5 + $0xb20] sm:$0xff] }
 0x5e0   : > { %9086 = vmatprep.subr.mxu0 %v6293_v20  ;;  %9136 = vmatpush3.msra.mxu1 %v6302_v3  ;;  %v8867_v19 = vpop.f32.mrf.mxu0  ;;  %v6381_v59 = vld [vmem:[%s17664_s5 + $0xea0] sm:$0xff]  ;;  %v6284_v20 = vld [vmem:[%s17664_s5 + $0xb98] sm:$0xff] }
 0x5e1   : > { %9087 = vmatpush3.msra.mxu0 %v6277_v23  ;;  %9137 = vmatprep.subr.mxu1 %v6317_v14  ;;  %v6650_v9 = vpop.f32.mrf.mxu1  ;;  %v6365_v3 = vld [vmem:[%s17664_s5 + $0xe20] sm:$0xff]  ;;  %v6268_v23 = vld [vmem:[%s17664_s5 + $0xb18] sm:$0xff] }
 0x5e2   : > { %9088 = vmatprep.subr.mxu0 %v6292_v4  ;;  %9138 = vmatpush3.msra.mxu1 %v6301_v35  ;;  %v8868_v60 = vpop.f32.mrf.mxu0  ;;  %v6380_v14 = vld [vmem:[%s17664_s5 + $0xe98] sm:$0xff]  ;;  %v6283_v4 = vld [vmem:[%s17664_s5 + $0xb90] sm:$0xff] }
 0x5e3   : > { %9089 = vmatpush3.msra.mxu0 %v6276_v40  ;;  %9139 = vmatprep.subr.mxu1 %v6316_v28  ;;  %v8869_v24 = vadd.f32 %v8868_v60, %v8867_v19  ;;  %v6652_v52 = vpop.f32.mrf.mxu1  ;;  %v6364_v35 = vld [vmem:[%s17664_s5 + $0xe18] sm:$0xff]  ;;  %v6267_v40 = vld [vmem:[%s17664_s5 + $0xb10] sm:$0xff]  ;;  %v6282_v19 = vld [vmem:[%s17664_s5 + $0xb88] sm:$0xff] }
 0x5e4   : > { %9090 = vmatprep.subr.mxu0 %v6291_v58  ;;  %9140 = vmatpush3.msra.mxu1 %v6300_v0  ;;  %v6379_v28 = vld [vmem:[%s17664_s5 + $0xe90] sm:$0xff]  ;;  %v6266_v0 = vld [vmem:[%s17664_s5 + $0xb08] sm:$0xff]  ;;  %v6376_v52 = vld [vmem:[%s17664_s5 + $0xe78] sm:$0xff] }
 0x5e5   : > { %9091 = vmatpush3.msra.mxu0 %v6275_v32  ;;  %9141 = vmatprep.subr.mxu1 %v6315_v55  ;;  %v6581_v31 = vadd.f32 %v8869_v24, %v16658_v21  ;;  %v6288_v21 = vld [vmem:[%s17664_s5 + $0xbb8] sm:$0xff]  ;;  %v6363_v58 = vld [vmem:[%s17664_s5 + $0xe10] sm:$0xff]  ;;  %v5831_v32 = vsel %vm1565_vm1, %v16965_v38, %v9361_v15  ;;  %v6281_v55 = vld [vmem:[%s17664_s5 + $0xb80] sm:$0xff]  ;;  %v17158_v15 = vpop.permute.xlu1 %5797 }
 0x5e6   : > { %9092 = vmatprep.subr.mxu0 %v6290_v46  ;;  %9142 = vmatpush3.msra.mxu1 %v6299_v51  ;;  %v6362_v60 = vld [vmem:[%s17664_s5 + $0xe08] sm:$0xff]  ;;  %v6265_v46 = vld [vmem:[%s17664_s5 + $0xb00] sm:$0xff]  ;;  %v5901_v38 = vmax.f32 %v18237_v45, %v5831_v32  ;;  %v6344_v24 = vld [vmem:[%s17664_s5 + $0xd78] sm:$0xff] }
 0x5e7   : > { %9093 = vmatpush3.msra.mxu0 %v6274_v25  ;;  %9143 = vmatprep.subr.mxu1 %v6314_v7  ;;  %v17055_v18 = vadd.f32 %v6650_v9, %v6581_v31  ;;  %v6378_v9 = vld [vmem:[%s17664_s5 + $0xe88] sm:$0xff]  ;;  %v6361_v51 = vld [vmem:[%s17664_s5 + $0xe00] sm:$0xff]  ;;  %v5906_v25 = vmax.f32 %v15748_v61, %v17158_v15  ;;  %v6360_v45 = vld [vmem:[%s17664_s5 + $0xdf8] sm:$0xff] }
 0x5e8   : > { %9094 = vmatprep.subr.mxu0 %v6289_v12  ;;  %9144 = vmatpush3.msra.mxu1 %v6298_v6  ;;  %v6343_v7 = vld [vmem:[%s17664_s5 + $0xd70] sm:$0xff]  ;;  %v6342_v6 = vld [vmem:[%s17664_s5 + $0xd68] sm:$0xff] }
 0x5e9   : > { %9095 = vmatpush3.msra.mxu0 %v6273_v26  ;;  %9145 = vmatprep.subr.mxu1 %v6313_v50  ;;  %v6375_v12 = vld [vmem:[%s17664_s5 + $0xe70] sm:$0xff]  ;;  %v6374_v31 = vld [vmem:[%s17664_s5 + $0xe68] sm:$0xff]  ;;  %v6341_v26 = vld [vmem:[%s17664_s5 + $0xd60] sm:$0xff] }
 0x5ea   : > { %9096 = vmatprep.subr.mxu0 %v6288_v21  ;;  %9146 = vmatpush3.msra.mxu1 %v6297_v43  ;;  %v6359_v61 = vld [vmem:[%s17664_s5 + $0xdf0] sm:$0xff]  ;;  %v6373_v50 = vld [vmem:[%s17664_s5 + $0xe60] sm:$0xff] }
 0x5eb   : > { %9097 = vmatpush3.msra.mxu0 %v6272_v10  ;;  %7431 = vmatmul.mubr.f32.vlgmr.msra.gmra.mxu1 %v5903_v11  ;;  %v6357_v21 = vld [vmem:[%s17664_s5 + $0xde0] sm:$0xff]  ;;  %v6340_v10 = vld [vmem:[%s17664_s5 + $0xd58] sm:$0xff]  ;;  %v6427_v32 = vld [vmem:[%s17664_s5 + $0x1010] sm:$0xff] }
 0x5ec   : > { %9150 = vmatprep.subr.mxu1 %v6384_v41  ;;  %9098 = vmatprep.subr.mxu0 %v6287_v63  ;;  %v6356_v11 = vld [vmem:[%s17664_s5 + $0xdd8] sm:$0xff]  ;;  %v6339_v63 = vld [vmem:[%s17664_s5 + $0xd50] sm:$0xff] }
 0x5ed   : > { %9151 = vmatpush3.msra.mxu1 %v6368_v16  ;;  %7573 = vmatprep.mubr.f32.mxu1 %v5908_v42  ;;  %v6371_v16 = vld [vmem:[%s17664_s5 + $0xe50] sm:$0xff] }
 0x5ee   : > { %9099 = vmatpush3.msra.mxu0 %v6271_v48  ;;  %9152 = vmatprep.subr.mxu1 %v6383_v39  ;;  %v6355_v48 = vld [vmem:[%s17664_s5 + $0xdd0] sm:$0xff]  ;;  %v6338_v39 = vld [vmem:[%s17664_s5 + $0xd48] sm:$0xff] }
 0x5ef   : > { %9100 = vmatprep.subr.mxu0 %v6286_v62  ;;  %9153 = vmatpush3.msra.mxu1 %v6367_v37  ;;  %v6370_v62 = vld [vmem:[%s17664_s5 + $0xe48] sm:$0xff]  ;;  %v5800_v37 = vpop.permute.xlu0 %5799 }
 0x5f0   : > { %9101 = vmatpush3.msra.mxu0 %v6270_v22  ;;  %9154 = vmatprep.subr.mxu1 %v6382_v47  ;;  %v6354_v22 = vld [vmem:[%s17664_s5 + $0xdc8] sm:$0xff]  ;;  %v5836_v47 = vsel %vm1565_vm1, %v5800_v37, %v9371_v30  ;;  %v6336_v30 = vld [vmem:[%s17664_s5 + $0xd38] sm:$0xff] }
 0x5f1   : > { %9102 = vmatprep.subr.mxu0 %v6285_v29  ;;  %9155 = vmatpush3.msra.mxu1 %v6366_v36  ;;  %v6337_v29 = vld [vmem:[%s17664_s5 + $0xd40] sm:$0xff] }
 0x5f2   : > { %9103 = vmatpush3.msra.mxu0 %v6269_v53  ;;  %9156 = vmatprep.subr.mxu1 %v6381_v59  ;;  %v6369_v36 = vld [vmem:[%s17664_s5 + $0xe40] sm:$0xff]  ;;  %v17251_v59 = vpop.permute.xlu1 %5809 }
 0x5f3   : > { %9104 = vmatprep.subr.mxu0 %v6284_v20  ;;  %9157 = vmatpush3.msra.mxu1 %v6365_v3  ;;  %v6353_v53 = vld [vmem:[%s17664_s5 + $0xdc0] sm:$0xff]  ;;  %v5907_v20 = vmax.f32 %v18239_v17, %v5836_v47  ;;  %v6432_v3 = vld [vmem:[%s17664_s5 + $0x1038] sm:$0xff]  ;;  %v6431_v17 = vld [vmem:[%s17664_s5 + $0x1030] sm:$0xff] }
 0x5f4   : > { %9105 = vmatpush3.msra.mxu0 %v6268_v23  ;;  %9158 = vmatprep.subr.mxu1 %v6380_v14  ;;  %v5912_v23 = vmax.f32 %v15765_v49, %v17251_v59  ;;  %v6335_v14 = vld [vmem:[%s17664_s5 + $0xd30] sm:$0xff]  ;;  %v6334_v49 = vld [vmem:[%s17664_s5 + $0xd28] sm:$0xff]  ;;  %v6440_v47 = vld [vmem:[%s17664_s5 + $0x1078] sm:$0xff] }
 0x5f5   : > { %9106 = vmatprep.subr.mxu0 %v6283_v4  ;;  %9159 = vmatpush3.msra.mxu1 %v6364_v35  ;;  %v6430_v4 = vld [vmem:[%s17664_s5 + $0x1028] sm:$0xff]  ;;  %v6333_v35 = vld [vmem:[%s17664_s5 + $0xd20] sm:$0xff] }
 0x5f6   : > { %9107 = vmatpush3.msra.mxu0 %v6267_v40  ;;  %9160 = vmatprep.subr.mxu1 %v6379_v28  ;;  %v6429_v40 = vld [vmem:[%s17664_s5 + $0x1020] sm:$0xff]  ;;  %v6332_v28 = vld [vmem:[%s17664_s5 + $0xd18] sm:$0xff] }
 0x5f7   : > { %9108 = vmatprep.subr.mxu0 %v6282_v19  ;;  %9161 = vmatpush3.msra.mxu1 %v6363_v58  ;;  %v6428_v58 = vld [vmem:[%s17664_s5 + $0x1018] sm:$0xff] }
 0x5f8   : > { %9109 = vmatpush3.msra.mxu0 %v6266_v0  ;;  %9162 = vmatprep.subr.mxu1 %v6378_v9  ;;  %v6331_v0 = vld [vmem:[%s17664_s5 + $0xd10] sm:$0xff] }
 0x5f9   : > { %9110 = vmatprep.subr.mxu0 %v6281_v55  ;;  %9163 = vmatpush3.msra.mxu1 %v6362_v60  ;;  %v6330_v55 = vld [vmem:[%s17664_s5 + $0xd08] sm:$0xff] }
 0x5fa   : > { %9111 = vmatpush3.msra.mxu0 %v6265_v46  ;;  %9164 = vmatprep.subr.mxu1 %v6377_v1  ;;  %v6426_v60 = vld [vmem:[%s17664_s5 + $0x1008] sm:$0xff]  ;;  %v6329_v46 = vld [vmem:[%s17664_s5 + $0xd00] sm:$0xff] }
 0x5fb   : > { %7361 = vmatmul.mubr.f32.vlgmr.msra.gmra.mxu0 %v5901_v38  ;;  %7436 = vmatprep.subr.mxu0 %v18242_v54  ;;  %v6425_v1 = vld [vmem:[%s17664_s5 + $0x1000] sm:$0xff]  ;;  %v6352_v38 = vld [vmem:[%s17664_s5 + $0xdb8] sm:$0xff] }
 0x5fc   : > { %9165 = vmatpush3.msra.mxu1 %v6361_v51  ;;  %7437 = vmatpush1.msra.mxu0 %v6344_v24  ;;  %v6424_v51 = vld [vmem:[%s17664_s5 + $0xff8] sm:$0xff]  ;;  %v6351_v24 = vld [vmem:[%s17664_s5 + $0xdb0] sm:$0xff] }
 0x5fd   : > { %8791 = vmatprep.mubr.msk.f32.mxu0 %vm1565_vm1, %v5906_v25  ;;  %9166 = vmatprep.subr.mxu1 %v6376_v52  ;;  %v6423_v52 = vld [vmem:[%s17664_s5 + $0xff0] sm:$0xff]  ;;  %v6350_v25 = vld [vmem:[%s17664_s5 + $0xda8] sm:$0xff] }
 0x5fe   : > { %7438 = vmatprep.subr.mxu0 %v18242_v54  ;;  %9167 = vmatpush3.msra.mxu1 %v6360_v45  ;;  %v6422_v45 = vld [vmem:[%s17664_s5 + $0xfe8] sm:$0xff] }
 0x5ff   : > { %7439 = vmatpush1.msra.mxu0 %v6343_v7  ;;  %9168 = vmatprep.subr.mxu1 %v6375_v12  ;;  %v6349_v7 = vld [vmem:[%s17664_s5 + $0xda0] sm:$0xff] }
 0x600   : > { %7440 = vmatprep.subr.mxu0 %v18242_v54  ;;  %9169 = vmatpush3.msra.mxu1 %v6359_v61  ;;  %v6421_v12 = vld [vmem:[%s17664_s5 + $0xfe0] sm:$0xff]  ;;  %v17354_v61 = vpop.permute.xlu0 %9374 }
 0x601   : > { %7441 = vmatpush1.msra.mxu0 %v6342_v6  ;;  %9170 = vmatprep.subr.mxu1 %v6374_v31  ;;  %v8902_v43 = vpop.f32.mrf.mxu0  ;;  %v6348_v6 = vld [vmem:[%s17664_s5 + $0xd98] sm:$0xff] }
 0x602   : > { %7442 = vmatprep.subr.mxu0 %v18242_v54  ;;  %9171 = vmatpush3.msra.mxu1 %v6358_v2  ;;  %v6420_v2 = vld [vmem:[%s17664_s5 + $0xfd8] sm:$0xff] }
 0x603   : > { %7443 = vmatpush1.msra.mxu0 %v6341_v26  ;;  %9172 = vmatprep.subr.mxu1 %v6373_v50  ;;  %v8903_v41 = vpop.f32.mrf.mxu0  ;;  %v6347_v26 = vld [vmem:[%s17664_s5 + $0xd90] sm:$0xff] }
 0x604   : > { %7444 = vmatprep.subr.mxu0 %v18242_v54  ;;  %9173 = vmatpush3.msra.mxu1 %v6357_v21  ;;  %v17223_v42 = vadd.f32 %v8903_v41, %v8902_v43  ;;  %v9377_v21 = vunpack.i.h.bf16 %v17354_v61  ;;  %v9376_v43 = vunpack.i.l.bf16 %v17354_v61  ;;  %v5835_v41 = vsel %vm1565_vm1, %v9367_v44, %v17158_v15 }
 0x605   : > { %7445 = vmatpush1.msra.mxu0 %v6340_v10  ;;  %9174 = vmatprep.subr.mxu1 %v6372_v13  ;;  %v6419_v10 = vld [vmem:[%s17664_s5 + $0xfd0] sm:$0xff] }
 0x606   : > { %7446 = vmatprep.subr.mxu0 %v18242_v54  ;;  %9175 = vmatpush3.msra.mxu1 %v6356_v11  ;;  %v6346_v11 = vld [vmem:[%s17664_s5 + $0xd88] sm:$0xff]  ;;  %v5839_v44 = vsel %vm1565_vm1, %v9376_v43, %v9377_v21 }
 0x607   : > { %7447 = vmatpush1.msra.mxu0 %v6339_v63  ;;  %9176 = vmatprep.subr.mxu1 %v6371_v16  ;;  %v6418_v63 = vld [vmem:[%s17664_s5 + $0xfc8] sm:$0xff] }
 0x608   : > { %7448 = vmatprep.subr.mxu0 %v18242_v54  ;;  %9177 = vmatpush3.msra.mxu1 %v6355_v48  ;;  %v6345_v48 = vld [vmem:[%s17664_s5 + $0xd80] sm:$0xff] }
 0x609   : > { %7449 = vmatpush1.msra.mxu0 %v6338_v39  ;;  %9178 = vmatprep.subr.mxu1 %v6370_v62  ;;  %v6417_v39 = vld [vmem:[%s17664_s5 + $0xfc0] sm:$0xff]  ;;  %v6400_v62 = vld [vmem:[%s17664_s5 + $0xf38] sm:$0xff] }
 0x60a   : > { %7450 = vmatprep.subr.mxu0 %v18242_v54  ;;  %9179 = vmatpush3.msra.mxu1 %v6354_v22  ;;  %v6415_v22 = vld [vmem:[%s17664_s5 + $0xfb0] sm:$0xff] }
 0x60b   : > { %7451 = vmatpush1.msra.mxu0 %v6337_v29  ;;  %9180 = vmatprep.subr.mxu1 %v6369_v36  ;;  %v6399_v29 = vld [vmem:[%s17664_s5 + $0xf30] sm:$0xff]  ;;  %v6398_v36 = vld [vmem:[%s17664_s5 + $0xf28] sm:$0xff] }
 0x60c   : > { %7452 = vmatprep.subr.mxu0 %v18242_v54  ;;  %9181 = vmatpush3.msra.mxu1 %v6353_v53  ;;  %v6413_v53 = vld [vmem:[%s17664_s5 + $0xfa0] sm:$0xff] }
 0x60d   : > { %7453 = vmatpush1.msra.mxu0 %v6336_v30  ;;  %7574 = vmatmul.mubr.f32.vlgmr.msra.gmra.mxu1 %v5907_v20  ;;  %v6438_v30 = vld [vmem:[%s17664_s5 + $0x1068] sm:$0xff]  ;;  %v6397_v20 = vld [vmem:[%s17664_s5 + $0xf20] sm:$0xff] }
 0x60e   : > { %7649 = vmatprep.subr.mxu1 %v18242_v54  ;;  %7454 = vmatprep.subr.mxu0 %v18242_v54 }
 0x60f   : > { %7650 = vmatpush1.msra.mxu1 %v6432_v3  ;;  %8792 = vmatprep.mubr.msk.f32.mxu1 %vm1565_vm1, %v5912_v23  ;;  %v6412_v3 = vld [vmem:[%s17664_s5 + $0xf98] sm:$0xff]  ;;  %v6437_v23 = vld [vmem:[%s17664_s5 + $0x1060] sm:$0xff] }
 0x610   : > { %7455 = vmatpush1.msra.mxu0 %v6335_v14  ;;  %7651 = vmatprep.subr.mxu1 %v18242_v54  ;;  %v6396_v14 = vld [vmem:[%s17664_s5 + $0xf18] sm:$0xff] }
 0x611   : > { %7456 = vmatprep.subr.mxu0 %v18242_v54  ;;  %7652 = vmatpush1.msra.mxu1 %v6431_v17  ;;  %v6411_v17 = vld [vmem:[%s17664_s5 + $0xf90] sm:$0xff] }
 0x612   : > { %7457 = vmatpush1.msra.mxu0 %v6334_v49  ;;  %7653 = vmatprep.subr.mxu1 %v18242_v54  ;;  %v6436_v49 = vld [vmem:[%s17664_s5 + $0x1058] sm:$0xff] }
 0x613   : > { %7458 = vmatprep.subr.mxu0 %v18242_v54  ;;  %7654 = vmatpush1.msra.mxu1 %v6430_v4  ;;  %v17292_v19 = vpop.f32.mrf.mxu1 }
 0x614   : > { %7459 = vmatpush1.msra.mxu0 %v6333_v35  ;;  %7655 = vmatprep.subr.mxu1 %v18242_v54  ;;  %v6395_v35 = vld [vmem:[%s17664_s5 + $0xf10] sm:$0xff] }
 0x615   : > { %7460 = vmatprep.subr.mxu0 %v18242_v54  ;;  %7656 = vmatpush1.msra.mxu1 %v6429_v40  ;;  %v6865_v9 = vpop.f32.mrf.mxu1  ;;  %v6410_v40 = vld [vmem:[%s17664_s5 + $0xf88] sm:$0xff] }
 0x616   : > { %7461 = vmatpush1.msra.mxu0 %v6332_v28  ;;  %7657 = vmatprep.subr.mxu1 %v18242_v54  ;;  %v6435_v28 = vld [vmem:[%s17664_s5 + $0x1050] sm:$0xff]  ;;  %v6409_v9 = vld [vmem:[%s17664_s5 + $0xf80] sm:$0xff] }
 0x617   : > { %7462 = vmatprep.subr.mxu0 %v18242_v54  ;;  %7658 = vmatpush1.msra.mxu1 %v6428_v58  ;;  %v6394_v58 = vld [vmem:[%s17664_s5 + $0xf08] sm:$0xff] }
 0x618   : > { %7463 = vmatpush1.msra.mxu0 %v6331_v0  ;;  %7659 = vmatprep.subr.mxu1 %v18242_v54 }
 0x619   : > { %7464 = vmatprep.subr.mxu0 %v18242_v54  ;;  %7660 = vmatpush1.msra.mxu1 %v6427_v32  ;;  %v6434_v32 = vld [vmem:[%s17664_s5 + $0x1048] sm:$0xff] }
 0x61a   : > { %7465 = vmatpush1.msra.mxu0 %v6330_v55  ;;  %7661 = vmatprep.subr.mxu1 %v18242_v54  ;;  %v5840_v55 = vsel %vm1565_vm1, %v9377_v21, %v17251_v59  ;;  %v6392_v59 = vld [vmem:[%s17664_s5 + $0xef8] sm:$0xff]  ;;  %v6386_v21 = vld [vmem:[%s17664_s5 + $0xec8] sm:$0xff] }
 0x61b   : > { %7466 = vmatprep.subr.mxu0 %v18242_v54  ;;  %7662 = vmatpush1.msra.mxu1 %v6426_v60  ;;  %v6393_v60 = vld [vmem:[%s17664_s5 + $0xf00] sm:$0xff] }
 0x61c   : > { %7467 = vmatpush1.msra.mxu0 %v6329_v46  ;;  %7663 = vmatprep.subr.mxu1 %v18242_v54  ;;  %v6408_v46 = vld [vmem:[%s17664_s5 + $0xf78] sm:$0xff] }
 0x61d   : > { %7484 = vmatprep.subr.mxu0 %v18242_v54  ;;  %7664 = vmatpush1.msra.mxu1 %v6425_v1  ;;  %v6433_v1 = vld [vmem:[%s17664_s5 + $0x1040] sm:$0xff] }
 0x61e   : > { %7485 = vmatpush2.msra.mxu0 %v6352_v38  ;;  %7665 = vmatprep.subr.mxu1 %v18242_v54  ;;  %v5911_v38 = vmax.f32 %v15758_v33, %v5840_v55  ;;  %v6390_v33 = vld [vmem:[%s17664_s5 + $0xee8] sm:$0xff] }
 0x61f   : > { %7486 = vmatprep.subr.mxu0 %v18242_v54  ;;  %7666 = vmatpush1.msra.mxu1 %v6424_v51  ;;  %v6407_v51 = vld [vmem:[%s17664_s5 + $0xf70] sm:$0xff] }
 0x620   : > { %7487 = vmatpush2.msra.mxu0 %v6351_v24  ;;  %7667 = vmatprep.subr.mxu1 %v18242_v54  ;;  %v6391_v24 = vld [vmem:[%s17664_s5 + $0xef0] sm:$0xff] }
 0x621   : > { %7488 = vmatprep.subr.mxu0 %v18242_v54  ;;  %7668 = vmatpush1.msra.mxu1 %v6423_v52  ;;  %v6406_v52 = vld [vmem:[%s17664_s5 + $0xf68] sm:$0xff] }
 0x622   : > { %7489 = vmatpush2.msra.mxu0 %v6350_v25  ;;  %7669 = vmatprep.subr.mxu1 %v18242_v54  ;;  %v6405_v25 = vld [vmem:[%s17664_s5 + $0xf60] sm:$0xff] }
 0x623   : > { %7490 = vmatprep.subr.mxu0 %v18242_v54  ;;  %7670 = vmatpush1.msra.mxu1 %v6422_v45  ;;  %v8937_v31 = vpop.f32.mrf.mxu0  ;;  %v6389_v45 = vld [vmem:[%s17664_s5 + $0xee0] sm:$0xff] }
 0x624   : > { %7491 = vmatpush2.msra.mxu0 %v6349_v7  ;;  %7671 = vmatprep.subr.mxu1 %v18242_v54  ;;  %v6404_v7 = vld [vmem:[%s17664_s5 + $0xf58] sm:$0xff] }
 0x625   : > { %7492 = vmatprep.subr.mxu0 %v18242_v54  ;;  %7672 = vmatpush1.msra.mxu1 %v6421_v12  ;;  %v8938_v50 = vpop.f32.mrf.mxu0  ;;  %v6388_v12 = vld [vmem:[%s17664_s5 + $0xed8] sm:$0xff] }
 0x626   : > { %7493 = vmatpush2.msra.mxu0 %v6348_v6  ;;  %7673 = vmatprep.subr.mxu1 %v18242_v54  ;;  %v8939_v13 = vadd.f32 %v8938_v50, %v8937_v31  ;;  %v6403_v6 = vld [vmem:[%s17664_s5 + $0xf50] sm:$0xff] }
 0x627   : > { %7494 = vmatprep.subr.mxu0 %v18242_v54  ;;  %7674 = vmatpush1.msra.mxu1 %v6420_v2  ;;  %v6387_v2 = vld [vmem:[%s17664_s5 + $0xed0] sm:$0xff] }
 0x628   : > { %7495 = vmatpush2.msra.mxu0 %v6347_v26  ;;  %7675 = vmatprep.subr.mxu1 %v18242_v54  ;;  %v6794_v16 = vadd.f32 %v8939_v13, %v17223_v42  ;;  %v5905_v42 = vmax.f32 %v15737_v34, %v5835_v41  ;;  %v5910_v34 = vmax.f32 %v15756_v57, %v5839_v44  ;;  %v6414_v57 = vld [vmem:[%s17664_s5 + $0xfa8] sm:$0xff]  ;;  %v6385_v41 = vld [vmem:[%s17664_s5 + $0xec0] sm:$0xff] }
 0x629   : > { %7496 = vmatprep.subr.mxu0 %v18242_v54  ;;  %7676 = vmatpush1.msra.mxu1 %v6419_v10  ;;  %v6402_v26 = vld [vmem:[%s17664_s5 + $0xf48] sm:$0xff]  ;;  %v5838_v13 = vsel %vm1565_vm1, %v9372_v27, %v9376_v43  ;;  %v7748_v43 = vld [vmem:[%s17666_s7 + $0x78] sm:$0xff] }
 0x62a   : > { %7497 = vmatpush2.msra.mxu0 %v6346_v11  ;;  %7677 = vmatprep.subr.mxu1 %v18242_v54  ;;  %v6864_v15 = vadd.f32 %v17292_v19, %v6794_v16  ;;  %v6401_v11 = vld [vmem:[%s17664_s5 + $0xf40] sm:$0xff]  ;;  %v5909_v16 = vmax.f32 %v15558_v5, %v5838_v13 }
 0x62b   : > { %7498 = vmatprep.subr.mxu0 %v18242_v54  ;;  %7678 = vmatpush1.msra.mxu1 %v6418_v63 }
 0x62c   : > { %7499 = vmatpush2.msra.mxu0 %v6345_v48  ;;  %7679 = vmatprep.subr.mxu1 %v18242_v54  ;;  %v17411_v37 = vadd.f32 %v6864_v15, %v17055_v18  ;;  %v6439_v18 = vld [vmem:[%s17664_s5 + $0x1070] sm:$0xff] }
 0x62d   : > { %7501 = vmatmul.mubr.f32.vlgmr.msra.gmra.mxu0 %v5905_v42  ;;  %9185 = vmatprep.subr.mxu0 %v6416_v56  ;;  %v7747_v15 = vld [vmem:[%s17666_s7 + $0x70] sm:$0xff]  ;;  %v7746_v42 = vld [vmem:[%s17666_s7 + $0x68] sm:$0xff] }
 0x62e   : > { %7680 = vmatpush1.msra.mxu1 %v6417_v39  ;;  %9186 = vmatpush3.msra.mxu0 %v6400_v62  ;;  %v7745_v39 = vld [vmem:[%s17666_s7 + $0x60] sm:$0xff]  ;;  %v7744_v62 = vld [vmem:[%s17666_s7 + $0x58] sm:$0xff] }
 0x62f   : > { %7643 = vmatprep.mubr.f32.mxu0 %v5910_v34  ;;  %7697 = vmatprep.subr.mxu1 %v18242_v54  ;;  %v7742_v34 = vld [vmem:[%s17666_s7 + $0x48] sm:$0xff] }
 0x630   : > { %9187 = vmatprep.subr.mxu0 %v6415_v22  ;;  %7698 = vmatpush2.msra.mxu1 %v6440_v47  ;;  %v7741_v47 = vld [vmem:[%s17666_s7 + $0x40] sm:$0xff] }
 0x631   : > { %9188 = vmatpush3.msra.mxu0 %v6399_v29  ;;  %7699 = vmatprep.subr.mxu1 %v18242_v54 }
 0x632   : > { %9189 = vmatprep.subr.mxu0 %v6414_v57  ;;  %7700 = vmatpush2.msra.mxu1 %v6439_v18  ;;  %v7740_v57 = vld [vmem:[%s17666_s7 + $0x38] sm:$0xff]  ;;  %v7739_v18 = vld [vmem:[%s17666_s7 + $0x30] sm:$0xff] }
 0x633   : > { %9190 = vmatpush3.msra.mxu0 %v6398_v36  ;;  %7701 = vmatprep.subr.mxu1 %v18242_v54  ;;  %v7738_v36 = vld [vmem:[%s17666_s7 + $0x28] sm:$0xff] }
 0x634   : > { %9191 = vmatprep.subr.mxu0 %v6413_v53  ;;  %7702 = vmatpush2.msra.mxu1 %v6438_v30  ;;  %v7737_v53 = vld [vmem:[%s17666_s7 + $0x20] sm:$0xff]  ;;  %v7736_v30 = vld [vmem:[%s17666_s7 + $0x18] sm:$0xff] }
 0x635   : > { %9192 = vmatpush3.msra.mxu0 %v6397_v20  ;;  %7703 = vmatprep.subr.mxu1 %v18242_v54  ;;  %v9007_v4 = vpop.f32.mrf.mxu1  ;;  %v7735_v20 = vld [vmem:[%s17666_s7 + $0x10] sm:$0xff] }
 0x636   : > { %9193 = vmatprep.subr.mxu0 %v6412_v3  ;;  %7704 = vmatpush2.msra.mxu1 %v6437_v23  ;;  %v7734_v23 = vld [vmem:[%s17666_s7 + $0x8] sm:$0xff] }
 0x637   : > { %9194 = vmatpush3.msra.mxu0 %v6396_v14  ;;  %7705 = vmatprep.subr.mxu1 %v18242_v54  ;;  %v9008_v19 = vpop.f32.mrf.mxu1 }
 0x638   : > { %9195 = vmatprep.subr.mxu0 %v6411_v17  ;;  %7706 = vmatpush2.msra.mxu1 %v6436_v49  ;;  %v9009_v0 = vadd.f32 %v9008_v19, %v9007_v4  ;;  %v7733_v17 = vld [vmem:[%s17666_s7] sm:$0xff] }
 0x639   : > { %9196 = vmatpush3.msra.mxu0 %v6395_v35  ;;  %7707 = vmatprep.subr.mxu1 %v18242_v54 }
 0x63a   : > { %9197 = vmatprep.subr.mxu0 %v6410_v40  ;;  %7708 = vmatpush2.msra.mxu1 %v6435_v28 }
 0x63b   : > { %9198 = vmatpush3.msra.mxu0 %v6394_v58  ;;  %7709 = vmatprep.subr.mxu1 %v18242_v54 }
 0x63c   : > { %9199 = vmatprep.subr.mxu0 %v6409_v9  ;;  %7710 = vmatpush2.msra.mxu1 %v6434_v32 }
 0x63d   : > { %9200 = vmatpush3.msra.mxu0 %v6393_v60  ;;  %7711 = vmatprep.subr.mxu1 %v18242_v54 }
 0x63e   : > { %9201 = vmatprep.subr.mxu0 %v6408_v46  ;;  %7712 = vmatpush2.msra.mxu1 %v6433_v1 }
 0x63f   : > { %9202 = vmatpush3.msra.mxu0 %v6392_v59  ;;  %7714 = vmatmul.mubr.f32.vlgmr.msra.gmra.mxu1 %v5911_v38 }
 0x640   : > { %9203 = vmatprep.subr.mxu0 %v6407_v51 }
 0x641   : > { %9204 = vmatpush3.msra.mxu0 %v6391_v24 }
 0x642   : > { %9205 = vmatprep.subr.mxu0 %v6406_v52 }
 0x643   : > { %9206 = vmatpush3.msra.mxu0 %v6390_v33 }
 0x644   : > { %9207 = vmatprep.subr.mxu0 %v6405_v25 }
 0x645   : > { %9208 = vmatpush3.msra.mxu0 %v6389_v45  ;;  %v8972_v31 = vpop.f32.mrf.mxu0 }
 0x646   : > { %9209 = vmatprep.subr.mxu0 %v6404_v7 }
 0x647   : > { %9210 = vmatpush3.msra.mxu0 %v6388_v12  ;;  %v8973_v50 = vpop.f32.mrf.mxu0 }
 0x648   : > { %9211 = vmatprep.subr.mxu0 %v6403_v6  ;;  %v8974_v10 = vadd.f32 %v8973_v50, %v8972_v31  ;;  %v8793_v6 = vld [vmem:[%s17665_s6] ss:$0 sm:$0xff] }
 0x649   : > { %9212 = vmatpush3.msra.mxu0 %v6387_v2  ;;  %v8794_v50 = vld [vmem:[%s17667_s8] ss:$0 sm:$0xff] }
 0x64a   : > { %9213 = vmatprep.subr.mxu0 %v6402_v26  ;;  %v7007_v63 = vadd.f32 %v9009_v0, %v8974_v10 }
 0x64b   : > { %9214 = vmatpush3.msra.mxu0 %v6386_v21 }
 0x64c   : > { %9215 = vmatprep.subr.mxu0 %v6401_v11 }
 0x64d   : > { %9216 = vmatpush3.msra.mxu0 %v6385_v41 }
 0x64e   : > { %7644 = vmatmul.mubr.f32.vlgmr.msra.gmra.mxu0 %v5909_v16  ;;  %9237 = vmatprep.subr.mxu0 %v18242_v54 }
 0x64f   : > { %9238 = vmatpush3.msra.mxu0 %v7748_v43  ;;  %9269 = vmatprep.mubr.msk.f32.mxu0 %vm9586_vm2, %v18242_v54 }
 0x650   : > { %9239 = vmatprep.subr.mxu0 %v18242_v54 }
 0x651   : > { %9240 = vmatpush3.msra.mxu0 %v7747_v15 }
 0x652   : > { %9241 = vmatprep.subr.mxu0 %v18242_v54 }
 0x653   : > { %9242 = vmatpush3.msra.mxu0 %v7746_v42 }
 0x654   : > { %9243 = vmatprep.subr.mxu0 %v18242_v54 }
 0x655   : > { %9244 = vmatpush3.msra.mxu0 %v7745_v39 }
 0x656   : > { %9245 = vmatprep.subr.mxu0 %v18242_v54 }
 0x657   : > { %v9042_v8 = vpop.f32.mrf.mxu1  ;;  %9246 = vmatpush3.msra.mxu0 %v7744_v62 }
 0x658   : > { %9247 = vmatprep.subr.mxu0 %v18242_v54 }
 0x659   : > { %v9043_v27 = vpop.f32.mrf.mxu1 }
 0x65a   : > { %v9044_v61 = vadd.f32 %v9043_v27, %v9042_v8 }
 0x677   : > { %v7076_v48 = vpop.f32.mrf.mxu0 }
 0x678   : > { %v7077_v56 = vadd.f32 %v7076_v48, %v7007_v63 }
 0x679   : > { %v7078_v44 = vpop.f32.mrf.mxu0 }
 0x67a   : > { %v7720_v5 = vadd.f32 %v17411_v37, %v7077_v56  ;;  %v7743_v37 = vld [vmem:[%s17666_s7 + $0x50] sm:$0xff] }
 0x67b   : > { %9248 = vmatpush3.msra.mxu0 %v7743_v37 }
 0x67c   : > { %9249 = vmatprep.subr.mxu0 %v18242_v54 }
 0x67d   : > { %9250 = vmatpush3.msra.mxu0 %v7742_v34 }
 0x67e   : > { %9251 = vmatprep.subr.mxu0 %v18242_v54 }
 0x67f   : > { %9252 = vmatpush3.msra.mxu0 %v7741_v47 }
 0x680   : > { %9253 = vmatprep.subr.mxu0 %v18242_v54 }
 0x681   : > { %9254 = vmatpush3.msra.mxu0 %v7740_v57 }
 0x682   : > { %9255 = vmatprep.subr.mxu0 %v18242_v54 }
 0x683   : > { %9256 = vmatpush3.msra.mxu0 %v7739_v18 }
 0x684   : > { %9257 = vmatprep.subr.mxu0 %v18242_v54 }
 0x685   : > { %9258 = vmatpush3.msra.mxu0 %v7738_v36 }
 0x686   : > { %9259 = vmatprep.subr.mxu0 %v18242_v54 }
 0x687   : > { %9260 = vmatpush3.msra.mxu0 %v7737_v53 }
 0x688   : > { %9261 = vmatprep.subr.mxu0 %v18242_v54 }
 0x689   : > { %v7289_v22 = vpop.f32.mrf.mxu1  ;;  %9262 = vmatpush3.msra.mxu0 %v7736_v30 }
 0x68a   : > { %9263 = vmatprep.subr.mxu0 %v18242_v54 }
 0x68b   : > { %v7291_v29 = vpop.f32.mrf.mxu1  ;;  %9264 = vmatpush3.msra.mxu0 %v7735_v20 }
 0x68c   : > { %9265 = vmatprep.subr.mxu0 %v18242_v54 }
 0x68d   : > { %9266 = vmatpush3.msra.mxu0 %v7734_v23 }
 0x68e   : > { %9267 = vmatprep.subr.mxu0 %v18242_v54 }
 0x68f   : > { %9268 = vmatpush3.msra.mxu0 %v7733_v17 }
 0x699   : > { %v9077_v3 = vpop.f32.mrf.mxu0 }
 0x69b   : > { %v9078_v14 = vpop.f32.mrf.mxu0 }
 0x69c   : > { %v9079_v49 = vadd.f32 %v9078_v14, %v9077_v3 }
 0x69e   : > { %v7220_v4 = vadd.f32 %v9079_v49, %v9044_v61 }
 0x6a0   : > { %v7290_v35 = vadd.f32 %v7289_v22, %v7220_v4 }
 0x6a2   : > { %v7721_v40 = vadd.f32 %v7720_v5, %v7290_v35 }
 0x6ab   : > { %v9147_v9 = vpop.f32.mrf.mxu1 }
 0x6ad   : > { %v9148_v32 = vpop.f32.mrf.mxu1 }
 0x6ae   : > { %v9149_v38 = vadd.f32 %v9148_v32, %v9147_v9 }
 0x6bb   : > { %v9112_v28 = vpop.f32.mrf.mxu0 }
 0x6bd   : > { %v9113_v19 = vpop.f32.mrf.mxu0 }
 0x6be   : > { %v9114_v59 = vadd.f32 %v9113_v19, %v9112_v28 }
 0x6c0   : > { %v7433_v24 = vadd.f32 %v9149_v38, %v9114_v59 }
 0x6cd   : > { %v9182_v55 = vpop.f32.mrf.mxu1 }
 0x6cf   : > { %v9183_v60 = vpop.f32.mrf.mxu1 }
 0x6d0   : > { %v9184_v52 = vadd.f32 %v9183_v60, %v9182_v55 }
 0x6ed   : > { %v7502_v58 = vpop.f32.mrf.mxu0 }
 0x6ee   : > { %v7503_v33 = vadd.f32 %v7502_v58, %v7433_v24 }
 0x6ef   : > { %v7504_v0 = vpop.f32.mrf.mxu0 }
 0x6f0   : > { %v7722_v7 = vadd.f32 %v7721_v40, %v7503_v33 }
 0x6ff   : > { %v7715_v46 = vpop.f32.mrf.mxu1 }
 0x701   : > { %v7717_v1 = vpop.f32.mrf.mxu1 }
 0x70e   : > { %v9217_v51 = vpop.f32.mrf.mxu0 }
 0x710   : > { %v9218_v54 = vpop.f32.mrf.mxu0 }
 0x711   : > { %v9219_v25 = vadd.f32 %v9218_v54, %v9217_v51 }
 0x713   : > { %v7646_v45 = vadd.f32 %v9219_v25, %v9184_v52 }
 0x715   : > { %v7716_v12 = vadd.f32 %v7715_v46, %v7646_v45 }
 0x717   : > { %v7723_v31 = vadd.f32 %v7722_v7, %v7716_v12 }
 0x719   : > { %v7731_v2 = vadd.f32 %v8793_v6, %v7723_v31 }
 0x71b   : > { %v7732_v26 = vmax.f32 %v7731_v2, 0.0 }
 0x71d   : > { %9270 = vmatmul.mubr.f32.vlgmr.msra.gmra.mxu0 %v7732_v26 }
 0x7dd   : > { %v7822_v21 = vpop.f32.mrf.mxu0 }
 0x7de   : > { %v7823_v10 = vadd.f32 %v8794_v50, %v7822_v21 }
 0x7df   : > { %v9271_v13 = vpop.f32.mrf.mxu0 }
 0x7e0   : > { %7826 = vst [vmem:[%s325_s28] sm:$0xff] %v7823_v10 }
 0x7e1   : > { %9535 = shalt.err (!%p9532_p3)
}
 0x7e2   : > { %s9536_s26 = scalar_lea.hbm %s17624_s21, 128  ;;  %s9540_s28 = scalar_lea.hbm %s17668_s9, 256 }
 0x7e3   : > { %p9537_p4 = scmp.ne.s32.totalorder %s17624_s21, %s9536_s26  ;;  %p9541_p9 = scmp.lt.s32.totalorder %s17624_s21, %s17668_s9 }
 0x7e4   : > { %p9542_p10 = scmp.lt.s32.totalorder %s9540_s28, %s9536_s26 }
 0x7e5   : > { %p9538_p7 = pnand %p9537_p4, %p9676_p5 }
 0x7e6   : > { %p9543_p11 = por %p9542_p10, %p9541_p9 }
 0x7e7   : > { %p9539_p8 = pneg %p9538_p7 }
 0x7e9   : > { %p9544_p12 = pnand %p9543_p11, %p9539_p8 }
 0x7eb   : > { %9547 = shalt.err (!%p9544_p12)
}
 0x7ec   : > { %9276 = dma.vmem_to_hbm [thread:$0]  (%p9676_p5), %s7842_s14, 128, %s17624_s21, %s7828_s22  }
 0x7ed PF: > { %p9282_p13 = scmp.ge.s32.totalorder %s9582_s12, 2  ;;  %s7853_s25 = sand.u32 1, %s9570_s30  }
 0x7ee   : > { %s7854_s24 = scalar_lea.sflag [#allocation4], %s7853_s25 }
 0x7ef   : > { %p9279_p0 = pnand %p9282_p13, %p9680_p6 }
 0x7f1   : > { %p9280_p1 = pneg %p9279_p0 }
 0x7f3   : > { %9565 = dma.done.wait (%p9280_p1), %s7854_s24, 128  }
 0x7f4   : > { %9567 = vsyncadd (%p9280_p1), %s7854_s24, 4294967168  ;;  %p19_p2 = scmp.ge.s32.totalorder %s9663_s15, 4   ;;  %s18246_s30 = smov %s9574_s10 }
 0x7f5   : > { %s18247_s10 = smov %s9578_s11  ;;  %s18248_s11 = smov %s9674_s18 }
 0x7f6   : > { %s18249_s12 = smov %s9663_s15  ;;  %21 = sbr.rel (!%p19_p2) target bundleno = 3 (0x3), region = 95 }
 0x7fb   :  { %7859 = vsyncpa [#allocation4], 1 }
 0x7fc   :  { %7861 = vsyncpa [#allocation4 + $0x1], 1 }

</bundles_post_ra>
